<compile_context>
chip_gen: v5e
topology: v5e:2x2
jax: 0.10.0
libtpu: 0.0.40
codegen_flags: <defaults>
</compile_context>

<pallas_src>
import functools
import math

import jax
import jax.numpy as jnp
from jax import lax
from jax.experimental import pallas as pl
from jax.experimental.pallas import tpu as pltpu


# ----------------------------- Pallas kernel ------------------------------

def _conv_rows_kernel(x_ref, w_ref, o_ref, *, ks, act):
    """One batch element: stride-1 ks x ks conv with fused activation.

    x_ref: (Ho+ks-1, Wo+ks-1, Cin) bf16  padded input, channels-last
    w_ref: (ks*ks, Cin, Np)        bf16  per-tap weight matrices
    o_ref: (Ho, Wo, Np)                  output
    """
    Ho, Wo, Np = o_ref.shape

    def row(oh, carry):
        acc = jnp.zeros((Wo, Np), jnp.float32)
        for kh in range(ks):                              # static unroll, ks*ks dots
            for kw in range(ks):
                xs = x_ref[oh + kh, pl.ds(kw, Wo), :]     # (Wo, Cin), contiguous
                acc = acc + jnp.dot(xs, w_ref[kh * ks + kw],
                                    preferred_element_type=jnp.float32)
        if act == "leaky_relu":
            acc = jnp.maximum(acc, 0.2 * acc)             # single VALU op
        elif act == "sigmoid":
            acc = pl.reciprocal(1.0 + jnp.exp(-acc), approx=True)  # EUP slot
        o_ref[oh, :, :] = acc.astype(o_ref.dtype)
        return carry

    lax.fori_loop(0, Ho, row, 0)


# --------------------------- VMEM budget helpers ---------------------------

@functools.lru_cache(maxsize=None)
def _vmem_budget_bytes():
    try:
        return int(pltpu.get_tpu_info().vmem_capacity_bytes) * 3 // 4
    except Exception:
        return 48 * 1024 * 1024            # v7x-safe fallback (64 MiB part)


def _vmem_limit(x_bytes, w_bytes, o_bytes):
    needed = 2 * (x_bytes + o_bytes) + 2 * w_bytes + (4 << 20)
    return int(min(_vmem_budget_bytes(), max(needed, 16 << 20)))


# ------------------------------- conv wrapper ------------------------------

def conv2d_act(x_nhwc, w_oihw, *, k, stride, pad, act, out_dtype):
    """PyTorch-semantics Conv2d (zero pad, bias=False) + fused activation."""
    N, H, W, C = x_nhwc.shape
    Cout = w_oihw.shape[0]

    # Single prep pass: cast to bf16 + zero pad (XLA fuses convert into pad).
    xb = jnp.pad(x_nhwc.astype(jnp.bfloat16),
                 ((0, 0), (pad, pad), (pad, pad), (0, 0)))

    if stride == 2:
        # Rewrite the stride-2 4x4 conv as a stride-1 2x2 conv over a
        # space-to-depth input so every in-kernel read is contiguous.
        assert k == 4 and pad == 1 and H % 2 == 0 and W % 2 == 0
        Hp, Wp = H + 2 * pad, W + 2 * pad
        xin = (xb.reshape(N, Hp // 2, 2, Wp // 2, 2, C)
                 .transpose(0, 1, 3, 2, 4, 5)
                 .reshape(N, Hp // 2, Wp // 2, 4 * C))
        ks, Cin = 2, 4 * C
        Ho, Wo = H // 2, W // 2
        w_taps = (w_oihw.reshape(Cout, C, 2, 2, 2, 2)      # [o,c,dh,ih,dw,iw]
                        .transpose(2, 4, 3, 5, 1, 0)       # [dh,dw,ih,iw,c,o]
                        .reshape(4, 4 * C, Cout))
    else:
        assert stride == 1
        xin = xb
        ks, Cin = k, C
        Ho, Wo = H + 2 * pad - k + 1, W + 2 * pad - k + 1
        w_taps = w_oihw.transpose(2, 3, 1, 0).reshape(k * k, C, Cout)

    # Lane-pad only the tiny Cout=1 head; everything else stores full-extent
    # (no padded-column passes on the large feature maps).
    Np = Cout if Cout >= 64 else 128
    if Np != Cout:
        w_taps = jnp.pad(w_taps, ((0, 0), (0, 0), (0, Np - Cout)))
    w_taps = w_taps.astype(jnp.bfloat16)

    Hs, Ws = Ho + ks - 1, Wo + ks - 1
    assert xin.shape[1] == Hs and xin.shape[2] == Ws

    out_bytes = jnp.dtype(out_dtype).itemsize
    vmem_limit = _vmem_limit(Hs * Ws * Cin * 2,
                             ks * ks * Cin * Np * 2,
                             Ho * Wo * Np * out_bytes)

    # TODO(synk): row-strip tiling (manual DMA of overlapping row windows) for
    # images whose per-sample block exceeds the VMEM budget.
    out = pl.pallas_call(
        functools.partial(_conv_rows_kernel, ks=ks, act=act),
        out_shape=jax.ShapeDtypeStruct((N, Ho, Wo, Np), out_dtype),
        grid=(N,),
        in_specs=[
            pl.BlockSpec((None, Hs, Ws, Cin), lambda n: (n, 0, 0, 0)),
            pl.BlockSpec((ks * ks, Cin, Np), lambda n: (0, 0, 0)),
        ],
        out_specs=pl.BlockSpec((None, Ho, Wo, Np), lambda n: (n, 0, 0, 0)),
        compiler_params=pltpu.CompilerParams(
            dimension_semantics=("parallel",),
            vmem_limit_bytes=vmem_limit),
    )(xin, w_taps)

    if Np != Cout:
        out = out[..., :Cout]
    return out


# ------------------------------- JAX glue ---------------------------------

def _nearest_half(m_nhwc):
    """F.interpolate(mode='nearest', size=(H//2, W//2)) on NHWC."""
    N, H, W, C = m_nhwc.shape
    Ho, Wo = H // 2, W // 2
    ri = (jnp.arange(Ho) * H) // Ho            # floor(i * in/out), PyTorch nearest
    ci = (jnp.arange(Wo) * W) // Wo
    return m_nhwc[:, ri][:, :, ci]


def _spectral_normalize(w, key, n_iter=5):
    """PyTorch spectral_norm semantics: W / sigma_max via power iteration."""
    cout = w.shape[0]
    w2 = w.reshape(cout, -1)
    u = jax.random.normal(key, (cout,), jnp.float32)
    u = u / (jnp.linalg.norm(u) + 1e-12)
    v = None
    for _ in range(n_iter):
        v = w2.T @ u
        v = v / (jnp.linalg.norm(v) + 1e-12)
        u = w2 @ v
        u = u / (jnp.linalg.norm(u) + 1e-12)
    sigma = jnp.dot(u, w2 @ v)
    return w / sigma


def init_discriminator_params(key, in_channels):
    shapes = [
        (64, in_channels, 4, 4),
        (128, 64 + 1, 4, 4),
        (256, 128 + 1, 4, 4),
        (512, 256 + 1, 3, 3),
        (1, 512, 3, 3),
    ]
    params = []
    for s in shapes:
        key, kw, ku = jax.random.split(key, 3)
        fan_in = s[1] * s[2] * s[3]
        bound = 1.0 / math.sqrt(fan_in)
        w = jax.random.uniform(kw, s, jnp.float32, -bound, bound)
        params.append(_spectral_normalize(w, ku))           # bias=False (SN on)
    return params


def discriminator_forward(x_nchw, params, use_sigmoid=True):
    """x: (N, C, H, W) -> (conv5, [conv1..conv5]) in NCHW (PyTorch semantics)."""
    w1, w2, w3, w4, w5 = params
    x = jnp.transpose(x_nchw, (0, 2, 3, 1))                  # NCHW -> NHWC
    mask = x[..., -1:]                                       # last channel

    c1 = conv2d_act(x, w1, k=4, stride=2, pad=1, act="leaky_relu",
                    out_dtype=jnp.bfloat16)
    mask = _nearest_half(mask)
    c1 = jnp.concatenate([c1, mask.astype(c1.dtype)], axis=-1)      # 64 + 1 ch

    c2 = conv2d_act(c1, w2, k=4, stride=2, pad=1, act="leaky_relu",
                    out_dtype=jnp.bfloat16)
    mask = _nearest_half(mask)
    c2 = jnp.concatenate([c2, mask.astype(c2.dtype)], axis=-1)      # 128 + 1 ch

    c3 = conv2d_act(c2, w3, k=4, stride=2, pad=1, act="leaky_relu",
                    out_dtype=jnp.bfloat16)
    mask = _nearest_half(mask)
    c3 = jnp.concatenate([c3, mask.astype(c3.dtype)], axis=-1)      # 256 + 1 ch

    c4 = conv2d_act(c3, w4, k=3, stride=1, pad=1, act="leaky_relu",
                    out_dtype=jnp.bfloat16)
    c5 = conv2d_act(c4, w5, k=3, stride=1, pad=1,
                    act="sigmoid" if use_sigmoid else "none",
                    out_dtype=jnp.float32)

    # PyTorch module returns NCHW; the transposes are interface plumbing.
    to_nchw = lambda t: jnp.transpose(t, (0, 3, 1, 2))
    feats = [to_nchw(c1), to_nchw(c2), to_nchw(c3), to_nchw(c4), to_nchw(c5)]
    return to_nchw(c5), feats


if __name__ == "__main__":
    key = jax.random.PRNGKey(0)
    k_x, k_p = jax.random.split(key)

    in_channels = 4                       # last channel plays the role of the mask
    x = jax.random.normal(k_x, (2, in_channels, 16, 16), jnp.float32)   # NCHW
    params = init_discriminator_params(k_p, in_channels)

    fwd = jax.jit(discriminator_forward)
    out, feats = fwd(x, params)
    out = jax.block_until_ready(out)

    assert out.shape == (2, 1, 2, 2), out.shape
    assert feats[0].shape == (2, 65, 8, 8), feats[0].shape
    assert feats[1].shape == (2, 129, 4, 4), feats[1].shape
    assert feats[2].shape == (2, 257, 2, 2), feats[2].shape
    assert feats[3].shape == (2, 512, 2, 2), feats[3].shape
    assert feats[4].shape == (2, 1, 2, 2), feats[4].shape
    # approx-reciprocal sigmoid can overshoot 1.0 by ~1e-4; allow tiny slack.
    assert bool(jnp.all((out >= -1e-2) & (out <= 1.0 + 1e-2))), "sigmoid range"
    print("KERNEL_OK")
</pallas_src>

<mosaic_0001>
module attributes {stable_mosaic.version = 11 : i64} {
  func.func @_conv_rows_kernel(%arg0: i32, %arg1: memref<1x9x9x16xbf16, #tpu.memory_space<vmem>>, %arg2: memref<4x16x64xbf16, #tpu.memory_space<vmem>>, %arg3: memref<1x8x8x64xbf16, #tpu.memory_space<vmem>>) attributes {dimension_semantics = [#tpu.dimension_semantics<parallel>], iteration_bounds = array<i64: 2>, scalar_prefetch = 0 : i64, scratch_operands = 0 : i64, tpu.core_type = #tpu.core_type<tc>, window_params = [{transform_indices = @transform_0, window_bounds = array<i64: 1, 9, 9, 16>}, {pipeline_mode = #tpu.pipeline_mode<synchronous>, transform_indices = @transform_1, window_bounds = array<i64: 4, 16, 64>}, {transform_indices = @transform_2, window_bounds = array<i64: 1, 8, 8, 64>}]} {
    %c0_i32 = arith.constant 0 : i32
    %c8_i32 = arith.constant 8 : i32
    %0 = arith.addi %c0_i32, %c8_i32 : i32
    %c1_i32 = arith.constant 1 : i32
    scf.for %arg4 = %c0_i32 to %0 step %c1_i32  : i32 {
      %cst = arith.constant 0.000000e+00 : f32
      %1 = vector.broadcast %cst : f32 to vector<8x64xf32>
      %c0_i32_1 = arith.constant 0 : i32
      %2 = arith.addi %arg4, %c0_i32_1 : i32
      %c0 = arith.constant 0 : index
      %3 = arith.index_cast %2 : i32 to index
      %c0_2 = arith.constant 0 : index
      %c0_3 = arith.constant 0 : index
      %4 = vector.load %arg1[%c0, %3, %c0_2, %c0_3] : memref<1x9x9x16xbf16, #tpu.memory_space<vmem>>, vector<1x1x8x16xbf16>
      %5 = vector.shape_cast %4 : vector<1x1x8x16xbf16> to vector<8x16xbf16>
      %c0_4 = arith.constant 0 : index
      %c0_5 = arith.constant 0 : index
      %c0_6 = arith.constant 0 : index
      %6 = vector.load %arg2[%c0_4, %c0_5, %c0_6] : memref<4x16x64xbf16, #tpu.memory_space<vmem>>, vector<1x16x64xbf16>
      %7 = vector.shape_cast %6 : vector<1x16x64xbf16> to vector<16x64xbf16>
      %cst_7 = arith.constant dense<0.000000e+00> : vector<8x64xf32>
      %8 = tpu.matmul %5, %7, %cst_7 {dimension_numbers = #tpu.dot_dimension_numbers<[1], [0], [0], [1], [0, 0, 1, 1], [], []>} : vector<8x16xbf16>, vector<16x64xbf16>, vector<8x64xf32> -> vector<8x64xf32>
      %9 = arith.addf %1, %8 : vector<8x64xf32>
      %c0_i32_8 = arith.constant 0 : i32
      %10 = arith.addi %arg4, %c0_i32_8 : i32
      %c0_9 = arith.constant 0 : index
      %11 = arith.index_cast %10 : i32 to index
      %c1 = arith.constant 1 : index
      %c0_10 = arith.constant 0 : index
      %12 = vector.load %arg1[%c0_9, %11, %c1, %c0_10] : memref<1x9x9x16xbf16, #tpu.memory_space<vmem>>, vector<1x1x8x16xbf16>
      %13 = vector.shape_cast %12 : vector<1x1x8x16xbf16> to vector<8x16xbf16>
      %c1_11 = arith.constant 1 : index
      %c0_12 = arith.constant 0 : index
      %c0_13 = arith.constant 0 : index
      %14 = vector.load %arg2[%c1_11, %c0_12, %c0_13] : memref<4x16x64xbf16, #tpu.memory_space<vmem>>, vector<1x16x64xbf16>
      %15 = vector.shape_cast %14 : vector<1x16x64xbf16> to vector<16x64xbf16>
      %cst_14 = arith.constant dense<0.000000e+00> : vector<8x64xf32>
      %16 = tpu.matmul %13, %15, %cst_14 {dimension_numbers = #tpu.dot_dimension_numbers<[1], [0], [0], [1], [0, 0, 1, 1], [], []>} : vector<8x16xbf16>, vector<16x64xbf16>, vector<8x64xf32> -> vector<8x64xf32>
      %17 = arith.addf %9, %16 : vector<8x64xf32>
      %c1_i32_15 = arith.constant 1 : i32
      %18 = arith.addi %arg4, %c1_i32_15 : i32
      %c0_16 = arith.constant 0 : index
      %19 = arith.index_cast %18 : i32 to index
      %c0_17 = arith.constant 0 : index
      %c0_18 = arith.constant 0 : index
      %20 = vector.load %arg1[%c0_16, %19, %c0_17, %c0_18] : memref<1x9x9x16xbf16, #tpu.memory_space<vmem>>, vector<1x1x8x16xbf16>
      %21 = vector.shape_cast %20 : vector<1x1x8x16xbf16> to vector<8x16xbf16>
      %c2 = arith.constant 2 : index
      %c0_19 = arith.constant 0 : index
      %c0_20 = arith.constant 0 : index
      %22 = vector.load %arg2[%c2, %c0_19, %c0_20] : memref<4x16x64xbf16, #tpu.memory_space<vmem>>, vector<1x16x64xbf16>
      %23 = vector.shape_cast %22 : vector<1x16x64xbf16> to vector<16x64xbf16>
      %cst_21 = arith.constant dense<0.000000e+00> : vector<8x64xf32>
      %24 = tpu.matmul %21, %23, %cst_21 {dimension_numbers = #tpu.dot_dimension_numbers<[1], [0], [0], [1], [0, 0, 1, 1], [], []>} : vector<8x16xbf16>, vector<16x64xbf16>, vector<8x64xf32> -> vector<8x64xf32>
      %25 = arith.addf %17, %24 : vector<8x64xf32>
      %c1_i32_22 = arith.constant 1 : i32
      %26 = arith.addi %arg4, %c1_i32_22 : i32
      %c0_23 = arith.constant 0 : index
      %27 = arith.index_cast %26 : i32 to index
      %c1_24 = arith.constant 1 : index
      %c0_25 = arith.constant 0 : index
      %28 = vector.load %arg1[%c0_23, %27, %c1_24, %c0_25] : memref<1x9x9x16xbf16, #tpu.memory_space<vmem>>, vector<1x1x8x16xbf16>
      %29 = vector.shape_cast %28 : vector<1x1x8x16xbf16> to vector<8x16xbf16>
      %c3 = arith.constant 3 : index
      %c0_26 = arith.constant 0 : index
      %c0_27 = arith.constant 0 : index
      %30 = vector.load %arg2[%c3, %c0_26, %c0_27] : memref<4x16x64xbf16, #tpu.memory_space<vmem>>, vector<1x16x64xbf16>
      %31 = vector.shape_cast %30 : vector<1x16x64xbf16> to vector<16x64xbf16>
      %cst_28 = arith.constant dense<0.000000e+00> : vector<8x64xf32>
      %32 = tpu.matmul %29, %31, %cst_28 {dimension_numbers = #tpu.dot_dimension_numbers<[1], [0], [0], [1], [0, 0, 1, 1], [], []>} : vector<8x16xbf16>, vector<16x64xbf16>, vector<8x64xf32> -> vector<8x64xf32>
      %33 = arith.addf %25, %32 : vector<8x64xf32>
      %cst_29 = arith.constant 2.000000e-01 : f32
      %34 = vector.broadcast %cst_29 : f32 to vector<8x64xf32>
      %35 = arith.mulf %34, %33 : vector<8x64xf32>
      %36 = arith.maximumf %33, %35 : vector<8x64xf32>
      %37 = arith.truncf %36 : vector<8x64xf32> to vector<8x64xbf16>
      %c0_30 = arith.constant 0 : index
      %38 = arith.index_cast %arg4 : i32 to index
      %c0_31 = arith.constant 0 : index
      %c0_32 = arith.constant 0 : index
      %39 = vector.load %arg3[%c0_30, %38, %c0_31, %c0_32] : memref<1x8x8x64xbf16, #tpu.memory_space<vmem>>, vector<1x1x8x64xbf16>
      %40 = vector.shape_cast %39 : vector<1x1x8x64xbf16> to vector<8x64xbf16>
      %41 = vector.shape_cast %37 : vector<8x64xbf16> to vector<1x1x8x64xbf16>
      tpu.vector_store %arg3[%c0_30, %38, %c0_31, %c0_32], %41 {strides = array<i32>} : memref<1x8x8x64xbf16, #tpu.memory_space<vmem>>, vector<1x1x8x64xbf16>,
    }
    %c8_i32_0 = arith.constant 8 : i32
    return
  }
  func.func @transform_0(%arg0: i32) -> (i32, i32, i32, i32) {
    %c0_i32 = arith.constant 0 : i32
    %c0_i32_0 = arith.constant 0 : i32
    %c0_i32_1 = arith.constant 0 : i32
    %c0_i32_2 = arith.constant 0 : i32
    return %arg0, %c0_i32, %c0_i32_0, %c0_i32_1 : i32, i32, i32, i32
  }
  func.func @transform_1(%arg0: i32) -> (i32, i32, i32) {
    %c0_i32 = arith.constant 0 : i32
    %c0_i32_0 = arith.constant 0 : i32
    %c0_i32_1 = arith.constant 0 : i32
    %c0_i32_2 = arith.constant 0 : i32
    return %c0_i32, %c0_i32_0, %c0_i32_1 : i32, i32, i32
  }
  func.func @transform_2(%arg0: i32) -> (i32, i32, i32, i32) {
    %c0_i32 = arith.constant 0 : i32
    %c0_i32_0 = arith.constant 0 : i32
    %c0_i32_1 = arith.constant 0 : i32
    %c0_i32_2 = arith.constant 0 : i32
    return %arg0, %c0_i32, %c0_i32_0, %c0_i32_1 : i32, i32, i32, i32
  }
}

module attributes {stable_mosaic.version = 11 : i64} {
  func.func @_conv_rows_kernel(%arg0: i32, %arg1: memref<1x5x5x260xbf16, #tpu.memory_space<vmem>>, %arg2: memref<4x260x128xbf16, #tpu.memory_space<vmem>>, %arg3: memref<1x4x4x128xbf16, #tpu.memory_space<vmem>>) attributes {dimension_semantics = [#tpu.dimension_semantics<parallel>], iteration_bounds = array<i64: 2>, scalar_prefetch = 0 : i64, scratch_operands = 0 : i64, tpu.core_type = #tpu.core_type<tc>, window_params = [{transform_indices = @transform_0, window_bounds = array<i64: 1, 5, 5, 260>}, {pipeline_mode = #tpu.pipeline_mode<synchronous>, transform_indices = @transform_1, window_bounds = array<i64: 4, 260, 128>}, {transform_indices = @transform_2, window_bounds = array<i64: 1, 4, 4, 128>}]} {
    %c0_i32 = arith.constant 0 : i32
    %c4_i32 = arith.constant 4 : i32
    %0 = arith.addi %c0_i32, %c4_i32 : i32
    %c1_i32 = arith.constant 1 : i32
    scf.for %arg4 = %c0_i32 to %0 step %c1_i32  : i32 {
      %cst = arith.constant 0.000000e+00 : f32
      %1 = vector.broadcast %cst : f32 to vector<4x128xf32>
      %c0_i32_1 = arith.constant 0 : i32
      %2 = arith.addi %arg4, %c0_i32_1 : i32
      %c0 = arith.constant 0 : index
      %3 = arith.index_cast %2 : i32 to index
      %c0_2 = arith.constant 0 : index
      %c0_3 = arith.constant 0 : index
      %4 = vector.load %arg1[%c0, %3, %c0_2, %c0_3] : memref<1x5x5x260xbf16, #tpu.memory_space<vmem>>, vector<1x1x4x260xbf16>
      %5 = vector.shape_cast %4 : vector<1x1x4x260xbf16> to vector<4x260xbf16>
      %c0_4 = arith.constant 0 : index
      %c0_5 = arith.constant 0 : index
      %c0_6 = arith.constant 0 : index
      %6 = vector.load %arg2[%c0_4, %c0_5, %c0_6] : memref<4x260x128xbf16, #tpu.memory_space<vmem>>, vector<1x260x128xbf16>
      %7 = vector.shape_cast %6 : vector<1x260x128xbf16> to vector<260x128xbf16>
      %cst_7 = arith.constant dense<0.000000e+00> : vector<4x128xf32>
      %8 = tpu.matmul %5, %7, %cst_7 {dimension_numbers = #tpu.dot_dimension_numbers<[1], [0], [0], [1], [0, 0, 1, 1], [], []>} : vector<4x260xbf16>, vector<260x128xbf16>, vector<4x128xf32> -> vector<4x128xf32>
      %9 = arith.addf %1, %8 : vector<4x128xf32>
      %c0_i32_8 = arith.constant 0 : i32
      %10 = arith.addi %arg4, %c0_i32_8 : i32
      %c0_9 = arith.constant 0 : index
      %11 = arith.index_cast %10 : i32 to index
      %c1 = arith.constant 1 : index
      %c0_10 = arith.constant 0 : index
      %12 = vector.load %arg1[%c0_9, %11, %c1, %c0_10] : memref<1x5x5x260xbf16, #tpu.memory_space<vmem>>, vector<1x1x4x260xbf16>
      %13 = vector.shape_cast %12 : vector<1x1x4x260xbf16> to vector<4x260xbf16>
      %c1_11 = arith.constant 1 : index
      %c0_12 = arith.constant 0 : index
      %c0_13 = arith.constant 0 : index
      %14 = vector.load %arg2[%c1_11, %c0_12, %c0_13] : memref<4x260x128xbf16, #tpu.memory_space<vmem>>, vector<1x260x128xbf16>
      %15 = vector.shape_cast %14 : vector<1x260x128xbf16> to vector<260x128xbf16>
      %cst_14 = arith.constant dense<0.000000e+00> : vector<4x128xf32>
      %16 = tpu.matmul %13, %15, %cst_14 {dimension_numbers = #tpu.dot_dimension_numbers<[1], [0], [0], [1], [0, 0, 1, 1], [], []>} : vector<4x260xbf16>, vector<260x128xbf16>, vector<4x128xf32> -> vector<4x128xf32>
      %17 = arith.addf %9, %16 : vector<4x128xf32>
      %c1_i32_15 = arith.constant 1 : i32
      %18 = arith.addi %arg4, %c1_i32_15 : i32
      %c0_16 = arith.constant 0 : index
      %19 = arith.index_cast %18 : i32 to index
      %c0_17 = arith.constant 0 : index
      %c0_18 = arith.constant 0 : index
      %20 = vector.load %arg1[%c0_16, %19, %c0_17, %c0_18] : memref<1x5x5x260xbf16, #tpu.memory_space<vmem>>, vector<1x1x4x260xbf16>
      %21 = vector.shape_cast %20 : vector<1x1x4x260xbf16> to vector<4x260xbf16>
      %c2 = arith.constant 2 : index
      %c0_19 = arith.constant 0 : index
      %c0_20 = arith.constant 0 : index
      %22 = vector.load %arg2[%c2, %c0_19, %c0_20] : memref<4x260x128xbf16, #tpu.memory_space<vmem>>, vector<1x260x128xbf16>
      %23 = vector.shape_cast %22 : vector<1x260x128xbf16> to vector<260x128xbf16>
      %cst_21 = arith.constant dense<0.000000e+00> : vector<4x128xf32>
      %24 = tpu.matmul %21, %23, %cst_21 {dimension_numbers = #tpu.dot_dimension_numbers<[1], [0], [0], [1], [0, 0, 1, 1], [], []>} : vector<4x260xbf16>, vector<260x128xbf16>, vector<4x128xf32> -> vector<4x128xf32>
      %25 = arith.addf %17, %24 : vector<4x128xf32>
      %c1_i32_22 = arith.constant 1 : i32
      %26 = arith.addi %arg4, %c1_i32_22 : i32
      %c0_23 = arith.constant 0 : index
      %27 = arith.index_cast %26 : i32 to index
      %c1_24 = arith.constant 1 : index
      %c0_25 = arith.constant 0 : index
      %28 = vector.load %arg1[%c0_23, %27, %c1_24, %c0_25] : memref<1x5x5x260xbf16, #tpu.memory_space<vmem>>, vector<1x1x4x260xbf16>
      %29 = vector.shape_cast %28 : vector<1x1x4x260xbf16> to vector<4x260xbf16>
      %c3 = arith.constant 3 : index
      %c0_26 = arith.constant 0 : index
      %c0_27 = arith.constant 0 : index
      %30 = vector.load %arg2[%c3, %c0_26, %c0_27] : memref<4x260x128xbf16, #tpu.memory_space<vmem>>, vector<1x260x128xbf16>
      %31 = vector.shape_cast %30 : vector<1x260x128xbf16> to vector<260x128xbf16>
      %cst_28 = arith.constant dense<0.000000e+00> : vector<4x128xf32>
      %32 = tpu.matmul %29, %31, %cst_28 {dimension_numbers = #tpu.dot_dimension_numbers<[1], [0], [0], [1], [0, 0, 1, 1], [], []>} : vector<4x260xbf16>, vector<260x128xbf16>, vector<4x128xf32> -> vector<4x128xf32>
      %33 = arith.addf %25, %32 : vector<4x128xf32>
      %cst_29 = arith.constant 2.000000e-01 : f32
      %34 = vector.broadcast %cst_29 : f32 to vector<4x128xf32>
      %35 = arith.mulf %34, %33 : vector<4x128xf32>
      %36 = arith.maximumf %33, %35 : vector<4x128xf32>
      %37 = arith.truncf %36 : vector<4x128xf32> to vector<4x128xbf16>
      %c0_30 = arith.constant 0 : index
      %38 = arith.index_cast %arg4 : i32 to index
      %c0_31 = arith.constant 0 : index
      %c0_32 = arith.constant 0 : index
      %39 = vector.load %arg3[%c0_30, %38, %c0_31, %c0_32] : memref<1x4x4x128xbf16, #tpu.memory_space<vmem>>, vector<1x1x4x128xbf16>
      %40 = vector.shape_cast %39 : vector<1x1x4x128xbf16> to vector<4x128xbf16>
      %41 = vector.shape_cast %37 : vector<4x128xbf16> to vector<1x1x4x128xbf16>
      tpu.vector_store %arg3[%c0_30, %38, %c0_31, %c0_32], %41 {strides = array<i32>} : memref<1x4x4x128xbf16, #tpu.memory_space<vmem>>, vector<1x1x4x128xbf16>,
    }
    %c4_i32_0 = arith.constant 4 : i32
    return
  }
  func.func @transform_0(%arg0: i32) -> (i32, i32, i32, i32) {
    %c0_i32 = arith.constant 0 : i32
    %c0_i32_0 = arith.constant 0 : i32
    %c0_i32_1 = arith.constant 0 : i32
    %c0_i32_2 = arith.constant 0 : i32
    return %arg0, %c0_i32, %c0_i32_0, %c0_i32_1 : i32, i32, i32, i32
  }
  func.func @transform_1(%arg0: i32) -> (i32, i32, i32) {
    %c0_i32 = arith.constant 0 : i32
    %c0_i32_0 = arith.constant 0 : i32
    %c0_i32_1 = arith.constant 0 : i32
    %c0_i32_2 = arith.constant 0 : i32
    return %c0_i32, %c0_i32_0, %c0_i32_1 : i32, i32, i32
  }
  func.func @transform_2(%arg0: i32) -> (i32, i32, i32, i32) {
    %c0_i32 = arith.constant 0 : i32
    %c0_i32_0 = arith.constant 0 : i32
    %c0_i32_1 = arith.constant 0 : i32
    %c0_i32_2 = arith.constant 0 : i32
    return %arg0, %c0_i32, %c0_i32_0, %c0_i32_1 : i32, i32, i32, i32
  }
}

module attributes {stable_mosaic.version = 11 : i64} {
  func.func @_conv_rows_kernel(%arg0: i32, %arg1: memref<1x3x3x516xbf16, #tpu.memory_space<vmem>>, %arg2: memref<4x516x256xbf16, #tpu.memory_space<vmem>>, %arg3: memref<1x2x2x256xbf16, #tpu.memory_space<vmem>>) attributes {dimension_semantics = [#tpu.dimension_semantics<parallel>], iteration_bounds = array<i64: 2>, scalar_prefetch = 0 : i64, scratch_operands = 0 : i64, tpu.core_type = #tpu.core_type<tc>, window_params = [{transform_indices = @transform_0, window_bounds = array<i64: 1, 3, 3, 516>}, {pipeline_mode = #tpu.pipeline_mode<synchronous>, transform_indices = @transform_1, window_bounds = array<i64: 4, 516, 256>}, {transform_indices = @transform_2, window_bounds = array<i64: 1, 2, 2, 256>}]} {
    %c0_i32 = arith.constant 0 : i32
    %c2_i32 = arith.constant 2 : i32
    %0 = arith.addi %c0_i32, %c2_i32 : i32
    %c1_i32 = arith.constant 1 : i32
    scf.for %arg4 = %c0_i32 to %0 step %c1_i32  : i32 {
      %cst = arith.constant 0.000000e+00 : f32
      %1 = vector.broadcast %cst : f32 to vector<2x256xf32>
      %c0_i32_1 = arith.constant 0 : i32
      %2 = arith.addi %arg4, %c0_i32_1 : i32
      %c0 = arith.constant 0 : index
      %3 = arith.index_cast %2 : i32 to index
      %c0_2 = arith.constant 0 : index
      %c0_3 = arith.constant 0 : index
      %4 = vector.load %arg1[%c0, %3, %c0_2, %c0_3] : memref<1x3x3x516xbf16, #tpu.memory_space<vmem>>, vector<1x1x2x516xbf16>
      %5 = vector.shape_cast %4 : vector<1x1x2x516xbf16> to vector<2x516xbf16>
      %c0_4 = arith.constant 0 : index
      %c0_5 = arith.constant 0 : index
      %c0_6 = arith.constant 0 : index
      %6 = vector.load %arg2[%c0_4, %c0_5, %c0_6] : memref<4x516x256xbf16, #tpu.memory_space<vmem>>, vector<1x516x256xbf16>
      %7 = vector.shape_cast %6 : vector<1x516x256xbf16> to vector<516x256xbf16>
      %cst_7 = arith.constant dense<0.000000e+00> : vector<2x256xf32>
      %8 = tpu.matmul %5, %7, %cst_7 {dimension_numbers = #tpu.dot_dimension_numbers<[1], [0], [0], [1], [0, 0, 1, 1], [], []>} : vector<2x516xbf16>, vector<516x256xbf16>, vector<2x256xf32> -> vector<2x256xf32>
      %9 = arith.addf %1, %8 : vector<2x256xf32>
      %c0_i32_8 = arith.constant 0 : i32
      %10 = arith.addi %arg4, %c0_i32_8 : i32
      %c0_9 = arith.constant 0 : index
      %11 = arith.index_cast %10 : i32 to index
      %c1 = arith.constant 1 : index
      %c0_10 = arith.constant 0 : index
      %12 = vector.load %arg1[%c0_9, %11, %c1, %c0_10] : memref<1x3x3x516xbf16, #tpu.memory_space<vmem>>, vector<1x1x2x516xbf16>
      %13 = vector.shape_cast %12 : vector<1x1x2x516xbf16> to vector<2x516xbf16>
      %c1_11 = arith.constant 1 : index
      %c0_12 = arith.constant 0 : index
      %c0_13 = arith.constant 0 : index
      %14 = vector.load %arg2[%c1_11, %c0_12, %c0_13] : memref<4x516x256xbf16, #tpu.memory_space<vmem>>, vector<1x516x256xbf16>
      %15 = vector.shape_cast %14 : vector<1x516x256xbf16> to vector<516x256xbf16>
      %cst_14 = arith.constant dense<0.000000e+00> : vector<2x256xf32>
      %16 = tpu.matmul %13, %15, %cst_14 {dimension_numbers = #tpu.dot_dimension_numbers<[1], [0], [0], [1], [0, 0, 1, 1], [], []>} : vector<2x516xbf16>, vector<516x256xbf16>, vector<2x256xf32> -> vector<2x256xf32>
      %17 = arith.addf %9, %16 : vector<2x256xf32>
      %c1_i32_15 = arith.constant 1 : i32
      %18 = arith.addi %arg4, %c1_i32_15 : i32
      %c0_16 = arith.constant 0 : index
      %19 = arith.index_cast %18 : i32 to index
      %c0_17 = arith.constant 0 : index
      %c0_18 = arith.constant 0 : index
      %20 = vector.load %arg1[%c0_16, %19, %c0_17, %c0_18] : memref<1x3x3x516xbf16, #tpu.memory_space<vmem>>, vector<1x1x2x516xbf16>
      %21 = vector.shape_cast %20 : vector<1x1x2x516xbf16> to vector<2x516xbf16>
      %c2 = arith.constant 2 : index
      %c0_19 = arith.constant 0 : index
      %c0_20 = arith.constant 0 : index
      %22 = vector.load %arg2[%c2, %c0_19, %c0_20] : memref<4x516x256xbf16, #tpu.memory_space<vmem>>, vector<1x516x256xbf16>
      %23 = vector.shape_cast %22 : vector<1x516x256xbf16> to vector<516x256xbf16>
      %cst_21 = arith.constant dense<0.000000e+00> : vector<2x256xf32>
      %24 = tpu.matmul %21, %23, %cst_21 {dimension_numbers = #tpu.dot_dimension_numbers<[1], [0], [0], [1], [0, 0, 1, 1], [], []>} : vector<2x516xbf16>, vector<516x256xbf16>, vector<2x256xf32> -> vector<2x256xf32>
      %25 = arith.addf %17, %24 : vector<2x256xf32>
      %c1_i32_22 = arith.constant 1 : i32
      %26 = arith.addi %arg4, %c1_i32_22 : i32
      %c0_23 = arith.constant 0 : index
      %27 = arith.index_cast %26 : i32 to index
      %c1_24 = arith.constant 1 : index
      %c0_25 = arith.constant 0 : index
      %28 = vector.load %arg1[%c0_23, %27, %c1_24, %c0_25] : memref<1x3x3x516xbf16, #tpu.memory_space<vmem>>, vector<1x1x2x516xbf16>
      %29 = vector.shape_cast %28 : vector<1x1x2x516xbf16> to vector<2x516xbf16>
      %c3 = arith.constant 3 : index
      %c0_26 = arith.constant 0 : index
      %c0_27 = arith.constant 0 : index
      %30 = vector.load %arg2[%c3, %c0_26, %c0_27] : memref<4x516x256xbf16, #tpu.memory_space<vmem>>, vector<1x516x256xbf16>
      %31 = vector.shape_cast %30 : vector<1x516x256xbf16> to vector<516x256xbf16>
      %cst_28 = arith.constant dense<0.000000e+00> : vector<2x256xf32>
      %32 = tpu.matmul %29, %31, %cst_28 {dimension_numbers = #tpu.dot_dimension_numbers<[1], [0], [0], [1], [0, 0, 1, 1], [], []>} : vector<2x516xbf16>, vector<516x256xbf16>, vector<2x256xf32> -> vector<2x256xf32>
      %33 = arith.addf %25, %32 : vector<2x256xf32>
      %cst_29 = arith.constant 2.000000e-01 : f32
      %34 = vector.broadcast %cst_29 : f32 to vector<2x256xf32>
      %35 = arith.mulf %34, %33 : vector<2x256xf32>
      %36 = arith.maximumf %33, %35 : vector<2x256xf32>
      %37 = arith.truncf %36 : vector<2x256xf32> to vector<2x256xbf16>
      %c0_30 = arith.constant 0 : index
      %38 = arith.index_cast %arg4 : i32 to index
      %c0_31 = arith.constant 0 : index
      %c0_32 = arith.constant 0 : index
      %39 = vector.load %arg3[%c0_30, %38, %c0_31, %c0_32] : memref<1x2x2x256xbf16, #tpu.memory_space<vmem>>, vector<1x1x2x256xbf16>
      %40 = vector.shape_cast %39 : vector<1x1x2x256xbf16> to vector<2x256xbf16>
      %41 = vector.shape_cast %37 : vector<2x256xbf16> to vector<1x1x2x256xbf16>
      tpu.vector_store %arg3[%c0_30, %38, %c0_31, %c0_32], %41 {strides = array<i32>} : memref<1x2x2x256xbf16, #tpu.memory_space<vmem>>, vector<1x1x2x256xbf16>,
    }
    %c2_i32_0 = arith.constant 2 : i32
    return
  }
  func.func @transform_0(%arg0: i32) -> (i32, i32, i32, i32) {
    %c0_i32 = arith.constant 0 : i32
    %c0_i32_0 = arith.constant 0 : i32
    %c0_i32_1 = arith.constant 0 : i32
    %c0_i32_2 = arith.constant 0 : i32
    return %arg0, %c0_i32, %c0_i32_0, %c0_i32_1 : i32, i32, i32, i32
  }
  func.func @transform_1(%arg0: i32) -> (i32, i32, i32) {
    %c0_i32 = arith.constant 0 : i32
    %c0_i32_0 = arith.constant 0 : i32
    %c0_i32_1 = arith.constant 0 : i32
    %c0_i32_2 = arith.constant 0 : i32
    return %c0_i32, %c0_i32_0, %c0_i32_1 : i32, i32, i32
  }
  func.func @transform_2(%arg0: i32) -> (i32, i32, i32, i32) {
    %c0_i32 = arith.constant 0 : i32
    %c0_i32_0 = arith.constant 0 : i32
    %c0_i32_1 = arith.constant 0 : i32
    %c0_i32_2 = arith.constant 0 : i32
    return %arg0, %c0_i32, %c0_i32_0, %c0_i32_1 : i32, i32, i32, i32
  }
}

module attributes {stable_mosaic.version = 11 : i64} {
  func.func @_conv_rows_kernel(%arg0: i32, %arg1: memref<1x4x4x257xbf16, #tpu.memory_space<vmem>>, %arg2: memref<9x257x512xbf16, #tpu.memory_space<vmem>>, %arg3: memref<1x2x2x512xbf16, #tpu.memory_space<vmem>>) attributes {dimension_semantics = [#tpu.dimension_semantics<parallel>], iteration_bounds = array<i64: 2>, scalar_prefetch = 0 : i64, scratch_operands = 0 : i64, tpu.core_type = #tpu.core_type<tc>, window_params = [{transform_indices = @transform_0, window_bounds = array<i64: 1, 4, 4, 257>}, {pipeline_mode = #tpu.pipeline_mode<synchronous>, transform_indices = @transform_1, window_bounds = array<i64: 9, 257, 512>}, {transform_indices = @transform_2, window_bounds = array<i64: 1, 2, 2, 512>}]} {
    %c0_i32 = arith.constant 0 : i32
    %c2_i32 = arith.constant 2 : i32
    %0 = arith.addi %c0_i32, %c2_i32 : i32
    %c1_i32 = arith.constant 1 : i32
    scf.for %arg4 = %c0_i32 to %0 step %c1_i32  : i32 {
      %cst = arith.constant 0.000000e+00 : f32
      %1 = vector.broadcast %cst : f32 to vector<2x512xf32>
      %c0_i32_1 = arith.constant 0 : i32
      %2 = arith.addi %arg4, %c0_i32_1 : i32
      %c0 = arith.constant 0 : index
      %3 = arith.index_cast %2 : i32 to index
      %c0_2 = arith.constant 0 : index
      %c0_3 = arith.constant 0 : index
      %4 = vector.load %arg1[%c0, %3, %c0_2, %c0_3] : memref<1x4x4x257xbf16, #tpu.memory_space<vmem>>, vector<1x1x2x257xbf16>
      %5 = vector.shape_cast %4 : vector<1x1x2x257xbf16> to vector<2x257xbf16>
      %c0_4 = arith.constant 0 : index
      %c0_5 = arith.constant 0 : index
      %c0_6 = arith.constant 0 : index
      %6 = vector.load %arg2[%c0_4, %c0_5, %c0_6] : memref<9x257x512xbf16, #tpu.memory_space<vmem>>, vector<1x257x512xbf16>
      %7 = vector.shape_cast %6 : vector<1x257x512xbf16> to vector<257x512xbf16>
      %cst_7 = arith.constant dense<0.000000e+00> : vector<2x512xf32>
      %8 = tpu.matmul %5, %7, %cst_7 {dimension_numbers = #tpu.dot_dimension_numbers<[1], [0], [0], [1], [0, 0, 1, 1], [], []>} : vector<2x257xbf16>, vector<257x512xbf16>, vector<2x512xf32> -> vector<2x512xf32>
      %9 = arith.addf %1, %8 : vector<2x512xf32>
      %c0_i32_8 = arith.constant 0 : i32
      %10 = arith.addi %arg4, %c0_i32_8 : i32
      %c0_9 = arith.constant 0 : index
      %11 = arith.index_cast %10 : i32 to index
      %c1 = arith.constant 1 : index
      %c0_10 = arith.constant 0 : index
      %12 = vector.load %arg1[%c0_9, %11, %c1, %c0_10] : memref<1x4x4x257xbf16, #tpu.memory_space<vmem>>, vector<1x1x2x257xbf16>
      %13 = vector.shape_cast %12 : vector<1x1x2x257xbf16> to vector<2x257xbf16>
      %c1_11 = arith.constant 1 : index
      %c0_12 = arith.constant 0 : index
      %c0_13 = arith.constant 0 : index
      %14 = vector.load %arg2[%c1_11, %c0_12, %c0_13] : memref<9x257x512xbf16, #tpu.memory_space<vmem>>, vector<1x257x512xbf16>
      %15 = vector.shape_cast %14 : vector<1x257x512xbf16> to vector<257x512xbf16>
      %cst_14 = arith.constant dense<0.000000e+00> : vector<2x512xf32>
      %16 = tpu.matmul %13, %15, %cst_14 {dimension_numbers = #tpu.dot_dimension_numbers<[1], [0], [0], [1], [0, 0, 1, 1], [], []>} : vector<2x257xbf16>, vector<257x512xbf16>, vector<2x512xf32> -> vector<2x512xf32>
      %17 = arith.addf %9, %16 : vector<2x512xf32>
      %c0_i32_15 = arith.constant 0 : i32
      %18 = arith.addi %arg4, %c0_i32_15 : i32
      %c0_16 = arith.constant 0 : index
      %19 = arith.index_cast %18 : i32 to index
      %c2 = arith.constant 2 : index
      %c0_17 = arith.constant 0 : index
      %20 = vector.load %arg1[%c0_16, %19, %c2, %c0_17] : memref<1x4x4x257xbf16, #tpu.memory_space<vmem>>, vector<1x1x2x257xbf16>
      %21 = vector.shape_cast %20 : vector<1x1x2x257xbf16> to vector<2x257xbf16>
      %c2_18 = arith.constant 2 : index
      %c0_19 = arith.constant 0 : index
      %c0_20 = arith.constant 0 : index
      %22 = vector.load %arg2[%c2_18, %c0_19, %c0_20] : memref<9x257x512xbf16, #tpu.memory_space<vmem>>, vector<1x257x512xbf16>
      %23 = vector.shape_cast %22 : vector<1x257x512xbf16> to vector<257x512xbf16>
      %cst_21 = arith.constant dense<0.000000e+00> : vector<2x512xf32>
      %24 = tpu.matmul %21, %23, %cst_21 {dimension_numbers = #tpu.dot_dimension_numbers<[1], [0], [0], [1], [0, 0, 1, 1], [], []>} : vector<2x257xbf16>, vector<257x512xbf16>, vector<2x512xf32> -> vector<2x512xf32>
      %25 = arith.addf %17, %24 : vector<2x512xf32>
      %c1_i32_22 = arith.constant 1 : i32
      %26 = arith.addi %arg4, %c1_i32_22 : i32
      %c0_23 = arith.constant 0 : index
      %27 = arith.index_cast %26 : i32 to index
      %c0_24 = arith.constant 0 : index
      %c0_25 = arith.constant 0 : index
      %28 = vector.load %arg1[%c0_23, %27, %c0_24, %c0_25] : memref<1x4x4x257xbf16, #tpu.memory_space<vmem>>, vector<1x1x2x257xbf16>
      %29 = vector.shape_cast %28 : vector<1x1x2x257xbf16> to vector<2x257xbf16>
      %c3 = arith.constant 3 : index
      %c0_26 = arith.constant 0 : index
      %c0_27 = arith.constant 0 : index
      %30 = vector.load %arg2[%c3, %c0_26, %c0_27] : memref<9x257x512xbf16, #tpu.memory_space<vmem>>, vector<1x257x512xbf16>
      %31 = vector.shape_cast %30 : vector<1x257x512xbf16> to vector<257x512xbf16>
      %cst_28 = arith.constant dense<0.000000e+00> : vector<2x512xf32>
      %32 = tpu.matmul %29, %31, %cst_28 {dimension_numbers = #tpu.dot_dimension_numbers<[1], [0], [0], [1], [0, 0, 1, 1], [], []>} : vector<2x257xbf16>, vector<257x512xbf16>, vector<2x512xf32> -> vector<2x512xf32>
      %33 = arith.addf %25, %32 : vector<2x512xf32>
      %c1_i32_29 = arith.constant 1 : i32
      %34 = arith.addi %arg4, %c1_i32_29 : i32
      %c0_30 = arith.constant 0 : index
      %35 = arith.index_cast %34 : i32 to index
      %c1_31 = arith.constant 1 : index
      %c0_32 = arith.constant 0 : index
      %36 = vector.load %arg1[%c0_30, %35, %c1_31, %c0_32] : memref<1x4x4x257xbf16, #tpu.memory_space<vmem>>, vector<1x1x2x257xbf16>
      %37 = vector.shape_cast %36 : vector<1x1x2x257xbf16> to vector<2x257xbf16>
      %c4 = arith.constant 4 : index
      %c0_33 = arith.constant 0 : index
      %c0_34 = arith.constant 0 : index
      %38 = vector.load %arg2[%c4, %c0_33, %c0_34] : memref<9x257x512xbf16, #tpu.memory_space<vmem>>, vector<1x257x512xbf16>
      %39 = vector.shape_cast %38 : vector<1x257x512xbf16> to vector<257x512xbf16>
      %cst_35 = arith.constant dense<0.000000e+00> : vector<2x512xf32>
      %40 = tpu.matmul %37, %39, %cst_35 {dimension_numbers = #tpu.dot_dimension_numbers<[1], [0], [0], [1], [0, 0, 1, 1], [], []>} : vector<2x257xbf16>, vector<257x512xbf16>, vector<2x512xf32> -> vector<2x512xf32>
      %41 = arith.addf %33, %40 : vector<2x512xf32>
      %c1_i32_36 = arith.constant 1 : i32
      %42 = arith.addi %arg4, %c1_i32_36 : i32
      %c0_37 = arith.constant 0 : index
      %43 = arith.index_cast %42 : i32 to index
      %c2_38 = arith.constant 2 : index
      %c0_39 = arith.constant 0 : index
      %44 = vector.load %arg1[%c0_37, %43, %c2_38, %c0_39] : memref<1x4x4x257xbf16, #tpu.memory_space<vmem>>, vector<1x1x2x257xbf16>
      %45 = vector.shape_cast %44 : vector<1x1x2x257xbf16> to vector<2x257xbf16>
      %c5 = arith.constant 5 : index
      %c0_40 = arith.constant 0 : index
      %c0_41 = arith.constant 0 : index
      %46 = vector.load %arg2[%c5, %c0_40, %c0_41] : memref<9x257x512xbf16, #tpu.memory_space<vmem>>, vector<1x257x512xbf16>
      %47 = vector.shape_cast %46 : vector<1x257x512xbf16> to vector<257x512xbf16>
      %cst_42 = arith.constant dense<0.000000e+00> : vector<2x512xf32>
      %48 = tpu.matmul %45, %47, %cst_42 {dimension_numbers = #tpu.dot_dimension_numbers<[1], [0], [0], [1], [0, 0, 1, 1], [], []>} : vector<2x257xbf16>, vector<257x512xbf16>, vector<2x512xf32> -> vector<2x512xf32>
      %49 = arith.addf %41, %48 : vector<2x512xf32>
      %c2_i32_43 = arith.constant 2 : i32
      %50 = arith.addi %arg4, %c2_i32_43 : i32
      %c0_44 = arith.constant 0 : index
      %51 = arith.index_cast %50 : i32 to index
      %c0_45 = arith.constant 0 : index
      %c0_46 = arith.constant 0 : index
      %52 = vector.load %arg1[%c0_44, %51, %c0_45, %c0_46] : memref<1x4x4x257xbf16, #tpu.memory_space<vmem>>, vector<1x1x2x257xbf16>
      %53 = vector.shape_cast %52 : vector<1x1x2x257xbf16> to vector<2x257xbf16>
      %c6 = arith.constant 6 : index
      %c0_47 = arith.constant 0 : index
      %c0_48 = arith.constant 0 : index
      %54 = vector.load %arg2[%c6, %c0_47, %c0_48] : memref<9x257x512xbf16, #tpu.memory_space<vmem>>, vector<1x257x512xbf16>
      %55 = vector.shape_cast %54 : vector<1x257x512xbf16> to vector<257x512xbf16>
      %cst_49 = arith.constant dense<0.000000e+00> : vector<2x512xf32>
      %56 = tpu.matmul %53, %55, %cst_49 {dimension_numbers = #tpu.dot_dimension_numbers<[1], [0], [0], [1], [0, 0, 1, 1], [], []>} : vector<2x257xbf16>, vector<257x512xbf16>, vector<2x512xf32> -> vector<2x512xf32>
      %57 = arith.addf %49, %56 : vector<2x512xf32>
      %c2_i32_50 = arith.constant 2 : i32
      %58 = arith.addi %arg4, %c2_i32_50 : i32
      %c0_51 = arith.constant 0 : index
      %59 = arith.index_cast %58 : i32 to index
      %c1_52 = arith.constant 1 : index
      %c0_53 = arith.constant 0 : index
      %60 = vector.load %arg1[%c0_51, %59, %c1_52, %c0_53] : memref<1x4x4x257xbf16, #tpu.memory_space<vmem>>, vector<1x1x2x257xbf16>
      %61 = vector.shape_cast %60 : vector<1x1x2x257xbf16> to vector<2x257xbf16>
      %c7 = arith.constant 7 : index
      %c0_54 = arith.constant 0 : index
      %c0_55 = arith.constant 0 : index
      %62 = vector.load %arg2[%c7, %c0_54, %c0_55] : memref<9x257x512xbf16, #tpu.memory_space<vmem>>, vector<1x257x512xbf16>
      %63 = vector.shape_cast %62 : vector<1x257x512xbf16> to vector<257x512xbf16>
      %cst_56 = arith.constant dense<0.000000e+00> : vector<2x512xf32>
      %64 = tpu.matmul %61, %63, %cst_56 {dimension_numbers = #tpu.dot_dimension_numbers<[1], [0], [0], [1], [0, 0, 1, 1], [], []>} : vector<2x257xbf16>, vector<257x512xbf16>, vector<2x512xf32> -> vector<2x512xf32>
      %65 = arith.addf %57, %64 : vector<2x512xf32>
      %c2_i32_57 = arith.constant 2 : i32
      %66 = arith.addi %arg4, %c2_i32_57 : i32
      %c0_58 = arith.constant 0 : index
      %67 = arith.index_cast %66 : i32 to index
      %c2_59 = arith.constant 2 : index
      %c0_60 = arith.constant 0 : index
      %68 = vector.load %arg1[%c0_58, %67, %c2_59, %c0_60] : memref<1x4x4x257xbf16, #tpu.memory_space<vmem>>, vector<1x1x2x257xbf16>
      %69 = vector.shape_cast %68 : vector<1x1x2x257xbf16> to vector<2x257xbf16>
      %c8 = arith.constant 8 : index
      %c0_61 = arith.constant 0 : index
      %c0_62 = arith.constant 0 : index
      %70 = vector.load %arg2[%c8, %c0_61, %c0_62] : memref<9x257x512xbf16, #tpu.memory_space<vmem>>, vector<1x257x512xbf16>
      %71 = vector.shape_cast %70 : vector<1x257x512xbf16> to vector<257x512xbf16>
      %cst_63 = arith.constant dense<0.000000e+00> : vector<2x512xf32>
      %72 = tpu.matmul %69, %71, %cst_63 {dimension_numbers = #tpu.dot_dimension_numbers<[1], [0], [0], [1], [0, 0, 1, 1], [], []>} : vector<2x257xbf16>, vector<257x512xbf16>, vector<2x512xf32> -> vector<2x512xf32>
      %73 = arith.addf %65, %72 : vector<2x512xf32>
      %cst_64 = arith.constant 2.000000e-01 : f32
      %74 = vector.broadcast %cst_64 : f32 to vector<2x512xf32>
      %75 = arith.mulf %74, %73 : vector<2x512xf32>
      %76 = arith.maximumf %73, %75 : vector<2x512xf32>
      %77 = arith.truncf %76 : vector<2x512xf32> to vector<2x512xbf16>
      %c0_65 = arith.constant 0 : index
      %78 = arith.index_cast %arg4 : i32 to index
      %c0_66 = arith.constant 0 : index
      %c0_67 = arith.constant 0 : index
      %79 = vector.load %arg3[%c0_65, %78, %c0_66, %c0_67] : memref<1x2x2x512xbf16, #tpu.memory_space<vmem>>, vector<1x1x2x512xbf16>
      %80 = vector.shape_cast %79 : vector<1x1x2x512xbf16> to vector<2x512xbf16>
      %81 = vector.shape_cast %77 : vector<2x512xbf16> to vector<1x1x2x512xbf16>
      tpu.vector_store %arg3[%c0_65, %78, %c0_66, %c0_67], %81 {strides = array<i32>} : memref<1x2x2x512xbf16, #tpu.memory_space<vmem>>, vector<1x1x2x512xbf16>,
    }
    %c2_i32_0 = arith.constant 2 : i32
    return
  }
  func.func @transform_0(%arg0: i32) -> (i32, i32, i32, i32) {
    %c0_i32 = arith.constant 0 : i32
    %c0_i32_0 = arith.constant 0 : i32
    %c0_i32_1 = arith.constant 0 : i32
    %c0_i32_2 = arith.constant 0 : i32
    return %arg0, %c0_i32, %c0_i32_0, %c0_i32_1 : i32, i32, i32, i32
  }
  func.func @transform_1(%arg0: i32) -> (i32, i32, i32) {
    %c0_i32 = arith.constant 0 : i32
    %c0_i32_0 = arith.constant 0 : i32
    %c0_i32_1 = arith.constant 0 : i32
    %c0_i32_2 = arith.constant 0 : i32
    return %c0_i32, %c0_i32_0, %c0_i32_1 : i32, i32, i32
  }
  func.func @transform_2(%arg0: i32) -> (i32, i32, i32, i32) {
    %c0_i32 = arith.constant 0 : i32
    %c0_i32_0 = arith.constant 0 : i32
    %c0_i32_1 = arith.constant 0 : i32
    %c0_i32_2 = arith.constant 0 : i32
    return %arg0, %c0_i32, %c0_i32_0, %c0_i32_1 : i32, i32, i32, i32
  }
}

module attributes {stable_mosaic.version = 11 : i64} {
  func.func @_conv_rows_kernel(%arg0: i32, %arg1: memref<1x4x4x512xbf16, #tpu.memory_space<vmem>>, %arg2: memref<9x512x128xbf16, #tpu.memory_space<vmem>>, %arg3: memref<1x2x2x128xf32, #tpu.memory_space<vmem>>) attributes {dimension_semantics = [#tpu.dimension_semantics<parallel>], iteration_bounds = array<i64: 2>, scalar_prefetch = 0 : i64, scratch_operands = 0 : i64, tpu.core_type = #tpu.core_type<tc>, window_params = [{transform_indices = @transform_0, window_bounds = array<i64: 1, 4, 4, 512>}, {pipeline_mode = #tpu.pipeline_mode<synchronous>, transform_indices = @transform_1, window_bounds = array<i64: 9, 512, 128>}, {transform_indices = @transform_2, window_bounds = array<i64: 1, 2, 2, 128>}]} {
    %c0_i32 = arith.constant 0 : i32
    %c2_i32 = arith.constant 2 : i32
    %0 = arith.addi %c0_i32, %c2_i32 : i32
    %c1_i32 = arith.constant 1 : i32
    scf.for %arg4 = %c0_i32 to %0 step %c1_i32  : i32 {
      %cst = arith.constant 0.000000e+00 : f32
      %1 = vector.broadcast %cst : f32 to vector<2x128xf32>
      %c0_i32_1 = arith.constant 0 : i32
      %2 = arith.addi %arg4, %c0_i32_1 : i32
      %c0 = arith.constant 0 : index
      %3 = arith.index_cast %2 : i32 to index
      %c0_2 = arith.constant 0 : index
      %c0_3 = arith.constant 0 : index
      %4 = vector.load %arg1[%c0, %3, %c0_2, %c0_3] : memref<1x4x4x512xbf16, #tpu.memory_space<vmem>>, vector<1x1x2x512xbf16>
      %5 = vector.shape_cast %4 : vector<1x1x2x512xbf16> to vector<2x512xbf16>
      %c0_4 = arith.constant 0 : index
      %c0_5 = arith.constant 0 : index
      %c0_6 = arith.constant 0 : index
      %6 = vector.load %arg2[%c0_4, %c0_5, %c0_6] : memref<9x512x128xbf16, #tpu.memory_space<vmem>>, vector<1x512x128xbf16>
      %7 = vector.shape_cast %6 : vector<1x512x128xbf16> to vector<512x128xbf16>
      %cst_7 = arith.constant dense<0.000000e+00> : vector<2x128xf32>
      %8 = tpu.matmul %5, %7, %cst_7 {dimension_numbers = #tpu.dot_dimension_numbers<[1], [0], [0], [1], [0, 0, 1, 1], [], []>} : vector<2x512xbf16>, vector<512x128xbf16>, vector<2x128xf32> -> vector<2x128xf32>
      %9 = arith.addf %1, %8 : vector<2x128xf32>
      %c0_i32_8 = arith.constant 0 : i32
      %10 = arith.addi %arg4, %c0_i32_8 : i32
      %c0_9 = arith.constant 0 : index
      %11 = arith.index_cast %10 : i32 to index
      %c1 = arith.constant 1 : index
      %c0_10 = arith.constant 0 : index
      %12 = vector.load %arg1[%c0_9, %11, %c1, %c0_10] : memref<1x4x4x512xbf16, #tpu.memory_space<vmem>>, vector<1x1x2x512xbf16>
      %13 = vector.shape_cast %12 : vector<1x1x2x512xbf16> to vector<2x512xbf16>
      %c1_11 = arith.constant 1 : index
      %c0_12 = arith.constant 0 : index
      %c0_13 = arith.constant 0 : index
      %14 = vector.load %arg2[%c1_11, %c0_12, %c0_13] : memref<9x512x128xbf16, #tpu.memory_space<vmem>>, vector<1x512x128xbf16>
      %15 = vector.shape_cast %14 : vector<1x512x128xbf16> to vector<512x128xbf16>
      %cst_14 = arith.constant dense<0.000000e+00> : vector<2x128xf32>
      %16 = tpu.matmul %13, %15, %cst_14 {dimension_numbers = #tpu.dot_dimension_numbers<[1], [0], [0], [1], [0, 0, 1, 1], [], []>} : vector<2x512xbf16>, vector<512x128xbf16>, vector<2x128xf32> -> vector<2x128xf32>
      %17 = arith.addf %9, %16 : vector<2x128xf32>
      %c0_i32_15 = arith.constant 0 : i32
      %18 = arith.addi %arg4, %c0_i32_15 : i32
      %c0_16 = arith.constant 0 : index
      %19 = arith.index_cast %18 : i32 to index
      %c2 = arith.constant 2 : index
      %c0_17 = arith.constant 0 : index
      %20 = vector.load %arg1[%c0_16, %19, %c2, %c0_17] : memref<1x4x4x512xbf16, #tpu.memory_space<vmem>>, vector<1x1x2x512xbf16>
      %21 = vector.shape_cast %20 : vector<1x1x2x512xbf16> to vector<2x512xbf16>
      %c2_18 = arith.constant 2 : index
      %c0_19 = arith.constant 0 : index
      %c0_20 = arith.constant 0 : index
      %22 = vector.load %arg2[%c2_18, %c0_19, %c0_20] : memref<9x512x128xbf16, #tpu.memory_space<vmem>>, vector<1x512x128xbf16>
      %23 = vector.shape_cast %22 : vector<1x512x128xbf16> to vector<512x128xbf16>
      %cst_21 = arith.constant dense<0.000000e+00> : vector<2x128xf32>
      %24 = tpu.matmul %21, %23, %cst_21 {dimension_numbers = #tpu.dot_dimension_numbers<[1], [0], [0], [1], [0, 0, 1, 1], [], []>} : vector<2x512xbf16>, vector<512x128xbf16>, vector<2x128xf32> -> vector<2x128xf32>
      %25 = arith.addf %17, %24 : vector<2x128xf32>
      %c1_i32_22 = arith.constant 1 : i32
      %26 = arith.addi %arg4, %c1_i32_22 : i32
      %c0_23 = arith.constant 0 : index
      %27 = arith.index_cast %26 : i32 to index
      %c0_24 = arith.constant 0 : index
      %c0_25 = arith.constant 0 : index
      %28 = vector.load %arg1[%c0_23, %27, %c0_24, %c0_25] : memref<1x4x4x512xbf16, #tpu.memory_space<vmem>>, vector<1x1x2x512xbf16>
      %29 = vector.shape_cast %28 : vector<1x1x2x512xbf16> to vector<2x512xbf16>
      %c3 = arith.constant 3 : index
      %c0_26 = arith.constant 0 : index
      %c0_27 = arith.constant 0 : index
      %30 = vector.load %arg2[%c3, %c0_26, %c0_27] : memref<9x512x128xbf16, #tpu.memory_space<vmem>>, vector<1x512x128xbf16>
      %31 = vector.shape_cast %30 : vector<1x512x128xbf16> to vector<512x128xbf16>
      %cst_28 = arith.constant dense<0.000000e+00> : vector<2x128xf32>
      %32 = tpu.matmul %29, %31, %cst_28 {dimension_numbers = #tpu.dot_dimension_numbers<[1], [0], [0], [1], [0, 0, 1, 1], [], []>} : vector<2x512xbf16>, vector<512x128xbf16>, vector<2x128xf32> -> vector<2x128xf32>
      %33 = arith.addf %25, %32 : vector<2x128xf32>
      %c1_i32_29 = arith.constant 1 : i32
      %34 = arith.addi %arg4, %c1_i32_29 : i32
      %c0_30 = arith.constant 0 : index
      %35 = arith.index_cast %34 : i32 to index
      %c1_31 = arith.constant 1 : index
      %c0_32 = arith.constant 0 : index
      %36 = vector.load %arg1[%c0_30, %35, %c1_31, %c0_32] : memref<1x4x4x512xbf16, #tpu.memory_space<vmem>>, vector<1x1x2x512xbf16>
      %37 = vector.shape_cast %36 : vector<1x1x2x512xbf16> to vector<2x512xbf16>
      %c4 = arith.constant 4 : index
      %c0_33 = arith.constant 0 : index
      %c0_34 = arith.constant 0 : index
      %38 = vector.load %arg2[%c4, %c0_33, %c0_34] : memref<9x512x128xbf16, #tpu.memory_space<vmem>>, vector<1x512x128xbf16>
      %39 = vector.shape_cast %38 : vector<1x512x128xbf16> to vector<512x128xbf16>
      %cst_35 = arith.constant dense<0.000000e+00> : vector<2x128xf32>
      %40 = tpu.matmul %37, %39, %cst_35 {dimension_numbers = #tpu.dot_dimension_numbers<[1], [0], [0], [1], [0, 0, 1, 1], [], []>} : vector<2x512xbf16>, vector<512x128xbf16>, vector<2x128xf32> -> vector<2x128xf32>
      %41 = arith.addf %33, %40 : vector<2x128xf32>
      %c1_i32_36 = arith.constant 1 : i32
      %42 = arith.addi %arg4, %c1_i32_36 : i32
      %c0_37 = arith.constant 0 : index
      %43 = arith.index_cast %42 : i32 to index
      %c2_38 = arith.constant 2 : index
      %c0_39 = arith.constant 0 : index
      %44 = vector.load %arg1[%c0_37, %43, %c2_38, %c0_39] : memref<1x4x4x512xbf16, #tpu.memory_space<vmem>>, vector<1x1x2x512xbf16>
      %45 = vector.shape_cast %44 : vector<1x1x2x512xbf16> to vector<2x512xbf16>
      %c5 = arith.constant 5 : index
      %c0_40 = arith.constant 0 : index
      %c0_41 = arith.constant 0 : index
      %46 = vector.load %arg2[%c5, %c0_40, %c0_41] : memref<9x512x128xbf16, #tpu.memory_space<vmem>>, vector<1x512x128xbf16>
      %47 = vector.shape_cast %46 : vector<1x512x128xbf16> to vector<512x128xbf16>
      %cst_42 = arith.constant dense<0.000000e+00> : vector<2x128xf32>
      %48 = tpu.matmul %45, %47, %cst_42 {dimension_numbers = #tpu.dot_dimension_numbers<[1], [0], [0], [1], [0, 0, 1, 1], [], []>} : vector<2x512xbf16>, vector<512x128xbf16>, vector<2x128xf32> -> vector<2x128xf32>
      %49 = arith.addf %41, %48 : vector<2x128xf32>
      %c2_i32_43 = arith.constant 2 : i32
      %50 = arith.addi %arg4, %c2_i32_43 : i32
      %c0_44 = arith.constant 0 : index
      %51 = arith.index_cast %50 : i32 to index
      %c0_45 = arith.constant 0 : index
      %c0_46 = arith.constant 0 : index
      %52 = vector.load %arg1[%c0_44, %51, %c0_45, %c0_46] : memref<1x4x4x512xbf16, #tpu.memory_space<vmem>>, vector<1x1x2x512xbf16>
      %53 = vector.shape_cast %52 : vector<1x1x2x512xbf16> to vector<2x512xbf16>
      %c6 = arith.constant 6 : index
      %c0_47 = arith.constant 0 : index
      %c0_48 = arith.constant 0 : index
      %54 = vector.load %arg2[%c6, %c0_47, %c0_48] : memref<9x512x128xbf16, #tpu.memory_space<vmem>>, vector<1x512x128xbf16>
      %55 = vector.shape_cast %54 : vector<1x512x128xbf16> to vector<512x128xbf16>
      %cst_49 = arith.constant dense<0.000000e+00> : vector<2x128xf32>
      %56 = tpu.matmul %53, %55, %cst_49 {dimension_numbers = #tpu.dot_dimension_numbers<[1], [0], [0], [1], [0, 0, 1, 1], [], []>} : vector<2x512xbf16>, vector<512x128xbf16>, vector<2x128xf32> -> vector<2x128xf32>
      %57 = arith.addf %49, %56 : vector<2x128xf32>
      %c2_i32_50 = arith.constant 2 : i32
      %58 = arith.addi %arg4, %c2_i32_50 : i32
      %c0_51 = arith.constant 0 : index
      %59 = arith.index_cast %58 : i32 to index
      %c1_52 = arith.constant 1 : index
      %c0_53 = arith.constant 0 : index
      %60 = vector.load %arg1[%c0_51, %59, %c1_52, %c0_53] : memref<1x4x4x512xbf16, #tpu.memory_space<vmem>>, vector<1x1x2x512xbf16>
      %61 = vector.shape_cast %60 : vector<1x1x2x512xbf16> to vector<2x512xbf16>
      %c7 = arith.constant 7 : index
      %c0_54 = arith.constant 0 : index
      %c0_55 = arith.constant 0 : index
      %62 = vector.load %arg2[%c7, %c0_54, %c0_55] : memref<9x512x128xbf16, #tpu.memory_space<vmem>>, vector<1x512x128xbf16>
      %63 = vector.shape_cast %62 : vector<1x512x128xbf16> to vector<512x128xbf16>
      %cst_56 = arith.constant dense<0.000000e+00> : vector<2x128xf32>
      %64 = tpu.matmul %61, %63, %cst_56 {dimension_numbers = #tpu.dot_dimension_numbers<[1], [0], [0], [1], [0, 0, 1, 1], [], []>} : vector<2x512xbf16>, vector<512x128xbf16>, vector<2x128xf32> -> vector<2x128xf32>
      %65 = arith.addf %57, %64 : vector<2x128xf32>
      %c2_i32_57 = arith.constant 2 : i32
      %66 = arith.addi %arg4, %c2_i32_57 : i32
      %c0_58 = arith.constant 0 : index
      %67 = arith.index_cast %66 : i32 to index
      %c2_59 = arith.constant 2 : index
      %c0_60 = arith.constant 0 : index
      %68 = vector.load %arg1[%c0_58, %67, %c2_59, %c0_60] : memref<1x4x4x512xbf16, #tpu.memory_space<vmem>>, vector<1x1x2x512xbf16>
      %69 = vector.shape_cast %68 : vector<1x1x2x512xbf16> to vector<2x512xbf16>
      %c8 = arith.constant 8 : index
      %c0_61 = arith.constant 0 : index
      %c0_62 = arith.constant 0 : index
      %70 = vector.load %arg2[%c8, %c0_61, %c0_62] : memref<9x512x128xbf16, #tpu.memory_space<vmem>>, vector<1x512x128xbf16>
      %71 = vector.shape_cast %70 : vector<1x512x128xbf16> to vector<512x128xbf16>
      %cst_63 = arith.constant dense<0.000000e+00> : vector<2x128xf32>
      %72 = tpu.matmul %69, %71, %cst_63 {dimension_numbers = #tpu.dot_dimension_numbers<[1], [0], [0], [1], [0, 0, 1, 1], [], []>} : vector<2x512xbf16>, vector<512x128xbf16>, vector<2x128xf32> -> vector<2x128xf32>
      %73 = arith.addf %65, %72 : vector<2x128xf32>
      %cst_64 = arith.constant 0.000000e+00 : f32
      %74 = vector.broadcast %cst_64 : f32 to vector<2x128xf32>
      %75 = arith.subf %74, %73 : vector<2x128xf32>
      %76 = math.exp %75 : vector<2x128xf32>
      %cst_65 = arith.constant 1.000000e+00 : f32
      %77 = vector.broadcast %cst_65 : f32 to vector<2x128xf32>
      %78 = arith.addf %77, %76 : vector<2x128xf32>
      %79 = tpu.reciprocal %78 {approx = true} : vector<2x128xf32> -> vector<2x128xf32>
      %c0_66 = arith.constant 0 : index
      %80 = arith.index_cast %arg4 : i32 to index
      %c0_67 = arith.constant 0 : index
      %c0_68 = arith.constant 0 : index
      %81 = vector.load %arg3[%c0_66, %80, %c0_67, %c0_68] : memref<1x2x2x128xf32, #tpu.memory_space<vmem>>, vector<1x1x2x128xf32>
      %82 = vector.shape_cast %81 : vector<1x1x2x128xf32> to vector<2x128xf32>
      %83 = vector.shape_cast %79 : vector<2x128xf32> to vector<1x1x2x128xf32>
      tpu.vector_store %arg3[%c0_66, %80, %c0_67, %c0_68], %83 {strides = array<i32>} : memref<1x2x2x128xf32, #tpu.memory_space<vmem>>, vector<1x1x2x128xf32>,
    }
    %c2_i32_0 = arith.constant 2 : i32
    return
  }
  func.func @transform_0(%arg0: i32) -> (i32, i32, i32, i32) {
    %c0_i32 = arith.constant 0 : i32
    %c0_i32_0 = arith.constant 0 : i32
    %c0_i32_1 = arith.constant 0 : i32
    %c0_i32_2 = arith.constant 0 : i32
    return %arg0, %c0_i32, %c0_i32_0, %c0_i32_1 : i32, i32, i32, i32
  }
  func.func @transform_1(%arg0: i32) -> (i32, i32, i32) {
    %c0_i32 = arith.constant 0 : i32
    %c0_i32_0 = arith.constant 0 : i32
    %c0_i32_1 = arith.constant 0 : i32
    %c0_i32_2 = arith.constant 0 : i32
    return %c0_i32, %c0_i32_0, %c0_i32_1 : i32, i32, i32
  }
  func.func @transform_2(%arg0: i32) -> (i32, i32, i32, i32) {
    %c0_i32 = arith.constant 0 : i32
    %c0_i32_0 = arith.constant 0 : i32
    %c0_i32_1 = arith.constant 0 : i32
    %c0_i32_2 = arith.constant 0 : i32
    return %arg0, %c0_i32, %c0_i32_0, %c0_i32_1 : i32, i32, i32, i32
  }
}

</mosaic_0001>

<bundles_post_ra>
// kernel: discriminator_forward.5
= control target key start
LH: loop header
LB: loop body
LE: loop exit
PB: predicated region body
PF: predicated region fallthrough
CT: control target
= control target key end

     0   :  { %s470_s9 = smov 0   ;;  %s519_s0 = inlined_call_operand.vmem [shape: bf16[2,9,9,16], index: 0, kind: input, shape index: {}]   ;;  %s520_s1 = inlined_call_operand.vmem [shape: bf16[4,16,64], index: 1, kind: input, shape index: {}]   ;;  %s521_s2 = inlined_call_operand.vmem [shape: bf16[2,8,8,64], index: 2, kind: output, shape index: {}]  }
   0x1 LB: > { %s363_s10 = sadd.s32 4294967295, %s449_s9   ;;  %p367_p0 = scmp.ge.s32.totalorder %s449_s9, 1  ;;  %s449_s9 = sphi %s470_s9, %s12_s9  }
   0x2   : > { %p112_p1 = scmp.lt.s32.totalorder %s449_s9, 3 }
   0x4   : > { %p113_p2 = pnand %p367_p0, %p112_p1 }
   0x5   : > { %p134_p3 = scmp.lt.s32.totalorder (!%p113_p2), %s363_s10, 1  ;;  %s488_s19 = smov (!%p113_p2), 0  }
   0x6   : > { %116 = sbr.rel (%p113_p2) target bundleno = 168 (0xa8), region = 28 }
   0xb   : > { %s523_s10 = smov (!%p134_p3, %s363_s10), 1 }
   0xc   : > { %s422_s11 = smul.u32 72, %s523_s10  ;;  %s414_s12 = sshll.u32 %s523_s10, 5 }
   0xd   : > { %s481_s15 = scalar_lea.vmem %s521_s2, %s414_s12 }
   0xe   : > { %s486_s18 = scalar_lea.vmem %s519_s0, %s422_s11 }
   0xf LB: >> { %v419_v0 = vld [vmem:[%s520_s1 + $0x10] sm:$0xff]  ;;  %v416_v1 = vld [vmem:[%s520_s1] sm:$0xff]  ;;  %v418_v2 = vld [vmem:[%s520_s1 + $0x8] sm:$0xff]  ;;  %s415_s28 = sshll.u32 %s453_s19, 3  ;;  %vm179_vm0 = vcmask 130048   ;;  %s411_s30 = sshll.u32 %s453_s19, 2  ;;  %s453_s19 = sphi %s488_s19, %s150_s19  }
  0x10   : >> { %v421_v3 = vld [vmem:[%s520_s1 + $0x18] sm:$0xff]  ;;  %242 = vmatpush.bf16.msra.mxu2 %v419_v0  ;;  %212 = vmatpush.bf16.msra.mxu1 %v416_v1  ;;  %s153_s29 = scalar_lea.vmem %s486_s18, %s415_s28  ;;  %s293_s3 = scalar_lea.vmem %s481_s15, %s411_s30  ;;  %vm294_vm1 = vcmask 519168  }
  0x11   : >> { %190 = vmatpush.bf16.msra.mxu0 %v418_v2  ;;  %282 = vmatpush.bf16.msra.mxu3 %v421_v3  ;;  %v390_v4 = vld [vmem:[%s153_s29 + $0x8] sm:$0xf]  ;;  %v154_v5 = vld [vmem:[%s153_s29] sm:$0xf]  ;;  %v417_v7 = vld [vmem:[%s153_s29] sm:$0x10] }
  0x12   : >> { %v377_v6 = vld [vmem:[%s153_s29] sm:$0xf]  ;;  %v404_v8 = vld [vmem:[%s153_s29 + $0x8] sm:$0xf]  ;;  %v420_v9 = vld [vmem:[%s153_s29 + $0x8] sm:$0x10] }
  0x13   : >> { %397 = vmatmul.msk.bf16.vlgmr.msra.gmra.mxu2 %vm179_vm0, %v390_v4  ;;  %388 = vmatmul.msk.bf16.vlgmr.msra.gmra.mxu1 %vm179_vm0, %v154_v5  ;;  %v378_v10 = vor.u32 %v417_v7, %v377_v6  ;;  %v405_v11 = vor.u32 %v420_v9, %v404_v8  ;;  %s150_s19 = sadd.s32 1, %s453_s19  }
  0x14   : >> { %p147_p4 = scmp.ge.s32.totalorder %s150_s19, 8  }
  0x15   : >> { %v167_v12 = vshrl.u32 %v378_v10, 16  ;;  %v169_v13 = vshll.u32 %v378_v10, 16  ;;  %v260_v14 = vshrl.u32 %v405_v11, 16  ;;  %v262_v15 = vshll.u32 %v405_v11, 16 }
  0x17   : >> { %v171_v16 = vrot.slane %v169_v13, 1  ;;  %v264_v17 = vrot.slane %v262_v15, 1 }
  0x19   : >> { %v172_v18 = vor.u32 %v171_v16, %v167_v12  ;;  %v265_v19 = vor.u32 %v264_v17, %v260_v14 }
  0x1b   : >> { %383 = vmatmul.msk.bf16.vlgmr.msra.gmra.mxu0 %vm179_vm0, %v172_v18  ;;  %410 = vmatmul.msk.bf16.vlgmr.msra.gmra.mxu3 %vm179_vm0, %v265_v19 }
  0x90   : >> { %v214_v20 = vpop.f32.mrf.mxu1 }
  0x96   : >> { %v244_v21 = vpop.f32.mrf.mxu2 }
  0x98   : >> { %v216_v22 = vpop.f32.mrf.mxu1  ;;  %v192_v23 = vpop.f32.mrf.mxu0 }
  0x99   : >> { %v215_v24 = vadd.f32 %v214_v20, %v192_v23 }
  0x9b   : >> { %v248_v25 = vadd.f32 %v244_v21, %v215_v24 }
  0x9e   : >> { %v246_v26 = vpop.f32.mrf.mxu2  ;;  %v284_v27 = vpop.f32.mrf.mxu3 }
  0x9f   : >> { %v288_v28 = vadd.f32 %v284_v27, %v248_v25 }
  0xa0   : >> { %v194_v29 = vpop.f32.mrf.mxu0 }
  0xa1   : >> { %v289_v30 = vmul.f32 0.2, %v288_v28 }
  0xa3   : >> { %v290_v31 = vmax.f32 %v288_v28, %v289_v30  ;;  %149 = sbr.rel (!%p147_p4) target bundleno = 15 (0xf), region = 71 }
  0xa5   : >> { %v291_v32 = vpack.c.bf16 %v290_v31, %v290_v31 }
  0xa6   : >> { %v286_v33 = vpop.f32.mrf.mxu3 }
  0xa7   : >> { %295 = vst.msk [vmem:[%s293_s3] sm:$0xf] %vm294_vm1, %v291_v32 }
  0xa8 PF: > { %s12_s9 = sadd.s32 1, %s449_s9  }
  0xa9   : > { %p9_p5 = scmp.ge.s32.totalorder %s12_s9, 4  }
  0xab   :  { %11 = sbr.rel (!%p9_p5) target bundleno = 1 (0x1), region = 82 }

// kernel: discriminator_forward.6
= control target key start
LH: loop header
LB: loop body
LE: loop exit
PB: predicated region body
PF: predicated region fallthrough
CT: control target
= control target key end

     0   :  { %s1525_s9 = smov 0   ;;  %s1780_s0 = inlined_call_operand.vmem [shape: bf16[2,5,5,260], index: 0, kind: input, shape index: {}]   ;;  %s1781_s1 = inlined_call_operand.vmem [shape: bf16[4,260,128], index: 1, kind: input, shape index: {}]   ;;  %s1782_s2 = inlined_call_operand.vmem [shape: bf16[2,4,4,128], index: 2, kind: output, shape index: {}]  }
   0x1 LB: > { %s1036_s10 = sadd.s32 4294967295, %s1504_s9   ;;  %p1040_p0 = scmp.ge.s32.totalorder %s1504_s9, 1  ;;  %s1504_s9 = sphi %s1525_s9, %s12_s9  }
   0x2   : > { %p112_p1 = scmp.lt.s32.totalorder %s1504_s9, 3 }
   0x4   : > { %p113_p2 = pnand %p1040_p0, %p112_p1 }
   0x5   : > { %p134_p3 = scmp.lt.s32.totalorder (!%p113_p2), %s1036_s10, 1  ;;  %s1543_s19 = smov (!%p113_p2), 0  }
   0x6   : > { %116 = sbr.rel (%p113_p2) target bundleno = 235 (0xeb), region = 28 }
   0xb   : > { %s1784_s10 = smov (!%p134_p3, %s1036_s10), 1 }
   0xc   : > { %s1477_s11 = smul.u32 60, %s1784_s10  ;;  %s1411_s12 = sshll.u32 %s1784_s10, 3 }
   0xd   : > { %s1536_s15 = scalar_lea.vmem %s1782_s2, %s1411_s12 }
   0xe   : > { %s1541_s18 = scalar_lea.vmem %s1780_s0, %s1477_s11 }
   0xf LB: >> { %v1436_v0 = vld [vmem:[%s1781_s1 + $0xbc] sm:$0xff]  ;;  %v1077_v3 = vld [vmem:[%s1781_s1 + $0x104] sm:$0x3]  ;;  %v1435_v5 = vld [vmem:[%s1781_s1 + $0xb4] sm:$0xff]  ;;  %s1412_s4 = smul.u32 12, %s1508_s19  ;;  %vm359_vm0 = vcmask 1041408   ;;  %s1508_s19 = sphi %s1543_s19, %s150_s19  }
  0x10   : >> { %v1444_v1 = vld [vmem:[%s1781_s1 + $0xfc] sm:$0xff]  ;;  %363 = vmatpush.bf16.msra.mxu0 %v1436_v0  ;;  %v321_v4 = vunpack.c.l.b16 %v1077_v3  ;;  %v1443_v6 = vld [vmem:[%s1781_s1 + $0xf4] sm:$0xff]  ;;  %v1434_v11 = vld [vmem:[%s1781_s1 + $0xac] sm:$0xff]  ;;  %vm355_vm1 = vcmask 31744   ;;  %s1408_s16 = sshll.u32 %s1508_s19, 1  ;;  %s150_s19 = sadd.s32 1, %s1508_s19  }
  0x11   : >> { %v1428_v2 = vld [vmem:[%s1781_s1 + $0x78] sm:$0xff]  ;;  %376 = vmatpush.bf16.msra.mxu1 %v1444_v1  ;;  %v1427_v7 = vld [vmem:[%s1781_s1 + $0x70] sm:$0xff]  ;;  %s1574_s10 = scalar_lea.vmem %s1541_s18, %s1412_s4  ;;  %v1426_v14 = vld [vmem:[%s1781_s1 + $0x68] sm:$0xff]  ;;  %s967_s17 = scalar_lea.vmem %s1536_s15, %s1408_s16 }
  0x12   : >> { %530 = vmatpush.bf16.msra.mxu2 %v1428_v2  ;;  %v338_v8 = vpack.c.b16 %v321_v4, %v321_v4  ;;  %v1420_v9 = vld [vmem:[%s1781_s1 + $0x38] sm:$0xff]  ;;  %v1442_v12 = vld [vmem:[%s1781_s1 + $0xec] sm:$0xff]  ;;  %v190_v13 = vld [vmem:[%s1574_s10 + $0x8] sm:$0x7]  ;;  %p147_p4 = scmp.ge.s32.totalorder %s150_s19, 4  }
  0x13   : >> { %v229_v15 = vunpack.c.l.b16 %v190_v13  ;;  %v1419_v16 = vld [vmem:[%s1781_s1 + $0x30] sm:$0xff]  ;;  %v1433_v18 = vld [vmem:[%s1781_s1 + $0xa4] sm:$0xff]  ;;  %v1432_v28 = vld [vmem:[%s1781_s1 + $0x9c] sm:$0xff] }
  0x14   : >> { %v361_v10 = vsel %vm359_vm0, %v338_v8, 0  ;;  %364 = vmatpush.bf16.msra.mxu0 %v1435_v5  ;;  %v1441_v19 = vld [vmem:[%s1781_s1 + $0xe4] sm:$0xff]  ;;  %v1440_v29 = vld [vmem:[%s1781_s1 + $0xdc] sm:$0xff]  ;;  %v1431_v36 = vld [vmem:[%s1781_s1 + $0x94] sm:$0xff] }
  0x15   : >> { %377 = vmatpush.bf16.msra.mxu1 %v1443_v6  ;;  %396 = vmatpush.bf16.msra.mxu3 %v361_v10  ;;  %v232_v17 = vpack.c.b16 %v229_v15, %v229_v15  ;;  %v1425_v20 = vld [vmem:[%s1781_s1 + $0x60] sm:$0xff]  ;;  %v1418_v24 = vld [vmem:[%s1781_s1 + $0x28] sm:$0xff]  ;;  %v1424_v30 = vld [vmem:[%s1781_s1 + $0x58] sm:$0xff] }
  0x16   : >> { %531 = vmatpush.bf16.msra.mxu2 %v1427_v7  ;;  %v189_v23 = vld [vmem:[%s1574_s10] sm:$0x77]  ;;  %v1242_v34 = vld [vmem:[%s1781_s1 + $0x188] sm:$0x3]  ;;  %v1439_v37 = vld [vmem:[%s1781_s1 + $0xd4] sm:$0xff] }
  0x17   : >> { %v248_v21 = vshrl.u32 %v232_v17, 16  ;;  %v250_v22 = vshll.u32 %v232_v17, 16  ;;  %v227_v26 = vunpack.c.l.b16 %v189_v23  ;;  %v228_v27 = vunpack.c.h.b16 %v189_v23  ;;  %v1417_v32 = vld [vmem:[%s1781_s1 + $0x20] sm:$0xff]  ;;  %v1423_v38 = vld [vmem:[%s1781_s1 + $0x50] sm:$0xff]  ;;  %v1416_v39 = vld [vmem:[%s1781_s1 + $0x18] sm:$0xff] }
  0x18   : >> { %365 = vmatpush.bf16.msra.mxu0 %v1434_v11  ;;  %v671_v40 = vunpack.c.l.b16 %v1242_v34  ;;  %v188_v41 = vld [vmem:[%s1781_s1 + $0x80] sm:$0x3]  ;;  %v1430_v44 = vld [vmem:[%s1781_s1 + $0x8c] sm:$0xff]  ;;  %v1429_v55 = vld [vmem:[%s1781_s1 + $0x84] sm:$0xff] }
  0x19   : >> { %517 = vmatpush.bf16.msrb.mxu3 %v1420_v9  ;;  %378 = vmatpush.bf16.msra.mxu1 %v1442_v12  ;;  %v252_v25 = vrot.slane %v250_v22, 1  ;;  %v230_v33 = vpack.c.b16 %v227_v26, %v227_v26  ;;  %v231_v35 = vpack.c.b16 %v228_v27, %v228_v27  ;;  %v1438_v45 = vld [vmem:[%s1781_s1 + $0xcc] sm:$0xff]  ;;  %v154_v47 = vld [vmem:[%s1574_s10] sm:$0x33]  ;;  %v477_v48 = vunpack.c.l.b16 %v188_v41  ;;  %v1451_v4 = vld [vmem:[%s1781_s1 + $0x138] sm:$0xff] }
  0x1a   : >> { %532 = vmatpush.bf16.msra.mxu2 %v1426_v14  ;;  %v1422_v46 = vld [vmem:[%s1781_s1 + $0x48] sm:$0xff]  ;;  %v1415_v49 = vld [vmem:[%s1781_s1 + $0x10] sm:$0xff]  ;;  %v688_v50 = vpack.c.b16 %v671_v40, %v671_v40  ;;  %v405_v57 = vunpack.c.h.b16 %v154_v47  ;;  %v1421_v58 = vld [vmem:[%s1781_s1 + $0x40] sm:$0xff]  ;;  %v404_v2 = vunpack.c.l.b16 %v154_v47 }
  0x1b   : >> { %v253_v31 = vor.u32 %v252_v25, %v248_v21  ;;  %v236_v42 = vshll.u32 %v230_v33, 16  ;;  %v243_v43 = vshll.u32 %v231_v35, 16  ;;  %v234_v51 = vshrl.u32 %v230_v33, 16  ;;  %v1437_v56 = vld [vmem:[%s1781_s1 + $0xc4] sm:$0xff]  ;;  %v1475_v10 = vld [vmem:[%s1781_s1 + $0x1fc] sm:$0xff]  ;;  %v1450_v11 = vld [vmem:[%s1781_s1 + $0x130] sm:$0xff] }
  0x1c   : >> { %366 = vmatpush.bf16.msra.mxu0 %v1433_v18  ;;  %v241_v53 = vshrl.u32 %v231_v35, 16  ;;  %v1452_v59 = vld [vmem:[%s1781_s1 + $0x140] sm:$0xff]  ;;  %v494_v60 = vpack.c.b16 %v477_v48, %v477_v48  ;;  %v1414_v61 = vld [vmem:[%s1781_s1 + $0x8] sm:$0xff]  ;;  %v709_v63 = vsel %vm359_vm0, %v688_v50, 0  ;;  %v408_v1 = vpack.c.b16 %v405_v57, %v405_v57  ;;  %v1459_v13 = vld [vmem:[%s1781_s1 + $0x178] sm:$0xff] }
  0x1d   : >> { %518 = vmatpush.bf16.msrb.mxu3 %v1419_v16  ;;  %379 = vmatpush.bf16.msra.mxu1 %v1441_v19  ;;  %v238_v52 = vrot.slane %v236_v42, 1  ;;  %v245_v54 = vrot.slane %v243_v43, 1  ;;  %v1476_v3 = vld [vmem:[%s1781_s1 + $0x204] sm:$0xff]  ;;  %v407_v9 = vpack.c.b16 %v404_v2, %v404_v2  ;;  %v1467_v12 = vld [vmem:[%s1781_s1 + $0x1bc] sm:$0xff]  ;;  %v1474_v15 = vld [vmem:[%s1781_s1 + $0x1f4] sm:$0xff] }
  0x1e   : >> { %533 = vmatpush.bf16.msra.mxu2 %v1425_v20  ;;  %1142 = vmatmul.msk.bf16.vlgmr.msra.gmra.mxu3 %vm355_vm1, %v253_v31  ;;  %v515_v5 = vsel %vm359_vm0, %v494_v60, 0  ;;  %v1413_v6 = vld [vmem:[%s1781_s1] sm:$0xff]  ;;  %v155_v14 = vld [vmem:[%s1574_s10 + $0x8] sm:$0x3]  ;;  %v1209_v16 = vld [vmem:[%s1574_s10 + $0x14] sm:$0x3] }
  0x1f   : >> { %v239_v62 = vor.u32 %v238_v52, %v234_v51  ;;  %v246_v0 = vor.u32 %v245_v54, %v241_v53  ;;  %v1468_v7 = vld [vmem:[%s1781_s1 + $0x1c4] sm:$0xff]  ;;  %v1466_v18 = vld [vmem:[%s1781_s1 + $0x1b4] sm:$0xff]  ;;  %v406_v20 = vunpack.c.l.b16 %v155_v14  ;;  %v600_v21 = vunpack.c.l.b16 %v1209_v16  ;;  %v1473_v22 = vld [vmem:[%s1781_s1 + $0x1ec] sm:$0xff] }
  0x20   : >> { %367 = vmatpush.bf16.msra.mxu0 %v1432_v28  ;;  %v1460_v8 = vld [vmem:[%s1781_s1 + $0x180] sm:$0xff]  ;;  %v1449_v17 = vld [vmem:[%s1781_s1 + $0x128] sm:$0xff]  ;;  %v1458_v19 = vld [vmem:[%s1781_s1 + $0x170] sm:$0xff] }
  0x21   : >> { %519 = vmatpush.bf16.msrb.mxu3 %v1418_v24  ;;  %380 = vmatpush.bf16.msra.mxu1 %v1440_v29  ;;  %v1308_v23 = vld [vmem:[%s1574_s10 + $0xc] sm:$0x77]  ;;  %v1448_v24 = vld [vmem:[%s1781_s1 + $0x120] sm:$0xff]  ;;  %v409_v27 = vpack.c.b16 %v406_v20, %v406_v20  ;;  %v603_v28 = vpack.c.b16 %v600_v21, %v600_v21  ;;  %v1447_v33 = vld [vmem:[%s1781_s1 + $0x118] sm:$0xff] }
  0x22   : >> { %534 = vmatpush.bf16.msra.mxu2 %v1424_v30  ;;  %v1465_v25 = vld [vmem:[%s1781_s1 + $0x1ac] sm:$0xff]  ;;  %v790_v29 = vunpack.c.h.b16 %v1308_v23  ;;  %v1472_v30 = vld [vmem:[%s1781_s1 + $0x1e4] sm:$0xff]  ;;  %v1463_v41 = vld [vmem:[%s1781_s1 + $0x19c] sm:$0xff] }
  0x23   : >> { %v1457_v26 = vld [vmem:[%s1781_s1 + $0x168] sm:$0xff]  ;;  %v1456_v35 = vld [vmem:[%s1781_s1 + $0x160] sm:$0xff]  ;;  %v1446_v40 = vld [vmem:[%s1781_s1 + $0x110] sm:$0xff] }
  0x24   : >> { %368 = vmatpush.bf16.msra.mxu0 %v1431_v36  ;;  %v1342_v31 = vld [vmem:[%s1781_s1 + $0x20c] sm:$0x3]  ;;  %v1464_v34 = vld [vmem:[%s1781_s1 + $0x1a4] sm:$0xff]  ;;  %v1455_v43 = vld [vmem:[%s1781_s1 + $0x158] sm:$0xff] }
  0x25   : >> { %520 = vmatpush.bf16.msrb.mxu3 %v1417_v32  ;;  %381 = vmatpush.bf16.msra.mxu1 %v1439_v37  ;;  %v789_v32 = vunpack.c.l.b16 %v1308_v23  ;;  %v883_v36 = vunpack.c.l.b16 %v1342_v31  ;;  %v793_v37 = vpack.c.b16 %v790_v29, %v790_v29  ;;  %v1208_v42 = vld [vmem:[%s1574_s10 + $0xc] sm:$0x33]  ;;  %v1462_v50 = vld [vmem:[%s1781_s1 + $0x194] sm:$0xff] }
  0x26   : >> { %535 = vmatpush.bf16.msra.mxu2 %v1423_v38  ;;  %v1471_v38 = vld [vmem:[%s1781_s1 + $0x1dc] sm:$0xff]  ;;  %v598_v47 = vunpack.c.l.b16 %v1208_v42  ;;  %v1309_v51 = vld [vmem:[%s1574_s10 + $0x14] sm:$0x7]  ;;  %v1469_v57 = vld [vmem:[%s1781_s1 + $0x1cc] sm:$0xff] }
  0x27   : >> { %v1454_v52 = vld [vmem:[%s1781_s1 + $0x150] sm:$0xff]  ;;  %v803_v54 = vshrl.u32 %v793_v37, 16  ;;  %v791_v60 = vunpack.c.l.b16 %v1309_v51 }
  0x28   : >> { %369 = vmatpush.bf16.msra.mxu0 %v1430_v44  ;;  %v900_v44 = vpack.c.b16 %v883_v36, %v883_v36 }
  0x29   : >> { %521 = vmatpush.bf16.msrb.mxu3 %v1416_v39  ;;  %382 = vmatpush.bf16.msra.mxu1 %v1438_v45  ;;  %v792_v39 = vpack.c.b16 %v789_v32, %v789_v32  ;;  %v805_v45 = vshll.u32 %v793_v37, 16  ;;  %v794_v2 = vpack.c.b16 %v791_v60, %v791_v60 }
  0x2a   : >> { %536 = vmatpush.bf16.msra.mxu2 %v1422_v46  ;;  %v1470_v46 = vld [vmem:[%s1781_s1 + $0x1d4] sm:$0xff]  ;;  %v921_v53 = vsel %vm359_vm0, %v900_v44, 0 }
  0x2b   : >> { %v798_v48 = vshll.u32 %v792_v39, 16 }
  0x2c   : >> { %370 = vmatpush.bf16.msra.mxu0 %v1429_v55  ;;  %v807_v55 = vrot.slane %v805_v45, 1 }
  0x2d   : >> { %522 = vmatpush.bf16.msrb.mxu3 %v1415_v49  ;;  %383 = vmatpush.bf16.msra.mxu1 %v1437_v56  ;;  %v1445_v49 = vld [vmem:[%s1781_s1 + $0x108] sm:$0xff]  ;;  %v601_v56 = vpack.c.b16 %v598_v47, %v598_v47 }
  0x2e   : >> { %537 = vmatpush.bf16.msra.mxu2 %v1421_v58  ;;  %v796_v58 = vshrl.u32 %v792_v39, 16 }
  0x2f   : >> { %371 = vmatmul.bf16.vlgmr.msra.gmra.mxu0 %v239_v62  ;;  %v1461_v62 = vld [vmem:[%s1781_s1 + $0x18c] sm:$0xff] }
  0x30   : >> { %384 = vmatmul.bf16.vlgmr.msra.gmra.mxu1 %v246_v0  ;;  %550 = vmatpush.bf16.msrb.mxu0 %v515_v5  ;;  %v808_v0 = vor.u32 %v807_v55, %v803_v54  ;;  %v810_v5 = vshrl.u32 %v794_v2, 16 }
  0x31   : >> { %711 = vmatpush.bf16.msrb.mxu1 %v1452_v59  ;;  %523 = vmatpush.bf16.msrb.mxu3 %v1414_v61  ;;  %v800_v59 = vrot.slane %v798_v48, 1  ;;  %v599_v61 = vunpack.c.h.b16 %v1208_v42 }
  0x32   : >> { %744 = vmatpush.bf16.msrb.mxu2 %v709_v63  ;;  %v1453_v63 = vld [vmem:[%s1781_s1 + $0x148] sm:$0xff] }
  0x33   : >> { %538 = vmatmul.bf16.vlgmr.msra.gmra.mxu2 %v408_v1  ;;  %v801_v1 = vor.u32 %v800_v59, %v796_v58 }
  0x34   : >> { %923 = vmatpush.bf16.msra.mxu0 %v1468_v7 }
  0x35   : >> { %712 = vmatpush.bf16.msrb.mxu1 %v1451_v4  ;;  %524 = vmatpush.bf16.msrb.mxu3 %v1413_v6  ;;  %v812_v4 = vshll.u32 %v794_v2, 16 }
  0x36   : >> { %936 = vmatpush.bf16.msra.mxu2 %v1476_v3  ;;  %v602_v3 = vpack.c.b16 %v599_v61, %v599_v61 }
  0x37   : >> { %v814_v6 = vrot.slane %v812_v4, 1 }
  0x38   : >> { %525 = vmatmul.bf16.vlgmr.msrb.gmra.mxu3 %v407_v9  ;;  %924 = vmatpush.bf16.msra.mxu0 %v1467_v12 }
  0x39   : >> { %724 = vmatpush.bf16.msra.mxu3 %v1460_v8  ;;  %713 = vmatpush.bf16.msrb.mxu1 %v1450_v11  ;;  %v815_v7 = vor.u32 %v814_v6, %v810_v5 }
  0x3a   : >> { %937 = vmatpush.bf16.msra.mxu2 %v1475_v10 }
  0x3c   : >> { %925 = vmatpush.bf16.msra.mxu0 %v1466_v18 }
  0x3d   : >> { %725 = vmatpush.bf16.msra.mxu3 %v1459_v13  ;;  %714 = vmatpush.bf16.msrb.mxu1 %v1449_v17 }
  0x3e   : >> { %938 = vmatpush.bf16.msra.mxu2 %v1474_v15 }
  0x3f   : >> { %1207 = vmatmul.msk.bf16.vlgmr.msrb.gmra.mxu0 %vm355_vm1, %v409_v27 }
  0x40   : >> { %926 = vmatpush.bf16.msra.mxu0 %v1465_v25 }
  0x41   : >> { %726 = vmatpush.bf16.msra.mxu3 %v1458_v19  ;;  %715 = vmatpush.bf16.msrb.mxu1 %v1448_v24 }
  0x42   : >> { %939 = vmatpush.bf16.msra.mxu2 %v1473_v22 }
  0x43   : >> { %1307 = vmatmul.msk.bf16.vlgmr.msrb.gmra.mxu2 %vm355_vm1, %v603_v28 }
  0x44   : >> { %927 = vmatpush.bf16.msra.mxu0 %v1464_v34 }
  0x45   : >> { %727 = vmatpush.bf16.msra.mxu3 %v1457_v26  ;;  %716 = vmatpush.bf16.msrb.mxu1 %v1447_v33 }
  0x46   : >> { %940 = vmatpush.bf16.msra.mxu2 %v1472_v30 }
  0x48   : >> { %928 = vmatpush.bf16.msra.mxu0 %v1463_v41 }
  0x49   : >> { %728 = vmatpush.bf16.msra.mxu3 %v1456_v35  ;;  %717 = vmatpush.bf16.msrb.mxu1 %v1446_v40 }
  0x4a   : >> { %941 = vmatpush.bf16.msra.mxu2 %v1471_v38 }
  0x4c   : >> { %929 = vmatpush.bf16.msra.mxu0 %v1462_v50 }
  0x4d   : >> { %729 = vmatpush.bf16.msra.mxu3 %v1455_v43  ;;  %718 = vmatpush.bf16.msrb.mxu1 %v1445_v49 }
  0x4e   : >> { %942 = vmatpush.bf16.msra.mxu2 %v1470_v46 }
  0x50   : >> { %719 = vmatmul.bf16.vlgmr.msrb.gmra.mxu1 %v601_v56  ;;  %930 = vmatpush.bf16.msra.mxu0 %v1461_v62 }
  0x51   : >> { %730 = vmatpush.bf16.msra.mxu3 %v1454_v52  ;;  %956 = vmatpush.bf16.msra.mxu1 %v921_v53 }
  0x52   : >> { %943 = vmatpush.bf16.msra.mxu2 %v1469_v57 }
  0x53   : >> { %931 = vmatmul.bf16.vlgmr.msra.gmra.mxu0 %v801_v1 }
  0x55   : >> { %731 = vmatpush.bf16.msra.mxu3 %v1453_v63  ;;  %944 = vmatmul.bf16.vlgmr.msra.gmra.mxu2 %v808_v0 }
  0x58   : >> { %732 = vmatmul.bf16.vlgmr.msra.gmra.mxu3 %v602_v3 }
  0x60   : >> { %1407 = vmatmul.msk.bf16.vlgmr.msra.gmra.mxu1 %vm355_vm1, %v815_v7 }
  0xa1   : >> { %v398_v8 = vpop.f32.mrf.mxu3 }
  0xa9   : >> { %v400_v9 = vpop.f32.mrf.mxu3 }
  0xac   : >> { %v372_v10 = vpop.f32.mrf.mxu0 }
  0xad   : >> { %v385_v11 = vpop.f32.mrf.mxu1 }
  0xae   : >> { %v386_v21 = vadd.f32 %v385_v11, %v372_v10 }
  0xb0   : >> { %v399_v24 = vadd.f32 %v398_v8, %v386_v21 }
  0xb4   : >> { %v374_v13 = vpop.f32.mrf.mxu0 }
  0xb5   : >> { %v387_v14 = vpop.f32.mrf.mxu1 }
  0xb6   : >> { %v539_v12 = vpop.f32.mrf.mxu2 }
  0xbb   : >> { %v526_v15 = vpop.f32.mrf.mxu3 }
  0xbc   : >> { %v552_v17 = vpop.f32.mrf.mxu0  ;;  %v527_v26 = vadd.f32 %v526_v15, %v399_v24 }
  0xbe   : >> { %v541_v16 = vpop.f32.mrf.mxu2  ;;  %v540_v29 = vadd.f32 %v539_v12, %v527_v26 }
  0xc0   : >> { %v553_v34 = vadd.f32 %v552_v17, %v540_v29 }
  0xc3   : >> { %v528_v18 = vpop.f32.mrf.mxu3 }
  0xc4   : >> { %v554_v20 = vpop.f32.mrf.mxu0 }
  0xc6   : >> { %v746_v19 = vpop.f32.mrf.mxu2 }
  0xcd   : >> { %v720_v22 = vpop.f32.mrf.mxu1 }
  0xce   : >> { %v748_v23 = vpop.f32.mrf.mxu2 }
  0xd0   : >> { %v932_v25 = vpop.f32.mrf.mxu0 }
  0xd5   : >> { %v722_v27 = vpop.f32.mrf.mxu1 }
  0xd8   : >> { %v945_v28 = vpop.f32.mrf.mxu2  ;;  %v934_v32 = vpop.f32.mrf.mxu0 }
  0xd9   : >> { %v946_v33 = vadd.f32 %v945_v28, %v932_v25 }
  0xdb   : >> { %v733_v30 = vpop.f32.mrf.mxu3 }
  0xdc   : >> { %v734_v31 = vadd.f32 %v733_v30, %v720_v22 }
  0xdd   : >> { %v958_v37 = vpop.f32.mrf.mxu1 }
  0xde   : >> { %v747_v35 = vadd.f32 %v746_v19, %v734_v31  ;;  %v959_v38 = vadd.f32 %v958_v37, %v946_v33 }
  0xe0   : >> { %v750_v36 = vadd.f32 %v747_v35, %v553_v34  ;;  %v947_v39 = vpop.f32.mrf.mxu2 }
  0xe2   : >> { %v962_v40 = vadd.f32 %v959_v38, %v750_v36 }
  0xe3   : >> { %v735_v41 = vpop.f32.mrf.mxu3 }
  0xe4   : >> { %v963_v42 = vmul.f32 0.2, %v962_v40 }
  0xe5   : >> { %v960_v44 = vpop.f32.mrf.mxu1 }
  0xe6   : >> { %v964_v43 = vmax.f32 %v962_v40, %v963_v42  ;;  %149 = sbr.rel (!%p147_p4) target bundleno = 15 (0xf), region = 71 }
  0xe8   : >> { %v965_v45 = vpack.c.bf16 %v964_v43, %v964_v43 }
  0xea   : >> { %968 = vst [vmem:[%s967_s17] sm:$0x3] %v965_v45 }
  0xeb PF: > { %s12_s9 = sadd.s32 1, %s1504_s9  }
  0xec   : > { %p9_p5 = scmp.ge.s32.totalorder %s12_s9, 4  }
  0xee   :  { %11 = sbr.rel (!%p9_p5) target bundleno = 1 (0x1), region = 82 }

// kernel: discriminator_forward.7
= control target key start
LH: loop header
LB: loop body
LE: loop exit
PB: predicated region body
PF: predicated region fallthrough
CT: control target
= control target key end

     0   :  { %s4030_s9 = smov 0   ;;  %s5755_s0 = inlined_call_operand.vmem [shape: bf16[2,3,3,516], index: 0, kind: input, shape index: {}]   ;;  %s5756_s1 = inlined_call_operand.vmem [shape: bf16[4,516,256], index: 1, kind: input, shape index: {}]   ;;  %s5757_s2 = inlined_call_operand.vmem [shape: bf16[2,2,2,256], index: 2, kind: output, shape index: {}]  }
   0x1 LB: > { %s2483_s10 = sadd.s32 4294967295, %s4009_s9   ;;  %p2487_p0 = scmp.ge.s32.totalorder %s4009_s9, 1  ;;  %s4009_s9 = sphi %s4030_s9, %s12_s9  }
   0x2   : > { %p112_p1 = scmp.lt.s32.totalorder %s4009_s9, 3 }
   0x4   : > { %p113_p2 = pnand %p2487_p0, %p112_p1 }
   0x5   : > { %p133_p3 = scmp.lt.s32.totalorder (!%p113_p2), %s2483_s10, 1  ;;  %s4048_s19 = smov (!%p113_p2), 0  }
   0x6   : > { %116 = sbr.rel (%p113_p2) target bundleno = 442 (0x1ba), region = 28 }
   0xb   : > { %s5759_s10 = smov (!%p133_p3, %s2483_s10), 1 }
   0xc   : > { %s3982_s11 = smul.u32 30, %s5759_s10  ;;  %s2489_s12 = sshll.u32 %s5759_s10, 2 }
   0xd   : > { %s4041_s15 = scalar_lea.vmem %s5757_s2, %s2489_s12 }
   0xe   : > { %s4046_s18 = scalar_lea.vmem %s5755_s0, %s3982_s11 }
   0xf LB: >> { %v2614_v0 = vld [vmem:[%s5756_s1 + $0x278] sm:$0xf]  ;;  %v3805_v1 = vld [vmem:[%s5756_s1 + $0x27c] sm:$0xf0]  ;;  %v2606_v11 = vld [vmem:[%s5756_s1 + $0x268] sm:$0xf]  ;;  %s4013_s19 = sphi %s4048_s19, %s148_s19  }
  0x10   : >> { %v2678_v2 = vld [vmem:[%s5756_s1 + $0x2f8] sm:$0xf]  ;;  %v2615_v3 = vor.u32 %v3805_v1, %v2614_v0  ;;  %v3821_v4 = vld [vmem:[%s5756_s1 + $0x2fc] sm:$0xf0]  ;;  %v3803_v13 = vld [vmem:[%s5756_s1 + $0x26c] sm:$0xf0] }
  0x11   : >> { %v2742_v5 = vld [vmem:[%s5756_s1 + $0x378] sm:$0xf]  ;;  %v3837_v6 = vld [vmem:[%s5756_s1 + $0x37c] sm:$0xf0]  ;;  %v2679_v7 = vor.u32 %v3821_v4, %v2678_v2  ;;  %v2670_v14 = vld [vmem:[%s5756_s1 + $0x2e8] sm:$0xf]  ;;  %v2607_v16 = vor.u32 %v3803_v13, %v2606_v11 }
  0x12   : >> { %v2743_v8 = vor.u32 %v3837_v6, %v2742_v5  ;;  %v2806_v9 = vld [vmem:[%s5756_s1 + $0x3f8] sm:$0xf]  ;;  %v3853_v10 = vld [vmem:[%s5756_s1 + $0x3fc] sm:$0xf0]  ;;  %667 = vmatpush.bf16.msra.mxu0 %v2615_v3  ;;  %v3819_v15 = vld [vmem:[%s5756_s1 + $0x2ec] sm:$0xf0] }
  0x13   : >> { %v2807_v12 = vor.u32 %v3853_v10, %v2806_v9  ;;  %680 = vmatpush.bf16.msra.mxu1 %v2679_v7  ;;  %v2671_v17 = vor.u32 %v3819_v15, %v2670_v14  ;;  %v2734_v18 = vld [vmem:[%s5756_s1 + $0x368] sm:$0xf]  ;;  %v3835_v19 = vld [vmem:[%s5756_s1 + $0x36c] sm:$0xf0]  ;;  %v2598_v23 = vld [vmem:[%s5756_s1 + $0x258] sm:$0xf] }
  0x14   : >> { %693 = vmatpush.bf16.msra.mxu2 %v2743_v8  ;;  %v2798_v20 = vld [vmem:[%s5756_s1 + $0x3e8] sm:$0xf]  ;;  %v2735_v21 = vor.u32 %v3835_v19, %v2734_v18  ;;  %v3851_v22 = vld [vmem:[%s5756_s1 + $0x3ec] sm:$0xf0]  ;;  %v3801_v24 = vld [vmem:[%s5756_s1 + $0x25c] sm:$0xf0] }
  0x15   : >> { %706 = vmatpush.bf16.msra.mxu3 %v2807_v12  ;;  %v2799_v25 = vor.u32 %v3851_v22, %v2798_v20  ;;  %v2662_v26 = vld [vmem:[%s5756_s1 + $0x2d8] sm:$0xf]  ;;  %v3817_v27 = vld [vmem:[%s5756_s1 + $0x2dc] sm:$0xf0]  ;;  %v2599_v29 = vor.u32 %v3801_v24, %v2598_v23  ;;  %v2590_v35 = vld [vmem:[%s5756_s1 + $0x248] sm:$0xf] }
  0x16   : >> { %v2726_v28 = vld [vmem:[%s5756_s1 + $0x358] sm:$0xf]  ;;  %668 = vmatpush.bf16.msra.mxu0 %v2607_v16  ;;  %v3833_v30 = vld [vmem:[%s5756_s1 + $0x35c] sm:$0xf0]  ;;  %v2663_v33 = vor.u32 %v3817_v27, %v2662_v26  ;;  %v3799_v36 = vld [vmem:[%s5756_s1 + $0x24c] sm:$0xf0] }
  0x17   : >> { %v2790_v31 = vld [vmem:[%s5756_s1 + $0x3d8] sm:$0xf]  ;;  %v3849_v32 = vld [vmem:[%s5756_s1 + $0x3dc] sm:$0xf0]  ;;  %681 = vmatpush.bf16.msra.mxu1 %v2671_v17  ;;  %v2727_v34 = vor.u32 %v3833_v30, %v2726_v28  ;;  %v2654_v37 = vld [vmem:[%s5756_s1 + $0x2c8] sm:$0xf]  ;;  %v2591_v44 = vor.u32 %v3799_v36, %v2590_v35 }
  0x18   : >> { %694 = vmatpush.bf16.msra.mxu2 %v2735_v21  ;;  %v2791_v38 = vor.u32 %v3849_v32, %v2790_v31  ;;  %v3815_v39 = vld [vmem:[%s5756_s1 + $0x2cc] sm:$0xf0]  ;;  %v2718_v40 = vld [vmem:[%s5756_s1 + $0x348] sm:$0xf]  ;;  %v2582_v47 = vld [vmem:[%s5756_s1 + $0x238] sm:$0xf] }
  0x19   : >> { %707 = vmatpush.bf16.msra.mxu3 %v2799_v25  ;;  %v3831_v41 = vld [vmem:[%s5756_s1 + $0x34c] sm:$0xf0]  ;;  %v2782_v42 = vld [vmem:[%s5756_s1 + $0x3c8] sm:$0xf]  ;;  %v2655_v45 = vor.u32 %v3815_v39, %v2654_v37  ;;  %v3797_v48 = vld [vmem:[%s5756_s1 + $0x23c] sm:$0xf0] }
  0x1a   : >> { %v3847_v43 = vld [vmem:[%s5756_s1 + $0x3cc] sm:$0xf0]  ;;  %669 = vmatpush.bf16.msra.mxu0 %v2599_v29  ;;  %v2719_v46 = vor.u32 %v3831_v41, %v2718_v40  ;;  %v2646_v49 = vld [vmem:[%s5756_s1 + $0x2b8] sm:$0xf]  ;;  %v3813_v51 = vld [vmem:[%s5756_s1 + $0x2bc] sm:$0xf0]  ;;  %v2583_v56 = vor.u32 %v3797_v48, %v2582_v47 }
  0x1b   : >> { %682 = vmatpush.bf16.msra.mxu1 %v2663_v33  ;;  %v2783_v50 = vor.u32 %v3847_v43, %v2782_v42  ;;  %v2710_v52 = vld [vmem:[%s5756_s1 + $0x338] sm:$0xf]  ;;  %v3829_v53 = vld [vmem:[%s5756_s1 + $0x33c] sm:$0xf0]  ;;  %v2647_v57 = vor.u32 %v3813_v51, %v2646_v49  ;;  %v2574_v59 = vld [vmem:[%s5756_s1 + $0x228] sm:$0xf] }
  0x1c   : >> { %695 = vmatpush.bf16.msra.mxu2 %v2727_v34  ;;  %v2774_v54 = vld [vmem:[%s5756_s1 + $0x3b8] sm:$0xf]  ;;  %v3845_v55 = vld [vmem:[%s5756_s1 + $0x3bc] sm:$0xf0]  ;;  %v2711_v58 = vor.u32 %v3829_v53, %v2710_v52  ;;  %v3795_v60 = vld [vmem:[%s5756_s1 + $0x22c] sm:$0xf0] }
  0x1d   : >> { %708 = vmatpush.bf16.msra.mxu3 %v2791_v38  ;;  %v2638_v61 = vld [vmem:[%s5756_s1 + $0x2a8] sm:$0xf]  ;;  %v2775_v62 = vor.u32 %v3845_v55, %v2774_v54  ;;  %v3811_v63 = vld [vmem:[%s5756_s1 + $0x2ac] sm:$0xf0]  ;;  %v2575_v4 = vor.u32 %v3795_v60, %v2574_v59  ;;  %v2566_v5 = vld [vmem:[%s5756_s1 + $0x218] sm:$0xf] }
  0x1e   : >> { %670 = vmatpush.bf16.msra.mxu0 %v2591_v44  ;;  %v2702_v0 = vld [vmem:[%s5756_s1 + $0x328] sm:$0xf]  ;;  %v3827_v1 = vld [vmem:[%s5756_s1 + $0x32c] sm:$0xf0]  ;;  %v2639_v6 = vor.u32 %v3811_v63, %v2638_v61  ;;  %v3793_v8 = vld [vmem:[%s5756_s1 + $0x21c] sm:$0xf0] }
  0x1f   : >> { %683 = vmatpush.bf16.msra.mxu1 %v2655_v45  ;;  %v2766_v2 = vld [vmem:[%s5756_s1 + $0x3a8] sm:$0xf]  ;;  %v3843_v3 = vld [vmem:[%s5756_s1 + $0x3ac] sm:$0xf0]  ;;  %v2703_v7 = vor.u32 %v3827_v1, %v2702_v0  ;;  %v2630_v9 = vld [vmem:[%s5756_s1 + $0x298] sm:$0xf]  ;;  %v2567_v18 = vor.u32 %v3793_v8, %v2566_v5 }
  0x20   : >> { %696 = vmatpush.bf16.msra.mxu2 %v2719_v46  ;;  %v3809_v10 = vld [vmem:[%s5756_s1 + $0x29c] sm:$0xf0]  ;;  %v2767_v11 = vor.u32 %v3843_v3, %v2766_v2  ;;  %v2694_v12 = vld [vmem:[%s5756_s1 + $0x318] sm:$0xf]  ;;  %v2558_v16 = vld [vmem:[%s5756_s1 + $0x208] sm:$0xf] }
  0x21   : >> { %709 = vmatpush.bf16.msra.mxu3 %v2783_v50  ;;  %v3825_v13 = vld [vmem:[%s5756_s1 + $0x31c] sm:$0xf0]  ;;  %v2758_v14 = vld [vmem:[%s5756_s1 + $0x398] sm:$0xf]  ;;  %v3791_v17 = vld [vmem:[%s5756_s1 + $0x20c] sm:$0xf0]  ;;  %v2631_v22 = vor.u32 %v3809_v10, %v2630_v9 }
  0x22   : >> { %671 = vmatpush.bf16.msra.mxu0 %v2583_v56  ;;  %v3841_v15 = vld [vmem:[%s5756_s1 + $0x39c] sm:$0xf0]  ;;  %v2622_v19 = vld [vmem:[%s5756_s1 + $0x288] sm:$0xf]  ;;  %v3807_v20 = vld [vmem:[%s5756_s1 + $0x28c] sm:$0xf0]  ;;  %v2695_v23 = vor.u32 %v3825_v13, %v2694_v12  ;;  %v2559_v35 = vor.u32 %v3791_v17, %v2558_v16 }
  0x23   : >> { %684 = vmatpush.bf16.msra.mxu1 %v2647_v57  ;;  %v4236_v21 = vld [vmem:[%s5756_s1 + $0x408] sm:$0x33]  ;;  %s3725_s22 = smul.u32 10, %s4013_s19  ;;  %v3823_v25 = vld [vmem:[%s5756_s1 + $0x30c] sm:$0xf0]  ;;  %v2759_v28 = vor.u32 %v3841_v15, %v2758_v14  ;;  %v2623_v38 = vor.u32 %v3807_v20, %v2622_v19  ;;  %vm660_vm0 = vcmask 1041408  }
  0x24   : >> { %697 = vmatpush.bf16.msra.mxu2 %v2711_v58  ;;  %v2686_v24 = vld [vmem:[%s5756_s1 + $0x308] sm:$0xf]  ;;  %v524_v27 = vunpack.c.l.b16 %v4236_v21  ;;  %v3839_v29 = vld [vmem:[%s5756_s1 + $0x38c] sm:$0xf0]  ;;  %v3804_v30 = vld [vmem:[%s5756_s1 + $0x27c] sm:$0xf] }
  0x25   : >> { %710 = vmatpush.bf16.msra.mxu3 %v2775_v62  ;;  %v2750_v26 = vld [vmem:[%s5756_s1 + $0x388] sm:$0xf]  ;;  %v2616_v31 = vld [vmem:[%s5756_s1 + $0x280] sm:$0xf0]  ;;  %s4259_s7 = scalar_lea.vmem %s4046_s18, %s3725_s22  ;;  %v3820_v32 = vld [vmem:[%s5756_s1 + $0x2fc] sm:$0xf]  ;;  %v2687_v39 = vor.u32 %v3823_v25, %v2686_v24 }
  0x26   : >> { %672 = vmatpush.bf16.msra.mxu0 %v2575_v4  ;;  %v2680_v33 = vld [vmem:[%s5756_s1 + $0x300] sm:$0xf0]  ;;  %v3836_v36 = vld [vmem:[%s5756_s1 + $0x37c] sm:$0xf]  ;;  %v590_v40 = vpack.c.b16 %v524_v27, %v524_v27  ;;  %v2751_v41 = vor.u32 %v3839_v29, %v2750_v26  ;;  %v2619_v42 = vor.u32 %v3804_v30, %v2616_v31  ;;  %v3802_v45 = vld [vmem:[%s5756_s1 + $0x26c] sm:$0xf] }
  0x27   : >> { %685 = vmatpush.bf16.msra.mxu1 %v2639_v6  ;;  %v219_v34 = vld [vmem:[%s4259_s7] sm:$0xff]  ;;  %v2683_v43 = vor.u32 %v3820_v32, %v2680_v33  ;;  %v2608_v46 = vld [vmem:[%s5756_s1 + $0x270] sm:$0xf0]  ;;  %v3818_v47 = vld [vmem:[%s5756_s1 + $0x2ec] sm:$0xf]  ;;  %vm656_vm1 = vcmask 31744  }
  0x28   : >> { %698 = vmatpush.bf16.msra.mxu2 %v2703_v7  ;;  %v2744_v37 = vld [vmem:[%s5756_s1 + $0x380] sm:$0xf0]  ;;  %288 = vst [vmem:[#allocation1] ss:$4 sm:$0xff] %v219_v34  ;;  %v2672_v48 = vld [vmem:[%s5756_s1 + $0x2f0] sm:$0xf0]  ;;  %v2611_v55 = vor.u32 %v3802_v45, %v2608_v46 }
  0x29   : >> { %711 = vmatpush.bf16.msra.mxu3 %v2767_v11  ;;  %v2747_v44 = vor.u32 %v3836_v36, %v2744_v37  ;;  %v3834_v49 = vld [vmem:[%s5756_s1 + $0x36c] sm:$0xf]  ;;  %v2736_v50 = vld [vmem:[%s5756_s1 + $0x370] sm:$0xf0]  ;;  %v662_v51 = vsel %vm660_vm0, %v590_v40, 0  ;;  %v2675_v60 = vor.u32 %v3818_v47, %v2672_v48  ;;  %s3722_s17 = sshll.u32 %s4013_s19, 1 }
  0x2a   : >> { %673 = vmatpush.bf16.msra.mxu0 %v2567_v18  ;;  %v3800_v52 = vld [vmem:[%s5756_s1 + $0x25c] sm:$0xf]  ;;  %v2808_v54 = vld [vmem:[%s5756_s1 + $0x400] sm:$0xf0]  ;;  %v2739_v61 = vor.u32 %v3834_v49, %v2736_v50  ;;  %v3850_v10 = vld [vmem:[%s5756_s1 + $0x3ec] sm:$0xf]  ;;  %s2416_s20 = scalar_lea.vmem %s4041_s15, %s3722_s17 }
  0x2b   : >> { %686 = vmatpush.bf16.msra.mxu1 %v2631_v22  ;;  %v3852_v53 = vld [vmem:[%s5756_s1 + $0x3fc] sm:$0xf]  ;;  %v2600_v56 = vld [vmem:[%s5756_s1 + $0x260] sm:$0xf0]  ;;  %v2800_v11 = vld [vmem:[%s5756_s1 + $0x3f0] sm:$0xf0] }
  0x2c   : >> { %699 = vmatpush.bf16.msra.mxu2 %v2695_v23  ;;  %v3816_v57 = vld [vmem:[%s5756_s1 + $0x2dc] sm:$0xf]  ;;  %v2664_v58 = vld [vmem:[%s5756_s1 + $0x2e0] sm:$0xf0]  ;;  %v2603_v6 = vor.u32 %v3800_v52, %v2600_v56  ;;  %v2811_v15 = vor.u32 %v3852_v53, %v2808_v54  ;;  %v3798_v17 = vld [vmem:[%s5756_s1 + $0x24c] sm:$0xf]  ;;  %v2803_v34 = vor.u32 %v3850_v10, %v2800_v11 }
  0x2d   : >> { %712 = vmatpush.bf16.msra.mxu3 %v2759_v28  ;;  %v3832_v62 = vld [vmem:[%s5756_s1 + $0x35c] sm:$0xf]  ;;  %v2728_v63 = vld [vmem:[%s5756_s1 + $0x360] sm:$0xf0]  ;;  %v2667_v16 = vor.u32 %v3816_v57, %v2664_v58  ;;  %v2592_v18 = vld [vmem:[%s5756_s1 + $0x250] sm:$0xf0] }
  0x2e   : >> { %674 = vmatpush.bf16.msra.mxu0 %v2559_v35  ;;  %v152_v5 = vld [vmem:[%s4259_s7] sm:$0x55]  ;;  %v2731_v23 = vor.u32 %v3832_v62, %v2728_v63  ;;  %v3814_v25 = vld [vmem:[%s5756_s1 + $0x2cc] sm:$0xf]  ;;  %v2656_v26 = vld [vmem:[%s5756_s1 + $0x2d0] sm:$0xf0]  ;;  %v2595_v32 = vor.u32 %v3798_v17, %v2592_v18 }
  0x2f   : >> { %687 = vmatpush.bf16.msra.mxu1 %v2623_v38  ;;  %v292_v59 = vld.sshfl [vmem:[#allocation1] sm:$0xff pattern:$0x73625140]  ;;  %v294_v0 = vld.sshfl [vmem:[#allocation1 + $0x10] sm:$0xff pattern:$0x73625140]  ;;  %v2659_v36 = vor.u32 %v3814_v25, %v2656_v26 }
  0x30   : >> { %700 = vmatpush.bf16.msra.mxu2 %v2687_v39  ;;  %v297_v1 = vshrl.u32 %v292_v59, 16  ;;  %v299_v2 = vshll.u32 %v292_v59, 16  ;;  %v309_v3 = vshrl.u32 %v294_v0, 16  ;;  %v311_v4 = vshll.u32 %v294_v0, 16  ;;  %v3830_v28 = vld [vmem:[%s5756_s1 + $0x34c] sm:$0xf] }
  0x31   : >> { %713 = vmatpush.bf16.msra.mxu3 %v2751_v41  ;;  %v295_v7 = vld.sshfl [vmem:[#allocation1 + $0x18] sm:$0xff pattern:$0x73625140]  ;;  %v293_v8 = vld.sshfl [vmem:[#allocation1 + $0x8] sm:$0xff pattern:$0x73625140] }
  0x32   : >> { %726 = vmatpush.bf16.msrb.mxu0 %v662_v51  ;;  %v301_v9 = vrot.slane %v299_v2, 1  ;;  %v313_v12 = vrot.slane %v311_v4, 1  ;;  %v315_v13 = vshrl.u32 %v295_v7, 16  ;;  %v317_v14 = vshll.u32 %v295_v7, 16  ;;  %798 = vst [vmem:[#allocation1] ss:$4 sm:$0xff] %v152_v5 }
  0x33   : >> { %732 = vmatpush.bf16.msrb.mxu1 %v2619_v42  ;;  %v303_v19 = vshrl.u32 %v293_v8, 16  ;;  %v305_v20 = vshll.u32 %v293_v8, 16  ;;  %v2720_v29 = vld [vmem:[%s5756_s1 + $0x350] sm:$0xf0]  ;;  %v3848_v31 = vld [vmem:[%s5756_s1 + $0x3dc] sm:$0xf] }
  0x34   : >> { %745 = vmatpush.bf16.msrb.mxu2 %v2683_v43  ;;  %v4330_v22 = vor.u32 %v301_v9, %v297_v1  ;;  %v4332_v24 = vor.u32 %v313_v12, %v309_v3  ;;  %v319_v27 = vrot.slane %v317_v14, 1  ;;  %v2792_v35 = vld [vmem:[%s5756_s1 + $0x3e0] sm:$0xf0]  ;;  %v3796_v38 = vld [vmem:[%s5756_s1 + $0x23c] sm:$0xf]  ;;  %v2723_v40 = vor.u32 %v3830_v28, %v2720_v29  ;;  %s148_s19 = sadd.s32 1, %s4013_s19  }
  0x35   : >> { %758 = vmatpush.bf16.msrb.mxu3 %v2747_v44  ;;  %v307_v30 = vrot.slane %v305_v20, 1  ;;  %v2584_v39 = vld [vmem:[%s5756_s1 + $0x240] sm:$0xf0]  ;;  %v3812_v41 = vld [vmem:[%s5756_s1 + $0x2bc] sm:$0xf]  ;;  %v2795_v47 = vor.u32 %v3848_v31, %v2792_v35  ;;  %v525_v9 = vunpack.c.h.b16 %v4236_v21  ;;  %vm2410_vm2 = vcmask 1040384  }
  0x36   : >> { %675 = vmatmul.bf16.vlgmr.msra.gmra.mxu0 %v4330_v22  ;;  %v4350_v33 = vor.u32 %v319_v27, %v315_v13  ;;  %701 = vmatmul.bf16.vlgmr.msra.gmra.mxu2 %v4332_v24  ;;  %v2648_v42 = vld [vmem:[%s5756_s1 + $0x2c0] sm:$0xf0]  ;;  %v220_v43 = vld [vmem:[%s4259_s7 + $0x8] sm:$0x3]  ;;  %v3828_v44 = vld [vmem:[%s5756_s1 + $0x33c] sm:$0xf]  ;;  %v2587_v46 = vor.u32 %v3796_v38, %v2584_v39 }
  0x37   : >> { %733 = vmatpush.bf16.msrb.mxu1 %v2611_v55  ;;  %771 = vmatpush.bf16.msra.mxu0 %v2811_v15  ;;  %v4355_v37 = vor.u32 %v307_v30, %v303_v19  ;;  %v2712_v45 = vld [vmem:[%s5756_s1 + $0x340] sm:$0xf0]  ;;  %291 = vst [vmem:[#allocation1 + $0x20] ss:$4 sm:$0xff] %v220_v43  ;;  %v3846_v48 = vld [vmem:[%s5756_s1 + $0x3cc] sm:$0xf]  ;;  %v2651_v49 = vor.u32 %v3812_v41, %v2648_v42 }
  0x38   : >> { %746 = vmatpush.bf16.msrb.mxu2 %v2675_v60  ;;  %714 = vmatmul.bf16.vlgmr.msra.gmra.mxu3 %v4350_v33  ;;  %v3794_v50 = vld [vmem:[%s5756_s1 + $0x22c] sm:$0xf]  ;;  %v2576_v51 = vld [vmem:[%s5756_s1 + $0x230] sm:$0xf0]  ;;  %v2715_v53 = vor.u32 %v3828_v44, %v2712_v45  ;;  %v3844_v58 = vld [vmem:[%s5756_s1 + $0x3bc] sm:$0xf]  ;;  %v591_v31 = vpack.c.b16 %v525_v9, %v525_v9 }
  0x39   : >> { %759 = vmatpush.bf16.msrb.mxu3 %v2739_v61  ;;  %688 = vmatmul.bf16.vlgmr.msra.gmra.mxu1 %v4355_v37  ;;  %v2784_v52 = vld [vmem:[%s5756_s1 + $0x3d0] sm:$0xf0]  ;;  %v3810_v54 = vld [vmem:[%s5756_s1 + $0x2ac] sm:$0xf]  ;;  %v2776_v59 = vld [vmem:[%s5756_s1 + $0x3c0] sm:$0xf0]  ;;  %v2579_v60 = vor.u32 %v3794_v50, %v2576_v51 }
  0x3a   : >> { %v2640_v55 = vld [vmem:[%s5756_s1 + $0x2b0] sm:$0xf0]  ;;  %v3826_v56 = vld [vmem:[%s5756_s1 + $0x32c] sm:$0xf]  ;;  %v2787_v61 = vor.u32 %v3846_v48, %v2784_v52  ;;  %v3792_v63 = vld [vmem:[%s5756_s1 + $0x21c] sm:$0xf]  ;;  %v2779_v13 = vor.u32 %v3844_v58, %v2776_v59 }
  0x3b   : >> { %734 = vmatpush.bf16.msrb.mxu1 %v2603_v6  ;;  %772 = vmatpush.bf16.msra.mxu0 %v2803_v34  ;;  %v2704_v57 = vld [vmem:[%s5756_s1 + $0x330] sm:$0xf0]  ;;  %v2643_v62 = vor.u32 %v3810_v54, %v2640_v55  ;;  %v2568_v0 = vld [vmem:[%s5756_s1 + $0x220] sm:$0xf0]  ;;  %v3808_v1 = vld [vmem:[%s5756_s1 + $0x29c] sm:$0xf] }
  0x3c   : >> { %747 = vmatpush.bf16.msrb.mxu2 %v2667_v16  ;;  %v2707_v2 = vor.u32 %v3826_v56, %v2704_v57  ;;  %v2632_v4 = vld [vmem:[%s5756_s1 + $0x2a0] sm:$0xf0]  ;;  %v3824_v7 = vld [vmem:[%s5756_s1 + $0x31c] sm:$0xf]  ;;  %v3842_v10 = vld [vmem:[%s5756_s1 + $0x3ac] sm:$0xf]  ;;  %v2571_v12 = vor.u32 %v3792_v63, %v2568_v0 }
  0x3d   : >> { %760 = vmatpush.bf16.msrb.mxu3 %v2731_v23  ;;  %v2696_v8 = vld [vmem:[%s5756_s1 + $0x320] sm:$0xf0]  ;;  %v2768_v11 = vld [vmem:[%s5756_s1 + $0x3b0] sm:$0xf0]  ;;  %v2635_v15 = vor.u32 %v3808_v1, %v2632_v4  ;;  %v3790_v21 = vld [vmem:[%s5756_s1 + $0x20c] sm:$0xf] }
  0x3e   : >> { %v296_v3 = vld.sshfl [vmem:[#allocation1 + $0x20] sm:$0xff pattern:$0x73625140]  ;;  %v2560_v16 = vld [vmem:[%s5756_s1 + $0x210] sm:$0xf0]  ;;  %v2699_v17 = vor.u32 %v3824_v7, %v2696_v8  ;;  %v665_v45 = vsel %vm660_vm0, %v591_v31, 0 }
  0x3f   : >> { %735 = vmatpush.bf16.msrb.mxu1 %v2595_v32  ;;  %773 = vmatpush.bf16.msra.mxu0 %v2795_v47  ;;  %v321_v5 = vshrl.u32 %v296_v3, 16  ;;  %v323_v6 = vshll.u32 %v296_v3, 16  ;;  %v3806_v18 = vld [vmem:[%s5756_s1 + $0x28c] sm:$0xf]  ;;  %v2624_v19 = vld [vmem:[%s5756_s1 + $0x290] sm:$0xf0]  ;;  %v2563_v28 = vor.u32 %v3790_v21, %v2560_v16  ;;  %v2771_v32 = vor.u32 %v3842_v10, %v2768_v11 }
  0x40   : >> { %748 = vmatpush.bf16.msrb.mxu2 %v2659_v36  ;;  %v3822_v20 = vld [vmem:[%s5756_s1 + $0x30c] sm:$0xf]  ;;  %v2688_v25 = vld [vmem:[%s5756_s1 + $0x310] sm:$0xf0]  ;;  %v2872_v26 = vld [vmem:[%s5756_s1 + $0x70] sm:$0xf]  ;;  %v2627_v35 = vor.u32 %v3806_v18, %v2624_v19 }
  0x41   : >> { %761 = vmatpush.bf16.msrb.mxu3 %v2723_v40  ;;  %v325_v14 = vrot.slane %v323_v6, 1  ;;  %v3741_v27 = vld [vmem:[%s5756_s1 + $0x74] sm:$0xf0]  ;;  %v2936_v29 = vld [vmem:[%s5756_s1 + $0xf0] sm:$0xf]  ;;  %v2691_v38 = vor.u32 %v3822_v20, %v2688_v25  ;;  %p145_p4 = scmp.ge.s32.totalorder %s148_s19, 2  }
  0x42   : >> { %v3757_v30 = vld [vmem:[%s5756_s1 + $0xf4] sm:$0xf0]  ;;  %v3840_v34 = vld [vmem:[%s5756_s1 + $0x39c] sm:$0xf]  ;;  %v2760_v36 = vld [vmem:[%s5756_s1 + $0x3a0] sm:$0xf0]  ;;  %v2873_v39 = vor.u32 %v3741_v27, %v2872_v26 }
  0x43   : >> { %736 = vmatpush.bf16.msrb.mxu1 %v2587_v46  ;;  %774 = vmatpush.bf16.msra.mxu0 %v2787_v61  ;;  %v4449_v23 = vor.u32 %v325_v14, %v321_v5  ;;  %v3064_v40 = vld [vmem:[%s5756_s1 + $0x1f0] sm:$0xf]  ;;  %v3789_v41 = vld [vmem:[%s5756_s1 + $0x1f4] sm:$0xf0]  ;;  %v2937_v42 = vor.u32 %v3757_v30, %v2936_v29  ;;  %v2864_v43 = vld [vmem:[%s5756_s1 + $0x60] sm:$0xf]  ;;  %v2763_v48 = vor.u32 %v3840_v34, %v2760_v36 }
  0x44   : >> { %749 = vmatpush.bf16.msrb.mxu2 %v2651_v49  ;;  %v3739_v44 = vld [vmem:[%s5756_s1 + $0x64] sm:$0xf0]  ;;  %v2928_v46 = vld [vmem:[%s5756_s1 + $0xe0] sm:$0xf]  ;;  %v3838_v49 = vld [vmem:[%s5756_s1 + $0x38c] sm:$0xf]  ;;  %v3065_v51 = vor.u32 %v3789_v41, %v3064_v40 }
  0x45   : >> { %762 = vmatpush.bf16.msrb.mxu3 %v2715_v53  ;;  %v3755_v47 = vld [vmem:[%s5756_s1 + $0xe4] sm:$0xf0]  ;;  %v2752_v50 = vld [vmem:[%s5756_s1 + $0x390] sm:$0xf0]  ;;  %v3000_v52 = vld [vmem:[%s5756_s1 + $0x170] sm:$0xf]  ;;  %v2865_v53 = vor.u32 %v3739_v44, %v2864_v43 }
  0x46   : >> { %2812 = vmatmul.msk.bf16.vlgmr.msrb.gmra.mxu0 %vm656_vm1, %v4449_v23  ;;  %v3056_v54 = vld [vmem:[%s5756_s1 + $0x1e0] sm:$0xf]  ;;  %v3787_v55 = vld [vmem:[%s5756_s1 + $0x1e4] sm:$0xf0]  ;;  %v3773_v56 = vld [vmem:[%s5756_s1 + $0x174] sm:$0xf0]  ;;  %v2929_v57 = vor.u32 %v3755_v47, %v2928_v46 }
  0x47   : >> { %737 = vmatpush.bf16.msrb.mxu1 %v2579_v60  ;;  %775 = vmatpush.bf16.msra.mxu0 %v2779_v13  ;;  %v2856_v58 = vld [vmem:[%s5756_s1 + $0x50] sm:$0xf]  ;;  %v3737_v59 = vld [vmem:[%s5756_s1 + $0x54] sm:$0xf0]  ;;  %v3057_v63 = vor.u32 %v3787_v55, %v3056_v54  ;;  %v3001_v0 = vor.u32 %v3773_v56, %v3000_v52  ;;  %v2848_v5 = vld [vmem:[%s5756_s1 + $0x40] sm:$0xf] }
  0x48   : >> { %750 = vmatpush.bf16.msrb.mxu2 %v2643_v62  ;;  %v2920_v60 = vld [vmem:[%s5756_s1 + $0xd0] sm:$0xf]  ;;  %v3753_v61 = vld [vmem:[%s5756_s1 + $0xd4] sm:$0xf0]  ;;  %v2755_v62 = vor.u32 %v3838_v49, %v2752_v50  ;;  %v2857_v1 = vor.u32 %v3737_v59, %v2856_v58  ;;  %v3735_v6 = vld [vmem:[%s5756_s1 + $0x44] sm:$0xf0] }
  0x49   : >> { %763 = vmatpush.bf16.msrb.mxu3 %v2707_v2  ;;  %v3048_v2 = vld [vmem:[%s5756_s1 + $0x1d0] sm:$0xf]  ;;  %v3785_v3 = vld [vmem:[%s5756_s1 + $0x1d4] sm:$0xf0]  ;;  %v2921_v4 = vor.u32 %v3753_v61, %v2920_v60  ;;  %v2912_v7 = vld [vmem:[%s5756_s1 + $0xc0] sm:$0xf]  ;;  %v2849_v11 = vor.u32 %v3735_v6, %v2848_v5 }
  0x4a   : >> { %v3049_v8 = vor.u32 %v3785_v3, %v3048_v2  ;;  %v2984_v10 = vld [vmem:[%s5756_s1 + $0x150] sm:$0xf]  ;;  %v3783_v13 = vld [vmem:[%s5756_s1 + $0x1c4] sm:$0xf0]  ;;  %v3769_v14 = vld [vmem:[%s5756_s1 + $0x154] sm:$0xf0] }
  0x4b   : >> { %738 = vmatpush.bf16.msrb.mxu1 %v2571_v12  ;;  %776 = vmatpush.bf16.msra.mxu0 %v2771_v32  ;;  %v3040_v12 = vld [vmem:[%s5756_s1 + $0x1c0] sm:$0xf]  ;;  %v2840_v21 = vld [vmem:[%s5756_s1 + $0x30] sm:$0xf]  ;;  %v3733_v16 = vld [vmem:[%s5756_s1 + $0x34] sm:$0xf0]  ;;  %v2985_v20 = vor.u32 %v3769_v14, %v2984_v10 }
  0x4c   : >> { %751 = vmatpush.bf16.msrb.mxu2 %v2635_v15  ;;  %v3749_v18 = vld [vmem:[%s5756_s1 + $0xb4] sm:$0xf0]  ;;  %v3041_v19 = vor.u32 %v3783_v13, %v3040_v12  ;;  %v2976_v25 = vld [vmem:[%s5756_s1 + $0x140] sm:$0xf]  ;;  %v2841_v26 = vor.u32 %v3733_v16, %v2840_v21  ;;  %v3032_v27 = vld [vmem:[%s5756_s1 + $0x1b0] sm:$0xf] }
  0x4d   : >> { %764 = vmatpush.bf16.msrb.mxu3 %v2699_v17  ;;  %v2904_v17 = vld [vmem:[%s5756_s1 + $0xb0] sm:$0xf]  ;;  %v3767_v29 = vld [vmem:[%s5756_s1 + $0x144] sm:$0xf0]  ;;  %v2832_v31 = vld [vmem:[%s5756_s1 + $0x20] sm:$0xf] }
  0x4e   : >> { %v2905_v30 = vor.u32 %v3749_v18, %v2904_v17  ;;  %v3731_v32 = vld [vmem:[%s5756_s1 + $0x24] sm:$0xf0]  ;;  %v2896_v34 = vld [vmem:[%s5756_s1 + $0xa0] sm:$0xf]  ;;  %v3765_v43 = vld [vmem:[%s5756_s1 + $0x134] sm:$0xf0] }
  0x4f   : >> { %739 = vmatpush.bf16.msrb.mxu1 %v2563_v28  ;;  %777 = vmatpush.bf16.msra.mxu0 %v2763_v48  ;;  %v3781_v28 = vld [vmem:[%s5756_s1 + $0x1b4] sm:$0xf0]  ;;  %v2833_v40 = vor.u32 %v3731_v32, %v2832_v31  ;;  %v3024_v41 = vld [vmem:[%s5756_s1 + $0x1a0] sm:$0xf]  ;;  %v2888_v47 = vld [vmem:[%s5756_s1 + $0x90] sm:$0xf] }
  0x50   : >> { %752 = vmatpush.bf16.msrb.mxu2 %v2627_v35  ;;  %v3747_v35 = vld [vmem:[%s5756_s1 + $0xa4] sm:$0xf0]  ;;  %v3033_v36 = vor.u32 %v3781_v28, %v3032_v27  ;;  %v3729_v46 = vld [vmem:[%s5756_s1 + $0x14] sm:$0xf0]  ;;  %v3016_v49 = vld [vmem:[%s5756_s1 + $0x190] sm:$0xf] }
  0x51   : >> { %765 = vmatpush.bf16.msrb.mxu3 %v2691_v38  ;;  %v4602_v38 = vld [vmem:[%s5756_s1 + $0x200] sm:$0x33]  ;;  %v2897_v44 = vor.u32 %v3747_v35, %v2896_v34  ;;  %v3745_v48 = vld [vmem:[%s5756_s1 + $0x94] sm:$0xf0]  ;;  %v3727_v55 = vld [vmem:[%s5756_s1 + $0x4] sm:$0xf0] }
  0x52   : >> { %740 = vmatmul.bf16.vlgmr.msrb.gmra.mxu1 %v4330_v22  ;;  %v2992_v22 = vld [vmem:[%s5756_s1 + $0x160] sm:$0xf]  ;;  %v1004_v50 = vunpack.c.l.b16 %v4602_v38  ;;  %v3743_v59 = vld [vmem:[%s5756_s1 + $0x84] sm:$0xf0]  ;;  %v2889_v61 = vor.u32 %v3745_v48, %v2888_v47  ;;  %v2952_v2 = vld [vmem:[%s5756_s1 + $0x110] sm:$0xf] }
  0x53   : >> { %791 = vmatpush.bf16.msra.mxu1 %v665_v45  ;;  %753 = vmatmul.bf16.vlgmr.msrb.gmra.mxu2 %v4355_v37  ;;  %v3771_v37 = vld [vmem:[%s5756_s1 + $0x164] sm:$0xf0]  ;;  %v2824_v45 = vld [vmem:[%s5756_s1 + $0x10] sm:$0xf]  ;;  %v2816_v54 = vld [vmem:[%s5756_s1] sm:$0xf] }
  0x54   : >> { %1144 = vmatpush.bf16.msra.mxu2 %v2873_v39  ;;  %766 = vmatmul.bf16.vlgmr.msrb.gmra.mxu3 %v4332_v24  ;;  %v3751_v24 = vld [vmem:[%s5756_s1 + $0xc4] sm:$0xf0]  ;;  %v2993_v9 = vor.u32 %v3771_v37, %v2992_v22  ;;  %v2977_v39 = vor.u32 %v3767_v29, %v2976_v25  ;;  %v2880_v58 = vld [vmem:[%s5756_s1 + $0x80] sm:$0xf]  ;;  %v3761_v3 = vld [vmem:[%s5756_s1 + $0x114] sm:$0xf0] }
  0x55   : >> { %1157 = vmatpush.bf16.msra.mxu3 %v2937_v42  ;;  %778 = vmatpush.bf16.msra.mxu0 %v2755_v62  ;;  %v2913_v15 = vor.u32 %v3751_v24, %v2912_v7  ;;  %v3779_v42 = vld [vmem:[%s5756_s1 + $0x1a4] sm:$0xf0]  ;;  %v4655_v60 = vld.sshfl [vmem:[#allocation1] sm:$0xff pattern:$0x73625140]  ;;  %v2817_v7 = vor.u32 %v3727_v55, %v2816_v54  ;;  %v2881_v10 = vor.u32 %v3743_v59, %v2880_v58 }
  0x56   : >> { %v3025_v52 = vor.u32 %v3779_v42, %v3024_v41  ;;  %v4657_v62 = vld.sshfl [vmem:[#allocation1 + $0x8] sm:$0xff pattern:$0x73625140]  ;;  %v4661_v22 = vld.sshfl [vmem:[#allocation1 + $0x18] sm:$0xff pattern:$0x73625140] }
  0x57   : >> { %1183 = vmatpush.bf16.msrb.mxu1 %v3065_v51  ;;  %v2960_v51 = vld [vmem:[%s5756_s1 + $0x120] sm:$0xf]  ;;  %v2874_v5 = vld [vmem:[%s5756_s1 + $0x78] sm:$0xf0]  ;;  %v3788_v12 = vld [vmem:[%s5756_s1 + $0x1f4] sm:$0xf] }
  0x58   : >> { %1145 = vmatpush.bf16.msra.mxu2 %v2865_v53  ;;  %779 = vmatmul.bf16.vlgmr.msra.gmra.mxu0 %v4350_v33  ;;  %v2968_v33 = vld [vmem:[%s5756_s1 + $0x130] sm:$0xf]  ;;  %v3777_v53 = vld [vmem:[%s5756_s1 + $0x194] sm:$0xf0]  ;;  %v3008_v24 = vld [vmem:[%s5756_s1 + $0x180] sm:$0xf] }
  0x59   : >> { %1158 = vmatpush.bf16.msra.mxu3 %v2929_v57  ;;  %1170 = vmatpush.bf16.msrb.mxu0 %v3001_v0  ;;  %v2969_v56 = vor.u32 %v3765_v43, %v2968_v33  ;;  %v2825_v57 = vor.u32 %v3729_v46, %v2824_v45  ;;  %v1070_v0 = vpack.c.b16 %v1004_v50, %v1004_v50  ;;  %v153_v13 = vld [vmem:[%s4259_s7 + $0x8] sm:$0x1]  ;;  %v3066_v21 = vld [vmem:[%s5756_s1 + $0x1f8] sm:$0xf0]  ;;  %v3738_v17 = vld [vmem:[%s5756_s1 + $0x64] sm:$0xf] }
  0x5a   : >> { %v3017_v37 = vor.u32 %v3777_v53, %v3016_v49  ;;  %801 = vst [vmem:[#allocation1 + $0x20] ss:$4 sm:$0xff] %v153_v13  ;;  %v2866_v18 = vld [vmem:[%s5756_s1 + $0x68] sm:$0xf0]  ;;  %v3759_v25 = vld [vmem:[%s5756_s1 + $0x104] sm:$0xf0]  ;;  %v3069_v28 = vor.u32 %v3788_v12, %v3066_v21 }
  0x5b   : >> { %1184 = vmatpush.bf16.msrb.mxu1 %v3057_v63  ;;  %v4659_v63 = vld.sshfl [vmem:[#allocation1 + $0x10] sm:$0xff pattern:$0x73625140]  ;;  %v3770_v29 = vld [vmem:[%s5756_s1 + $0x164] sm:$0xf]  ;;  %v2869_v32 = vor.u32 %v3738_v17, %v2866_v18 }
  0x5c   : >> { %1146 = vmatpush.bf16.msra.mxu2 %v2857_v1  ;;  %v3072_v1 = vld [vmem:[%s4259_s7 + $0xa] sm:$0x55]  ;;  %v3756_v27 = vld [vmem:[%s5756_s1 + $0xf4] sm:$0xf]  ;;  %v2938_v31 = vld [vmem:[%s5756_s1 + $0xf8] sm:$0xf0] }
  0x5d   : >> { %1159 = vmatpush.bf16.msra.mxu3 %v2921_v4  ;;  %1171 = vmatpush.bf16.msrb.mxu0 %v2993_v9  ;;  %v3740_v4 = vld [vmem:[%s5756_s1 + $0x74] sm:$0xf]  ;;  %1347 = vst [vmem:[#allocation1] ss:$4 sm:$0xff] %v3072_v1  ;;  %v3786_v34 = vld [vmem:[%s5756_s1 + $0x1e4] sm:$0xf]  ;;  %v2941_v45 = vor.u32 %v3756_v27, %v2938_v31  ;;  %v1005_v27 = vunpack.c.h.b16 %v4602_v38 }
  0x5e   : >> { %v3772_v9 = vld [vmem:[%s5756_s1 + $0x174] sm:$0xf]  ;;  %v2877_v14 = vor.u32 %v3740_v4, %v2874_v5  ;;  %v3058_v35 = vld [vmem:[%s5756_s1 + $0x1e8] sm:$0xf0]  ;;  %v3073_v33 = vld [vmem:[%s4259_s7 + $0x12] sm:$0x1] }
  0x5f   : >> { %1185 = vmatpush.bf16.msrb.mxu1 %v3049_v8  ;;  %v3775_v8 = vld [vmem:[%s5756_s1 + $0x184] sm:$0xf0]  ;;  %v3754_v41 = vld [vmem:[%s5756_s1 + $0xe4] sm:$0xf]  ;;  %v2930_v42 = vld [vmem:[%s5756_s1 + $0xe8] sm:$0xf0]  ;;  %v3061_v46 = vor.u32 %v3786_v34, %v3058_v35 }
  0x60   : >> { %1147 = vmatpush.bf16.msra.mxu2 %v2849_v11  ;;  %v3002_v11 = vld [vmem:[%s5756_s1 + $0x178] sm:$0xf0]  ;;  %v3009_v16 = vor.u32 %v3775_v8, %v3008_v24  ;;  %v3784_v50 = vld [vmem:[%s5756_s1 + $0x1d4] sm:$0xf]  ;;  %v2933_v54 = vor.u32 %v3754_v41, %v2930_v42  ;;  %v2978_v58 = vld [vmem:[%s5756_s1 + $0x148] sm:$0xf0]  ;;  %v1071_v41 = vpack.c.b16 %v1005_v27, %v1005_v27 }
  0x61   : >> { %1160 = vmatpush.bf16.msra.mxu3 %v2913_v15  ;;  %1172 = vmatpush.bf16.msrb.mxu0 %v2985_v20  ;;  %v1139_v15 = vsel %vm660_vm0, %v1070_v0, 0  ;;  %v2944_v20 = vld [vmem:[%s5756_s1 + $0x100] sm:$0xf]  ;;  %v2986_v47 = vld [vmem:[%s5756_s1 + $0x158] sm:$0xf0] }
  0x62   : >> { %2813 = vmatmul.msk.bf16.vlgmr.msra.gmra.mxu1 %vm656_vm1, %v4449_v23  ;;  %v3763_v23 = vld [vmem:[%s5756_s1 + $0x124] sm:$0xf0]  ;;  %v4747_v48 = vld.sshfl [vmem:[#allocation1 + $0x20] sm:$0xff pattern:$0x73625140] }
  0x63   : >> { %1186 = vmatpush.bf16.msrb.mxu1 %v3041_v19  ;;  %v2961_v6 = vor.u32 %v3763_v23, %v2960_v51  ;;  %v2953_v19 = vor.u32 %v3761_v3, %v2952_v2  ;;  %v3050_v51 = vld [vmem:[%s5756_s1 + $0x1d8] sm:$0xf0]  ;;  %1350 = vst [vmem:[#allocation1 + $0x20] ss:$4 sm:$0xff] %v3073_v33  ;;  %v3734_v23 = vld [vmem:[%s5756_s1 + $0x44] sm:$0xf] }
  0x64   : >> { %1148 = vmatpush.bf16.msra.mxu2 %v2841_v26  ;;  %v3005_v26 = vor.u32 %v3772_v9, %v3002_v11  ;;  %v3752_v55 = vld [vmem:[%s5756_s1 + $0xd4] sm:$0xf]  ;;  %v2922_v59 = vld [vmem:[%s5756_s1 + $0xd8] sm:$0xf0]  ;;  %v3782_v0 = vld [vmem:[%s5756_s1 + $0x1c4] sm:$0xf] }
  0x65   : >> { %1161 = vmatpush.bf16.msra.mxu3 %v2905_v30  ;;  %1173 = vmatpush.bf16.msrb.mxu0 %v2977_v39  ;;  %v2994_v30 = vld [vmem:[%s5756_s1 + $0x168] sm:$0xf0]  ;;  %v2858_v39 = vld [vmem:[%s5756_s1 + $0x58] sm:$0xf0]  ;;  %v3732_v2 = vld [vmem:[%s5756_s1 + $0x34] sm:$0xf]  ;;  %v2925_v4 = vor.u32 %v3752_v55, %v2922_v59 }
  0x66   : >> { %v2997_v43 = vor.u32 %v3770_v29, %v2994_v30  ;;  %v3042_v1 = vld [vmem:[%s5756_s1 + $0x1c8] sm:$0xf0]  ;;  %v2842_v3 = vld [vmem:[%s5756_s1 + $0x38] sm:$0xf0]  ;;  %v3750_v5 = vld [vmem:[%s5756_s1 + $0xc4] sm:$0xf] }
  0x67   : >> { %1187 = vmatpush.bf16.msrb.mxu1 %v3033_v36  ;;  %v3736_v36 = vld [vmem:[%s5756_s1 + $0x54] sm:$0xf]  ;;  %v2970_v24 = vld [vmem:[%s5756_s1 + $0x138] sm:$0xf0]  ;;  %v2914_v8 = vld [vmem:[%s5756_s1 + $0xc8] sm:$0xf0]  ;;  %v2845_v9 = vor.u32 %v3732_v2, %v2842_v3 }
  0x68   : >> { %1149 = vmatpush.bf16.msra.mxu2 %v2833_v40  ;;  %v2945_v40 = vor.u32 %v3759_v25, %v2944_v20  ;;  %v2861_v49 = vor.u32 %v3736_v36, %v2858_v39  ;;  %v3034_v11 = vld [vmem:[%s5756_s1 + $0x1b8] sm:$0xf0]  ;;  %v3730_v12 = vld [vmem:[%s5756_s1 + $0x24] sm:$0xf]  ;;  %v2834_v13 = vld [vmem:[%s5756_s1 + $0x28] sm:$0xf0] }
  0x69   : >> { %1162 = vmatpush.bf16.msra.mxu3 %v2897_v44  ;;  %1174 = vmatpush.bf16.msrb.mxu0 %v2969_v56  ;;  %v3768_v44 = vld [vmem:[%s5756_s1 + $0x154] sm:$0xf]  ;;  %v3053_v56 = vor.u32 %v3784_v50, %v3050_v51  ;;  %v3762_v17 = vld [vmem:[%s5756_s1 + $0x124] sm:$0xf]  ;;  %v2962_v18 = vld [vmem:[%s5756_s1 + $0x128] sm:$0xf0]  ;;  %v2837_v20 = vor.u32 %v3730_v12, %v2834_v13 }
  0x6a   : >> { %v2989_v53 = vor.u32 %v3768_v44, %v2986_v47  ;;  %v3748_v21 = vld [vmem:[%s5756_s1 + $0xb4] sm:$0xf]  ;;  %v3778_v25 = vld [vmem:[%s5756_s1 + $0x1a4] sm:$0xf]  ;;  %v2826_v29 = vld [vmem:[%s5756_s1 + $0x18] sm:$0xf0]  ;;  %v2965_v30 = vor.u32 %v3762_v17, %v2962_v18 }
  0x6b   : >> { %1188 = vmatpush.bf16.msrb.mxu1 %v3025_v52  ;;  %v2850_v52 = vld [vmem:[%s5756_s1 + $0x48] sm:$0xf0]  ;;  %v3746_v38 = vld [vmem:[%s5756_s1 + $0xa4] sm:$0xf]  ;;  %v3760_v34 = vld [vmem:[%s5756_s1 + $0x114] sm:$0xf] }
  0x6c   : >> { %1150 = vmatpush.bf16.msra.mxu2 %v2825_v57  ;;  %v3766_v57 = vld [vmem:[%s5756_s1 + $0x144] sm:$0xf]  ;;  %v2954_v35 = vld [vmem:[%s5756_s1 + $0x118] sm:$0xf0]  ;;  %v2898_v36 = vld [vmem:[%s5756_s1 + $0xa8] sm:$0xf0] }
  0x6d   : >> { %1163 = vmatpush.bf16.msra.mxu3 %v2889_v61  ;;  %1175 = vmatpush.bf16.msrb.mxu0 %v2961_v6  ;;  %v2853_v61 = vor.u32 %v3734_v23, %v2850_v52  ;;  %v3045_v6 = vor.u32 %v3782_v0, %v3042_v1  ;;  %v3776_v33 = vld [vmem:[%s5756_s1 + $0x194] sm:$0xf]  ;;  %v3726_v42 = vld [vmem:[%s5756_s1 + $0x4] sm:$0xf]  ;;  %v2890_v47 = vld [vmem:[%s5756_s1 + $0x98] sm:$0xf0] }
  0x6e   : >> { %v3744_v44 = vld [vmem:[%s5756_s1 + $0x94] sm:$0xf]  ;;  %v3758_v50 = vld [vmem:[%s5756_s1 + $0x104] sm:$0xf]  ;;  %v2946_v51 = vld [vmem:[%s5756_s1 + $0x108] sm:$0xf0] }
  0x6f   : >> { %1189 = vmatpush.bf16.msrb.mxu1 %v3017_v37  ;;  %v2981_v37 = vor.u32 %v3766_v57, %v2978_v58  ;;  %v3774_v52 = vld [vmem:[%s5756_s1 + $0x184] sm:$0xf]  ;;  %v3261_v55 = vld [vmem:[%s5756_s1 + $0x500] sm:$0xf]  ;;  %v2949_v58 = vor.u32 %v3758_v50, %v2946_v51  ;;  %v3901_v59 = vld [vmem:[%s5756_s1 + $0x584] sm:$0xf0]  ;;  %v2893_v1 = vor.u32 %v3744_v44, %v2890_v47 }
  0x70   : >> { %1151 = vmatpush.bf16.msra.mxu2 %v2817_v7  ;;  %v3764_v7 = vld [vmem:[%s5756_s1 + $0x134] sm:$0xf]  ;;  %v3325_v57 = vld [vmem:[%s5756_s1 + $0x580] sm:$0xf]  ;;  %v3917_v0 = vld [vmem:[%s5756_s1 + $0x604] sm:$0xf0] }
  0x71   : >> { %1164 = vmatpush.bf16.msra.mxu3 %v2881_v10  ;;  %1176 = vmatpush.bf16.msrb.mxu0 %v2953_v19  ;;  %v3780_v10 = vld [vmem:[%s5756_s1 + $0x1b4] sm:$0xf]  ;;  %v2906_v19 = vld [vmem:[%s5756_s1 + $0xb8] sm:$0xf0]  ;;  %v3742_v2 = vld [vmem:[%s5756_s1 + $0x84] sm:$0xf] }
  0x72   : >> { %v2909_v31 = vor.u32 %v3748_v21, %v2906_v19  ;;  %v2882_v3 = vld [vmem:[%s5756_s1 + $0x88] sm:$0xf0]  ;;  %v3381_v12 = vld [vmem:[%s5756_s1 + $0x5f0] sm:$0xf]  ;;  %v3915_v13 = vld [vmem:[%s5756_s1 + $0x5f4] sm:$0xf0] }
  0x73   : >> { %1152 = vmatmul.bf16.vlgmr.msra.gmra.mxu2 %v4655_v60  ;;  %1190 = vmatpush.bf16.msrb.mxu1 %v3009_v16  ;;  %v3037_v16 = vor.u32 %v3780_v10, %v3034_v11  ;;  %v3317_v10 = vld [vmem:[%s5756_s1 + $0x570] sm:$0xf]  ;;  %v3899_v11 = vld [vmem:[%s5756_s1 + $0x574] sm:$0xf0]  ;;  %v3382_v19 = vor.u32 %v3915_v13, %v3381_v12  ;;  %v3373_v27 = vld [vmem:[%s5756_s1 + $0x5e0] sm:$0xf] }
  0x74   : >> { %1203 = vmatpush.bf16.msrb.mxu2 %v1139_v15  ;;  %1165 = vmatmul.bf16.vlgmr.msra.gmra.mxu3 %v4657_v62  ;;  %v2917_v15 = vor.u32 %v3750_v5, %v2914_v8  ;;  %v3869_v5 = vld [vmem:[%s5756_s1 + $0x484] sm:$0xf0]  ;;  %v3253_v8 = vld [vmem:[%s5756_s1 + $0x4f0] sm:$0xf]  ;;  %v3318_v18 = vor.u32 %v3899_v11, %v3317_v10  ;;  %v3277_v12 = vld [vmem:[%s5756_s1 + $0x520] sm:$0xf] }
  0x75   : >> { %1209 = vmatpush.bf16.msrb.mxu3 %v2877_v14  ;;  %1177 = vmatpush.bf16.msrb.mxu0 %v2945_v40  ;;  %v2973_v14 = vor.u32 %v3764_v7, %v2970_v24  ;;  %v3018_v40 = vld [vmem:[%s5756_s1 + $0x198] sm:$0xf0]  ;;  %v3326_v7 = vor.u32 %v3901_v59, %v3325_v57  ;;  %v3189_v21 = vld [vmem:[%s5756_s1 + $0x470] sm:$0xf]  ;;  %v3893_v47 = vld [vmem:[%s5756_s1 + $0x544] sm:$0xf0] }
  0x76   : >> { %1191 = vmatmul.bf16.vlgmr.msrb.gmra.mxu1 %v4661_v22  ;;  %v5002_v50 = vld.sshfl [vmem:[#allocation1 + $0x10] sm:$0xff pattern:$0x73625140]  ;;  %v3165_v57 = vld [vmem:[%s5756_s1 + $0x440] sm:$0xf] }
  0x77   : >> { %1235 = vmatpush.bf16.msra.mxu1 %v3005_v26  ;;  %v3026_v26 = vld [vmem:[%s5756_s1 + $0x1a8] sm:$0xf0]  ;;  %v3873_v11 = vld [vmem:[%s5756_s1 + $0x4a4] sm:$0xf0] }
  0x78   : >> { %1248 = vmatpush.bf16.msra.mxu2 %v3069_v28  ;;  %1178 = vmatmul.bf16.vlgmr.msrb.gmra.mxu0 %v4659_v63  ;;  %v3728_v28 = vld [vmem:[%s5756_s1 + $0x14] sm:$0xf]  ;;  %v3889_v13 = vld [vmem:[%s5756_s1 + $0x524] sm:$0xf0] }
  0x79   : >> { %1210 = vmatpush.bf16.msrb.mxu3 %v2869_v32  ;;  %1222 = vmatpush.bf16.msra.mxu0 %v2941_v45  ;;  %v3029_v32 = vor.u32 %v3778_v25, %v3026_v26  ;;  %v2829_v39 = vor.u32 %v3728_v28, %v2826_v29  ;;  %v2957_v45 = vor.u32 %v3760_v34, %v2954_v35  ;;  %v3309_v25 = vld [vmem:[%s5756_s1 + $0x560] sm:$0xf]  ;;  %v3897_v26 = vld [vmem:[%s5756_s1 + $0x564] sm:$0xf0]  ;;  %v3879_v35 = vld [vmem:[%s5756_s1 + $0x4d4] sm:$0xf0] }
  0x7a   : >> { %v3913_v28 = vld [vmem:[%s5756_s1 + $0x5e4] sm:$0xf0]  ;;  %v3310_v34 = vor.u32 %v3897_v26, %v3309_v25  ;;  %v3205_v25 = vld [vmem:[%s5756_s1 + $0x490] sm:$0xf]  ;;  %v3278_v26 = vor.u32 %v3889_v13, %v3277_v12  ;;  %v3862_v12 = vld [vmem:[%s5756_s1 + $0x454] sm:$0xf] }
  0x7b   : >> { %1236 = vmatpush.bf16.msra.mxu1 %v2997_v43  ;;  %v2818_v43 = vld [vmem:[%s5756_s1 + $0x8] sm:$0xf0] }
  0x7c   : >> { %1249 = vmatpush.bf16.msra.mxu2 %v3061_v46  ;;  %v2901_v46 = vor.u32 %v3746_v38, %v2898_v36  ;;  %v2821_v23 = vor.u32 %v3726_v42, %v2818_v43  ;;  %v3301_v36 = vld [vmem:[%s5756_s1 + $0x550] sm:$0xf]  ;;  %v3229_v42 = vld [vmem:[%s5756_s1 + $0x4c0] sm:$0xf]  ;;  %v3877_v43 = vld [vmem:[%s5756_s1 + $0x4c4] sm:$0xf0] }
  0x7d   : >> { %1211 = vmatpush.bf16.msrb.mxu3 %v2861_v49  ;;  %1223 = vmatpush.bf16.msra.mxu0 %v2933_v54  ;;  %v3021_v49 = vor.u32 %v3776_v33, %v3018_v40  ;;  %v1142_v54 = vsel %vm660_vm0, %v1071_v41, 0  ;;  %v3365_v33 = vld [vmem:[%s5756_s1 + $0x5d0] sm:$0xf]  ;;  %v3911_v40 = vld [vmem:[%s5756_s1 + $0x5d4] sm:$0xf0]  ;;  %v3230_v59 = vor.u32 %v3877_v43, %v3229_v42 }
  0x7e   : >> { %v3173_v41 = vld [vmem:[%s5756_s1 + $0x450] sm:$0xf] }
  0x7f   : >> { %1237 = vmatpush.bf16.msra.mxu1 %v2989_v53  ;;  %v3010_v53 = vld [vmem:[%s5756_s1 + $0x188] sm:$0xf0] }
  0x80   : >> { %1250 = vmatpush.bf16.msra.mxu2 %v3053_v56  ;;  %v3885_v56 = vld [vmem:[%s5756_s1 + $0x504] sm:$0xf0] }
  0x81   : >> { %1212 = vmatpush.bf16.msrb.mxu3 %v2853_v61  ;;  %1224 = vmatpush.bf16.msra.mxu0 %v2925_v4  ;;  %v3389_v61 = vld [vmem:[%s5756_s1 + $0x600] sm:$0xf] }
  0x82   : >> { %v3197_v4 = vld [vmem:[%s5756_s1 + $0x480] sm:$0xf]  ;;  %v3390_v24 = vor.u32 %v3917_v0, %v3389_v61 }
  0x83   : >> { %1238 = vmatpush.bf16.msra.mxu1 %v2981_v37  ;;  %3070 = vmatmul.msk.bf16.vlgmr.msrb.gmra.mxu2 %vm656_vm1, %v4747_v48  ;;  %v3013_v37 = vor.u32 %v3774_v52, %v3010_v53  ;;  %v5004_v52 = vld.sshfl [vmem:[#allocation1 + $0x18] sm:$0xff pattern:$0x73625140]  ;;  %v5006_v53 = vld.sshfl [vmem:[#allocation1 + $0x8] sm:$0xff pattern:$0x73625140] }
  0x84   : >> { %1251 = vmatpush.bf16.msra.mxu2 %v3045_v6  ;;  %v3262_v6 = vor.u32 %v3885_v56, %v3261_v55  ;;  %v3909_v55 = vld [vmem:[%s5756_s1 + $0x5c4] sm:$0xf0] }
  0x85   : >> { %1213 = vmatpush.bf16.msrb.mxu3 %v2845_v9  ;;  %1225 = vmatpush.bf16.msra.mxu0 %v2917_v15  ;;  %v3883_v9 = vld [vmem:[%s5756_s1 + $0x4f4] sm:$0xf0]  ;;  %v3198_v15 = vor.u32 %v3869_v5, %v3197_v4  ;;  %v3349_v4 = vld [vmem:[%s5756_s1 + $0x5b0] sm:$0xf] }
  0x86   : >> { %v3254_v17 = vor.u32 %v3883_v9, %v3253_v8  ;;  %v3907_v5 = vld [vmem:[%s5756_s1 + $0x5b4] sm:$0xf0]  ;;  %v3213_v9 = vld [vmem:[%s5756_s1 + $0x4a0] sm:$0xf] }
  0x87   : >> { %1239 = vmatpush.bf16.msra.mxu1 %v2973_v14  ;;  %v2885_v14 = vor.u32 %v3742_v2, %v2882_v3  ;;  %v3875_v2 = vld [vmem:[%s5756_s1 + $0x4b4] sm:$0xf0]  ;;  %v3285_v3 = vld [vmem:[%s5756_s1 + $0x530] sm:$0xf]  ;;  %v3350_v10 = vor.u32 %v3907_v5, %v3349_v4  ;;  %v3183_v4 = vld [vmem:[%s5756_s1 + $0x468] sm:$0xf0] }
  0x88   : >> { %1252 = vmatpush.bf16.msra.mxu2 %v3037_v16  ;;  %v3867_v16 = vld [vmem:[%s5756_s1 + $0x474] sm:$0xf0]  ;;  %v3880_v5 = vld [vmem:[%s5756_s1 + $0x4e4] sm:$0xf] }
  0x89   : >> { %1214 = vmatpush.bf16.msrb.mxu3 %v2837_v20  ;;  %1226 = vmatpush.bf16.msra.mxu0 %v2909_v31  ;;  %v3881_v20 = vld [vmem:[%s5756_s1 + $0x4e4] sm:$0xf0]  ;;  %v3190_v29 = vor.u32 %v3867_v16, %v3189_v21  ;;  %v5067_v21 = vld [vmem:[%s5756_s1 + $0x610] sm:$0x33]  ;;  %v3149_v16 = vld [vmem:[%s5756_s1 + $0x420] sm:$0xf] }
  0x8a   : >> { %v3865_v31 = vld [vmem:[%s5756_s1 + $0x464] sm:$0xf0] }
  0x8b   : >> { %1240 = vmatpush.bf16.msra.mxu1 %v2965_v30  ;;  %v3181_v30 = vld [vmem:[%s5756_s1 + $0x460] sm:$0xf] }
  0x8c   : >> { %1253 = vmatpush.bf16.msra.mxu2 %v3029_v32  ;;  %v3397_v32 = vld [vmem:[%s4259_s7 + $0xa] sm:$0xff]  ;;  %v3182_v44 = vor.u32 %v3865_v31, %v3181_v30  ;;  %v3887_v30 = vld [vmem:[%s5756_s1 + $0x514] sm:$0xf0] }
  0x8d   : >> { %1215 = vmatpush.bf16.msrb.mxu3 %v2829_v39  ;;  %1227 = vmatpush.bf16.msra.mxu0 %v2901_v46  ;;  %v3895_v39 = vld [vmem:[%s5756_s1 + $0x554] sm:$0xf0]  ;;  %v3293_v46 = vld [vmem:[%s5756_s1 + $0x540] sm:$0xf]  ;;  %v3333_v31 = vld [vmem:[%s5756_s1 + $0x590] sm:$0xf] }
  0x8e   : >> { %v3302_v51 = vor.u32 %v3895_v39, %v3301_v36  ;;  %v3294_v61 = vor.u32 %v3893_v47, %v3293_v46  ;;  %v3866_v46 = vld [vmem:[%s5756_s1 + $0x474] sm:$0xf] }
  0x8f   : >> { %1241 = vmatpush.bf16.msra.mxu1 %v2957_v45 }
  0x90   : >> { %1254 = vmatpush.bf16.msra.mxu2 %v3021_v49  ;;  %v5000_v49 = vld.sshfl [vmem:[#allocation1] sm:$0xff pattern:$0x73625140] }
  0x91   : >> { %1216 = vmatpush.bf16.msrb.mxu3 %v2821_v23  ;;  %1228 = vmatpush.bf16.msra.mxu0 %v2893_v1  ;;  %v3366_v23 = vor.u32 %v3911_v40, %v3365_v33  ;;  %1894 = vst [vmem:[#allocation1] ss:$4 sm:$0xff] %v3397_v32  ;;  %v3221_v1 = vld [vmem:[%s5756_s1 + $0x4b0] sm:$0xf]  ;;  %v3868_v32 = vld [vmem:[%s5756_s1 + $0x484] sm:$0xf] }
  0x92   : >> { %v3222_v8 = vor.u32 %v3875_v2, %v3221_v1  ;;  %v3900_v33 = vld [vmem:[%s5756_s1 + $0x584] sm:$0xf]  ;;  %v3327_v40 = vld [vmem:[%s5756_s1 + $0x588] sm:$0xf0] }
  0x93   : >> { %1242 = vmatpush.bf16.msra.mxu1 %v2949_v58  ;;  %v3861_v58 = vld [vmem:[%s5756_s1 + $0x444] sm:$0xf0] }
  0x94   : >> { %1217 = vmatmul.bf16.vlgmr.msrb.gmra.mxu3 %v4655_v60  ;;  %1255 = vmatpush.bf16.msra.mxu2 %v3013_v37  ;;  %v3245_v60 = vld [vmem:[%s5756_s1 + $0x4e0] sm:$0xf]  ;;  %v3891_v37 = vld [vmem:[%s5756_s1 + $0x534] sm:$0xf0] }
  0x95   : >> { %1268 = vmatpush.bf16.msra.mxu3 %v1142_v54  ;;  %1229 = vmatpush.bf16.msra.mxu0 %v2885_v14  ;;  %v3246_v38 = vor.u32 %v3881_v20, %v3245_v60  ;;  %v3357_v54 = vld [vmem:[%s5756_s1 + $0x5c0] sm:$0xf]  ;;  %v3857_v60 = vld [vmem:[%s5756_s1 + $0x424] sm:$0xf0]  ;;  %v3214_v20 = vor.u32 %v3873_v11, %v3213_v9  ;;  %v3914_v9 = vld [vmem:[%s5756_s1 + $0x5f4] sm:$0xf] }
  0x96   : >> { %1243 = vmatmul.bf16.vlgmr.msra.gmra.mxu1 %v4659_v63  ;;  %v3374_v63 = vor.u32 %v3913_v28, %v3373_v27  ;;  %v3358_v0 = vor.u32 %v3909_v55, %v3357_v54  ;;  %v3341_v14 = vld [vmem:[%s5756_s1 + $0x5a0] sm:$0xf]  ;;  %v3871_v28 = vld [vmem:[%s5756_s1 + $0x494] sm:$0xf0]  ;;  %v3150_v36 = vor.u32 %v3857_v60, %v3149_v16  ;;  %v3882_v54 = vld [vmem:[%s5756_s1 + $0x4f4] sm:$0xf] }
  0x97   : >> { %1706 = vmatpush.bf16.msrb.mxu1 %v3262_v6  ;;  %1256 = vmatmul.bf16.vlgmr.msra.gmra.mxu2 %v4661_v22  ;;  %v3237_v22 = vld [vmem:[%s5756_s1 + $0x4d0] sm:$0xf]  ;;  %v3166_v6 = vor.u32 %v3861_v58, %v3165_v57  ;;  %v3206_v39 = vor.u32 %v3871_v28, %v3205_v25  ;;  %v3255_v55 = vld [vmem:[%s5756_s1 + $0x4f8] sm:$0xf0]  ;;  %v3898_v57 = vld [vmem:[%s5756_s1 + $0x574] sm:$0xf] }
  0x98   : >> { %1719 = vmatpush.bf16.msrb.mxu2 %v3326_v7  ;;  %1230 = vmatmul.bf16.vlgmr.msra.gmra.mxu0 %v4657_v62  ;;  %v3863_v62 = vld [vmem:[%s5756_s1 + $0x454] sm:$0xf0]  ;;  %v3238_v45 = vor.u32 %v3879_v35, %v3237_v22  ;;  %v3157_v7 = vld [vmem:[%s5756_s1 + $0x430] sm:$0xf]  ;;  %v3884_v22 = vld [vmem:[%s5756_s1 + $0x504] sm:$0xf]  ;;  %v3258_v1 = vor.u32 %v3882_v54, %v3255_v55 }
  0x99   : >> { %1732 = vmatpush.bf16.msrb.mxu3 %v3390_v24  ;;  %1693 = vmatpush.bf16.msrb.mxu0 %v3198_v15  ;;  %v3174_v56 = vor.u32 %v3863_v62, %v3173_v41  ;;  %v3859_v24 = vld [vmem:[%s5756_s1 + $0x434] sm:$0xf0]  ;;  %v3905_v15 = vld [vmem:[%s5756_s1 + $0x5a4] sm:$0xf0]  ;;  %v3263_v35 = vld [vmem:[%s5756_s1 + $0x508] sm:$0xf0] }
  0x9a   : >> { %v3342_v27 = vor.u32 %v3905_v15, %v3341_v14  ;;  %v3141_v41 = vld [vmem:[%s5756_s1 + $0x410] sm:$0xf]  ;;  %v3855_v62 = vld [vmem:[%s5756_s1 + $0x414] sm:$0xf0]  ;;  %v3319_v58 = vld [vmem:[%s5756_s1 + $0x578] sm:$0xf0] }
  0x9b   : >> { %1707 = vmatpush.bf16.msrb.mxu1 %v3254_v17  ;;  %v5072_v17 = vld.sshfl [vmem:[#allocation1 + $0x20] sm:$0xff pattern:$0x73625140]  ;;  %v3175_v14 = vld [vmem:[%s5756_s1 + $0x458] sm:$0xf0] }
  0x9c   : >> { %1720 = vmatpush.bf16.msrb.mxu2 %v3318_v18  ;;  %v3398_v18 = vld [vmem:[%s4259_s7 + $0x12] sm:$0x3]  ;;  %v3878_v15 = vld [vmem:[%s5756_s1 + $0x4d4] sm:$0xf]  ;;  %v3239_v16 = vld [vmem:[%s5756_s1 + $0x4d8] sm:$0xf0] }
  0x9d   : >> { %1733 = vmatpush.bf16.msrb.mxu3 %v3382_v19  ;;  %1694 = vmatpush.bf16.msrb.mxu0 %v3190_v29  ;;  %v3158_v19 = vor.u32 %v3859_v24, %v3157_v7  ;;  %1897 = vst [vmem:[#allocation1 + $0x20] ss:$4 sm:$0xff] %v3398_v18  ;;  %v3269_v29 = vld [vmem:[%s5756_s1 + $0x510] sm:$0xf]  ;;  %v3896_v24 = vld [vmem:[%s5756_s1 + $0x564] sm:$0xf] }
  0x9e   : >> { %v3270_v42 = vor.u32 %v3887_v30, %v3269_v29  ;;  %v3303_v60 = vld [vmem:[%s5756_s1 + $0x558] sm:$0xf0]  ;;  %v3375_v25 = vld [vmem:[%s5756_s1 + $0x5e8] sm:$0xf0]  ;;  %v3860_v28 = vld [vmem:[%s5756_s1 + $0x444] sm:$0xf] }
  0x9f   : >> { %1708 = vmatpush.bf16.msrb.mxu1 %v3246_v38  ;;  %v3903_v38 = vld [vmem:[%s5756_s1 + $0x594] sm:$0xf0]  ;;  %v3167_v30 = vld [vmem:[%s5756_s1 + $0x448] sm:$0xf0] }
  0xa0   : >> { %1721 = vmatpush.bf16.msrb.mxu2 %v3310_v34  ;;  %v1553_v34 = vunpack.c.l.b16 %v5067_v21  ;;  %v3334_v43 = vor.u32 %v3903_v38, %v3333_v31  ;;  %v3876_v31 = vld [vmem:[%s5756_s1 + $0x4c4] sm:$0xf]  ;;  %v3231_v38 = vld [vmem:[%s5756_s1 + $0x4c8] sm:$0xf0] }
  0xa1   : >> { %1734 = vmatpush.bf16.msrb.mxu3 %v3374_v63  ;;  %1695 = vmatpush.bf16.msrb.mxu0 %v3182_v44  ;;  %v3199_v63 = vld [vmem:[%s5756_s1 + $0x488] sm:$0xf0] }
  0xa2   : >> { %v3202_v44 = vor.u32 %v3868_v32, %v3199_v63  ;;  %v1619_v47 = vpack.c.b16 %v1553_v34, %v1553_v34  ;;  %v3892_v34 = vld [vmem:[%s5756_s1 + $0x544] sm:$0xf]  ;;  %v3295_v63 = vld [vmem:[%s5756_s1 + $0x548] sm:$0xf0] }
  0xa3   : >> { %1709 = vmatpush.bf16.msrb.mxu1 %v3238_v45  ;;  %v3266_v45 = vor.u32 %v3884_v22, %v3263_v35  ;;  %v3910_v35 = vld [vmem:[%s5756_s1 + $0x5d4] sm:$0xf]  ;;  %v3359_v54 = vld [vmem:[%s5756_s1 + $0x5c8] sm:$0xf0] }
  0xa4   : >> { %1722 = vmatpush.bf16.msrb.mxu2 %v3302_v51  ;;  %3071 = vmatmul.msk.bf16.vlgmr.msra.gmra.mxu3 %vm656_vm1, %v4747_v48  ;;  %v3286_v48 = vor.u32 %v3891_v37, %v3285_v3  ;;  %v3330_v51 = vor.u32 %v3900_v33, %v3327_v40  ;;  %v1688_v2 = vsel %vm660_vm0, %v1619_v47, 0  ;;  %v3864_v3 = vld [vmem:[%s5756_s1 + $0x464] sm:$0xf]  ;;  %v3322_v37 = vor.u32 %v3898_v57, %v3319_v58  ;;  %v3858_v40 = vld [vmem:[%s5756_s1 + $0x434] sm:$0xf] }
  0xa5   : >> { %1735 = vmatpush.bf16.msrb.mxu3 %v3366_v23  ;;  %1696 = vmatpush.bf16.msrb.mxu0 %v3174_v56  ;;  %v3191_v23 = vld [vmem:[%s5756_s1 + $0x478] sm:$0xf0]  ;;  %v3142_v56 = vor.u32 %v3855_v62, %v3141_v41  ;;  %v3234_v33 = vor.u32 %v3876_v31, %v3231_v38  ;;  %v3298_v41 = vor.u32 %v3892_v34, %v3295_v63  ;;  %v3856_v57 = vld [vmem:[%s5756_s1 + $0x424] sm:$0xf]  ;;  %v3931_v34 = vld [vmem:[%s5756_s1 + $0x67c] sm:$0xf0] }
  0xa6   : >> { %v3159_v62 = vld [vmem:[%s5756_s1 + $0x438] sm:$0xf0] }
  0xa7   : >> { %1710 = vmatpush.bf16.msrb.mxu1 %v3230_v59  ;;  %v3916_v59 = vld [vmem:[%s5756_s1 + $0x604] sm:$0xf]  ;;  %v3162_v55 = vor.u32 %v3858_v40, %v3159_v62  ;;  %v3947_v40 = vld [vmem:[%s5756_s1 + $0x6fc] sm:$0xf0]  ;;  %v3335_v62 = vld [vmem:[%s5756_s1 + $0x598] sm:$0xf0] }
  0xa8   : >> { %1723 = vmatpush.bf16.msrb.mxu2 %v3294_v61  ;;  %v3391_v61 = vld [vmem:[%s5756_s1 + $0x608] sm:$0xf0] }
  0xa9   : >> { %1736 = vmatpush.bf16.msrb.mxu3 %v3358_v0  ;;  %1697 = vmatpush.bf16.msrb.mxu0 %v3166_v6  ;;  %v3194_v0 = vor.u32 %v3866_v46, %v3191_v23  ;;  %v3247_v6 = vld [vmem:[%s5756_s1 + $0x4e8] sm:$0xf0]  ;;  %v3394_v7 = vor.u32 %v3916_v59, %v3391_v61  ;;  %v3287_v46 = vld [vmem:[%s5756_s1 + $0x538] sm:$0xf0]  ;;  %v3908_v23 = vld [vmem:[%s5756_s1 + $0x5c4] sm:$0xf] }
  0xaa   : >> { %v3250_v11 = vor.u32 %v3880_v5, %v3247_v6  ;;  %v3151_v59 = vld [vmem:[%s5756_s1 + $0x428] sm:$0xf0]  ;;  %v3872_v61 = vld [vmem:[%s5756_s1 + $0x4a4] sm:$0xf]  ;;  %v3906_v5 = vld [vmem:[%s5756_s1 + $0x5b4] sm:$0xf] }
  0xab   : >> { %1711 = vmatpush.bf16.msrb.mxu1 %v3222_v8  ;;  %v3311_v8 = vld [vmem:[%s5756_s1 + $0x568] sm:$0xf0]  ;;  %v3351_v6 = vld [vmem:[%s5756_s1 + $0x5b8] sm:$0xf0] }
  0xac   : >> { %1724 = vmatpush.bf16.msrb.mxu2 %v3286_v48  ;;  %v3383_v48 = vld [vmem:[%s5756_s1 + $0x5f8] sm:$0xf0]  ;;  %v3314_v13 = vor.u32 %v3896_v24, %v3311_v8  ;;  %v3154_v24 = vor.u32 %v3856_v57, %v3151_v59  ;;  %v3706_v59 = vld [vmem:[%s5756_s1 + $0x7f8] sm:$0xf] }
  0xad   : >> { %1737 = vmatpush.bf16.msrb.mxu3 %v3350_v10  ;;  %1698 = vmatpush.bf16.msrb.mxu0 %v3158_v19  ;;  %v3186_v10 = vor.u32 %v3864_v3, %v3183_v4  ;;  %v3386_v18 = vor.u32 %v3914_v9, %v3383_v48  ;;  %v3894_v19 = vld [vmem:[%s5756_s1 + $0x554] sm:$0xf]  ;;  %v3279_v3 = vld [vmem:[%s5756_s1 + $0x528] sm:$0xf0] }
  0xae   : >> { %v3306_v29 = vor.u32 %v3894_v19, %v3303_v60  ;;  %v3854_v48 = vld [vmem:[%s5756_s1 + $0x414] sm:$0xf]  ;;  %v3354_v19 = vor.u32 %v3906_v5, %v3351_v6  ;;  %v3522_v60 = vld [vmem:[%s5756_s1 + $0x688] sm:$0xf] }
  0xaf   : >> { %1712 = vmatpush.bf16.msrb.mxu1 %v3214_v20  ;;  %v3912_v20 = vld [vmem:[%s5756_s1 + $0x5e4] sm:$0xf]  ;;  %v3698_v6 = vld [vmem:[%s5756_s1 + $0x7e8] sm:$0xf] }
  0xb0   : >> { %1725 = vmatpush.bf16.msrb.mxu2 %v3278_v26  ;;  %v3178_v26 = vor.u32 %v3862_v12, %v3175_v14  ;;  %v3378_v32 = vor.u32 %v3912_v20, %v3375_v25  ;;  %v3886_v14 = vld [vmem:[%s5756_s1 + $0x514] sm:$0xf]  ;;  %v3933_v20 = vld [vmem:[%s5756_s1 + $0x68c] sm:$0xf0]  ;;  %v3586_v25 = vld [vmem:[%s5756_s1 + $0x708] sm:$0xf] }
  0xb1   : >> { %1738 = vmatpush.bf16.msrb.mxu3 %v3342_v27  ;;  %1699 = vmatpush.bf16.msrb.mxu0 %v3150_v36  ;;  %v3242_v27 = vor.u32 %v3878_v15, %v3239_v16  ;;  %v3367_v36 = vld [vmem:[%s5756_s1 + $0x5d8] sm:$0xf0]  ;;  %v1554_v16 = vunpack.c.h.b16 %v5067_v21  ;;  %v3949_v21 = vld [vmem:[%s5756_s1 + $0x70c] sm:$0xf0]  ;;  %v3523_v38 = vor.u32 %v3933_v20, %v3522_v60  ;;  %v3975_v60 = vld [vmem:[%s5756_s1 + $0x7dc] sm:$0xf0] }
  0xb2   : >> { %v3271_v15 = vld [vmem:[%s5756_s1 + $0x518] sm:$0xf0] }
  0xb3   : >> { %1713 = vmatpush.bf16.msrb.mxu1 %v3206_v39  ;;  %v676_v22 = vpop.f32.mrf.mxu0  ;;  %v3170_v39 = vor.u32 %v3860_v28, %v3167_v30  ;;  %v3343_v28 = vld [vmem:[%s5756_s1 + $0x5a8] sm:$0xf0]  ;;  %v3274_v31 = vor.u32 %v3886_v14, %v3271_v15  ;;  %v1620_v63 = vpack.c.b16 %v1554_v16, %v1554_v16 }
  0xb4   : >> { %1726 = vmatpush.bf16.msrb.mxu2 %v3270_v42  ;;  %v3874_v42 = vld [vmem:[%s5756_s1 + $0x4b4] sm:$0xf] }
  0xb5   : >> { %1739 = vmatpush.bf16.msrb.mxu3 %v3334_v43  ;;  %1700 = vmatpush.bf16.msrb.mxu0 %v3142_v56  ;;  %v3223_v43 = vld [vmem:[%s5756_s1 + $0x4b8] sm:$0xf0] }
  0xb6   : >> { %1714 = vmatmul.bf16.vlgmr.msrb.gmra.mxu1 %v5006_v53  ;;  %v689_v47 = vpop.f32.mrf.mxu1  ;;  %v3226_v56 = vor.u32 %v3874_v42, %v3223_v43  ;;  %v3650_v43 = vld [vmem:[%s5756_s1 + $0x788] sm:$0xf] }
  0xb7   : >> { %1758 = vmatpush.bf16.msra.mxu1 %v3202_v44  ;;  %1727 = vmatmul.bf16.vlgmr.msrb.gmra.mxu2 %v5002_v50  ;;  %v3370_v44 = vor.u32 %v3910_v35, %v3367_v36  ;;  %v3578_v36 = vld [vmem:[%s5756_s1 + $0x6f8] sm:$0xf] }
  0xb8   : >> { %1771 = vmatpush.bf16.msra.mxu2 %v3266_v45  ;;  %1740 = vmatmul.bf16.vlgmr.msrb.gmra.mxu3 %v5004_v52  ;;  %v3890_v45 = vld [vmem:[%s5756_s1 + $0x534] sm:$0xf] }
  0xb9   : >> { %1784 = vmatpush.bf16.msra.mxu3 %v3330_v51  ;;  %1752 = vmatpush.bf16.msra.mxu0 %v1688_v2  ;;  %v690_v51 = vadd.f32 %v689_v47, %v676_v22  ;;  %v3290_v58 = vor.u32 %v3890_v45, %v3287_v46  ;;  %v3888_v2 = vld [vmem:[%s5756_s1 + $0x524] sm:$0xf]  ;;  %v702_v4 = vpop.f32.mrf.mxu2  ;;  %v3587_v22 = vor.u32 %v3949_v21, %v3586_v25  ;;  %v3554_v25 = vld [vmem:[%s5756_s1 + $0x6c8] sm:$0xf]  ;;  %v3959_v21 = vld [vmem:[%s5756_s1 + $0x75c] sm:$0xf0] }
  0xba   : >> { %1701 = vmatmul.bf16.vlgmr.msrb.gmra.mxu0 %v5000_v49  ;;  %v3282_v12 = vor.u32 %v3888_v2, %v3279_v3  ;;  %v3945_v2 = vld [vmem:[%s5756_s1 + $0x6ec] sm:$0xf0]  ;;  %v3642_v3 = vld [vmem:[%s5756_s1 + $0x778] sm:$0xf] }
  0xbb   : >> { %1759 = vmatpush.bf16.msra.mxu1 %v3194_v0  ;;  %v3215_v0 = vld [vmem:[%s5756_s1 + $0x4a8] sm:$0xf0]  ;;  %v715_v9 = vpop.f32.mrf.mxu3 }
  0xbc   : >> { %1772 = vmatpush.bf16.msra.mxu2 %v3258_v1  ;;  %v3362_v1 = vor.u32 %v3908_v23, %v3359_v54  ;;  %v3218_v8 = vor.u32 %v3872_v61, %v3215_v0  ;;  %v3506_v23 = vld [vmem:[%s5756_s1 + $0x668] sm:$0xf]  ;;  %v3979_v61 = vld [vmem:[%s5756_s1 + $0x7fc] sm:$0xf0] }
  0xbd   : >> { %1785 = vmatpush.bf16.msra.mxu3 %v3322_v37  ;;  %1797 = vmatpush.bf16.msrb.mxu0 %v3394_v7  ;;  %v678_v37 = vpop.f32.mrf.mxu0  ;;  %v703_v7 = vadd.f32 %v702_v4, %v690_v51  ;;  %v1691_v51 = vsel %vm660_vm0, %v1620_v63, 0  ;;  %v3707_v4 = vor.u32 %v3979_v61, %v3706_v59  ;;  %v3682_v63 = vld [vmem:[%s5756_s1 + $0x7c8] sm:$0xf]  ;;  %v3937_v61 = vld [vmem:[%s5756_s1 + $0x6ac] sm:$0xf0] }
  0xbe   : >> { %v3498_v37 = vld [vmem:[%s5756_s1 + $0x658] sm:$0xf] }
  0xbf   : >> { %1760 = vmatpush.bf16.msra.mxu1 %v3186_v10  ;;  %v3143_v10 = vld [vmem:[%s5756_s1 + $0x418] sm:$0xf0] }
  0xc0   : >> { %1773 = vmatpush.bf16.msra.mxu2 %v3250_v11  ;;  %v3870_v11 = vld [vmem:[%s5756_s1 + $0x494] sm:$0xf] }
  0xc1   : >> { %1786 = vmatpush.bf16.msra.mxu3 %v3314_v13  ;;  %1798 = vmatpush.bf16.msrb.mxu0 %v3386_v18  ;;  %v3207_v13 = vld [vmem:[%s5756_s1 + $0x498] sm:$0xf0]  ;;  %v716_v18 = vadd.f32 %v715_v9, %v703_v7  ;;  %v704_v42 = vpop.f32.mrf.mxu2  ;;  %v3977_v7 = vld [vmem:[%s5756_s1 + $0x7ec] sm:$0xf0]  ;;  %v3943_v9 = vld [vmem:[%s5756_s1 + $0x6dc] sm:$0xf0] }
  0xc2   : >> { %v3210_v30 = vor.u32 %v3870_v11, %v3207_v13  ;;  %v3961_v11 = vld [vmem:[%s5756_s1 + $0x76c] sm:$0xf0]  ;;  %v3490_v13 = vld [vmem:[%s5756_s1 + $0x648] sm:$0xf]  ;;  %v3699_v14 = vor.u32 %v3977_v7, %v3698_v6 }
  0xc3   : >> { %1761 = vmatpush.bf16.msra.mxu1 %v3178_v26  ;;  %v691_v26 = vpop.f32.mrf.mxu1  ;;  %v717_v45 = vpop.f32.mrf.mxu3  ;;  %v3921_v42 = vld [vmem:[%s5756_s1 + $0x62c] sm:$0xf0]  ;;  %v3666_v6 = vld [vmem:[%s5756_s1 + $0x7a8] sm:$0xf] }
  0xc4   : >> { %1774 = vmatpush.bf16.msra.mxu2 %v3242_v27  ;;  %v3904_v27 = vld [vmem:[%s5756_s1 + $0x5a4] sm:$0xf]  ;;  %v3626_v26 = vld [vmem:[%s5756_s1 + $0x758] sm:$0xf] }
  0xc5   : >> { %1787 = vmatpush.bf16.msra.mxu3 %v3306_v29  ;;  %1799 = vmatpush.bf16.msrb.mxu0 %v3378_v32  ;;  %v3146_v29 = vor.u32 %v3854_v48, %v3143_v10  ;;  %v3514_v32 = vld [vmem:[%s5756_s1 + $0x678] sm:$0xf]  ;;  %v3346_v35 = vor.u32 %v3904_v27, %v3343_v28  ;;  %v728_v46 = vpop.f32.mrf.mxu0  ;;  %v3634_v10 = vld [vmem:[%s5756_s1 + $0x768] sm:$0xf] }
  0xc6   : >> { %v3515_v47 = vor.u32 %v3931_v34, %v3514_v32  ;;  %v3635_v20 = vor.u32 %v3961_v11, %v3634_v10  ;;  %v3482_v28 = vld [vmem:[%s5756_s1 + $0x638] sm:$0xf] }
  0xc7   : >> { %1762 = vmatpush.bf16.msra.mxu1 %v3170_v39  ;;  %v3714_v39 = vld [vmem:[%s5756_s1 + $0x808] sm:$0xf]  ;;  %v3546_v32 = vld [vmem:[%s5756_s1 + $0x6b8] sm:$0xf] }
  0xc8   : >> { %1775 = vmatpush.bf16.msra.mxu2 %v3234_v33  ;;  %v3981_v33 = vld [vmem:[%s5756_s1 + $0x80c] sm:$0xf0]  ;;  %v5501_v10 = vld.sshfl [vmem:[#allocation1 + $0x18] sm:$0xff pattern:$0x73625140] }
  0xc9   : >> { %1788 = vmatpush.bf16.msra.mxu3 %v3298_v41  ;;  %1800 = vmatpush.bf16.msrb.mxu0 %v3370_v44  ;;  %v3902_v41 = vld [vmem:[%s5756_s1 + $0x594] sm:$0xf]  ;;  %v3965_v44 = vld [vmem:[%s5756_s1 + $0x78c] sm:$0xf0]  ;;  %v3715_v54 = vor.u32 %v3981_v33, %v3714_v39  ;;  %v3618_v33 = vld [vmem:[%s5756_s1 + $0x748] sm:$0xf] }
  0xca   : >> { %3395 = vmatmul.msk.bf16.vlgmr.msra.gmra.mxu0 %vm656_vm1, %v5072_v17  ;;  %v3338_v57 = vor.u32 %v3902_v41, %v3335_v62  ;;  %v3651_v0 = vor.u32 %v3965_v44, %v3650_v43  ;;  %v3474_v62 = vld [vmem:[%s5756_s1 + $0x628] sm:$0xf]  ;;  %v5451_v44 = vld [vmem:[%s5756_s1 + $0x818] sm:$0x33] }
  0xcb   : >> { %1763 = vmatpush.bf16.msra.mxu1 %v3162_v55  ;;  %v5343_v55 = vadd.f32 %v728_v46, %v716_v18  ;;  %v3925_v18 = vld [vmem:[%s5756_s1 + $0x64c] sm:$0xf0]  ;;  %v3538_v46 = vld [vmem:[%s5756_s1 + $0x6a8] sm:$0xf] }
  0xcc   : >> { %1776 = vmatpush.bf16.msra.mxu2 %v3226_v56  ;;  %v3579_v56 = vor.u32 %v3947_v40, %v3578_v36  ;;  %v3491_v27 = vor.u32 %v3925_v18, %v3490_v13  ;;  %v3939_v36 = vld [vmem:[%s5756_s1 + $0x6bc] sm:$0xf0]  ;;  %v3957_v40 = vld [vmem:[%s5756_s1 + $0x74c] sm:$0xf0] }
  0xcd   : >> { %1789 = vmatpush.bf16.msra.mxu3 %v3290_v58  ;;  %1801 = vmatpush.bf16.msrb.mxu0 %v3362_v1  ;;  %v3929_v58 = vld [vmem:[%s5756_s1 + $0x66c] sm:$0xf0]  ;;  %v3570_v1 = vld [vmem:[%s5756_s1 + $0x6e8] sm:$0xf]  ;;  %v730_v15 = vpop.f32.mrf.mxu0  ;;  %v3619_v59 = vor.u32 %v3957_v40, %v3618_v33  ;;  %v3658_v33 = vld [vmem:[%s5756_s1 + $0x798] sm:$0xf] }
  0xce   : >> { %v3571_v5 = vor.u32 %v3945_v2, %v3570_v1  ;;  %v3955_v1 = vld [vmem:[%s5756_s1 + $0x73c] sm:$0xf0] }
  0xcf   : >> { %1764 = vmatpush.bf16.msra.mxu1 %v3154_v24  ;;  %v741_v48 = vpop.f32.mrf.mxu1  ;;  %v3967_v40 = vld [vmem:[%s5756_s1 + $0x79c] sm:$0xf0] }
  0xd0   : >> { %1777 = vmatpush.bf16.msra.mxu2 %v3218_v8  ;;  %v3562_v8 = vld [vmem:[%s5756_s1 + $0x6d8] sm:$0xf] }
  0xd1   : >> { %1790 = vmatpush.bf16.msra.mxu3 %v3282_v12  ;;  %1802 = vmatpush.bf16.msrb.mxu0 %v3354_v19  ;;  %v3563_v16 = vor.u32 %v3943_v9, %v3562_v8  ;;  %v3690_v19 = vld [vmem:[%s5756_s1 + $0x7d8] sm:$0xf]  ;;  %v3539_v8 = vor.u32 %v3937_v61, %v3538_v46  ;;  %v3932_v9 = vld [vmem:[%s5756_s1 + $0x68c] sm:$0xf] }
  0xd3   : >> { %1765 = vmatpush.bf16.msra.mxu1 %v3146_v29  ;;  %v3923_v29 = vld [vmem:[%s5756_s1 + $0x63c] sm:$0xf0] }
  0xd4   : >> { %1778 = vmatpush.bf16.msra.mxu2 %v3210_v30  ;;  %v3691_v30 = vor.u32 %v3975_v60, %v3690_v19  ;;  %v3483_v45 = vor.u32 %v3923_v29, %v3482_v28  ;;  %v3602_v60 = vld [vmem:[%s5756_s1 + $0x728] sm:$0xf]  ;;  %v1923_v29 = vshll.u32 %v5501_v10, 16 }
  0xd5   : >> { %1791 = vmatpush.bf16.msra.mxu3 %v3274_v31  ;;  %1803 = vmatpush.bf16.msrb.mxu0 %v3346_v35  ;;  %v3627_v35 = vor.u32 %v3959_v21, %v3626_v26  ;;  %v3980_v21 = vld [vmem:[%s5756_s1 + $0x80c] sm:$0xf] }
  0xd6   : >> { %1766 = vmatmul.bf16.vlgmr.msra.gmra.mxu1 %v5000_v49  ;;  %v3963_v49 = vld [vmem:[%s5756_s1 + $0x77c] sm:$0xf0]  ;;  %v754_v31 = vpop.f32.mrf.mxu2 }
  0xd7   : >> { %1779 = vmatmul.bf16.vlgmr.msra.gmra.mxu2 %v5006_v53  ;;  %1817 = vmatpush.bf16.msrb.mxu1 %v1691_v51  ;;  %v3507_v53 = vor.u32 %v3929_v58, %v3506_v23  ;;  %v3643_v24 = vor.u32 %v3963_v49, %v3642_v3  ;;  %v755_v34 = vadd.f32 %v754_v31, %v741_v48  ;;  %v743_v39 = vpop.f32.mrf.mxu1  ;;  %v767_v41 = vpop.f32.mrf.mxu3  ;;  %v3674_v51 = vld [vmem:[%s5756_s1 + $0x7b8] sm:$0xf]  ;;  %v5459_v23 = vld.sshfl [vmem:[#allocation1] sm:$0xff pattern:$0x73625140]  ;;  %v2130_v3 = vunpack.c.l.b16 %v5451_v44 }
  0xd8   : >> { %2271 = vmatpush.bf16.msrb.mxu2 %v3523_v38  ;;  %1792 = vmatmul.bf16.vlgmr.msra.gmra.mxu3 %v5002_v50  ;;  %v3927_v50 = vld [vmem:[%s5756_s1 + $0x65c] sm:$0xf0]  ;;  %v5464_v58 = vld.sshfl [vmem:[#allocation1 + $0x8] sm:$0xff pattern:$0x73625140] }
  0xd9   : >> { %2284 = vmatpush.bf16.msrb.mxu3 %v3587_v22  ;;  %1804 = vmatpush.bf16.msrb.mxu0 %v3338_v57  ;;  %v3499_v12 = vor.u32 %v3927_v50, %v3498_v37  ;;  %v3973_v22 = vld [vmem:[%s5756_s1 + $0x7cc] sm:$0xf0]  ;;  %v768_v43 = vadd.f32 %v767_v41, %v755_v34  ;;  %v3971_v57 = vld [vmem:[%s5756_s1 + $0x7bc] sm:$0xf0]  ;;  %v3475_v37 = vor.u32 %v3921_v42, %v3474_v62  ;;  %v3930_v31 = vld [vmem:[%s5756_s1 + $0x67c] sm:$0xf] }
  0xda   : >> { %v3919_v49 = vld [vmem:[%s5756_s1 + $0x61c] sm:$0xf0]  ;;  %v3675_v50 = vor.u32 %v3971_v57, %v3674_v51  ;;  %v3969_v48 = vld [vmem:[%s5756_s1 + $0x7ac] sm:$0xf0]  ;;  %v3594_v34 = vld [vmem:[%s5756_s1 + $0x718] sm:$0xf] }
  0xdb   : >> { %2310 = vmatpush.bf16.msra.mxu1 %v3715_v54  ;;  %v3547_v54 = vor.u32 %v3939_v36, %v3546_v32  ;;  %v3667_v26 = vor.u32 %v3969_v48, %v3666_v6  ;;  %v3716_v32 = vld [vmem:[%s5756_s1 + $0x810] sm:$0xf0]  ;;  %v3951_v62 = vld [vmem:[%s5756_s1 + $0x71c] sm:$0xf0]  ;;  %v3948_v42 = vld [vmem:[%s5756_s1 + $0x70c] sm:$0xf] }
  0xdc   : >> { %2272 = vmatpush.bf16.msrb.mxu2 %v3515_v47  ;;  %1805 = vmatmul.bf16.vlgmr.msrb.gmra.mxu0 %v5004_v52  ;;  %v3941_v52 = vld [vmem:[%s5756_s1 + $0x6cc] sm:$0xf0]  ;;  %v3683_v47 = vor.u32 %v3973_v22, %v3682_v63  ;;  %v3652_v51 = vld [vmem:[%s5756_s1 + $0x790] sm:$0xf0]  ;;  %v3978_v57 = vld [vmem:[%s5756_s1 + $0x7fc] sm:$0xf] }
  0xdd   : >> { %2285 = vmatpush.bf16.msrb.mxu3 %v3579_v56  ;;  %2297 = vmatpush.bf16.msra.mxu0 %v3651_v0  ;;  %v3555_v38 = vor.u32 %v3941_v52, %v3554_v25  ;;  %v780_v56 = vpop.f32.mrf.mxu0  ;;  %v3610_v0 = vld [vmem:[%s5756_s1 + $0x738] sm:$0xf]  ;;  %v1903_v25 = vshrl.u32 %v5459_v23, 16  ;;  %v3644_v6 = vld [vmem:[%s5756_s1 + $0x780] sm:$0xf0] }
  0xde   : >> { %v781_v2 = vadd.f32 %v780_v56, %v768_v43  ;;  %v756_v7 = vpop.f32.mrf.mxu2  ;;  %v3611_v11 = vor.u32 %v3955_v1, %v3610_v0  ;;  %v3588_v43 = vld [vmem:[%s5756_s1 + $0x710] sm:$0xf0]  ;;  %v3659_v56 = vor.u32 %v3967_v40, %v3658_v33  ;;  %v3595_v1 = vor.u32 %v3951_v62, %v3594_v34  ;;  %v3972_v33 = vld [vmem:[%s5756_s1 + $0x7cc] sm:$0xf] }
  0xdf   : >> { %2311 = vmatpush.bf16.msra.mxu1 %v3707_v4  ;;  %v3530_v4 = vld [vmem:[%s5756_s1 + $0x698] sm:$0xf]  ;;  %v793_v13 = vpop.f32.mrf.mxu1  ;;  %v769_v15 = vpop.f32.mrf.mxu3  ;;  %v1902_v7 = vld.sshfl [vmem:[#allocation1 + $0x20] sm:$0xff pattern:$0x73625140] }
  0xe0   : >> { %2273 = vmatpush.bf16.msrb.mxu2 %v3507_v53  ;;  %v1905_v53 = vshll.u32 %v5459_v23, 16  ;;  %v5508_v19 = vadd.f32 %v793_v13, %v781_v2  ;;  %v1921_v23 = vshrl.u32 %v5501_v10, 16  ;;  %v3928_v2 = vld [vmem:[%s5756_s1 + $0x66c] sm:$0xf]  ;;  %v3500_v13 = vld [vmem:[%s5756_s1 + $0x660] sm:$0xf0] }
  0xe1   : >> { %2286 = vmatpush.bf16.msrb.mxu3 %v3571_v5  ;;  %2298 = vmatpush.bf16.msra.mxu0 %v3643_v24  ;;  %v3935_v5 = vld [vmem:[%s5756_s1 + $0x69c] sm:$0xf0]  ;;  %v1911_v24 = vshll.u32 %v5464_v58, 16  ;;  %v3944_v15 = vld [vmem:[%s5756_s1 + $0x6ec] sm:$0xf] }
  0xe2   : >> { %v1907_v52 = vrot.slane %v1905_v53, 1  ;;  %v3684_v40 = vld [vmem:[%s5756_s1 + $0x7d0] sm:$0xf0] }
  0xe3   : >> { %2312 = vmatpush.bf16.msra.mxu1 %v3699_v14  ;;  %v2196_v14 = vpack.c.b16 %v2130_v3, %v2130_v3  ;;  %v1913_v28 = vrot.slane %v1911_v24, 1  ;;  %v3508_v3 = vld [vmem:[%s5756_s1 + $0x670] sm:$0xf0] }
  0xe4   : >> { %2274 = vmatpush.bf16.msrb.mxu2 %v3499_v12  ;;  %v3524_v12 = vld [vmem:[%s5756_s1 + $0x690] sm:$0xf0]  ;;  %v5542_v41 = vor.u32 %v1907_v52, %v1903_v25  ;;  %v3511_v10 = vor.u32 %v3928_v2, %v3508_v3  ;;  %v3974_v52 = vld [vmem:[%s5756_s1 + $0x7dc] sm:$0xf]  ;;  %v3676_v2 = vld [vmem:[%s5756_s1 + $0x7c0] sm:$0xf0] }
  0xe5   : >> { %2287 = vmatpush.bf16.msrb.mxu3 %v3563_v16  ;;  %2299 = vmatpush.bf16.msra.mxu0 %v3635_v20  ;;  %v5506_v16 = vld.sshfl [vmem:[#allocation1 + $0x10] sm:$0xff pattern:$0x73625140]  ;;  %v782_v63 = vpop.f32.mrf.mxu0  ;;  %v2266_v39 = vsel %vm660_vm0, %v2196_v14, 0 }
  0xe6   : >> { %3396 = vmatmul.msk.bf16.vlgmr.msrb.gmra.mxu1 %vm656_vm1, %v5072_v17  ;;  %v3466_v17 = vld [vmem:[%s5756_s1 + $0x618] sm:$0xf]  ;;  %v3953_v20 = vld [vmem:[%s5756_s1 + $0x72c] sm:$0xf0]  ;;  %v1917_v22 = vshll.u32 %v5506_v16, 16 }
  0xe7   : >> { %2313 = vmatpush.bf16.msra.mxu1 %v3691_v30  ;;  %v3467_v18 = vor.u32 %v3919_v49, %v3466_v17  ;;  %v3531_v30 = vor.u32 %v3935_v5, %v3530_v4  ;;  %v3603_v36 = vor.u32 %v3953_v20, %v3602_v60  ;;  %v795_v17 = vpop.f32.mrf.mxu1  ;;  %v3591_v49 = vor.u32 %v3948_v42, %v3588_v43  ;;  %v3580_v4 = vld [vmem:[%s5756_s1 + $0x700] sm:$0xf0]  ;;  %v3962_v5 = vld [vmem:[%s5756_s1 + $0x77c] sm:$0xf]  ;;  %v3572_v60 = vld [vmem:[%s5756_s1 + $0x6f0] sm:$0xf0] }
  0xe8   : >> { %2275 = vmatpush.bf16.msrb.mxu2 %v3491_v27  ;;  %v1909_v27 = vshrl.u32 %v5464_v58, 16  ;;  %v3708_v58 = vld [vmem:[%s5756_s1 + $0x800] sm:$0xf0]  ;;  %v1919_v61 = vrot.slane %v1917_v22, 1  ;;  %v3647_v14 = vor.u32 %v3962_v5, %v3644_v6  ;;  %v3960_v20 = vld [vmem:[%s5756_s1 + $0x76c] sm:$0xf] }
  0xe9   : >> { %2288 = vmatpush.bf16.msrb.mxu3 %v3555_v38  ;;  %2300 = vmatpush.bf16.msra.mxu0 %v3627_v35  ;;  %v3516_v38 = vld [vmem:[%s5756_s1 + $0x680] sm:$0xf0]  ;;  %v3527_v35 = vor.u32 %v3932_v9, %v3524_v12  ;;  %v3700_v9 = vld [vmem:[%s5756_s1 + $0x7f0] sm:$0xf0]  ;;  %v3942_v63 = vld [vmem:[%s5756_s1 + $0x6dc] sm:$0xf] }
  0xea   : >> { %v5553_v46 = vor.u32 %v1913_v28, %v1909_v27  ;;  %v3519_v0 = vor.u32 %v3930_v31, %v3516_v38  ;;  %v3636_v25 = vld [vmem:[%s5756_s1 + $0x770] sm:$0xf0]  ;;  %v3575_v28 = vor.u32 %v3944_v15, %v3572_v60  ;;  %v1927_v38 = vshrl.u32 %v1902_v7, 16  ;;  %v3564_v22 = vld [vmem:[%s5756_s1 + $0x6e0] sm:$0xf0] }
  0xeb   : >> { %2314 = vmatpush.bf16.msra.mxu1 %v3683_v47  ;;  %v3964_v47 = vld [vmem:[%s5756_s1 + $0x78c] sm:$0xf]  ;;  %v3639_v31 = vor.u32 %v3960_v20, %v3636_v25  ;;  %v3468_v60 = vld [vmem:[%s5756_s1 + $0x620] sm:$0xf0] }
  0xec   : >> { %2276 = vmatpush.bf16.msrb.mxu2 %v3483_v45  ;;  %v3719_v45 = vor.u32 %v3980_v21, %v3716_v32  ;;  %v3655_v53 = vor.u32 %v3964_v47, %v3652_v51  ;;  %v3567_v51 = vor.u32 %v3942_v63, %v3564_v22 }
  0xed   : >> { %2289 = vmatpush.bf16.msrb.mxu3 %v3547_v54  ;;  %2301 = vmatpush.bf16.msra.mxu0 %v3619_v59  ;;  %v1925_v54 = vrot.slane %v1923_v29, 1  ;;  %v1915_v59 = vshrl.u32 %v5506_v16, 16  ;;  %v1929_v16 = vshll.u32 %v1902_v7, 16  ;;  %v3924_v29 = vld [vmem:[%s5756_s1 + $0x64c] sm:$0xf] }
  0xee   : >> { %v3938_v7 = vld [vmem:[%s5756_s1 + $0x6bc] sm:$0xf] }
  0xef   : >> { %2315 = vmatpush.bf16.msra.mxu1 %v3675_v50  ;;  %v3711_v50 = vor.u32 %v3978_v57, %v3708_v58  ;;  %v5589_v24 = vor.u32 %v1925_v54, %v1921_v23  ;;  %v5597_v48 = vor.u32 %v1919_v61, %v1915_v59  ;;  %v1931_v32 = vrot.slane %v1929_v16, 1  ;;  %v3922_v23 = vld [vmem:[%s5756_s1 + $0x63c] sm:$0xf]  ;;  %v3484_v54 = vld [vmem:[%s5756_s1 + $0x640] sm:$0xf0] }
  0xf0   : >> { %2277 = vmatpush.bf16.msrb.mxu2 %v3475_v37  ;;  %v3946_v37 = vld [vmem:[%s5756_s1 + $0x6fc] sm:$0xf]  ;;  %v3940_v58 = vld [vmem:[%s5756_s1 + $0x6cc] sm:$0xf]  ;;  %v3556_v59 = vld [vmem:[%s5756_s1 + $0x6d0] sm:$0xf0]  ;;  %v3487_v17 = vor.u32 %v3922_v23, %v3484_v54 }
  0xf1   : >> { %2290 = vmatpush.bf16.msrb.mxu3 %v3539_v8  ;;  %2302 = vmatpush.bf16.msra.mxu0 %v3611_v11  ;;  %v3976_v8 = vld [vmem:[%s5756_s1 + $0x7ec] sm:$0xf]  ;;  %v3926_v11 = vld [vmem:[%s5756_s1 + $0x65c] sm:$0xf]  ;;  %v3583_v12 = vor.u32 %v3946_v37, %v3580_v4  ;;  %v5650_v47 = vor.u32 %v1931_v32, %v1927_v38  ;;  %v3476_v4 = vld [vmem:[%s5756_s1 + $0x630] sm:$0xf0] }
  0xf2   : >> { %v3503_v21 = vor.u32 %v3926_v11, %v3500_v13  ;;  %v3956_v61 = vld [vmem:[%s5756_s1 + $0x74c] sm:$0xf] }
  0xf3   : >> { %2316 = vmatpush.bf16.msra.mxu1 %v3667_v26  ;;  %v3692_v26 = vld [vmem:[%s5756_s1 + $0x7e0] sm:$0xf0]  ;;  %v1192_v27 = vpop.f32.mrf.mxu1  ;;  %v3920_v37 = vld [vmem:[%s5756_s1 + $0x62c] sm:$0xf] }
  0xf4   : >> { %2278 = vmatpush.bf16.msrb.mxu2 %v3467_v18  ;;  %v3703_v18 = vor.u32 %v3976_v8, %v3700_v9  ;;  %v3695_v34 = vor.u32 %v3974_v52, %v3692_v26  ;;  %v3548_v8 = vld [vmem:[%s5756_s1 + $0x6c0] sm:$0xf0]  ;;  %v3954_v9 = vld [vmem:[%s5756_s1 + $0x73c] sm:$0xf]  ;;  %v3968_v13 = vld [vmem:[%s5756_s1 + $0x7ac] sm:$0xf]  ;;  %v3479_v15 = vor.u32 %v3920_v37, %v3476_v4 }
  0xf5   : >> { %2291 = vmatpush.bf16.msrb.mxu3 %v3531_v30  ;;  %2303 = vmatpush.bf16.msra.mxu0 %v3603_v36  ;;  %v3492_v30 = vld [vmem:[%s5756_s1 + $0x650] sm:$0xf0]  ;;  %v3551_v16 = vor.u32 %v3938_v7, %v3548_v8  ;;  %v3936_v26 = vld [vmem:[%s5756_s1 + $0x6ac] sm:$0xf] }
  0xf6   : >> { %v1153_v36 = vpop.f32.mrf.mxu2  ;;  %v3495_v42 = vor.u32 %v3924_v29, %v3492_v30  ;;  %v3604_v29 = vld [vmem:[%s5756_s1 + $0x730] sm:$0xf0]  ;;  %v3966_v30 = vld [vmem:[%s5756_s1 + $0x79c] sm:$0xf] }
  0xf7   : >> { %2279 = vmatmul.bf16.vlgmr.msrb.gmra.mxu2 %v5542_v41  ;;  %2317 = vmatpush.bf16.msra.mxu1 %v3659_v56  ;;  %v1154_v62 = vadd.f32 %v1153_v36, %v5343_v55  ;;  %v1166_v43 = vpop.f32.mrf.mxu3  ;;  %v3687_v55 = vor.u32 %v3972_v33, %v3684_v40  ;;  %v3532_v36 = vld [vmem:[%s5756_s1 + $0x6a0] sm:$0xf0]  ;;  %v3950_v33 = vld [vmem:[%s5756_s1 + $0x71c] sm:$0xf] }
  0xf8   : >> { %2330 = vmatpush.bf16.msra.mxu2 %v2266_v39  ;;  %2292 = vmatmul.bf16.vlgmr.msrb.gmra.mxu3 %v5553_v46  ;;  %v3628_v39 = vld [vmem:[%s5756_s1 + $0x760] sm:$0xf0] }
  0xf9   : >> { %2336 = vmatpush.bf16.msra.mxu3 %v3527_v35  ;;  %2304 = vmatpush.bf16.msra.mxu0 %v3595_v1  ;;  %v3958_v35 = vld [vmem:[%s5756_s1 + $0x75c] sm:$0xf]  ;;  %v1167_v56 = vadd.f32 %v1166_v43, %v1154_v62  ;;  %v3596_v40 = vld [vmem:[%s5756_s1 + $0x720] sm:$0xf0] }
  0xfa   : >> { %2318 = vmatmul.bf16.vlgmr.msra.gmra.mxu1 %v5589_v24  ;;  %v3631_v57 = vor.u32 %v3958_v35, %v3628_v39  ;;  %v3970_v1 = vld [vmem:[%s5756_s1 + $0x7bc] sm:$0xf]  ;;  %v3599_v43 = vor.u32 %v3950_v33, %v3596_v40 }
  0xfb   : >> { %2362 = vmatpush.bf16.msrb.mxu1 %v3655_v53  ;;  %v3559_v53 = vor.u32 %v3940_v58, %v3556_v59  ;;  %v3679_v6 = vor.u32 %v3970_v1, %v3676_v2  ;;  %v3934_v35 = vld [vmem:[%s5756_s1 + $0x69c] sm:$0xf] }
  0xfc   : >> { %2375 = vmatpush.bf16.msrb.mxu2 %v3719_v45  ;;  %2305 = vmatmul.bf16.vlgmr.msra.gmra.mxu0 %v5597_v48  ;;  %v1179_v45 = vpop.f32.mrf.mxu0 }
  0xfd   : >> { %2337 = vmatpush.bf16.msra.mxu3 %v3519_v0  ;;  %2349 = vmatpush.bf16.msrb.mxu0 %v3591_v49  ;;  %v3620_v0 = vld [vmem:[%s5756_s1 + $0x750] sm:$0xf0]  ;;  %v1180_v3 = vadd.f32 %v1179_v45, %v1167_v56  ;;  %v1194_v49 = vpop.f32.mrf.mxu1 }
  0xfe   : >> { %v1155_v11 = vpop.f32.mrf.mxu2 }
  0xff   : >> { %2363 = vmatpush.bf16.msrb.mxu1 %v3647_v14  ;;  %v1193_v5 = vadd.f32 %v1192_v27, %v1180_v3  ;;  %v3668_v14 = vld [vmem:[%s5756_s1 + $0x7b0] sm:$0xf0] }
 0x100   : >> { %2376 = vmatpush.bf16.msrb.mxu2 %v3711_v50  ;;  %v3623_v50 = vor.u32 %v3956_v61, %v3620_v0  ;;  %v3671_v52 = vor.u32 %v3968_v13, %v3668_v14 }
 0x101   : >> { %2338 = vmatpush.bf16.msra.mxu3 %v3511_v10  ;;  %2350 = vmatpush.bf16.msrb.mxu0 %v3583_v12  ;;  %v2131_v10 = vunpack.c.h.b16 %v5451_v44  ;;  %v3612_v12 = vld [vmem:[%s5756_s1 + $0x740] sm:$0xf0]  ;;  %v3918_v44 = vld [vmem:[%s5756_s1 + $0x61c] sm:$0xf] }
 0x102   : >> { %v3615_v25 = vor.u32 %v3954_v9, %v3612_v12  ;;  %v3471_v38 = vor.u32 %v3918_v44, %v3468_v60 }
 0x103   : >> { %2364 = vmatpush.bf16.msrb.mxu1 %v3639_v31  ;;  %v2197_v27 = vpack.c.b16 %v2131_v10, %v2131_v10  ;;  %v3660_v31 = vld [vmem:[%s5756_s1 + $0x7a0] sm:$0xf0] }
 0x104   : >> { %2377 = vmatpush.bf16.msrb.mxu2 %v3703_v18  ;;  %v1168_v18 = vpop.f32.mrf.mxu3  ;;  %v1181_v20 = vpop.f32.mrf.mxu0  ;;  %v3663_v22 = vor.u32 %v3966_v30, %v3660_v31 }
 0x105   : >> { %2339 = vmatpush.bf16.msra.mxu3 %v3503_v21  ;;  %2351 = vmatpush.bf16.msrb.mxu0 %v3575_v28  ;;  %v3540_v21 = vld [vmem:[%s5756_s1 + $0x6b0] sm:$0xf0]  ;;  %v3952_v28 = vld [vmem:[%s5756_s1 + $0x72c] sm:$0xf] }
 0x106   : >> { %v3543_v32 = vor.u32 %v3936_v26, %v3540_v21  ;;  %v3607_v63 = vor.u32 %v3952_v28, %v3604_v29  ;;  %v1205_v39 = vpop.f32.mrf.mxu2 }
 0x107   : >> { %3720 = vmatmul.msk.bf16.vlgmr.msra.gmra.mxu2 %vm656_vm1, %v5650_v47  ;;  %2365 = vmatpush.bf16.msrb.mxu1 %v3631_v57  ;;  %v1206_v62 = vadd.f32 %v1205_v39, %v1193_v5 }
 0x108   : >> { %2378 = vmatpush.bf16.msrb.mxu2 %v3695_v34  ;;  %v2269_v34 = vsel %vm660_vm0, %v2197_v27, 0 }
 0x109   : >> { %2340 = vmatpush.bf16.msra.mxu3 %v3495_v42  ;;  %2352 = vmatpush.bf16.msrb.mxu0 %v3567_v51  ;;  %v3535_v42 = vor.u32 %v3934_v35, %v3532_v36 }
 0x10b   : >> { %2366 = vmatpush.bf16.msrb.mxu1 %v3623_v50 }
 0x10c   : >> { %2379 = vmatpush.bf16.msrb.mxu2 %v3687_v55 }
 0x10d   : >> { %2341 = vmatpush.bf16.msra.mxu3 %v3487_v17  ;;  %2353 = vmatpush.bf16.msrb.mxu0 %v3559_v53 }
 0x10e   : >> { %v1207_v45 = vpop.f32.mrf.mxu2 }
 0x10f   : >> { %2367 = vmatpush.bf16.msrb.mxu1 %v3615_v25 }
 0x110   : >> { %2380 = vmatpush.bf16.msrb.mxu2 %v3679_v6 }
 0x111   : >> { %2342 = vmatpush.bf16.msra.mxu3 %v3479_v15  ;;  %2354 = vmatpush.bf16.msrb.mxu0 %v3551_v16 }
 0x113   : >> { %2368 = vmatpush.bf16.msrb.mxu1 %v3607_v63  ;;  %v1244_v51 = vpop.f32.mrf.mxu1 }
 0x114   : >> { %2381 = vmatpush.bf16.msrb.mxu2 %v3671_v52 }
 0x115   : >> { %2343 = vmatpush.bf16.msra.mxu3 %v3471_v38  ;;  %2355 = vmatpush.bf16.msrb.mxu0 %v3543_v32  ;;  %v1231_v56 = vpop.f32.mrf.mxu0 }
 0x117   : >> { %2369 = vmatpush.bf16.msrb.mxu1 %v3599_v43  ;;  %v1218_v23 = vpop.f32.mrf.mxu3 }
 0x118   : >> { %2382 = vmatpush.bf16.msrb.mxu2 %v3663_v22  ;;  %2344 = vmatmul.bf16.vlgmr.msra.gmra.mxu3 %v5542_v41  ;;  %v1219_v54 = vadd.f32 %v1218_v23, %v5508_v19 }
 0x119   : >> { %2395 = vmatpush.bf16.msrb.mxu3 %v2269_v34  ;;  %2356 = vmatpush.bf16.msrb.mxu0 %v3535_v42 }
 0x11a   : >> { %2370 = vmatmul.bf16.vlgmr.msrb.gmra.mxu1 %v5597_v48  ;;  %v1232_v57 = vadd.f32 %v1231_v56, %v1219_v54  ;;  %v1257_v55 = vpop.f32.mrf.mxu2 }
 0x11b   : >> { %2383 = vmatmul.bf16.vlgmr.msrb.gmra.mxu2 %v5589_v24  ;;  %v1246_v59 = vpop.f32.mrf.mxu1 }
 0x11c   : >> { %2357 = vmatmul.bf16.vlgmr.msrb.gmra.mxu0 %v5553_v46  ;;  %v1245_v58 = vadd.f32 %v1244_v51, %v1232_v57 }
 0x11d   : >> { %v1233_v61 = vpop.f32.mrf.mxu0 }
 0x11e   : >> { %v1258_v41 = vadd.f32 %v1257_v55, %v1245_v58 }
 0x11f   : >> { %v1220_v24 = vpop.f32.mrf.mxu3 }
 0x122   : >> { %v1259_v0 = vpop.f32.mrf.mxu2 }
 0x127   : >> { %v1270_v1 = vpop.f32.mrf.mxu3 }
 0x128   : >> { %3721 = vmatmul.msk.bf16.vlgmr.msrb.gmra.mxu3 %vm656_vm1, %v5650_v47  ;;  %v1271_v46 = vadd.f32 %v1270_v1, %v1258_v41 }
 0x12f   : >> { %v1272_v2 = vpop.f32.mrf.mxu3 }
 0x133   : >> { %v1715_v48 = vpop.f32.mrf.mxu1 }
 0x137   : >> { %v1702_v3 = vpop.f32.mrf.mxu0 }
 0x138   : >> { %v1716_v17 = vadd.f32 %v1715_v48, %v1702_v3 }
 0x13a   : >> { %v1728_v49 = vpop.f32.mrf.mxu2 }
 0x13b   : >> { %v1729_v19 = vadd.f32 %v1728_v49, %v1716_v17  ;;  %v1741_v53 = vpop.f32.mrf.mxu3  ;;  %v1717_v37 = vpop.f32.mrf.mxu1 }
 0x13d   : >> { %v1742_v4 = vadd.f32 %v1741_v53, %v1729_v19 }
 0x13f   : >> { %v1704_v5 = vpop.f32.mrf.mxu0 }
 0x142   : >> { %v1730_v50 = vpop.f32.mrf.mxu2 }
 0x143   : >> { %v1743_v6 = vpop.f32.mrf.mxu3 }
 0x147   : >> { %v1754_v7 = vpop.f32.mrf.mxu0 }
 0x148   : >> { %v1755_v47 = vadd.f32 %v1754_v7, %v1742_v4 }
 0x14a   : >> { %v1823_v8 = vadd.f32 %v1755_v47, %v1206_v62 }
 0x14f   : >> { %v1756_v9 = vpop.f32.mrf.mxu0 }
 0x153   : >> { %v1767_v10 = vpop.f32.mrf.mxu1 }
 0x159   : >> { %v1806_v14 = vpop.f32.mrf.mxu0 }
 0x15a   : >> { %v1780_v11 = vpop.f32.mrf.mxu2 }
 0x15b   : >> { %v1781_v12 = vadd.f32 %v1780_v11, %v1767_v10  ;;  %v1793_v13 = vpop.f32.mrf.mxu3  ;;  %v1769_v15 = vpop.f32.mrf.mxu1 }
 0x15d   : >> { %v1794_v16 = vadd.f32 %v1793_v13, %v1781_v12 }
 0x15f   : >> { %v1807_v18 = vadd.f32 %v1806_v14, %v1794_v16 }
 0x161   : >> { %v1808_v20 = vpop.f32.mrf.mxu0 }
 0x162   : >> { %v1782_v44 = vpop.f32.mrf.mxu2 }
 0x163   : >> { %v1795_v60 = vpop.f32.mrf.mxu3  ;;  %v1819_v25 = vpop.f32.mrf.mxu1 }
 0x164   : >> { %v1820_v52 = vadd.f32 %v1819_v25, %v1807_v18 }
 0x166   : >> { %v1824_v26 = vadd.f32 %v1820_v52, %v1271_v46 }
 0x16b   : >> { %v1821_v21 = vpop.f32.mrf.mxu1 }
 0x177   : >> { %v2319_v27 = vpop.f32.mrf.mxu1 }
 0x179   : >> { %v2306_v29 = vpop.f32.mrf.mxu0 }
 0x17a   : >> { %v2280_v28 = vpop.f32.mrf.mxu2 }
 0x17b   : >> { %v2293_v30 = vpop.f32.mrf.mxu3 }
 0x17c   : >> { %v2294_v35 = vadd.f32 %v2293_v30, %v2280_v28 }
 0x17e   : >> { %v2307_v62 = vadd.f32 %v2306_v29, %v2294_v35 }
 0x17f   : >> { %v2321_v31 = vpop.f32.mrf.mxu1 }
 0x180   : >> { %v2320_v42 = vadd.f32 %v2319_v27, %v2307_v62 }
 0x181   : >> { %v2308_v32 = vpop.f32.mrf.mxu0 }
 0x182   : >> { %v2282_v38 = vpop.f32.mrf.mxu2 }
 0x183   : >> { %v2295_v34 = vpop.f32.mrf.mxu3 }
 0x18a   : >> { %v2332_v63 = vpop.f32.mrf.mxu2 }
 0x18b   : >> { %v2333_v56 = vadd.f32 %v2332_v63, %v2320_v42 }
 0x18d   : >> { %v2401_v55 = vadd.f32 %v2333_v56, %v1823_v8 }
 0x18f   : >> { %v2403_v24 = vmul.f32 0.2, %v2401_v55 }
 0x191   : >> { %v2405_v1 = vmax.f32 %v2401_v55, %v2403_v24 }
 0x192   : >> { %v2334_v22 = vpop.f32.mrf.mxu2 }
 0x197   : >> { %v2371_v33 = vpop.f32.mrf.mxu1 }
 0x199   : >> { %v2358_v36 = vpop.f32.mrf.mxu0 }
 0x19b   : >> { %v2345_v39 = vpop.f32.mrf.mxu3 }
 0x19c   : >> { %v2359_v43 = vadd.f32 %v2358_v36, %v2345_v39 }
 0x19e   : >> { %v2384_v40 = vpop.f32.mrf.mxu2  ;;  %v2372_v57 = vadd.f32 %v2371_v33, %v2359_v43 }
 0x19f   : >> { %v2373_v23 = vpop.f32.mrf.mxu1 }
 0x1a0   : >> { %v2385_v58 = vadd.f32 %v2384_v40, %v2372_v57 }
 0x1a1   : >> { %v2360_v45 = vpop.f32.mrf.mxu0 }
 0x1a3   : >> { %v2347_v51 = vpop.f32.mrf.mxu3 }
 0x1a6   : >> { %v2386_v54 = vpop.f32.mrf.mxu2 }
 0x1ab   : >> { %v2397_v59 = vpop.f32.mrf.mxu3 }
 0x1ac   : >> { %v2398_v41 = vadd.f32 %v2397_v59, %v2385_v58 }
 0x1ae   : >> { %v2402_v61 = vadd.f32 %v2398_v41, %v1824_v26 }
 0x1b0   : >> { %v2404_v0 = vmul.f32 0.2, %v2402_v61 }
 0x1b2   : >> { %v2406_v46 = vmax.f32 %v2402_v61, %v2404_v0 }
 0x1b3   : >> { %v2399_v2 = vpop.f32.mrf.mxu3 }
 0x1b4   : >> { %v2407_v48 = vpack.c.bf16 %v2406_v46, %v2405_v1 }
 0x1b5   : > { %147 = sbr.rel (!%p145_p4) target bundleno = 15 (0xf), region = 75 }
 0x1b6   : >> { %v2409_v3 = vrot.slane %v2407_v48, 3 }
 0x1b8   : >> { %v2413_v17 = vsel %vm2410_vm2, %v2407_v48, %v2409_v3 }
 0x1b9   : >> { %2417 = vst [vmem:[%s2416_s20] sm:$0x3] %v2413_v17 }
 0x1ba PF: > { %s12_s9 = sadd.s32 1, %s4009_s9  }
 0x1bb   : > { %p9_p5 = scmp.ge.s32.totalorder %s12_s9, 4  }
 0x1bd   :  { %11 = sbr.rel (!%p9_p5) target bundleno = 1 (0x1), region = 86 }

// kernel: discriminator_forward.8
= control target key start
LH: loop header
LB: loop body
LE: loop exit
PB: predicated region body
PF: predicated region fallthrough
CT: control target
= control target key end

     0   :  { %s9052_s9 = smov 0   ;;  %s13068_s0 = inlined_call_operand.vmem [shape: bf16[2,4,4,257], index: 0, kind: input, shape index: {}]   ;;  %s13069_s1 = inlined_call_operand.vmem [shape: bf16[9,257,512], index: 1, kind: input, shape index: {}]   ;;  %s13070_s2 = inlined_call_operand.vmem [shape: bf16[2,2,2,512], index: 2, kind: output, shape index: {}]  }
   0x1 LB: > { %s5540_s10 = sadd.s32 4294967295, %s9030_s9   ;;  %p5544_p0 = scmp.ge.s32.totalorder %s9030_s9, 1  ;;  %s9030_s9 = sphi %s9052_s9, %s12_s9  }
   0x2   : > { %p112_p1 = scmp.lt.s32.totalorder %s9030_s9, 3 }
   0x4   : > { %p113_p2 = pnand %p5544_p0, %p112_p1 }
   0x5   : > { %p133_p3 = scmp.lt.s32.totalorder (!%p113_p2), %s5540_s10, 1  ;;  %s9070_s19 = smov (!%p113_p2), 0  }
   0x6   : > { %116 = sbr.rel (%p113_p2) target bundleno = 786 (0x312), region = 28 }
   0xb   : > { %s13072_s10 = smov (!%p133_p3, %s5540_s10), 1 }
   0xc   : > { %s9002_s11 = smul.u32 24, %s13072_s10  ;;  %s5546_s12 = sshll.u32 %s13072_s10, 3 }
   0xd   : > { %s9063_s15 = scalar_lea.vmem %s13070_s2, %s5546_s12 }
   0xe   : > { %s9068_s18 = scalar_lea.vmem %s13068_s0, %s9002_s11 }
   0xf LB: >> { %v5728_v0 = vld [vmem:[%s13069_s1 + $0x2f0] sm:$0xf]  ;;  %v8520_v1 = vld [vmem:[%s13069_s1 + $0x2fc] sm:$0xf0]  ;;  %v8550_v5 = vld [vmem:[%s13069_s1 + $0x3f4] sm:$0xf]  ;;  %s9034_s19 = sphi %s9070_s19, %s148_s19  }
  0x10   : >> { %v5856_v2 = vld [vmem:[%s13069_s1 + $0x3f0] sm:$0xf]  ;;  %v5729_v3 = vor.u32 %v8520_v1, %v5728_v0  ;;  %v8552_v4 = vld [vmem:[%s13069_s1 + $0x3fc] sm:$0xf0]  ;;  %v5858_v6 = vld [vmem:[%s13069_s1 + $0x400] sm:$0xf0] }
  0x11   : >> { %v5857_v7 = vor.u32 %v8552_v4, %v5856_v2  ;;  %v5861_v8 = vor.u32 %v8550_v5, %v5858_v6  ;;  %v5712_v9 = vld [vmem:[%s13069_s1 + $0x2d0] sm:$0xf]  ;;  %v8516_v10 = vld [vmem:[%s13069_s1 + $0x2dc] sm:$0xf0]  ;;  %vm646_vm0 = vcmask 1040384   ;;  %v9036_v17 = vmov 0  }
  0x12   : >> { %v5840_v11 = vld [vmem:[%s13069_s1 + $0x3d0] sm:$0xf]  ;;  %661 = vmatpush.bf16.msra.mxu0 %v5729_v3  ;;  %v5713_v12 = vor.u32 %v8516_v10, %v5712_v9  ;;  %v8548_v13 = vld [vmem:[%s13069_s1 + $0x3dc] sm:$0xf0]  ;;  %v9112_v18 = vsel %vm646_vm0, 65535, %v9036_v17  ;;  %s8425_s22 = smul.u32 6, %s9034_s19 }
  0x13   : >> { %v9108_v14 = vld [vmem:[%s13069_s1 + $0x410] sm:$0x11]  ;;  %674 = vmatpush.bf16.msra.mxu1 %v5857_v7  ;;  %713 = vmatpush.bf16.msra.mxu2 %v5861_v8  ;;  %v5841_v15 = vor.u32 %v8548_v13, %v5840_v11  ;;  %v5842_v20 = vld [vmem:[%s13069_s1 + $0x3e0] sm:$0xf0]  ;;  %v8512_v26 = vld [vmem:[%s13069_s1 + $0x2bc] sm:$0xf0] }
  0x14   : >> { %v506_v16 = vunpack.c.l.b16 %v9108_v14  ;;  %v8546_v19 = vld [vmem:[%s13069_s1 + $0x3d4] sm:$0xf]  ;;  %v5730_v23 = vld [vmem:[%s13069_s1 + $0x300] sm:$0xf0]  ;;  %v5696_v24 = vld [vmem:[%s13069_s1 + $0x2b0] sm:$0xf]  ;;  %s9197_s25 = scalar_lea.vmem %s9068_s18, %s8425_s22 }
  0x15   : >> { %v5845_v21 = vor.u32 %v8546_v19, %v5842_v20  ;;  %v8518_v22 = vld [vmem:[%s13069_s1 + $0x2f4] sm:$0xf]  ;;  %v5824_v27 = vld [vmem:[%s13069_s1 + $0x3b0] sm:$0xf]  ;;  %v8544_v28 = vld [vmem:[%s13069_s1 + $0x3bc] sm:$0xf0]  ;;  %v5697_v30 = vor.u32 %v8512_v26, %v5696_v24 }
  0x16   : >> { %v574_v25 = vpack.c.b16 %v506_v16, %v506_v16  ;;  %662 = vmatpush.bf16.msra.mxu0 %v5713_v12  ;;  %v5733_v29 = vor.u32 %v8518_v22, %v5730_v23  ;;  %v8542_v31 = vld [vmem:[%s13069_s1 + $0x3b4] sm:$0xf]  ;;  %v5826_v32 = vld [vmem:[%s13069_s1 + $0x3c0] sm:$0xf0]  ;;  %v5825_v35 = vor.u32 %v8544_v28, %v5824_v27  ;;  %v5680_v38 = vld [vmem:[%s13069_s1 + $0x290] sm:$0xf]  ;;  %v507_v23 = vunpack.c.h.b16 %v9108_v14 }
  0x17   : >> { %v8514_v33 = vld [vmem:[%s13069_s1 + $0x2d4] sm:$0xf]  ;;  %675 = vmatpush.bf16.msra.mxu1 %v5841_v15  ;;  %714 = vmatpush.bf16.msra.mxu2 %v5845_v21  ;;  %v5829_v36 = vor.u32 %v8542_v31, %v5826_v32  ;;  %v5714_v37 = vld [vmem:[%s13069_s1 + $0x2e0] sm:$0xf0]  ;;  %v8508_v39 = vld [vmem:[%s13069_s1 + $0x29c] sm:$0xf0] }
  0x18   : >> { %v650_v34 = vand.u32 %v9112_v18, %v574_v25  ;;  %v5808_v40 = vld [vmem:[%s13069_s1 + $0x390] sm:$0xf]  ;;  %v8540_v41 = vld [vmem:[%s13069_s1 + $0x39c] sm:$0xf0]  ;;  %v8538_v42 = vld [vmem:[%s13069_s1 + $0x394] sm:$0xf]  ;;  %v5717_v44 = vor.u32 %v8514_v33, %v5714_v37  ;;  %v5681_v45 = vor.u32 %v8508_v39, %v5680_v38  ;;  %v575_v39 = vpack.c.b16 %v507_v23, %v507_v23 }
  0x19   : >> { %v5810_v43 = vld [vmem:[%s13069_s1 + $0x3a0] sm:$0xf0]  ;;  %v8510_v46 = vld [vmem:[%s13069_s1 + $0x2b4] sm:$0xf]  ;;  %v5809_v48 = vor.u32 %v8540_v41, %v5808_v40  ;;  %v5664_v50 = vld [vmem:[%s13069_s1 + $0x270] sm:$0xf] }
  0x1a   : >> { %694 = vmatpush.bf16.msra.mxu3 %v650_v34  ;;  %663 = vmatpush.bf16.msra.mxu0 %v5697_v30  ;;  %v5698_v47 = vld [vmem:[%s13069_s1 + $0x2c0] sm:$0xf0]  ;;  %v5813_v49 = vor.u32 %v8538_v42, %v5810_v43  ;;  %v8504_v51 = vld [vmem:[%s13069_s1 + $0x27c] sm:$0xf0]  ;;  %v5792_v52 = vld [vmem:[%s13069_s1 + $0x370] sm:$0xf] }
  0x1b   : >> { %676 = vmatpush.bf16.msra.mxu1 %v5825_v35  ;;  %715 = vmatpush.bf16.msra.mxu2 %v5829_v36  ;;  %v8536_v53 = vld [vmem:[%s13069_s1 + $0x37c] sm:$0xf0]  ;;  %v8534_v54 = vld [vmem:[%s13069_s1 + $0x374] sm:$0xf]  ;;  %v5794_v55 = vld [vmem:[%s13069_s1 + $0x380] sm:$0xf0]  ;;  %v5701_v57 = vor.u32 %v8510_v46, %v5698_v47  ;;  %v5665_v58 = vor.u32 %v8504_v51, %v5664_v50 }
  0x1c   : >> { %v8506_v56 = vld [vmem:[%s13069_s1 + $0x294] sm:$0xf]  ;;  %v5682_v59 = vld [vmem:[%s13069_s1 + $0x2a0] sm:$0xf0]  ;;  %v5648_v60 = vld [vmem:[%s13069_s1 + $0x250] sm:$0xf]  ;;  %v5793_v62 = vor.u32 %v8536_v53, %v5792_v52  ;;  %v5797_v63 = vor.u32 %v8534_v54, %v5794_v55 }
  0x1d   : >> { %v8500_v61 = vld [vmem:[%s13069_s1 + $0x25c] sm:$0xf0]  ;;  %v5776_v0 = vld [vmem:[%s13069_s1 + $0x350] sm:$0xf]  ;;  %v8530_v3 = vld [vmem:[%s13069_s1 + $0x354] sm:$0xf]  ;;  %v5685_v5 = vor.u32 %v8506_v56, %v5682_v59 }
  0x1e   : >> { %700 = vmatpush.bf16.msrb.mxu3 %v5733_v29  ;;  %664 = vmatpush.bf16.msra.mxu0 %v5681_v45  ;;  %v8532_v1 = vld [vmem:[%s13069_s1 + $0x35c] sm:$0xf0]  ;;  %v5778_v4 = vld [vmem:[%s13069_s1 + $0x360] sm:$0xf0]  ;;  %v5649_v6 = vor.u32 %v8500_v61, %v5648_v60  ;;  %v8502_v7 = vld [vmem:[%s13069_s1 + $0x274] sm:$0xf] }
  0x1f   : >> { %677 = vmatpush.bf16.msra.mxu1 %v5809_v48  ;;  %716 = vmatpush.bf16.msra.mxu2 %v5813_v49  ;;  %v219_v2 = vld [vmem:[%s9197_s25] sm:$0x3f]  ;;  %v5632_v9 = vld [vmem:[%s13069_s1 + $0x230] sm:$0xf]  ;;  %v5777_v10 = vor.u32 %v8532_v1, %v5776_v0  ;;  %v5781_v11 = vor.u32 %v8530_v3, %v5778_v4  ;;  %v8526_v16 = vld [vmem:[%s13069_s1 + $0x334] sm:$0xf] }
  0x20   : >> { %288 = vst [vmem:[#allocation1] ss:$4 sm:$0xff] %v219_v2  ;;  %v5666_v8 = vld [vmem:[%s13069_s1 + $0x280] sm:$0xf0]  ;;  %v8496_v12 = vld [vmem:[%s13069_s1 + $0x23c] sm:$0xf0] }
  0x21   : >> { %v5760_v13 = vld [vmem:[%s13069_s1 + $0x330] sm:$0xf]  ;;  %v8528_v15 = vld [vmem:[%s13069_s1 + $0x33c] sm:$0xf0]  ;;  %v5762_v17 = vld [vmem:[%s13069_s1 + $0x340] sm:$0xf0]  ;;  %v5669_v24 = vor.u32 %v8502_v7, %v5666_v8  ;;  %v5633_v25 = vor.u32 %v8496_v12, %v5632_v9 }
  0x22   : >> { %701 = vmatpush.bf16.msrb.mxu3 %v5717_v44  ;;  %665 = vmatpush.bf16.msra.mxu0 %v5665_v58  ;;  %v8498_v19 = vld [vmem:[%s13069_s1 + $0x254] sm:$0xf]  ;;  %v5650_v20 = vld [vmem:[%s13069_s1 + $0x260] sm:$0xf0]  ;;  %v5616_v21 = vld [vmem:[%s13069_s1 + $0x210] sm:$0xf]  ;;  %v5761_v29 = vor.u32 %v8528_v15, %v5760_v13  ;;  %v5765_v30 = vor.u32 %v8526_v16, %v5762_v17 }
  0x23   : >> { %678 = vmatpush.bf16.msra.mxu1 %v5793_v62  ;;  %717 = vmatpush.bf16.msra.mxu2 %v5797_v63  ;;  %v8492_v22 = vld [vmem:[%s13069_s1 + $0x21c] sm:$0xf0]  ;;  %v5744_v26 = vld [vmem:[%s13069_s1 + $0x310] sm:$0xf]  ;;  %v8522_v28 = vld [vmem:[%s13069_s1 + $0x314] sm:$0xf]  ;;  %v5653_v36 = vor.u32 %v8498_v19, %v5650_v20  ;;  %v653_v62 = vand.u32 %v9112_v18, %v575_v39 }
  0x24   : >> { %v8524_v27 = vld [vmem:[%s13069_s1 + $0x31c] sm:$0xf0]  ;;  %v5746_v31 = vld [vmem:[%s13069_s1 + $0x320] sm:$0xf0]  ;;  %v5736_v34 = vld [vmem:[%s13069_s1 + $0x2f8] sm:$0xf]  ;;  %v5617_v41 = vor.u32 %v8492_v22, %v5616_v21 }
  0x25   : >> { %v8521_v35 = vld [vmem:[%s13069_s1 + $0x304] sm:$0xf0]  ;;  %vm642_vm1 = vcmask 7168   ;;  %v152_v38 = vld [vmem:[%s9197_s25] sm:$0x15]  ;;  %v5745_v47 = vor.u32 %v8524_v27, %v5744_v26  ;;  %v5749_v48 = vor.u32 %v8522_v28, %v5746_v31  ;;  %s8422_s12 = sshll.u32 %s9034_s19, 2 }
  0x26   : >> { %702 = vmatpush.bf16.msrb.mxu3 %v5701_v57  ;;  %666 = vmatpush.bf16.msra.mxu0 %v5649_v6  ;;  %v8494_v42 = vld [vmem:[%s13069_s1 + $0x234] sm:$0xf]  ;;  %v5634_v43 = vld [vmem:[%s13069_s1 + $0x240] sm:$0xf0]  ;;  %v9289_v51 = vld [vmem:[%s13069_s1 + $0x418] sm:$0x11]  ;;  %v5737_v53 = vor.u32 %v8521_v35, %v5736_v34  ;;  %s5470_s13 = scalar_lea.vmem %s9063_s15, %s8422_s12 }
  0x27   : >> { %679 = vmatpush.bf16.msra.mxu1 %v5777_v10  ;;  %718 = vmatpush.bf16.msra.mxu2 %v5781_v11  ;;  %v291_v14 = vld.sshfl [vmem:[#allocation1 + $0x10] sm:$0xff pattern:$0x73625140]  ;;  %v289_v37 = vld.sshfl [vmem:[#allocation1] sm:$0xff pattern:$0x73625140]  ;;  %v508_v55 = vunpack.c.l.b16 %v9289_v51  ;;  %v5637_v0 = vor.u32 %v8494_v42, %v5634_v43 }
  0x28   : >> { %v304_v32 = vshrl.u32 %v291_v14, 16  ;;  %v306_v33 = vshll.u32 %v291_v14, 16  ;;  %v292_v44 = vshrl.u32 %v289_v37, 16  ;;  %v294_v45 = vshll.u32 %v289_v37, 16  ;;  %v8519_v56 = vld [vmem:[%s13069_s1 + $0x2fc] sm:$0xf] }
  0x29   : >> { %v290_v46 = vld.sshfl [vmem:[#allocation1 + $0x8] sm:$0xff pattern:$0x73625140]  ;;  %v8551_v59 = vld [vmem:[%s13069_s1 + $0x3fc] sm:$0xf]  ;;  %v576_v63 = vpack.c.b16 %v508_v55, %v508_v55  ;;  %vm5462_vm2 = vcmask 1042434  }
  0x2a   : >> { %703 = vmatpush.bf16.msrb.mxu3 %v5685_v5  ;;  %v308_v40 = vrot.slane %v306_v33, 1  ;;  %667 = vmatpush.bf16.msra.mxu0 %v5633_v25  ;;  %v298_v49 = vshrl.u32 %v290_v46, 16  ;;  %v300_v50 = vshll.u32 %v290_v46, 16  ;;  %818 = vst [vmem:[#allocation1] ss:$4 sm:$0xff] %v152_v38  ;;  %v296_v54 = vrot.slane %v294_v45, 1 }
  0x2b   : >> { %680 = vmatpush.bf16.msra.mxu1 %v5761_v29  ;;  %719 = vmatpush.bf16.msra.mxu2 %v5765_v30  ;;  %v5738_v57 = vld [vmem:[%s13069_s1 + $0x308] sm:$0xf0]  ;;  %v5720_v2 = vld [vmem:[%s13069_s1 + $0x2d8] sm:$0xf]  ;;  %v8517_v3 = vld [vmem:[%s13069_s1 + $0x2e4] sm:$0xf0]  ;;  %v656_v4 = vand.u32 %v9112_v18, %v576_v63 }
  0x2c   : >> { %v9291_v52 = vor.u32 %v308_v40, %v304_v32  ;;  %v302_v58 = vrot.slane %v300_v50, 1  ;;  %v5866_v60 = vld [vmem:[%s13069_s1 + $0x408] sm:$0xf0]  ;;  %v9308_v61 = vor.u32 %v296_v54, %v292_v44  ;;  %v5741_v5 = vor.u32 %v8519_v56, %v5738_v57  ;;  %v8490_v7 = vld [vmem:[%s13069_s1 + $0x214] sm:$0xf]  ;;  %s148_s19 = sadd.s32 1, %s9034_s19  }
  0x2d   : >> { %v5869_v6 = vor.u32 %v8551_v59, %v5866_v60  ;;  %v5618_v8 = vld [vmem:[%s13069_s1 + $0x220] sm:$0xf0]  ;;  %v5864_v9 = vld [vmem:[%s13069_s1 + $0x3f8] sm:$0xf]  ;;  %v8553_v10 = vld [vmem:[%s13069_s1 + $0x404] sm:$0xf0]  ;;  %v5721_v13 = vor.u32 %v8517_v3, %v5720_v2 }
  0x2e   : >> { %704 = vmatpush.bf16.msrb.mxu3 %v5669_v24  ;;  %668 = vmatpush.bf16.msra.mxu0 %v5617_v41  ;;  %v9311_v1 = vor.u32 %v302_v58, %v298_v49  ;;  %v8515_v11 = vld [vmem:[%s13069_s1 + $0x2dc] sm:$0xf]  ;;  %v5722_v12 = vld [vmem:[%s13069_s1 + $0x2e8] sm:$0xf0]  ;;  %v5621_v17 = vor.u32 %v8490_v7, %v5618_v8  ;;  %v5704_v19 = vld [vmem:[%s13069_s1 + $0x2b8] sm:$0xf]  ;;  %v5865_v21 = vor.u32 %v8553_v10, %v5864_v9 }
  0x2f   : >> { %5870 = vmatmul.msk.bf16.vlgmr.msra.gmra.mxu3 %vm642_vm1, %v9291_v52  ;;  %681 = vmatpush.bf16.msra.mxu1 %v5745_v47  ;;  %v8547_v15 = vld [vmem:[%s13069_s1 + $0x3dc] sm:$0xf]  ;;  %v5850_v16 = vld [vmem:[%s13069_s1 + $0x3e8] sm:$0xf0]  ;;  %v8513_v20 = vld [vmem:[%s13069_s1 + $0x2c4] sm:$0xf0]  ;;  %v5725_v22 = vor.u32 %v8515_v11, %v5722_v12 }
  0x30   : >> { %720 = vmatpush.bf16.msra.mxu2 %v5749_v48  ;;  %v5848_v23 = vld [vmem:[%s13069_s1 + $0x3d8] sm:$0xf]  ;;  %v5853_v24 = vor.u32 %v8547_v15, %v5850_v16  ;;  %v8549_v25 = vld [vmem:[%s13069_s1 + $0x3e4] sm:$0xf0]  ;;  %v8511_v26 = vld [vmem:[%s13069_s1 + $0x2bc] sm:$0xf]  ;;  %v5705_v28 = vor.u32 %v8513_v20, %v5704_v19 }
  0x31   : >> { %669 = vmatmul.bf16.vlgmr.msra.gmra.mxu0 %v9308_v61  ;;  %v5706_v27 = vld [vmem:[%s13069_s1 + $0x2c8] sm:$0xf0]  ;;  %v8543_v14 = vld [vmem:[%s13069_s1 + $0x3bc] sm:$0xf]  ;;  %v5688_v30 = vld [vmem:[%s13069_s1 + $0x298] sm:$0xf]  ;;  %v5849_v32 = vor.u32 %v8549_v25, %v5848_v23 }
  0x32   : >> { %705 = vmatpush.bf16.msrb.mxu3 %v5653_v36  ;;  %733 = vmatpush.bf16.msrb.mxu0 %v653_v62  ;;  %v5834_v29 = vld [vmem:[%s13069_s1 + $0x3c8] sm:$0xf0]  ;;  %v8509_v31 = vld [vmem:[%s13069_s1 + $0x2a4] sm:$0xf0]  ;;  %v5709_v33 = vor.u32 %v8511_v26, %v5706_v27  ;;  %v5832_v34 = vld [vmem:[%s13069_s1 + $0x3b8] sm:$0xf] }
  0x33   : >> { %739 = vmatpush.bf16.msrb.mxu1 %v5737_v53  ;;  %721 = vmatmul.bf16.vlgmr.msra.gmra.mxu2 %v9311_v1  ;;  %v5837_v35 = vor.u32 %v8543_v14, %v5834_v29  ;;  %v8545_v36 = vld [vmem:[%s13069_s1 + $0x3c4] sm:$0xf0]  ;;  %v8507_v37 = vld [vmem:[%s13069_s1 + $0x29c] sm:$0xf]  ;;  %v5690_v38 = vld [vmem:[%s13069_s1 + $0x2a8] sm:$0xf0]  ;;  %v5689_v39 = vor.u32 %v8509_v31, %v5688_v30 }
  0x34   : >> { %772 = vmatpush.bf16.msrb.mxu2 %v656_v4  ;;  %682 = vmatmul.bf16.vlgmr.msra.gmra.mxu1 %v9311_v1  ;;  %v8539_v40 = vld [vmem:[%s13069_s1 + $0x39c] sm:$0xf]  ;;  %v5818_v41 = vld [vmem:[%s13069_s1 + $0x3a8] sm:$0xf0]  ;;  %v5672_v42 = vld [vmem:[%s13069_s1 + $0x278] sm:$0xf]  ;;  %v5833_v44 = vor.u32 %v8545_v36, %v5832_v34  ;;  %v5693_v45 = vor.u32 %v8507_v37, %v5690_v38 }
  0x35   : >> { %v8505_v43 = vld [vmem:[%s13069_s1 + $0x284] sm:$0xf0]  ;;  %v5816_v46 = vld [vmem:[%s13069_s1 + $0x398] sm:$0xf]  ;;  %v5821_v47 = vor.u32 %v8539_v40, %v5818_v41  ;;  %v8503_v49 = vld [vmem:[%s13069_s1 + $0x27c] sm:$0xf] }
  0x36   : >> { %706 = vmatpush.bf16.msrb.mxu3 %v5637_v0  ;;  %778 = vmatpush.bf16.msra.mxu0 %v5741_v5  ;;  %v8541_v48 = vld [vmem:[%s13069_s1 + $0x3a4] sm:$0xf0]  ;;  %v5674_v50 = vld [vmem:[%s13069_s1 + $0x288] sm:$0xf0]  ;;  %v5673_v53 = vor.u32 %v8505_v43, %v5672_v42  ;;  %v8535_v54 = vld [vmem:[%s13069_s1 + $0x37c] sm:$0xf] }
  0x37   : >> { %740 = vmatpush.bf16.msrb.mxu1 %v5721_v13  ;;  %v5802_v55 = vld [vmem:[%s13069_s1 + $0x388] sm:$0xf0]  ;;  %v5656_v56 = vld [vmem:[%s13069_s1 + $0x258] sm:$0xf]  ;;  %v8501_v57 = vld [vmem:[%s13069_s1 + $0x264] sm:$0xf0]  ;;  %v5817_v58 = vor.u32 %v8541_v48, %v5816_v46  ;;  %v5677_v59 = vor.u32 %v8503_v49, %v5674_v50 }
  0x38   : >> { %791 = vmatpush.bf16.msra.mxu2 %v5869_v6  ;;  %v5800_v60 = vld [vmem:[%s13069_s1 + $0x378] sm:$0xf]  ;;  %v5805_v62 = vor.u32 %v8535_v54, %v5802_v55  ;;  %v8537_v63 = vld [vmem:[%s13069_s1 + $0x384] sm:$0xf0]  ;;  %v8499_v0 = vld [vmem:[%s13069_s1 + $0x25c] sm:$0xf]  ;;  %v5657_v3 = vor.u32 %v8501_v57, %v5656_v56  ;;  %v509_v6 = vunpack.c.h.b16 %v9289_v51 }
  0x39   : >> { %v5658_v2 = vld [vmem:[%s13069_s1 + $0x268] sm:$0xf0]  ;;  %v8531_v4 = vld [vmem:[%s13069_s1 + $0x35c] sm:$0xf]  ;;  %v5640_v7 = vld [vmem:[%s13069_s1 + $0x238] sm:$0xf]  ;;  %v5801_v9 = vor.u32 %v8537_v63, %v5800_v60 }
  0x3a   : >> { %707 = vmatpush.bf16.msrb.mxu3 %v5621_v17  ;;  %779 = vmatpush.bf16.msra.mxu0 %v5725_v22  ;;  %v5786_v5 = vld [vmem:[%s13069_s1 + $0x368] sm:$0xf0]  ;;  %v8497_v8 = vld [vmem:[%s13069_s1 + $0x244] sm:$0xf0]  ;;  %v5661_v10 = vor.u32 %v8499_v0, %v5658_v2  ;;  %v5784_v11 = vld [vmem:[%s13069_s1 + $0x358] sm:$0xf]  ;;  %v577_v20 = vpack.c.b16 %v509_v6, %v509_v6 }
  0x3b   : >> { %741 = vmatpush.bf16.msrb.mxu1 %v5705_v28  ;;  %v5789_v51 = vor.u32 %v8531_v4, %v5786_v5  ;;  %v8533_v12 = vld [vmem:[%s13069_s1 + $0x364] sm:$0xf0]  ;;  %v8495_v13 = vld [vmem:[%s13069_s1 + $0x23c] sm:$0xf]  ;;  %v5642_v15 = vld [vmem:[%s13069_s1 + $0x248] sm:$0xf0]  ;;  %v5641_v16 = vor.u32 %v8497_v8, %v5640_v7 }
  0x3c   : >> { %792 = vmatpush.bf16.msra.mxu2 %v5853_v24  ;;  %v8527_v17 = vld [vmem:[%s13069_s1 + $0x33c] sm:$0xf]  ;;  %v5770_v19 = vld [vmem:[%s13069_s1 + $0x348] sm:$0xf0]  ;;  %v8493_v22 = vld [vmem:[%s13069_s1 + $0x224] sm:$0xf0]  ;;  %v5785_v23 = vor.u32 %v8533_v12, %v5784_v11  ;;  %v5645_v24 = vor.u32 %v8495_v13, %v5642_v15  ;;  %v659_v37 = vand.u32 %v9112_v18, %v577_v20 }
  0x3d   : >> { %v5768_v25 = vld [vmem:[%s13069_s1 + $0x338] sm:$0xf]  ;;  %v8529_v26 = vld [vmem:[%s13069_s1 + $0x344] sm:$0xf0]  ;;  %v5773_v27 = vor.u32 %v8527_v17, %v5770_v19  ;;  %v8491_v28 = vld [vmem:[%s13069_s1 + $0x21c] sm:$0xf] }
  0x3e   : >> { %752 = vmatpush.bf16.msra.mxu3 %v5865_v21  ;;  %780 = vmatpush.bf16.msra.mxu0 %v5709_v33  ;;  %v5624_v21 = vld [vmem:[%s13069_s1 + $0x218] sm:$0xf]  ;;  %v5626_v14 = vld [vmem:[%s13069_s1 + $0x228] sm:$0xf0]  ;;  %v8523_v29 = vld [vmem:[%s13069_s1 + $0x31c] sm:$0xf] }
  0x3f   : >> { %708 = vmatmul.bf16.vlgmr.msrb.gmra.mxu3 %v9308_v61  ;;  %742 = vmatpush.bf16.msrb.mxu1 %v5689_v39  ;;  %v5625_v30 = vor.u32 %v8493_v22, %v5624_v21  ;;  %v5754_v31 = vld [vmem:[%s13069_s1 + $0x328] sm:$0xf0]  ;;  %v9503_v33 = vld [vmem:[%s13069_s1 + $0x200] sm:$0x11]  ;;  %v8488_v34 = vld [vmem:[%s13069_s1 + $0x1ec] sm:$0xf0]  ;;  %v5769_v39 = vor.u32 %v8529_v26, %v5768_v25  ;;  %v5629_v40 = vor.u32 %v8491_v28, %v5626_v14 }
  0x40   : >> { %793 = vmatpush.bf16.msra.mxu2 %v5837_v35  ;;  %v8454_v35 = vld [vmem:[%s13069_s1 + $0xe4] sm:$0xf]  ;;  %v5990_v36 = vld [vmem:[%s13069_s1 + $0xf0] sm:$0xf0]  ;;  %v1018_v38 = vunpack.c.l.b16 %v9503_v33  ;;  %v5757_v41 = vor.u32 %v8523_v29, %v5754_v31  ;;  %v5752_v42 = vld [vmem:[%s13069_s1 + $0x318] sm:$0xf] }
  0x41   : >> { %5871 = vmatmul.msk.bf16.vlgmr.msrb.gmra.mxu0 %vm642_vm1, %v9291_v52  ;;  %v8525_v43 = vld [vmem:[%s13069_s1 + $0x324] sm:$0xf0]  ;;  %v5993_v46 = vor.u32 %v8454_v35, %v5990_v36  ;;  %v8456_v48 = vld [vmem:[%s13069_s1 + $0xec] sm:$0xf0]  ;;  %v6100_v49 = vld [vmem:[%s13069_s1 + $0x1c0] sm:$0xf] }
  0x42   : >> { %753 = vmatpush.bf16.msra.mxu3 %v5849_v32  ;;  %781 = vmatpush.bf16.msra.mxu0 %v5693_v45  ;;  %v6116_v32 = vld [vmem:[%s13069_s1 + $0x1e0] sm:$0xf]  ;;  %v8484_v50 = vld [vmem:[%s13069_s1 + $0x1cc] sm:$0xf0]  ;;  %v5974_v54 = vld [vmem:[%s13069_s1 + $0xd0] sm:$0xf0]  ;;  %v5753_v56 = vor.u32 %v8525_v43, %v5752_v42 }
  0x43   : >> { %743 = vmatpush.bf16.msrb.mxu1 %v5673_v53  ;;  %5872 = vmatmul.msk.bf16.vlgmr.msrb.gmra.mxu2 %vm642_vm1, %v9291_v52  ;;  %v6117_v45 = vor.u32 %v8488_v34, %v6116_v32  ;;  %v8450_v53 = vld [vmem:[%s13069_s1 + $0xc4] sm:$0xf]  ;;  %v5972_v60 = vld [vmem:[%s13069_s1 + $0xc0] sm:$0xf]  ;;  %v8480_v0 = vld [vmem:[%s13069_s1 + $0x1ac] sm:$0xf0] }
  0x44   : >> { %794 = vmatpush.bf16.msra.mxu2 %v5821_v47  ;;  %v5988_v47 = vld [vmem:[%s13069_s1 + $0xe0] sm:$0xf]  ;;  %v8446_v2 = vld [vmem:[%s13069_s1 + $0xa4] sm:$0xf]  ;;  %v8448_v8 = vld [vmem:[%s13069_s1 + $0xac] sm:$0xf0] }
  0x45   : >> { %v5989_v57 = vor.u32 %v8456_v48, %v5988_v47  ;;  %v6084_v63 = vld [vmem:[%s13069_s1 + $0x1a0] sm:$0xf]  ;;  %v5942_v11 = vld [vmem:[%s13069_s1 + $0x90] sm:$0xf0]  ;;  %v8444_v15 = vld [vmem:[%s13069_s1 + $0x8c] sm:$0xf0] }
  0x46   : >> { %754 = vmatpush.bf16.msra.mxu3 %v5833_v44  ;;  %782 = vmatpush.bf16.msra.mxu0 %v5677_v59  ;;  %v1086_v44 = vpack.c.b16 %v1018_v38, %v1018_v38  ;;  %v5977_v59 = vor.u32 %v8450_v53, %v5974_v54  ;;  %v6085_v5 = vor.u32 %v8480_v0, %v6084_v63  ;;  %v5956_v7 = vld [vmem:[%s13069_s1 + $0xa0] sm:$0xf]  ;;  %v6118_v17 = vld [vmem:[%s13069_s1 + $0x1f0] sm:$0xf0]  ;;  %v8472_v20 = vld [vmem:[%s13069_s1 + $0x16c] sm:$0xf0] }
  0x47   : >> { %744 = vmatpush.bf16.msrb.mxu1 %v5657_v3  ;;  %v5958_v3 = vld [vmem:[%s13069_s1 + $0xb0] sm:$0xf0]  ;;  %v6052_v19 = vld [vmem:[%s13069_s1 + $0x160] sm:$0xf]  ;;  %v8438_v21 = vld [vmem:[%s13069_s1 + $0x64] sm:$0xf] }
  0x48   : >> { %795 = vmatpush.bf16.msra.mxu2 %v5805_v62  ;;  %v1157_v55 = vand.u32 %v1086_v44, %v9112_v18  ;;  %v8452_v62 = vld [vmem:[%s13069_s1 + $0xcc] sm:$0xf0]  ;;  %v5961_v6 = vor.u32 %v8446_v2, %v5958_v3  ;;  %v5926_v22 = vld [vmem:[%s13069_s1 + $0x70] sm:$0xf0]  ;;  %v6053_v25 = vor.u32 %v8472_v20, %v6052_v19  ;;  %v5924_v26 = vld [vmem:[%s13069_s1 + $0x60] sm:$0xf] }
  0x49   : >> { %v5973_v4 = vor.u32 %v8452_v62, %v5972_v60  ;;  %v8482_v28 = vld [vmem:[%s13069_s1 + $0x1c4] sm:$0xf]  ;;  %v5929_v14 = vor.u32 %v8438_v21, %v5926_v22  ;;  %v6102_v29 = vld [vmem:[%s13069_s1 + $0x1d0] sm:$0xf0]  ;;  %v8468_v31 = vld [vmem:[%s13069_s1 + $0x14c] sm:$0xf0]  ;;  %v1019_v62 = vunpack.c.h.b16 %v9503_v33 }
  0x4a   : >> { %755 = vmatpush.bf16.msra.mxu3 %v5817_v58  ;;  %783 = vmatpush.bf16.msra.mxu0 %v5661_v10  ;;  %v6101_v58 = vor.u32 %v8484_v50, %v6100_v49  ;;  %v8442_v10 = vld [vmem:[%s13069_s1 + $0x84] sm:$0xf]  ;;  %v5910_v34 = vld [vmem:[%s13069_s1 + $0x50] sm:$0xf0]  ;;  %v9634_v36 = vld [vmem:[%s13069_s1 + $0x208] sm:$0x11] }
  0x4b   : >> { %745 = vmatpush.bf16.msrb.mxu1 %v5641_v16  ;;  %v5945_v13 = vor.u32 %v8442_v10, %v5942_v11  ;;  %v8486_v16 = vld [vmem:[%s13069_s1 + $0x1e4] sm:$0xf]  ;;  %v6086_v42 = vld [vmem:[%s13069_s1 + $0x1b0] sm:$0xf0]  ;;  %v6020_v43 = vld [vmem:[%s13069_s1 + $0x120] sm:$0xf]  ;;  %v1020_v47 = vunpack.c.l.b16 %v9634_v36  ;;  %v1087_v11 = vpack.c.b16 %v1019_v62, %v1019_v62 }
  0x4c   : >> { %796 = vmatpush.bf16.msra.mxu2 %v5789_v51  ;;  %v5957_v51 = vor.u32 %v8448_v8, %v5956_v7  ;;  %v8434_v32 = vld [vmem:[%s13069_s1 + $0x44] sm:$0xf]  ;;  %v8464_v44 = vld [vmem:[%s13069_s1 + $0x12c] sm:$0xf0]  ;;  %v5892_v49 = vld [vmem:[%s13069_s1 + $0x20] sm:$0xf] }
  0x4d   : >> { %v6021_v53 = vor.u32 %v8464_v44, %v6020_v43  ;;  %v8432_v54 = vld [vmem:[%s13069_s1 + $0x2c] sm:$0xf0]  ;;  %v8426_v60 = vld [vmem:[%s13069_s1 + $0x4] sm:$0xf]  ;;  %v5878_v63 = vld [vmem:[%s13069_s1 + $0x10] sm:$0xf0]  ;;  %v1088_v3 = vpack.c.b16 %v1020_v47, %v1020_v47 }
  0x4e   : >> { %756 = vmatpush.bf16.msra.mxu3 %v5801_v9  ;;  %784 = vmatpush.bf16.msra.mxu0 %v5645_v24  ;;  %v8476_v9 = vld [vmem:[%s13069_s1 + $0x18c] sm:$0xf0]  ;;  %v6121_v24 = vor.u32 %v8486_v16, %v6118_v17  ;;  %v5996_v0 = vld [vmem:[%s13069_s1 + $0xe8] sm:$0xf]  ;;  %v8457_v2 = vld [vmem:[%s13069_s1 + $0xf4] sm:$0xf0]  ;;  %v5881_v8 = vor.u32 %v8426_v60, %v5878_v63 }
  0x4f   : >> { %746 = vmatpush.bf16.msrb.mxu1 %v5625_v30  ;;  %v6036_v30 = vld [vmem:[%s13069_s1 + $0x140] sm:$0xf]  ;;  %v8428_v7 = vld [vmem:[%s13069_s1 + $0xc] sm:$0xf0]  ;;  %v6054_v10 = vld [vmem:[%s13069_s1 + $0x170] sm:$0xf0] }
  0x50   : >> { %797 = vmatpush.bf16.msra.mxu2 %v5773_v27  ;;  %v8440_v27 = vld [vmem:[%s13069_s1 + $0x6c] sm:$0xf0]  ;;  %v6037_v38 = vor.u32 %v8468_v31, %v6036_v30  ;;  %v5876_v33 = vld [vmem:[%s13069_s1] sm:$0xf]  ;;  %v5980_v17 = vld [vmem:[%s13069_s1 + $0xc8] sm:$0xf] }
  0x51   : >> { %v5925_v35 = vor.u32 %v8440_v27, %v5924_v26  ;;  %v9713_v16 = vld.sshfl [vmem:[#allocation1] sm:$0xff pattern:$0x73625140]  ;;  %v8453_v19 = vld [vmem:[%s13069_s1 + $0xd4] sm:$0xf0]  ;;  %vm5466_vm3 = vcmask 1041408  }
  0x52   : >> { %757 = vmatpush.bf16.msra.mxu3 %v5785_v23  ;;  %785 = vmatpush.bf16.msra.mxu0 %v5629_v40  ;;  %v8436_v40 = vld [vmem:[%s13069_s1 + $0x4c] sm:$0xf0]  ;;  %v6124_v21 = vld [vmem:[%s13069_s1 + $0x1e8] sm:$0xf]  ;;  %v8489_v22 = vld [vmem:[%s13069_s1 + $0x1f4] sm:$0xf0]  ;;  %v5981_v27 = vor.u32 %v8453_v19, %v5980_v17 }
  0x53   : >> { %811 = vmatpush.bf16.msra.mxu1 %v659_v37  ;;  %v6105_v37 = vor.u32 %v8482_v28, %v6102_v29  ;;  %v6038_v26 = vld [vmem:[%s13069_s1 + $0x150] sm:$0xf0]  ;;  %v8483_v28 = vld [vmem:[%s13069_s1 + $0x1cc] sm:$0xf]  ;;  %v6125_v29 = vor.u32 %v8489_v22, %v6124_v21  ;;  %v5964_v30 = vld [vmem:[%s13069_s1 + $0xa8] sm:$0xf] }
  0x54   : >> { %747 = vmatmul.bf16.vlgmr.msrb.gmra.mxu1 %v9308_v61  ;;  %798 = vmatpush.bf16.msra.mxu2 %v5757_v41  ;;  %v5913_v41 = vor.u32 %v8434_v32, %v5910_v34  ;;  %v8449_v31 = vld [vmem:[%s13069_s1 + $0xb4] sm:$0xf0]  ;;  %v6108_v32 = vld [vmem:[%s13069_s1 + $0x1c8] sm:$0xf]  ;;  %v5966_v19 = vld [vmem:[%s13069_s1 + $0xb8] sm:$0xf0] }
  0x55   : >> { %786 = vmatmul.bf16.vlgmr.msra.gmra.mxu0 %v9308_v61  ;;  %v6068_v61 = vld [vmem:[%s13069_s1 + $0x180] sm:$0xf]  ;;  %v5948_v44 = vld [vmem:[%s13069_s1 + $0x88] sm:$0xf]  ;;  %v8441_v62 = vld [vmem:[%s13069_s1 + $0x74] sm:$0xf0] }
  0x56   : >> { %758 = vmatpush.bf16.msra.mxu3 %v5769_v39  ;;  %1181 = vmatpush.bf16.msrb.mxu0 %v6117_v45  ;;  %v6069_v12 = vor.u32 %v8476_v9, %v6068_v61  ;;  %v5908_v39 = vld [vmem:[%s13069_s1 + $0x40] sm:$0xf]  ;;  %v8430_v45 = vld [vmem:[%s13069_s1 + $0x24] sm:$0xf]  ;;  %v5997_v61 = vor.u32 %v8457_v2, %v5996_v0  ;;  %v6092_v47 = vld [vmem:[%s13069_s1 + $0x1a8] sm:$0xf] }
  0x57   : >> { %1201 = vmatpush.bf16.msrb.mxu1 %v1157_v55  ;;  %799 = vmatmul.bf16.vlgmr.msra.gmra.mxu2 %v9311_v1  ;;  %v5909_v48 = vor.u32 %v8436_v40, %v5908_v39  ;;  %v8474_v55 = vld [vmem:[%s13069_s1 + $0x184] sm:$0xf]  ;;  %v6022_v40 = vld [vmem:[%s13069_s1 + $0x130] sm:$0xf0]  ;;  %v5932_v60 = vld [vmem:[%s13069_s1 + $0x68] sm:$0xf] }
  0x58   : >> { %1207 = vmatpush.bf16.msrb.mxu2 %v5993_v46  ;;  %v5894_v46 = vld [vmem:[%s13069_s1 + $0x30] sm:$0xf0]  ;;  %v8470_v9 = vld [vmem:[%s13069_s1 + $0x164] sm:$0xf]  ;;  %v6076_v0 = vld [vmem:[%s13069_s1 + $0x188] sm:$0xf] }
  0x59   : >> { %v6057_v20 = vor.u32 %v8470_v9, %v6054_v10  ;;  %v8462_v39 = vld [vmem:[%s13069_s1 + $0x124] sm:$0xf]  ;;  %v8477_v2 = vld [vmem:[%s13069_s1 + $0x194] sm:$0xf0]  ;;  %v5916_v9 = vld [vmem:[%s13069_s1 + $0x48] sm:$0xf] }
  0x5a   : >> { %759 = vmatpush.bf16.msra.mxu3 %v5753_v56  ;;  %1182 = vmatpush.bf16.msrb.mxu0 %v6101_v58  ;;  %v6070_v56 = vld [vmem:[%s13069_s1 + $0x190] sm:$0xf0]  ;;  %v6004_v58 = vld [vmem:[%s13069_s1 + $0x100] sm:$0xf]  ;;  %v8437_v10 = vld [vmem:[%s13069_s1 + $0x54] sm:$0xf0] }
  0x5b   : >> { %v5917_v17 = vor.u32 %v8437_v10, %v5916_v9  ;;  %v6046_v21 = vld [vmem:[%s13069_s1 + $0x158] sm:$0xf0]  ;;  %v6300_v9 = vld [vmem:[%s13069_s1 + $0x4f0] sm:$0xf0]  ;;  %p145_p4 = scmp.ge.s32.totalorder %s148_s19, 2  }
  0x5c   : >> { %1208 = vmatpush.bf16.msrb.mxu2 %v5977_v59  ;;  %v8460_v59 = vld [vmem:[%s13069_s1 + $0x10c] sm:$0xf0] }
  0x5d   : >> { %760 = vmatmul.bf16.vlgmr.msra.gmra.mxu3 %v9311_v1  ;;  %v5940_v1 = vld [vmem:[%s13069_s1 + $0x80] sm:$0xf] }
  0x5e   : >> { %1168 = vmatpush.bf16.msrb.mxu3 %v5989_v57  ;;  %1183 = vmatpush.bf16.msrb.mxu0 %v6085_v5  ;;  %v5941_v23 = vor.u32 %v8444_v15, %v5940_v1  ;;  %v5897_v57 = vor.u32 %v8430_v45, %v5894_v46  ;;  %v6073_v5 = vor.u32 %v8474_v55, %v6070_v56  ;;  %v6126_v1 = vld [vmem:[%s13069_s1 + $0x1f8] sm:$0xf0]  ;;  %v8445_v45 = vld [vmem:[%s13069_s1 + $0x94] sm:$0xf0] }
  0x5f   : >> { %v5877_v15 = vor.u32 %v8428_v7, %v5876_v33  ;;  %v6025_v46 = vor.u32 %v8462_v39, %v6022_v40  ;;  %v5949_v55 = vor.u32 %v8445_v45, %v5948_v44  ;;  %v5998_v56 = vld [vmem:[%s13069_s1 + $0xf8] sm:$0xf0]  ;;  %v8471_v7 = vld [vmem:[%s13069_s1 + $0x16c] sm:$0xf]  ;;  %v1324_v40 = vld [vmem:[%s9197_s25] sm:$0x2a] }
  0x60   : >> { %1209 = vmatpush.bf16.msrb.mxu2 %v5961_v6  ;;  %v6005_v6 = vor.u32 %v8460_v59, %v6004_v58  ;;  %v6078_v58 = vld [vmem:[%s13069_s1 + $0x198] sm:$0xf0]  ;;  %v8439_v44 = vld [vmem:[%s13069_s1 + $0x6c] sm:$0xf] }
  0x61   : >> { %v5982_v33 = vld [vmem:[%s13069_s1 + $0xd8] sm:$0xf0] }
  0x62   : >> { %1169 = vmatpush.bf16.msrb.mxu3 %v5973_v4  ;;  %1184 = vmatpush.bf16.msrb.mxu0 %v6069_v12  ;;  %v5893_v4 = vor.u32 %v8432_v54, %v5892_v49  ;;  %v1163_v12 = vand.u32 %v1088_v3, %v9112_v18  ;;  %v8455_v54 = vld [vmem:[%s13069_s1 + $0xec] sm:$0xf] }
  0x63   : >> { %v6001_v3 = vor.u32 %v8455_v54, %v5998_v56  ;;  %v8616_v54 = vld [vmem:[%s13069_s1 + $0x60c] sm:$0xf0]  ;;  %v6316_v56 = vld [vmem:[%s13069_s1 + $0x510] sm:$0xf0] }
  0x64   : >> { %1210 = vmatpush.bf16.msrb.mxu2 %v5945_v13  ;;  %5873 = vmatmul.msk.bf16.vlgmr.msra.gmra.mxu1 %vm642_vm1, %v9291_v52  ;;  %v8478_v52 = vld [vmem:[%s13069_s1 + $0x1a4] sm:$0xf]  ;;  %v8487_v13 = vld [vmem:[%s13069_s1 + $0x1ec] sm:$0xf] }
  0x65   : >> { %1220 = vmatpush.bf16.msra.mxu1 %v6121_v24  ;;  %v6089_v50 = vor.u32 %v8478_v52, %v6086_v42  ;;  %v1160_v24 = vand.u32 %v1087_v11, %v9112_v18  ;;  %v5965_v52 = vor.u32 %v8449_v31, %v5964_v30  ;;  %v6094_v42 = vld [vmem:[%s13069_s1 + $0x1b8] sm:$0xf0]  ;;  %v6060_v11 = vld [vmem:[%s13069_s1 + $0x168] sm:$0xf]  ;;  %v8463_v31 = vld [vmem:[%s13069_s1 + $0x12c] sm:$0xf] }
  0x66   : >> { %1170 = vmatpush.bf16.msrb.mxu3 %v5957_v51  ;;  %1185 = vmatpush.bf16.msrb.mxu0 %v6053_v25  ;;  %v9704_v51 = vld.sshfl [vmem:[#allocation1 + $0x10] sm:$0xff pattern:$0x73625140]  ;;  %v8466_v25 = vld [vmem:[%s13069_s1 + $0x144] sm:$0xf] }
  0x67   : >> { %v6041_v34 = vor.u32 %v8466_v25, %v6038_v26  ;;  %v1021_v25 = vunpack.c.h.b16 %v9634_v36  ;;  %v6044_v26 = vld [vmem:[%s13069_s1 + $0x148] sm:$0xf]  ;;  %v8443_v36 = vld [vmem:[%s13069_s1 + $0x8c] sm:$0xf]  ;;  %v5950_v30 = vld [vmem:[%s13069_s1 + $0x98] sm:$0xf0] }
  0x68   : >> { %1211 = vmatpush.bf16.msrb.mxu2 %v5929_v14  ;;  %v6110_v14 = vld [vmem:[%s13069_s1 + $0x1d8] sm:$0xf0] }
  0x69   : >> { %1221 = vmatpush.bf16.msra.mxu1 %v6105_v37  ;;  %v8485_v37 = vld [vmem:[%s13069_s1 + $0x1d4] sm:$0xf0]  ;;  %v1089_v39 = vpack.c.b16 %v1021_v25, %v1021_v25  ;;  %v6282_v25 = vld [vmem:[%s13069_s1 + $0x4c0] sm:$0xf] }
  0x6a   : >> { %1171 = vmatpush.bf16.msrb.mxu3 %v5941_v23  ;;  %1186 = vmatpush.bf16.msrb.mxu0 %v6037_v38  ;;  %v6129_v23 = vor.u32 %v8487_v13, %v6126_v1  ;;  %v6113_v38 = vor.u32 %v8483_v28, %v6110_v14  ;;  %v6109_v43 = vor.u32 %v8485_v37, %v6108_v32  ;;  %v6030_v32 = vld [vmem:[%s13069_s1 + $0x138] sm:$0xf0]  ;;  %v5884_v37 = vld [vmem:[%s13069_s1 + $0x8] sm:$0xf] }
  0x6c   : >> { %1212 = vmatpush.bf16.msrb.mxu2 %v5913_v41  ;;  %v8479_v41 = vld [vmem:[%s13069_s1 + $0x1ac] sm:$0xf] }
  0x6d   : >> { %1222 = vmatpush.bf16.msra.mxu1 %v6089_v50  ;;  %v6097_v49 = vor.u32 %v8479_v41, %v6094_v42  ;;  %v8458_v50 = vld [vmem:[%s13069_s1 + $0x104] sm:$0xf]  ;;  %v8465_v41 = vld [vmem:[%s13069_s1 + $0x134] sm:$0xf0]  ;;  %v5953_v42 = vor.u32 %v8443_v36, %v5950_v30  ;;  %v6394_v36 = vld [vmem:[%s13069_s1 + $0x5a0] sm:$0xf] }
  0x6e   : >> { %1172 = vmatpush.bf16.msrb.mxu3 %v5925_v35  ;;  %1187 = vmatpush.bf16.msrb.mxu0 %v6021_v53  ;;  %v9752_v35 = vld.sshfl [vmem:[#allocation1 + $0x8] sm:$0xff pattern:$0x73625140]  ;;  %v6006_v53 = vld [vmem:[%s13069_s1 + $0x110] sm:$0xf0] }
  0x6f   : >> { %v6009_v63 = vor.u32 %v8458_v50, %v6006_v53  ;;  %1393 = vst [vmem:[#allocation1] ss:$4 sm:$0xff] %v1324_v40  ;;  %v1166_v50 = vand.u32 %v1089_v39, %v9112_v18  ;;  %v6442_v53 = vld [vmem:[%s13069_s1 + $0x600] sm:$0xf]  ;;  %v8604_v30 = vld [vmem:[%s13069_s1 + $0x5ac] sm:$0xf0] }
  0x70   : >> { %1213 = vmatpush.bf16.msrb.mxu2 %v5897_v57  ;;  %v8475_v57 = vld [vmem:[%s13069_s1 + $0x18c] sm:$0xf] }
  0x71   : >> { %1223 = vmatpush.bf16.msra.mxu1 %v6073_v5  ;;  %v8451_v5 = vld [vmem:[%s13069_s1 + $0xcc] sm:$0xf] }
  0x72   : >> { %1173 = vmatpush.bf16.msrb.mxu3 %v5909_v48  ;;  %1188 = vmatpush.bf16.msrb.mxu0 %v6005_v6  ;;  %v8481_v48 = vld [vmem:[%s13069_s1 + $0x1b4] sm:$0xf0]  ;;  %v5933_v6 = vor.u32 %v8441_v62, %v5932_v60  ;;  %v5985_v13 = vor.u32 %v8451_v5, %v5982_v33  ;;  %v6314_v60 = vld [vmem:[%s13069_s1 + $0x500] sm:$0xf]  ;;  %v8584_v62 = vld [vmem:[%s13069_s1 + $0x50c] sm:$0xf0] }
  0x73   : >> { %v6093_v59 = vor.u32 %v8481_v48, %v6092_v47  ;;  %v8459_v47 = vld [vmem:[%s13069_s1 + $0x10c] sm:$0xf]  ;;  %v6014_v48 = vld [vmem:[%s13069_s1 + $0x118] sm:$0xf0]  ;;  %v8612_v33 = vld [vmem:[%s13069_s1 + $0x5ec] sm:$0xf0] }
  0x74   : >> { %1214 = vmatpush.bf16.msrb.mxu2 %v5881_v8  ;;  %6130 = vmatmul.msk.bf16.vlgmr.msrb.gmra.mxu1 %vm642_vm1, %v9704_v51  ;;  %v6062_v8 = vld [vmem:[%s13069_s1 + $0x178] sm:$0xf0] }
  0x75   : >> { %1224 = vmatpush.bf16.msra.mxu1 %v6057_v20  ;;  %1189 = vmatmul.bf16.vlgmr.msrb.gmra.mxu0 %v9752_v35  ;;  %v6065_v1 = vor.u32 %v8471_v7, %v6062_v8  ;;  %v8467_v20 = vld [vmem:[%s13069_s1 + $0x14c] sm:$0xf]  ;;  %v9944_v7 = vld [vmem:[%s13069_s1 + $0x620] sm:$0x11]  ;;  %v6315_v8 = vor.u32 %v8584_v62, %v6314_v60  ;;  %v6428_v62 = vld [vmem:[%s13069_s1 + $0x5f0] sm:$0xf0] }
  0x76   : >> { %1174 = vmatpush.bf16.msrb.mxu3 %v5893_v4  ;;  %1246 = vmatpush.bf16.msra.mxu0 %v5997_v61  ;;  %v6081_v4 = vor.u32 %v8475_v57, %v6078_v58  ;;  %v6077_v61 = vor.u32 %v8477_v2, %v6076_v0  ;;  %v6049_v14 = vor.u32 %v8467_v20, %v6046_v21  ;;  %v6012_v57 = vld [vmem:[%s13069_s1 + $0x108] sm:$0xf]  ;;  %v8461_v58 = vld [vmem:[%s13069_s1 + $0x114] sm:$0xf0]  ;;  %v8435_v2 = vld [vmem:[%s13069_s1 + $0x4c] sm:$0xf] }
  0x77   : >> { %1215 = vmatmul.bf16.vlgmr.msrb.gmra.mxu2 %v9713_v16  ;;  %v6443_v0 = vor.u32 %v8616_v54, %v6442_v53  ;;  %v6013_v5 = vor.u32 %v8461_v58, %v6012_v57  ;;  %v6410_v20 = vld [vmem:[%s13069_s1 + $0x5c0] sm:$0xf]  ;;  %v8608_v21 = vld [vmem:[%s13069_s1 + $0x5cc] sm:$0xf0]  ;;  %v8566_v54 = vld [vmem:[%s13069_s1 + $0x484] sm:$0xf] }
  0x78   : >> { %1279 = vmatpush.bf16.msra.mxu2 %v1163_v12  ;;  %v8473_v12 = vld [vmem:[%s13069_s1 + $0x174] sm:$0xf0]  ;;  %v10008_v40 = vld.sshfl [vmem:[#allocation1 + $0x8] sm:$0xff pattern:$0x73625140] }
  0x79   : >> { %1225 = vmatpush.bf16.msra.mxu1 %v6041_v34  ;;  %v6061_v22 = vor.u32 %v8473_v12, %v6060_v11  ;;  %v6298_v11 = vld [vmem:[%s13069_s1 + $0x4e0] sm:$0xf]  ;;  %v8580_v12 = vld [vmem:[%s13069_s1 + $0x4ec] sm:$0xf0]  ;;  %v8610_v60 = vld [vmem:[%s13069_s1 + $0x5e4] sm:$0xf] }
  0x7a   : >> { %1175 = vmatpush.bf16.msrb.mxu3 %v5877_v15  ;;  %1247 = vmatpush.bf16.msra.mxu0 %v5981_v27  ;;  %v8447_v15 = vld [vmem:[%s13069_s1 + $0xac] sm:$0xf]  ;;  %v8469_v27 = vld [vmem:[%s13069_s1 + $0x154] sm:$0xf0]  ;;  %v6250_v57 = vld [vmem:[%s13069_s1 + $0x480] sm:$0xf] }
  0x7b   : >> { %v5969_v28 = vor.u32 %v8447_v15, %v5966_v19  ;;  %v6045_v34 = vor.u32 %v8469_v27, %v6044_v26  ;;  %v5902_v15 = vld [vmem:[%s13069_s1 + $0x38] sm:$0xf0]  ;;  %v8576_v26 = vld [vmem:[%s13069_s1 + $0x4cc] sm:$0xf0] }
  0x7c   : >> { %1298 = vmatpush.bf16.msrb.mxu2 %v6129_v23  ;;  %v5900_v23 = vld [vmem:[%s13069_s1 + $0x28] sm:$0xf]  ;;  %v6283_v39 = vor.u32 %v8576_v26, %v6282_v25  ;;  %v8568_v58 = vld [vmem:[%s13069_s1 + $0x48c] sm:$0xf0]  ;;  %v1600_v25 = vunpack.c.h.b16 %v9944_v7 }
  0x7d   : >> { %1176 = vmatmul.bf16.vlgmr.msrb.gmra.mxu3 %v9713_v16  ;;  %1226 = vmatpush.bf16.msra.mxu1 %v6025_v46  ;;  %v5934_v46 = vld [vmem:[%s13069_s1 + $0x78] sm:$0xf0] }
  0x7e   : >> { %1240 = vmatpush.bf16.msra.mxu3 %v1160_v24  ;;  %1248 = vmatpush.bf16.msra.mxu0 %v5965_v52  ;;  %v8433_v24 = vld [vmem:[%s13069_s1 + $0x34] sm:$0xf0]  ;;  %v6028_v52 = vld [vmem:[%s13069_s1 + $0x128] sm:$0xf] }
  0x80   : >> { %1299 = vmatpush.bf16.msrb.mxu2 %v6113_v38  ;;  %v8429_v38 = vld [vmem:[%s13069_s1 + $0x14] sm:$0xf0] }
  0x81   : >> { %1227 = vmatpush.bf16.msra.mxu1 %v6009_v63  ;;  %v5885_v45 = vor.u32 %v8429_v38, %v5884_v37  ;;  %v6017_v63 = vor.u32 %v8459_v47, %v6014_v48  ;;  %v10004_v38 = vld.sshfl [vmem:[#allocation1 + $0x10] sm:$0xff pattern:$0x73625140] }
  0x82   : >> { %1259 = vmatpush.bf16.msrb.mxu3 %v6125_v29  ;;  %1249 = vmatpush.bf16.msra.mxu0 %v5949_v55  ;;  %v5901_v29 = vor.u32 %v8433_v24, %v5900_v23  ;;  %v8582_v55 = vld [vmem:[%s13069_s1 + $0x504] sm:$0xf]  ;;  %v6299_v23 = vor.u32 %v8580_v12, %v6298_v11  ;;  %v6284_v24 = vld [vmem:[%s13069_s1 + $0x4d0] sm:$0xf0]  ;;  %v6346_v11 = vld [vmem:[%s13069_s1 + $0x540] sm:$0xf] }
  0x83   : >> { %v6444_v47 = vld [vmem:[%s13069_s1 + $0x610] sm:$0xf0]  ;;  %v8592_v12 = vld [vmem:[%s13069_s1 + $0x54c] sm:$0xf0] }
  0x84   : >> { %1300 = vmatpush.bf16.msrb.mxu2 %v6097_v49  ;;  %1228 = vmatmul.bf16.vlgmr.msra.gmra.mxu1 %v9752_v35  ;;  %v6029_v49 = vor.u32 %v8465_v41, %v6028_v52  ;;  %v6460_v52 = vld [vmem:[%s9197_s25 + $0x6] sm:$0x15] }
  0x85   : >> { %1285 = vmatpush.bf16.msrb.mxu1 %v6001_v3  ;;  %v5918_v3 = vld [vmem:[%s13069_s1 + $0x58] sm:$0xf0] }
  0x86   : >> { %1260 = vmatpush.bf16.msrb.mxu3 %v6109_v43  ;;  %1250 = vmatpush.bf16.msra.mxu0 %v5933_v6  ;;  %v6033_v43 = vor.u32 %v8463_v31, %v6030_v32  ;;  %v6426_v6 = vld [vmem:[%s13069_s1 + $0x5e0] sm:$0xf]  ;;  %v5921_v10 = vor.u32 %v8435_v2, %v5918_v3  ;;  %v8570_v31 = vld [vmem:[%s13069_s1 + $0x4a4] sm:$0xf]  ;;  %v6268_v32 = vld [vmem:[%s13069_s1 + $0x4b0] sm:$0xf0]  ;;  %v6251_v3 = vor.u32 %v8568_v58, %v6250_v57 }
  0x87   : >> { %6132 = vmatmul.msk.bf16.vlgmr.msra.gmra.mxu2 %vm642_vm1, %v9704_v51  ;;  %v6271_v48 = vor.u32 %v8570_v31, %v6268_v32  ;;  %v8596_v2 = vld [vmem:[%s13069_s1 + $0x56c] sm:$0xf0]  ;;  %v6202_v32 = vld [vmem:[%s13069_s1 + $0x420] sm:$0xf]  ;;  %v8594_v58 = vld [vmem:[%s13069_s1 + $0x564] sm:$0xf] }
  0x88   : >> { %1301 = vmatpush.bf16.msrb.mxu2 %v6081_v4  ;;  %v6319_v4 = vor.u32 %v8582_v55, %v6316_v56  ;;  %v6252_v55 = vld [vmem:[%s13069_s1 + $0x490] sm:$0xf0] }
  0x89   : >> { %1286 = vmatpush.bf16.msrb.mxu1 %v5985_v13  ;;  %v6427_v13 = vor.u32 %v8612_v33, %v6426_v6  ;;  %v6431_v6 = vor.u32 %v8610_v60, %v6428_v62  ;;  %v6234_v33 = vld [vmem:[%s13069_s1 + $0x460] sm:$0xf]  ;;  %v8611_v62 = vld [vmem:[%s13069_s1 + $0x5ec] sm:$0xf] }
  0x8a   : >> { %1261 = vmatpush.bf16.msrb.mxu3 %v6093_v59  ;;  %1251 = vmatpush.bf16.msra.mxu0 %v5917_v17  ;;  %v5937_v59 = vor.u32 %v8439_v44, %v5934_v46  ;;  %v1599_v17 = vunpack.c.l.b16 %v9944_v7  ;;  %v6395_v44 = vor.u32 %v8604_v30, %v6394_v36  ;;  %v8614_v46 = vld [vmem:[%s13069_s1 + $0x604] sm:$0xf]  ;;  %v6204_v7 = vld [vmem:[%s13069_s1 + $0x430] sm:$0xf0]  ;;  %v8585_v30 = vld [vmem:[%s13069_s1 + $0x514] sm:$0xf0] }
  0x8b   : >> { %v6447_v56 = vor.u32 %v8614_v46, %v6444_v47  ;;  %v8615_v47 = vld [vmem:[%s13069_s1 + $0x60c] sm:$0xf] }
  0x8c   : >> { %1302 = vmatpush.bf16.msrb.mxu2 %v6065_v1  ;;  %v8431_v1 = vld [vmem:[%s13069_s1 + $0x2c] sm:$0xf] }
  0x8d   : >> { %6131 = vmatmul.msk.bf16.vlgmr.msra.gmra.mxu3 %vm642_vm1, %v9704_v51  ;;  %1287 = vmatpush.bf16.msrb.mxu1 %v5969_v28  ;;  %v5905_v27 = vor.u32 %v8431_v1, %v5902_v15  ;;  %v8427_v28 = vld [vmem:[%s13069_s1 + $0xc] sm:$0xf]  ;;  %v8558_v1 = vld [vmem:[%s13069_s1 + $0x444] sm:$0xf]  ;;  %v6220_v15 = vld [vmem:[%s13069_s1 + $0x450] sm:$0xf0] }
  0x8e   : >> { %1262 = vmatpush.bf16.msrb.mxu3 %v6077_v61  ;;  %1252 = vmatpush.bf16.msra.mxu0 %v5901_v29  ;;  %v8578_v61 = vld [vmem:[%s13069_s1 + $0x4e4] sm:$0xf]  ;;  %v6411_v29 = vor.u32 %v8608_v21, %v6410_v20  ;;  %v8560_v20 = vld [vmem:[%s13069_s1 + $0x44c] sm:$0xf0]  ;;  %v6223_v26 = vor.u32 %v8558_v1, %v6220_v15  ;;  %v6420_v1 = vld [vmem:[%s13069_s1 + $0x5d8] sm:$0xf0] }
  0x8f   : >> { %v6303_v19 = vor.u32 %v8578_v61, %v6300_v9  ;;  %v8606_v61 = vld [vmem:[%s13069_s1 + $0x5c4] sm:$0xf]  ;;  %v6412_v9 = vld [vmem:[%s13069_s1 + $0x5d0] sm:$0xf0]  ;;  %v6274_v15 = vld [vmem:[%s13069_s1 + $0x4a8] sm:$0xf] }
  0x90   : >> { %1303 = vmatpush.bf16.msrb.mxu2 %v6049_v14  ;;  %v5886_v14 = vld [vmem:[%s13069_s1 + $0x18] sm:$0xf0] }
  0x91   : >> { %1288 = vmatpush.bf16.msrb.mxu1 %v5953_v42  ;;  %v5889_v41 = vor.u32 %v8427_v28, %v5886_v14  ;;  %v6266_v42 = vld [vmem:[%s13069_s1 + $0x4a0] sm:$0xf]  ;;  %v8588_v28 = vld [vmem:[%s13069_s1 + $0x52c] sm:$0xf0]  ;;  %v8554_v14 = vld [vmem:[%s13069_s1 + $0x424] sm:$0xf] }
  0x92   : >> { %1263 = vmatpush.bf16.msrb.mxu3 %v6061_v22  ;;  %1253 = vmatpush.bf16.msra.mxu0 %v5885_v45  ;;  %v8574_v22 = vld [vmem:[%s13069_s1 + $0x4c4] sm:$0xf] }
  0x93   : >> { %v6287_v37 = vor.u32 %v8574_v22, %v6284_v24  ;;  %v6347_v22 = vor.u32 %v8592_v12, %v6346_v11  ;;  %v6396_v24 = vld [vmem:[%s13069_s1 + $0x5b0] sm:$0xf0] }
  0x94   : >> { %1304 = vmatpush.bf16.msrb.mxu2 %v6033_v43  ;;  %v8572_v43 = vld [vmem:[%s13069_s1 + $0x4ac] sm:$0xf0] }
  0x95   : >> { %1254 = vmatmul.bf16.vlgmr.msra.gmra.mxu0 %v9713_v16  ;;  %1289 = vmatpush.bf16.msrb.mxu1 %v5937_v59  ;;  %v6267_v53 = vor.u32 %v8572_v43, %v6266_v42  ;;  %v1668_v42 = vpack.c.b16 %v1600_v25, %v1600_v25  ;;  %v6207_v43 = vor.u32 %v8554_v14, %v6204_v7 }
  0x96   : >> { %1264 = vmatpush.bf16.msrb.mxu3 %v6045_v34  ;;  %1318 = vmatpush.bf16.msrb.mxu0 %v1166_v50  ;;  %v1667_v34 = vpack.c.b16 %v1599_v17, %v1599_v17  ;;  %v8600_v50 = vld [vmem:[%s13069_s1 + $0x58c] sm:$0xf0]  ;;  %v6415_v17 = vor.u32 %v8606_v61, %v6412_v9 }
  0x97   : >> { %v1742_v57 = vand.u32 %v1668_v42, %v9112_v18 }
  0x98   : >> { %1305 = vmatpush.bf16.msrb.mxu2 %v6017_v63  ;;  %v1739_v45 = vand.u32 %v1667_v34, %v9112_v18  ;;  %v6255_v63 = vor.u32 %v8566_v54, %v6252_v55  ;;  %v8556_v34 = vld [vmem:[%s13069_s1 + $0x42c] sm:$0xf0]  ;;  %v6450_v54 = vld [vmem:[%s13069_s1 + $0x608] sm:$0xf]  ;;  %v8617_v55 = vld [vmem:[%s13069_s1 + $0x614] sm:$0xf0] }
  0x99   : >> { %1290 = vmatpush.bf16.msrb.mxu1 %v5921_v10  ;;  %v6203_v46 = vor.u32 %v8556_v34, %v6202_v32  ;;  %v6258_v34 = vld [vmem:[%s13069_s1 + $0x488] sm:$0xf] }
  0x9a   : >> { %1265 = vmatpush.bf16.msrb.mxu3 %v6029_v49  ;;  %1763 = vmatpush.bf16.msra.mxu0 %v6443_v0  ;;  %v6378_v49 = vld [vmem:[%s13069_s1 + $0x580] sm:$0xf] }
  0x9b   : >> { %1306 = vmatmul.bf16.vlgmr.msrb.gmra.mxu2 %v9752_v35  ;;  %v6379_v59 = vor.u32 %v8600_v50, %v6378_v49  ;;  %v6362_v0 = vld [vmem:[%s13069_s1 + $0x560] sm:$0xf]  ;;  %v6306_v49 = vld [vmem:[%s13069_s1 + $0x4e8] sm:$0xf] }
  0x9c   : >> { %1789 = vmatpush.bf16.msra.mxu2 %v6319_v4  ;;  %v8562_v4 = vld [vmem:[%s13069_s1 + $0x464] sm:$0xf] }
  0x9d   : >> { %1291 = vmatpush.bf16.msrb.mxu1 %v5905_v27  ;;  %v6330_v27 = vld [vmem:[%s13069_s1 + $0x520] sm:$0xf] }
  0x9e   : >> { %1266 = vmatpush.bf16.msrb.mxu3 %v6013_v5  ;;  %1764 = vmatpush.bf16.msra.mxu0 %v6427_v13  ;;  %v6236_v5 = vld [vmem:[%s13069_s1 + $0x470] sm:$0xf0] }
  0x9f   : >> { %v6239_v10 = vor.u32 %v8562_v4, %v6236_v5  ;;  %v8577_v4 = vld [vmem:[%s13069_s1 + $0x4d4] sm:$0xf0] }
  0xa0   : >> { %1790 = vmatpush.bf16.msra.mxu2 %v6303_v19  ;;  %v6218_v19 = vld [vmem:[%s13069_s1 + $0x440] sm:$0xf] }
  0xa1   : >> { %1267 = vmatmul.bf16.vlgmr.msrb.gmra.mxu3 %v9752_v35  ;;  %v10006_v35 = vld.sshfl [vmem:[#allocation1] sm:$0xff pattern:$0x73625140]  ;;  %1292 = vmatpush.bf16.msrb.mxu1 %v5889_v41  ;;  %v6219_v36 = vor.u32 %v8560_v20, %v6218_v19  ;;  %v6380_v41 = vld [vmem:[%s13069_s1 + $0x590] sm:$0xf0] }
  0xa2   : >> { %1750 = vmatpush.bf16.msra.mxu3 %v6315_v8  ;;  %1983 = vst [vmem:[#allocation1] ss:$4 sm:$0xff] %v6460_v52  ;;  %1765 = vmatpush.bf16.msra.mxu0 %v6411_v29  ;;  %v6363_v8 = vor.u32 %v8596_v2, %v6362_v0  ;;  %v6322_v29 = vld [vmem:[%s13069_s1 + $0x508] sm:$0xf]  ;;  %v8598_v52 = vld [vmem:[%s13069_s1 + $0x584] sm:$0xf]  ;;  %v6451_v0 = vor.u32 %v8617_v55, %v6450_v54 }
  0xa3   : >> { %v6383_v50 = vor.u32 %v8598_v52, %v6380_v41  ;;  %v6436_v2 = vld [vmem:[%s13069_s1 + $0x5f8] sm:$0xf0]  ;;  %v8573_v20 = vld [vmem:[%s13069_s1 + $0x4b4] sm:$0xf0]  ;;  %v6402_v52 = vld [vmem:[%s13069_s1 + $0x5a8] sm:$0xf] }
  0xa4   : >> { %1791 = vmatpush.bf16.msra.mxu2 %v6287_v37  ;;  %1293 = vmatmul.bf16.vlgmr.msrb.gmra.mxu1 %v9713_v16  ;;  %v8564_v16 = vld [vmem:[%s13069_s1 + $0x46c] sm:$0xf0]  ;;  %v6439_v9 = vor.u32 %v8611_v62, %v6436_v2  ;;  %v8605_v41 = vld [vmem:[%s13069_s1 + $0x5b4] sm:$0xf0]  ;;  %v6292_v62 = vld [vmem:[%s13069_s1 + $0x4d8] sm:$0xf0] }
  0xa5   : >> { %1783 = vmatpush.bf16.msra.mxu1 %v1739_v45  ;;  %6133 = vmatmul.msk.bf16.vlgmr.msrb.gmra.mxu0 %vm642_vm1, %v9704_v51  ;;  %v10078_v51 = vld [vmem:[%s13069_s1 + $0x628] sm:$0x11]  ;;  %v6235_v13 = vor.u32 %v8564_v16, %v6234_v33  ;;  %v10137_v45 = vrot.slane %v10004_v38, 1  ;;  %v8581_v38 = vld [vmem:[%s13069_s1 + $0x4f4] sm:$0xf0] }
  0xa6   : >> { %1751 = vmatpush.bf16.msra.mxu3 %v6299_v23  ;;  %1766 = vmatpush.bf16.msra.mxu0 %v6395_v44  ;;  %v1601_v21 = vunpack.c.l.b16 %v10078_v51  ;;  %v8602_v23 = vld [vmem:[%s13069_s1 + $0x5a4] sm:$0xf]  ;;  %v6323_v44 = vor.u32 %v8585_v30, %v6322_v29  ;;  %v6434_v33 = vld [vmem:[%s13069_s1 + $0x5e8] sm:$0xf]  ;;  %v8613_v16 = vld [vmem:[%s13069_s1 + $0x5f4] sm:$0xf0] }
  0xa7   : >> { %v6399_v31 = vor.u32 %v8602_v23, %v6396_v24  ;;  %v6435_v12 = vor.u32 %v8613_v16, %v6434_v33  ;;  %v8586_v23 = vld [vmem:[%s13069_s1 + $0x524] sm:$0xf]  ;;  %v6332_v24 = vld [vmem:[%s13069_s1 + $0x530] sm:$0xf0]  ;;  %v8603_v30 = vld [vmem:[%s13069_s1 + $0x5ac] sm:$0xf]  ;;  %v1602_v16 = vunpack.c.h.b16 %v10078_v51 }
  0xa8   : >> { %1792 = vmatpush.bf16.msra.mxu2 %v6271_v48  ;;  %v1669_v37 = vpack.c.b16 %v1601_v21, %v1601_v21  ;;  %v6452_v48 = vld [vmem:[%s13069_s1 + $0x618] sm:$0xf0]  ;;  %v6418_v21 = vld [vmem:[%s13069_s1 + $0x5c8] sm:$0xf]  ;;  %v6335_v32 = vor.u32 %v8586_v23, %v6332_v24  ;;  %v8565_v54 = vld [vmem:[%s13069_s1 + $0x474] sm:$0xf0] }
  0xa9   : >> { %1802 = vmatpush.bf16.msrb.mxu1 %v6447_v56  ;;  %v10159_v56 = vrot.slane %v10006_v35, 1  ;;  %v6455_v60 = vor.u32 %v8615_v47, %v6452_v48  ;;  %v6307_v35 = vor.u32 %v8581_v38, %v6306_v49  ;;  %v8599_v49 = vld [vmem:[%s13069_s1 + $0x58c] sm:$0xf]  ;;  %v6242_v38 = vld [vmem:[%s13069_s1 + $0x468] sm:$0xf] }
  0xaa   : >> { %1752 = vmatpush.bf16.msra.mxu3 %v6283_v39  ;;  %1767 = vmatpush.bf16.msra.mxu0 %v6379_v59  ;;  %v6331_v39 = vor.u32 %v8588_v28, %v6330_v27  ;;  %v6364_v59 = vld [vmem:[%s13069_s1 + $0x570] sm:$0xf0]  ;;  %v6324_v27 = vld [vmem:[%s13069_s1 + $0x518] sm:$0xf0]  ;;  %v8595_v2 = vld [vmem:[%s13069_s1 + $0x56c] sm:$0xf] }
  0xab   : >> { %v6367_v5 = vor.u32 %v8594_v58, %v6364_v59  ;;  %v8601_v58 = vld [vmem:[%s13069_s1 + $0x594] sm:$0xf0]  ;;  %v8571_v51 = vld [vmem:[%s13069_s1 + $0x4ac] sm:$0xf]  ;;  %v6354_v24 = vld [vmem:[%s13069_s1 + $0x548] sm:$0xf] }
  0xac   : >> { %1793 = vmatpush.bf16.msra.mxu2 %v6255_v63  ;;  %v8561_v33 = vld [vmem:[%s13069_s1 + $0x454] sm:$0xf0] }
  0xad   : >> { %1803 = vmatpush.bf16.msrb.mxu1 %v6431_v6  ;;  %v10183_v6 = vrot.slane %v10008_v40, 1  ;;  %v6348_v40 = vld [vmem:[%s13069_s1 + $0x550] sm:$0xf0] }
  0xae   : >> { %1753 = vmatpush.bf16.msra.mxu3 %v6267_v53  ;;  %1768 = vmatpush.bf16.msra.mxu0 %v6363_v8  ;;  %v1745_v53 = vand.u32 %v1669_v37, %v9112_v18  ;;  %v670_v63 = vpop.f32.mrf.mxu0  ;;  %v8590_v8 = vld [vmem:[%s13069_s1 + $0x544] sm:$0xf]  ;;  %v8569_v37 = vld [vmem:[%s13069_s1 + $0x494] sm:$0xf0] }
  0xaf   : >> { %v6351_v19 = vor.u32 %v8590_v8, %v6348_v40  ;;  %v6259_v47 = vor.u32 %v8569_v37, %v6258_v34  ;;  %v6370_v40 = vld [vmem:[%s13069_s1 + $0x568] sm:$0xf] }
  0xb0   : >> { %1794 = vmatpush.bf16.msra.mxu2 %v6239_v10 }
  0xb1   : >> { %1804 = vmatpush.bf16.msrb.mxu1 %v6415_v17  ;;  %v683_v10 = vpop.f32.mrf.mxu1 }
  0xb2   : >> { %1754 = vmatpush.bf16.msra.mxu3 %v6251_v3  ;;  %1769 = vmatpush.bf16.msra.mxu0 %v6347_v22  ;;  %v6290_v3 = vld [vmem:[%s13069_s1 + $0x4c8] sm:$0xf]  ;;  %v696_v61 = vpop.f32.mrf.mxu3  ;;  %v684_v17 = vadd.f32 %v683_v10, %v670_v63  ;;  %v8609_v22 = vld [vmem:[%s13069_s1 + $0x5d4] sm:$0xf0]  ;;  %v6243_v63 = vor.u32 %v8565_v54, %v6242_v38 }
  0xb3   : >> { %v6291_v11 = vor.u32 %v8577_v4, %v6290_v3  ;;  %v6419_v29 = vor.u32 %v8609_v22, %v6418_v21  ;;  %v6372_v3 = vld [vmem:[%s13069_s1 + $0x578] sm:$0xf0]  ;;  %v1670_v21 = vpack.c.b16 %v1602_v16, %v1602_v16 }
  0xb4   : >> { %1795 = vmatpush.bf16.msra.mxu2 %v6223_v26  ;;  %6456 = vmatmul.msk.bf16.vlgmr.msra.gmra.mxu1 %vm642_vm1, %v10137_v45  ;;  %v8583_v26 = vld [vmem:[%s13069_s1 + $0x50c] sm:$0xf]  ;;  %v10230_v28 = vadd.f32 %v696_v61, %v684_v17  ;;  %v8597_v61 = vld [vmem:[%s13069_s1 + $0x574] sm:$0xf0]  ;;  %v6375_v10 = vor.u32 %v8595_v2, %v6372_v3  ;;  %v8644_v2 = vld [vmem:[%s13069_s1 + $0x6fc] sm:$0xf0] }
  0xb5   : >> { %1805 = vmatpush.bf16.msrb.mxu1 %v6399_v31  ;;  %v6404_v31 = vld [vmem:[%s13069_s1 + $0x5b8] sm:$0xf0]  ;;  %v6371_v17 = vor.u32 %v8597_v61, %v6370_v40  ;;  %v1748_v37 = vand.u32 %v1670_v21, %v9112_v18  ;;  %v8559_v3 = vld [vmem:[%s13069_s1 + $0x44c] sm:$0xf]  ;;  %v6737_v61 = vld [vmem:[%s13069_s1 + $0x7d0] sm:$0xf] }
  0xb6   : >> { %1755 = vmatpush.bf16.msra.mxu3 %v6235_v13  ;;  %1770 = vmatpush.bf16.msra.mxu0 %v6331_v39  ;;  %v8607_v13 = vld [vmem:[%s13069_s1 + $0x5cc] sm:$0xf]  ;;  %v722_v14 = vpop.f32.mrf.mxu2  ;;  %v672_v7 = vpop.f32.mrf.mxu0  ;;  %v6327_v39 = vor.u32 %v8583_v26, %v6324_v27  ;;  %v6721_v21 = vld [vmem:[%s13069_s1 + $0x7b0] sm:$0xf] }
  0xb7   : >> { %v6423_v25 = vor.u32 %v8607_v13, %v6420_v1  ;;  %v8591_v1 = vld [vmem:[%s13069_s1 + $0x54c] sm:$0xf] }
  0xb8   : >> { %1796 = vmatpush.bf16.msra.mxu2 %v6207_v43  ;;  %v6407_v43 = vor.u32 %v8603_v30, %v6404_v31  ;;  %v8567_v27 = vld [vmem:[%s13069_s1 + $0x48c] sm:$0xf]  ;;  %v6769_v31 = vld [vmem:[%s13069_s1 + $0x810] sm:$0xf] }
  0xb9   : >> { %1806 = vmatpush.bf16.msrb.mxu1 %v6383_v50  ;;  %1771 = vmatmul.bf16.vlgmr.msra.gmra.mxu0 %v10183_v6  ;;  %v685_v48 = vpop.f32.mrf.mxu1  ;;  %v6388_v50 = vld [vmem:[%s13069_s1 + $0x598] sm:$0xf0]  ;;  %v8587_v7 = vld [vmem:[%s13069_s1 + $0x52c] sm:$0xf] }
  0xba   : >> { %1756 = vmatpush.bf16.msra.mxu3 %v6219_v36  ;;  %1828 = vmatpush.bf16.msrb.mxu0 %v6323_v44  ;;  %v6275_v36 = vor.u32 %v8573_v20, %v6274_v15  ;;  %v698_v42 = vpop.f32.mrf.mxu3  ;;  %v8579_v44 = vld [vmem:[%s13069_s1 + $0x4ec] sm:$0xf]  ;;  %v6391_v59 = vor.u32 %v8599_v49, %v6388_v50  ;;  %v6356_v15 = vld [vmem:[%s13069_s1 + $0x558] sm:$0xf0]  ;;  %v8557_v20 = vld [vmem:[%s13069_s1 + $0x434] sm:$0xf0] }
  0xbb   : >> { %1797 = vmatmul.bf16.vlgmr.msra.gmra.mxu2 %v10159_v56  ;;  %v6359_v26 = vor.u32 %v8591_v1, %v6356_v15  ;;  %v8648_v48 = vld [vmem:[%s13069_s1 + $0x71c] sm:$0xf0]  ;;  %v8563_v49 = vld [vmem:[%s13069_s1 + $0x46c] sm:$0xf]  ;;  %v6244_v50 = vld [vmem:[%s13069_s1 + $0x478] sm:$0xf0] }
  0xbc   : >> { %1861 = vmatpush.bf16.msrb.mxu2 %v1745_v53  ;;  %v6403_v53 = vor.u32 %v8605_v41, %v6402_v52  ;;  %v8646_v52 = vld [vmem:[%s13069_s1 + $0x714] sm:$0xf]  ;;  %v6643_v41 = vld [vmem:[%s13069_s1 + $0x720] sm:$0xf0]  ;;  %v6609_v1 = vld [vmem:[%s13069_s1 + $0x6d0] sm:$0xf] }
  0xbd   : >> { %1807 = vmatpush.bf16.msrb.mxu1 %v6367_v5  ;;  %v6226_v5 = vld [vmem:[%s13069_s1 + $0x448] sm:$0xf]  ;;  %v6646_v54 = vor.u32 %v8646_v52, %v6643_v41  ;;  %v8640_v15 = vld [vmem:[%s13069_s1 + $0x6dc] sm:$0xf0]  ;;  %v6771_v52 = vld [vmem:[%s13069_s1 + $0x820] sm:$0xf0] }
  0xbe   : >> { %1757 = vmatpush.bf16.msra.mxu3 %v6203_v46  ;;  %1829 = vmatpush.bf16.msrb.mxu0 %v6307_v35  ;;  %v6308_v46 = vld [vmem:[%s13069_s1 + $0x4f8] sm:$0xf0]  ;;  %v724_v35 = vpop.f32.mrf.mxu2  ;;  %v6227_v13 = vor.u32 %v8561_v33, %v6226_v5 }
  0xbf   : >> { %v6311_v55 = vor.u32 %v8579_v44, %v6308_v46  ;;  %v8589_v44 = vld [vmem:[%s13069_s1 + $0x534] sm:$0xf0]  ;;  %v6641_v46 = vld [vmem:[%s13069_s1 + $0x710] sm:$0xf]  ;;  %v8642_v35 = vld [vmem:[%s13069_s1 + $0x6f4] sm:$0xf] }
  0xc0   : >> { %1880 = vmatpush.bf16.msra.mxu2 %v6455_v60  ;;  %v8575_v60 = vld [vmem:[%s13069_s1 + $0x4cc] sm:$0xf] }
  0xc1   : >> { %1758 = vmatmul.bf16.vlgmr.msra.gmra.mxu3 %v10159_v56  ;;  %1808 = vmatpush.bf16.msrb.mxu1 %v6351_v19  ;;  %v6295_v8 = vor.u32 %v8575_v60, %v6292_v62  ;;  %v6210_v19 = vld [vmem:[%s13069_s1 + $0x428] sm:$0xf]  ;;  %v6642_v60 = vor.u32 %v8648_v48, %v6641_v46  ;;  %v6247_v62 = vor.u32 %v8563_v49, %v6244_v50  ;;  %v6705_v46 = vld [vmem:[%s13069_s1 + $0x790] sm:$0xf] }
  0xc2   : >> { %1822 = vmatpush.bf16.msrb.mxu3 %v1742_v57  ;;  %1830 = vmatpush.bf16.msrb.mxu0 %v6291_v11  ;;  %v6386_v57 = vld [vmem:[%s13069_s1 + $0x588] sm:$0xf]  ;;  %v6276_v11 = vld [vmem:[%s13069_s1 + $0x4b8] sm:$0xf0] }
  0xc3   : >> { %v6387_v4 = vor.u32 %v8601_v58, %v6386_v57  ;;  %v6279_v23 = vor.u32 %v8571_v51, %v6276_v11  ;;  %v6753_v58 = vld [vmem:[%s13069_s1 + $0x7f0] sm:$0xf]  ;;  %v6787_v51 = vld [vmem:[%s9197_s25 + $0x6] sm:$0x3f] }
  0xc4   : >> { %1881 = vmatpush.bf16.msra.mxu2 %v6439_v9  ;;  %v709_v9 = vpop.f32.mrf.mxu3 }
  0xc5   : >> { %1809 = vmatpush.bf16.msrb.mxu1 %v6335_v32 }
  0xc6   : >> { %1841 = vmatpush.bf16.msra.mxu3 %v6451_v0  ;;  %1831 = vmatpush.bf16.msrb.mxu0 %v6275_v36  ;;  %v735_v0 = vpop.f32.mrf.mxu0  ;;  %v6211_v36 = vor.u32 %v8557_v20, %v6210_v19  ;;  %v10342_v30 = vpop.f32.mrf.mxu2  ;;  %v8555_v19 = vld [vmem:[%s13069_s1 + $0x42c] sm:$0xf]  ;;  %v6212_v20 = vld [vmem:[%s13069_s1 + $0x438] sm:$0xf0] }
  0xc8   : >> { %1882 = vmatpush.bf16.msra.mxu2 %v6423_v25  ;;  %1810 = vmatmul.bf16.vlgmr.msrb.gmra.mxu1 %v10183_v6  ;;  %v8593_v25 = vld [vmem:[%s13069_s1 + $0x554] sm:$0xf0] }
  0xc9   : >> { %1867 = vmatpush.bf16.msra.mxu1 %v6327_v39  ;;  %v6355_v34 = vor.u32 %v8593_v25, %v6354_v24  ;;  %v8680_v39 = vld [vmem:[%s13069_s1 + $0x81c] sm:$0xf0] }
  0xca   : >> { %1842 = vmatpush.bf16.msra.mxu3 %v6435_v12  ;;  %1832 = vmatpush.bf16.msrb.mxu0 %v6259_v47  ;;  %v723_v12 = vadd.f32 %v722_v14, %v709_v9  ;;  %v6260_v14 = vld [vmem:[%s13069_s1 + $0x498] sm:$0xf0]  ;;  %v6770_v38 = vor.u32 %v8680_v39, %v6769_v31  ;;  %v8672_v9 = vld [vmem:[%s13069_s1 + $0x7dc] sm:$0xf0]  ;;  %v6215_v31 = vor.u32 %v8555_v19, %v6212_v20  ;;  %v8678_v39 = vld [vmem:[%s13069_s1 + $0x814] sm:$0xf] }
  0xcb   : >> { %6458 = vmatmul.msk.bf16.vlgmr.msrb.gmra.mxu2 %vm642_vm1, %v10137_v45  ;;  %v6263_v42 = vor.u32 %v8567_v27, %v6260_v14  ;;  %v6738_v24 = vor.u32 %v8672_v9, %v6737_v61  ;;  %v8668_v25 = vld [vmem:[%s13069_s1 + $0x7bc] sm:$0xf0]  ;;  %v6595_v27 = vld [vmem:[%s13069_s1 + $0x6c0] sm:$0xf0]  ;;  %v6774_v49 = vor.u32 %v8678_v39, %v6771_v52  ;;  %v8622_v19 = vld [vmem:[%s13069_s1 + $0x654] sm:$0xf] }
  0xcc   : >> { %1883 = vmatpush.bf16.msra.mxu2 %v6407_v43  ;;  %v10322_v22 = vadd.f32 %v735_v0, %v723_v12  ;;  %v6338_v43 = vld [vmem:[%s13069_s1 + $0x528] sm:$0xf]  ;;  %v6625_v0 = vld [vmem:[%s13069_s1 + $0x6f0] sm:$0xf]  ;;  %v6739_v61 = vld [vmem:[%s13069_s1 + $0x7e0] sm:$0xf0] }
  0xcd   : >> { %1868 = vmatpush.bf16.msra.mxu1 %v6311_v55  ;;  %v10378_v55 = vld [vmem:[%s13069_s1 + $0x830] sm:$0x11]  ;;  %v6339_v57 = vor.u32 %v8589_v44, %v6338_v43  ;;  %v6626_v11 = vor.u32 %v8644_v2, %v6625_v0  ;;  %v6547_v20 = vld [vmem:[%s13069_s1 + $0x660] sm:$0xf0] }
  0xce   : >> { %1843 = vmatpush.bf16.msra.mxu3 %v6419_v29  ;;  %1833 = vmatpush.bf16.msrb.mxu0 %v6243_v63  ;;  %v6340_v29 = vld [vmem:[%s13069_s1 + $0x538] sm:$0xf0]  ;;  %v737_v32 = vpop.f32.mrf.mxu0  ;;  %v6627_v63 = vld [vmem:[%s13069_s1 + $0x700] sm:$0xf0]  ;;  %v2183_v5 = vunpack.c.l.b16 %v10378_v55  ;;  %v6689_v2 = vld [vmem:[%s13069_s1 + $0x770] sm:$0xf] }
  0xcf   : >> { %v6343_v47 = vor.u32 %v8587_v7, %v6340_v29  ;;  %v6630_v40 = vor.u32 %v8642_v35, %v6627_v63  ;;  %v10453_v7 = vld.sshfl [vmem:[#allocation1 + $0x10] sm:$0xff pattern:$0x73625140]  ;;  %v6610_v29 = vor.u32 %v8640_v15, %v6609_v1  ;;  %v10455_v32 = vld.sshfl [vmem:[#allocation1] sm:$0xff pattern:$0x73625140] }
  0xd0   : >> { %1884 = vmatpush.bf16.msra.mxu2 %v6391_v59  ;;  %v8676_v59 = vld [vmem:[%s13069_s1 + $0x7fc] sm:$0xf0] }
  0xd1   : >> { %6457 = vmatmul.msk.bf16.vlgmr.msrb.gmra.mxu3 %vm642_vm1, %v10137_v45  ;;  %1869 = vmatpush.bf16.msra.mxu1 %v6295_v8  ;;  %v10406_v33 = vpop.f32.mrf.mxu1  ;;  %v6754_v16 = vor.u32 %v8676_v59, %v6753_v58  ;;  %v776_v8 = vpop.f32.mrf.mxu2  ;;  %v8632_v58 = vld [vmem:[%s13069_s1 + $0x69c] sm:$0xf0]  ;;  %v8674_v59 = vld [vmem:[%s13069_s1 + $0x7f4] sm:$0xf] }
  0xd2   : >> { %1844 = vmatpush.bf16.msra.mxu3 %v6403_v53  ;;  %1834 = vmatpush.bf16.msrb.mxu0 %v6227_v13  ;;  %v711_v53 = vpop.f32.mrf.mxu3  ;;  %v6611_v13 = vld [vmem:[%s13069_s1 + $0x6e0] sm:$0xf0]  ;;  %v8628_v8 = vld [vmem:[%s13069_s1 + $0x67c] sm:$0xf0] }
  0xd3   : >> { %v8630_v53 = vld [vmem:[%s13069_s1 + $0x694] sm:$0xf] }
  0xd4   : >> { %1885 = vmatpush.bf16.msra.mxu2 %v6375_v10  ;;  %v8638_v10 = vld [vmem:[%s13069_s1 + $0x6d4] sm:$0xf] }
  0xd5   : >> { %1870 = vmatpush.bf16.msra.mxu1 %v6279_v23  ;;  %v2251_v23 = vpack.c.b16 %v2183_v5, %v2183_v5  ;;  %v6614_v14 = vor.u32 %v8638_v10, %v6611_v13  ;;  %v6673_v13 = vld [vmem:[%s13069_s1 + $0x750] sm:$0xf] }
  0xd6   : >> { %1845 = vmatpush.bf16.msra.mxu3 %v6387_v4  ;;  %1835 = vmatpush.bf16.msrb.mxu0 %v6211_v36  ;;  %v6228_v4 = vld [vmem:[%s13069_s1 + $0x458] sm:$0xf0]  ;;  %v8636_v36 = vld [vmem:[%s13069_s1 + $0x6bc] sm:$0xf0] }
  0xd7   : >> { %v6231_v12 = vor.u32 %v8559_v3, %v6228_v4  ;;  %v8660_v3 = vld [vmem:[%s13069_s1 + $0x77c] sm:$0xf0] }
  0xd8   : >> { %1886 = vmatpush.bf16.msra.mxu2 %v6359_v26  ;;  %v8634_v26 = vld [vmem:[%s13069_s1 + $0x6b4] sm:$0xf] }
  0xd9   : >> { %1871 = vmatpush.bf16.msra.mxu1 %v6263_v42  ;;  %1836 = vmatmul.bf16.vlgmr.msrb.gmra.mxu0 %v10159_v56  ;;  %v750_v41 = vpop.f32.mrf.mxu1  ;;  %v6722_v42 = vor.u32 %v8668_v25, %v6721_v21  ;;  %v6598_v43 = vor.u32 %v8634_v26, %v6595_v27  ;;  %v6545_v21 = vld [vmem:[%s13069_s1 + $0x650] sm:$0xf]  ;;  %v6723_v25 = vld [vmem:[%s13069_s1 + $0x7c0] sm:$0xf0] }
  0xda   : >> { %1846 = vmatpush.bf16.msra.mxu3 %v6371_v17  ;;  %1900 = vmatpush.bf16.msra.mxu0 %v1748_v37  ;;  %v787_v17 = vpop.f32.mrf.mxu0  ;;  %v2322_v37 = vand.u32 %v2251_v23, %v9112_v18  ;;  %v800_v44 = vpop.f32.mrf.mxu2  ;;  %v8624_v23 = vld [vmem:[%s13069_s1 + $0x65c] sm:$0xf0]  ;;  %v6649_v41 = vld [vmem:[%s13069_s1 + $0x718] sm:$0xf] }
  0xdb   : >> { %v801_v50 = vadd.f32 %v800_v44, %v787_v17  ;;  %v6546_v39 = vor.u32 %v8624_v23, %v6545_v21  ;;  %v8620_v44 = vld [vmem:[%s13069_s1 + $0x63c] sm:$0xf0]  ;;  %v8671_v21 = vld [vmem:[%s13069_s1 + $0x7dc] sm:$0xf]  ;;  %v6747_v23 = vld [vmem:[%s13069_s1 + $0x7e8] sm:$0xf0] }
  0xdc   : >> { %1887 = vmatpush.bf16.msra.mxu2 %v6343_v47  ;;  %v8664_v47 = vld [vmem:[%s13069_s1 + $0x79c] sm:$0xf0] }
  0xdd   : >> { %1872 = vmatpush.bf16.msra.mxu1 %v6247_v62  ;;  %v6706_v35 = vor.u32 %v8664_v47, %v6705_v46 }
  0xde   : >> { %1847 = vmatpush.bf16.msra.mxu3 %v6355_v34  ;;  %2346 = vmatpush.bf16.msrb.mxu0 %v6770_v38  ;;  %v10457_v34 = vld.sshfl [vmem:[#allocation1 + $0x8] sm:$0xff pattern:$0x73625140]  ;;  %v6579_v38 = vld [vmem:[%s13069_s1 + $0x6a0] sm:$0xf0] }
  0xdf   : >> { %1888 = vmatmul.bf16.vlgmr.msra.gmra.mxu2 %v10183_v6  ;;  %2562 = vst [vmem:[#allocation1] ss:$4 sm:$0xff] %v6787_v51  ;;  %v6582_v0 = vor.u32 %v8630_v53, %v6579_v38  ;;  %v6690_v51 = vor.u32 %v8660_v3, %v6689_v2  ;;  %v8681_v2 = vld [vmem:[%s13069_s1 + $0x824] sm:$0xf0] }
  0xe0   : >> { %2372 = vmatpush.bf16.msrb.mxu2 %v6646_v54  ;;  %v6577_v54 = vld [vmem:[%s13069_s1 + $0x690] sm:$0xf]  ;;  %v761_v62 = vpop.f32.mrf.mxu3 }
  0xe1   : >> { %1873 = vmatpush.bf16.msra.mxu1 %v6231_v12  ;;  %v762_v63 = vadd.f32 %v761_v62, %v10406_v33  ;;  %v6578_v4 = vor.u32 %v8632_v58, %v6577_v54  ;;  %v6561_v33 = vld [vmem:[%s13069_s1 + $0x670] sm:$0xf]  ;;  %v813_v10 = vpop.f32.mrf.mxu1  ;;  %v8679_v58 = vld [vmem:[%s13069_s1 + $0x81c] sm:$0xf] }
  0xe2   : >> { %1848 = vmatpush.bf16.msra.mxu3 %v6339_v57  ;;  %2347 = vmatpush.bf16.msrb.mxu0 %v6754_v16  ;;  %v789_v57 = vpop.f32.mrf.mxu0  ;;  %v8626_v16 = vld [vmem:[%s13069_s1 + $0x674] sm:$0xf]  ;;  %v802_v1 = vpop.f32.mrf.mxu2  ;;  %v6562_v15 = vor.u32 %v8628_v8, %v6561_v33  ;;  %v8675_v8 = vld [vmem:[%s13069_s1 + $0x7fc] sm:$0xf] }
  0xe3   : >> { %v10519_v9 = vadd.f32 %v10342_v30, %v762_v63  ;;  %v8656_v30 = vld [vmem:[%s13069_s1 + $0x75c] sm:$0xf0]  ;;  %v8645_v63 = vld [vmem:[%s13069_s1 + $0x704] sm:$0xf0]  ;;  %v8654_v1 = vld [vmem:[%s13069_s1 + $0x754] sm:$0xf] }
  0xe4   : >> { %2373 = vmatpush.bf16.msrb.mxu2 %v6630_v40  ;;  %v8670_v40 = vld [vmem:[%s13069_s1 + $0x7d4] sm:$0xf]  ;;  %v6674_v27 = vor.u32 %v8656_v30, %v6673_v13  ;;  %v8677_v13 = vld [vmem:[%s13069_s1 + $0x804] sm:$0xf0] }
  0xe5   : >> { %1849 = vmatmul.bf16.vlgmr.msra.gmra.mxu3 %v10183_v6  ;;  %v6593_v6 = vld [vmem:[%s13069_s1 + $0x6b0] sm:$0xf]  ;;  %1874 = vmatpush.bf16.msra.mxu1 %v6215_v31  ;;  %v6742_v17 = vor.u32 %v8670_v40, %v6739_v61  ;;  %v8652_v31 = vld [vmem:[%s13069_s1 + $0x73c] sm:$0xf0]  ;;  %v6763_v40 = vld [vmem:[%s13069_s1 + $0x808] sm:$0xf0] }
  0xe6   : >> { %2333 = vmatpush.bf16.msrb.mxu3 %v6642_v60  ;;  %2348 = vmatpush.bf16.msrb.mxu0 %v6738_v24  ;;  %v6594_v48 = vor.u32 %v8636_v36, %v6593_v6  ;;  %v6755_v60 = vld [vmem:[%s13069_s1 + $0x800] sm:$0xf0]  ;;  %v8666_v24 = vld [vmem:[%s13069_s1 + $0x7b4] sm:$0xf]  ;;  %v2184_v6 = vunpack.c.h.b16 %v10378_v55  ;;  %v6550_v36 = vor.u32 %v8622_v19, %v6547_v20  ;;  %v6617_v61 = vld [vmem:[%s13069_s1 + $0x6d8] sm:$0xf] }
  0xe7   : >> { %v6758_v5 = vor.u32 %v8674_v59, %v6755_v60  ;;  %v6726_v52 = vor.u32 %v8666_v24, %v6723_v25  ;;  %v6531_v55 = vld [vmem:[%s13069_s1 + $0x640] sm:$0xf0]  ;;  %v6779_v59 = vld [vmem:[%s13069_s1 + $0x828] sm:$0xf0]  ;;  %v6633_v60 = vld [vmem:[%s13069_s1 + $0x6f8] sm:$0xf] }
  0xe8   : >> { %2374 = vmatpush.bf16.msrb.mxu2 %v6614_v14  ;;  %1875 = vmatmul.bf16.vlgmr.msra.gmra.mxu1 %v10159_v56  ;;  %v6563_v56 = vld [vmem:[%s13069_s1 + $0x680] sm:$0xf0]  ;;  %v763_v14 = vpop.f32.mrf.mxu3  ;;  %v2252_v53 = vpack.c.b16 %v2184_v6, %v2184_v6  ;;  %v6601_v24 = vld [vmem:[%s13069_s1 + $0x6b8] sm:$0xf] }
  0xe9   : >> { %2366 = vmatpush.bf16.msrb.mxu1 %v2322_v37  ;;  %6459 = vmatmul.msk.bf16.vlgmr.msra.gmra.mxu0 %vm642_vm1, %v10137_v45  ;;  %v10524_v45 = vld [vmem:[%s13069_s1 + $0x838] sm:$0x11]  ;;  %v6566_v12 = vor.u32 %v8626_v16, %v6563_v56  ;;  %v8618_v37 = vld [vmem:[%s13069_s1 + $0x634] sm:$0xf]  ;;  %v815_v47 = vpop.f32.mrf.mxu1  ;;  %v6782_v16 = vor.u32 %v8679_v58, %v6779_v59  ;;  %v6634_v56 = vor.u32 %v8645_v63, %v6633_v60  ;;  %v8673_v14 = vld [vmem:[%s13069_s1 + $0x7e4] sm:$0xf0] }
  0xea   : >> { %2334 = vmatpush.bf16.msrb.mxu3 %v6626_v11  ;;  %2349 = vmatpush.bf16.msrb.mxu0 %v6722_v42  ;;  %v10526_v11 = vadd.f32 %v813_v10, %v801_v50  ;;  %v2185_v26 = vunpack.c.l.b16 %v10524_v45  ;;  %v8649_v42 = vld [vmem:[%s13069_s1 + $0x724] sm:$0xf0]  ;;  %v6707_v50 = vld [vmem:[%s13069_s1 + $0x7a0] sm:$0xf0]  ;;  %v6534_v38 = vor.u32 %v8618_v37, %v6531_v55  ;;  %v2325_v3 = vand.u32 %v2252_v53, %v9112_v18  ;;  %v8647_v37 = vld [vmem:[%s13069_s1 + $0x71c] sm:$0xf] }
  0xeb   : >> { %v6650_v54 = vor.u32 %v8649_v42, %v6649_v41  ;;  %v8667_v41 = vld [vmem:[%s13069_s1 + $0x7bc] sm:$0xf]  ;;  %v6731_v42 = vld [vmem:[%s13069_s1 + $0x7c8] sm:$0xf0]  ;;  %v8633_v47 = vld [vmem:[%s13069_s1 + $0x6a4] sm:$0xf0] }
  0xec   : >> { %2375 = vmatpush.bf16.msrb.mxu2 %v6598_v43  ;;  %v6529_v43 = vld [vmem:[%s13069_s1 + $0x630] sm:$0xf]  ;;  %v2253_v46 = vpack.c.b16 %v2185_v26, %v2185_v26  ;;  %v8637_v26 = vld [vmem:[%s13069_s1 + $0x6c4] sm:$0xf0]  ;;  %v6729_v53 = vld [vmem:[%s13069_s1 + $0x7b8] sm:$0xf] }
  0xed   : >> { %2385 = vmatpush.bf16.msra.mxu1 %v6774_v49  ;;  %v8662_v49 = vld [vmem:[%s13069_s1 + $0x794] sm:$0xf]  ;;  %v6530_v57 = vor.u32 %v8620_v44, %v6529_v43  ;;  %v8643_v58 = vld [vmem:[%s13069_s1 + $0x6fc] sm:$0xf] }
  0xee   : >> { %2335 = vmatpush.bf16.msrb.mxu3 %v6610_v29  ;;  %2350 = vmatpush.bf16.msrb.mxu0 %v6706_v35  ;;  %v6657_v29 = vld [vmem:[%s13069_s1 + $0x730] sm:$0xf]  ;;  %v6710_v62 = vor.u32 %v8662_v49, %v6707_v50  ;;  %v2328_v35 = vand.u32 %v2253_v46, %v9112_v18  ;;  %v6585_v46 = vld [vmem:[%s13069_s1 + $0x698] sm:$0xf] }
  0xef   : >> { %v6586_v60 = vor.u32 %v8633_v47, %v6585_v46  ;;  %v8651_v46 = vld [vmem:[%s13069_s1 + $0x73c] sm:$0xf]  ;;  %v6667_v47 = vld [vmem:[%s13069_s1 + $0x748] sm:$0xf0] }
  0xf0   : >> { %2376 = vmatpush.bf16.msrb.mxu2 %v6582_v0  ;;  %v6777_v0 = vld [vmem:[%s13069_s1 + $0x818] sm:$0xf] }
  0xf1   : >> { %2386 = vmatpush.bf16.msra.mxu1 %v6758_v5  ;;  %v6691_v5 = vld [vmem:[%s13069_s1 + $0x780] sm:$0xf0]  ;;  %v6778_v33 = vor.u32 %v8681_v2, %v6777_v0  ;;  %v10631_v30 = vpop.f32.mrf.mxu1  ;;  %v6569_v0 = vld [vmem:[%s13069_s1 + $0x678] sm:$0xf] }
  0xf2   : >> { %2336 = vmatpush.bf16.msrb.mxu3 %v6594_v48  ;;  %2351 = vmatpush.bf16.msrb.mxu0 %v6690_v51  ;;  %v6658_v48 = vor.u32 %v8652_v31, %v6657_v29  ;;  %v8641_v51 = vld [vmem:[%s13069_s1 + $0x6e4] sm:$0xf0]  ;;  %v1190_v6 = vpop.f32.mrf.mxu0  ;;  %v6659_v29 = vld [vmem:[%s13069_s1 + $0x740] sm:$0xf0]  ;;  %v6750_v31 = vor.u32 %v8671_v21, %v6747_v23 }
  0xf3   : >> { %v6618_v19 = vor.u32 %v8641_v51, %v6617_v61  ;;  %v6699_v51 = vld [vmem:[%s13069_s1 + $0x788] sm:$0xf0]  ;;  %v8661_v21 = vld [vmem:[%s13069_s1 + $0x784] sm:$0xf0] }
  0xf4   : >> { %2377 = vmatpush.bf16.msrb.mxu2 %v6566_v12  ;;  %v6761_v12 = vld [vmem:[%s13069_s1 + $0x7f8] sm:$0xf] }
  0xf5   : >> { %2387 = vmatpush.bf16.msra.mxu1 %v6742_v17  ;;  %v6766_v17 = vor.u32 %v8675_v8, %v6763_v40  ;;  %v6762_v20 = vor.u32 %v8677_v13, %v6761_v12  ;;  %v6619_v8 = vld [vmem:[%s13069_s1 + $0x6e8] sm:$0xf0] }
  0xf6   : >> { %2337 = vmatpush.bf16.msrb.mxu3 %v6578_v4  ;;  %2352 = vmatpush.bf16.msrb.mxu0 %v6674_v27  ;;  %v8658_v4 = vld [vmem:[%s13069_s1 + $0x774] sm:$0xf]  ;;  %v6745_v27 = vld [vmem:[%s13069_s1 + $0x7d8] sm:$0xf] }
  0xf7   : >> { %v6694_v10 = vor.u32 %v8658_v4, %v6691_v5  ;;  %v6746_v55 = vor.u32 %v8673_v14, %v6745_v27  ;;  %v6713_v5 = vld [vmem:[%s13069_s1 + $0x798] sm:$0xf]  ;;  %v8655_v14 = vld [vmem:[%s13069_s1 + $0x75c] sm:$0xf] }
  0xf8   : >> { %2378 = vmatpush.bf16.msrb.mxu2 %v6550_v36  ;;  %6783 = vmatmul.msk.bf16.vlgmr.msrb.gmra.mxu1 %vm642_vm1, %v10453_v7  ;;  %v8650_v36 = vld [vmem:[%s13069_s1 + $0x734] sm:$0xf] }
  0xf9   : >> { %2388 = vmatpush.bf16.msra.mxu1 %v6726_v52  ;;  %v6602_v52 = vor.u32 %v8637_v26, %v6601_v24  ;;  %v6662_v44 = vor.u32 %v8650_v36, %v6659_v29  ;;  %v1205_v49 = vpop.f32.mrf.mxu1  ;;  %v6603_v26 = vld [vmem:[%s13069_s1 + $0x6c8] sm:$0xf0]  ;;  %v6537_v29 = vld [vmem:[%s13069_s1 + $0x638] sm:$0xf] }
  0xfa   : >> { %2338 = vmatpush.bf16.msrb.mxu3 %v6562_v15  ;;  %2353 = vmatpush.bf16.msrb.mxu0 %v6658_v48  ;;  %v6675_v15 = vld [vmem:[%s13069_s1 + $0x760] sm:$0xf0]  ;;  %v1216_v43 = vpop.f32.mrf.mxu2  ;;  %v1192_v4 = vpop.f32.mrf.mxu0 }
  0xfb   : >> { %v6678_v25 = vor.u32 %v8654_v1, %v6675_v15  ;;  %v1217_v48 = vadd.f32 %v1216_v43, %v10322_v22  ;;  %v6635_v22 = vld [vmem:[%s13069_s1 + $0x708] sm:$0xf0]  ;;  %v8625_v1 = vld [vmem:[%s13069_s1 + $0x664] sm:$0xf0]  ;;  %v2186_v15 = vunpack.c.h.b16 %v10524_v45 }
  0xfc   : >> { %2379 = vmatpush.bf16.msrb.mxu2 %v6534_v38  ;;  %v8669_v38 = vld [vmem:[%s13069_s1 + $0x7c4] sm:$0xf0]  ;;  %v6587_v43 = vld [vmem:[%s13069_s1 + $0x6a8] sm:$0xf0] }
  0xfd   : >> { %2389 = vmatpush.bf16.msra.mxu1 %v6710_v62  ;;  %2354 = vmatmul.bf16.vlgmr.msrb.gmra.mxu0 %v10457_v34  ;;  %v8663_v62 = vld [vmem:[%s13069_s1 + $0x79c] sm:$0xf]  ;;  %v6730_v63 = vor.u32 %v8669_v38, %v6729_v53  ;;  %v8744_v53 = vld [vmem:[%s13069_s1 + $0xa2c] sm:$0xf0]  ;;  %v8710_v38 = vld [vmem:[%s13069_s1 + $0x924] sm:$0xf] }
  0xfe   : >> { %2339 = vmatpush.bf16.msrb.mxu3 %v6546_v39  ;;  %2411 = vmatpush.bf16.msra.mxu0 %v6650_v54  ;;  %v6651_v39 = vld [vmem:[%s13069_s1 + $0x728] sm:$0xf0] }
  0xff   : >> { %2380 = vmatmul.bf16.vlgmr.msrb.gmra.mxu2 %v10455_v32  ;;  %v6654_v50 = vor.u32 %v8647_v37, %v6651_v39  ;;  %v2254_v37 = vpack.c.b16 %v2186_v15, %v2186_v15  ;;  %v6555_v15 = vld [vmem:[%s13069_s1 + $0x668] sm:$0xf0] }
 0x100   : >> { %2444 = vmatpush.bf16.msra.mxu2 %v2328_v35  ;;  %v1177_v54 = vpop.f32.mrf.mxu3  ;;  %v6715_v35 = vld [vmem:[%s13069_s1 + $0x7a8] sm:$0xf0] }
 0x101   : >> { %2390 = vmatpush.bf16.msra.mxu1 %v6694_v10  ;;  %v1178_v59 = vadd.f32 %v1177_v54, %v10230_v28  ;;  %v8629_v28 = vld [vmem:[%s13069_s1 + $0x684] sm:$0xf0]  ;;  %v8659_v10 = vld [vmem:[%s13069_s1 + $0x77c] sm:$0xf]  ;;  %v6970_v54 = vld [vmem:[%s13069_s1 + $0x930] sm:$0xf0] }
 0x102   : >> { %2340 = vmatpush.bf16.msrb.mxu3 %v6530_v57  ;;  %2412 = vmatpush.bf16.msra.mxu0 %v6634_v56  ;;  %v6734_v57 = vor.u32 %v8667_v41, %v6731_v42  ;;  %v6718_v56 = vor.u32 %v8663_v62, %v6715_v35  ;;  %v6570_v61 = vor.u32 %v8629_v28, %v6569_v0  ;;  %v1218_v12 = vpop.f32.mrf.mxu2  ;;  %v8631_v42 = vld [vmem:[%s13069_s1 + $0x69c] sm:$0xf]  ;;  %v6968_v62 = vld [vmem:[%s13069_s1 + $0x920] sm:$0xf]  ;;  %v8712_v0 = vld [vmem:[%s13069_s1 + $0x92c] sm:$0xf0] }
 0x103   : >> { %v1191_v2 = vadd.f32 %v1190_v6, %v1178_v59  ;;  %v6702_v24 = vor.u32 %v8659_v10, %v6699_v51  ;;  %v6683_v6 = vld [vmem:[%s13069_s1 + $0x768] sm:$0xf0]  ;;  %v8653_v59 = vld [vmem:[%s13069_s1 + $0x744] sm:$0xf0]  ;;  %v8627_v28 = vld [vmem:[%s13069_s1 + $0x67c] sm:$0xf] }
 0x104   : >> { %2463 = vmatpush.bf16.msrb.mxu2 %v6782_v16  ;;  %v8665_v16 = vld [vmem:[%s13069_s1 + $0x7a4] sm:$0xf0]  ;;  %v6686_v41 = vor.u32 %v8655_v14, %v6683_v6  ;;  %v8706_v51 = vld [vmem:[%s13069_s1 + $0x904] sm:$0xf]  ;;  %v6954_v12 = vld [vmem:[%s13069_s1 + $0x910] sm:$0xf0] }
 0x105   : >> { %2341 = vmatmul.bf16.vlgmr.msrb.gmra.mxu3 %v10455_v32  ;;  %2391 = vmatpush.bf16.msra.mxu1 %v6678_v25  ;;  %v10722_v40 = vadd.f32 %v10631_v30, %v1191_v2  ;;  %v6714_v13 = vor.u32 %v8665_v16, %v6713_v5  ;;  %v6553_v30 = vld [vmem:[%s13069_s1 + $0x658] sm:$0xf]  ;;  %v8635_v25 = vld [vmem:[%s13069_s1 + $0x6bc] sm:$0xf]  ;;  %v6571_v2 = vld [vmem:[%s13069_s1 + $0x688] sm:$0xf0]  ;;  %v6973_v5 = vor.u32 %v8710_v38, %v6970_v54 }
 0x106   : >> { %2405 = vmatpush.bf16.msra.mxu3 %v2325_v3  ;;  %2413 = vmatpush.bf16.msra.mxu0 %v6618_v19  ;;  %v6638_v3 = vor.u32 %v8643_v58, %v6635_v22  ;;  %v6554_v27 = vor.u32 %v8625_v1, %v6553_v30  ;;  %v6606_v39 = vor.u32 %v8635_v25, %v6603_v26  ;;  %v6665_v22 = vld [vmem:[%s13069_s1 + $0x738] sm:$0xf]  ;;  %v10822_v16 = vld [vmem:[%s13069_s1 + $0xa40] sm:$0x11]  ;;  %v8708_v30 = vld [vmem:[%s13069_s1 + $0x90c] sm:$0xf0] }
 0x107   : >> { %v6590_v58 = vor.u32 %v8631_v42, %v6587_v43  ;;  %v6574_v10 = vor.u32 %v8627_v28, %v6571_v2  ;;  %v8623_v1 = vld [vmem:[%s13069_s1 + $0x65c] sm:$0xf]  ;;  %v8736_v25 = vld [vmem:[%s13069_s1 + $0x9ec] sm:$0xf0]  ;;  %v8702_v26 = vld [vmem:[%s13069_s1 + $0x8e4] sm:$0xf] }
 0x108   : >> { %2464 = vmatpush.bf16.msrb.mxu2 %v6766_v17  ;;  %v1229_v17 = vpop.f32.mrf.mxu1  ;;  %v1179_v23 = vpop.f32.mrf.mxu3  ;;  %v10880_v42 = vld.sshfl [vmem:[#allocation1] sm:$0xff pattern:$0x73625140]  ;;  %v10882_v43 = vld.sshfl [vmem:[#allocation1 + $0x8] sm:$0xff pattern:$0x73625140] }
 0x109   : >> { %2392 = vmatpush.bf16.msra.mxu1 %v6662_v44  ;;  %v1230_v45 = vadd.f32 %v1229_v17, %v1217_v48  ;;  %v7096_v48 = vld [vmem:[%s13069_s1 + $0xa20] sm:$0xf]  ;;  %v2780_v17 = vunpack.c.l.b16 %v10822_v16  ;;  %v8700_v38 = vld [vmem:[%s13069_s1 + $0x8cc] sm:$0xf0]  ;;  %v8694_v2 = vld [vmem:[%s13069_s1 + $0x8a4] sm:$0xf] }
 0x10a   : >> { %2424 = vmatpush.bf16.msrb.mxu3 %v6778_v33  ;;  %2414 = vmatpush.bf16.msra.mxu0 %v6602_v52  ;;  %v8639_v33 = vld [vmem:[%s13069_s1 + $0x6dc] sm:$0xf]  ;;  %v6681_v52 = vld [vmem:[%s13069_s1 + $0x758] sm:$0xf]  ;;  %v7097_v4 = vor.u32 %v8744_v53, %v7096_v48  ;;  %v7064_v23 = vld [vmem:[%s13069_s1 + $0x9e0] sm:$0xf] }
 0x10b   : >> { %v6622_v19 = vor.u32 %v8639_v33, %v6619_v8  ;;  %v7080_v33 = vld [vmem:[%s13069_s1 + $0xa00] sm:$0xf]  ;;  %v8740_v8 = vld [vmem:[%s13069_s1 + $0xa0c] sm:$0xf0] }
 0x10c   : >> { %2465 = vmatpush.bf16.msrb.mxu2 %v6750_v31  ;;  %2393 = vmatmul.bf16.vlgmr.msra.gmra.mxu1 %v10457_v34  ;;  %v8621_v31 = vld [vmem:[%s13069_s1 + $0x644] sm:$0xf0]  ;;  %v6920_v53 = vld [vmem:[%s13069_s1 + $0x8c0] sm:$0xf] }
 0x10d   : >> { %2450 = vmatpush.bf16.msrb.mxu1 %v6654_v50  ;;  %v6538_v44 = vor.u32 %v8621_v31, %v6537_v29  ;;  %v2331_v50 = vand.u32 %v2254_v37, %v9112_v18  ;;  %v8704_v29 = vld [vmem:[%s13069_s1 + $0x8ec] sm:$0xf0]  ;;  %v8619_v31 = vld [vmem:[%s13069_s1 + $0x63c] sm:$0xf] }
 0x10e   : >> { %2425 = vmatpush.bf16.msrb.mxu3 %v6762_v20  ;;  %2415 = vmatpush.bf16.msra.mxu0 %v6586_v60  ;;  %v6697_v20 = vld [vmem:[%s13069_s1 + $0x778] sm:$0xf] }
 0x10f   : >> { %6785 = vmatmul.msk.bf16.vlgmr.msra.gmra.mxu2 %vm642_vm1, %v10453_v7  ;;  %v6698_v36 = vor.u32 %v8661_v21, %v6697_v20  ;;  %v7081_v21 = vor.u32 %v8740_v8, %v7080_v33  ;;  %v8696_v8 = vld [vmem:[%s13069_s1 + $0x8ac] sm:$0xf0] }
 0x110   : >> { %2466 = vmatpush.bf16.msrb.mxu2 %v6734_v57  ;;  %v10797_v57 = vpop.f32.mrf.mxu2  ;;  %v1231_v60 = vpop.f32.mrf.mxu1 }
 0x111   : >> { %2451 = vmatpush.bf16.msrb.mxu1 %v6638_v3  ;;  %v1242_v35 = vpop.f32.mrf.mxu3 }
 0x112   : >> { %2426 = vmatpush.bf16.msrb.mxu3 %v6746_v55  ;;  %2416 = vmatpush.bf16.msra.mxu0 %v6570_v61  ;;  %v8657_v55 = vld [vmem:[%s13069_s1 + $0x764] sm:$0xf0]  ;;  %v10817_v3 = vadd.f32 %v1242_v35, %v1230_v45  ;;  %v6969_v61 = vor.u32 %v8712_v0, %v6968_v62  ;;  %v1255_v20 = vpop.f32.mrf.mxu0  ;;  %v7032_v35 = vld [vmem:[%s13069_s1 + $0x9a0] sm:$0xf]  ;;  %v6921_v0 = vor.u32 %v8700_v38, %v6920_v53  ;;  %v2568_v38 = vshll.u32 %v10880_v42, 16 }
 0x113   : >> { %v6682_v49 = vor.u32 %v8657_v55, %v6681_v52  ;;  %v1256_v45 = vadd.f32 %v1255_v20, %v10519_v9  ;;  %v6936_v9 = vld [vmem:[%s13069_s1 + $0x8e0] sm:$0xf]  ;;  %v2848_v52 = vpack.c.b16 %v2780_v17, %v2780_v17  ;;  %v10877_v55 = vld.sshfl [vmem:[#allocation1 + $0x10] sm:$0xff pattern:$0x73625140] }
 0x114   : >> { %2467 = vmatpush.bf16.msrb.mxu2 %v6718_v56  ;;  %v6666_v56 = vor.u32 %v8653_v59, %v6665_v22  ;;  %v7098_v22 = vld [vmem:[%s13069_s1 + $0xa30] sm:$0xf0]  ;;  %v6984_v53 = vld [vmem:[%s13069_s1 + $0x940] sm:$0xf] }
 0x115   : >> { %6784 = vmatmul.msk.bf16.vlgmr.msra.gmra.mxu3 %vm642_vm1, %v10453_v7  ;;  %2452 = vmatpush.bf16.msrb.mxu1 %v6622_v19  ;;  %v7114_v19 = vld [vmem:[%s9197_s25 + $0x6] sm:$0x2a]  ;;  %v2920_v54 = vand.u32 %v2848_v52, %v9112_v18  ;;  %v6890_v20 = vld [vmem:[%s13069_s1 + $0x890] sm:$0xf0]  ;;  %v2580_v52 = vshll.u32 %v10877_v55, 16 }
 0x116   : >> { %2427 = vmatpush.bf16.msrb.mxu3 %v6730_v63  ;;  %2417 = vmatpush.bf16.msra.mxu0 %v6554_v27  ;;  %v6670_v63 = vor.u32 %v8651_v46, %v6667_v47  ;;  %v6938_v27 = vld [vmem:[%s13069_s1 + $0x8f0] sm:$0xf0]  ;;  %v7048_v46 = vld [vmem:[%s13069_s1 + $0x9c0] sm:$0xf]  ;;  %v8732_v47 = vld [vmem:[%s13069_s1 + $0x9cc] sm:$0xf0] }
 0x117   : >> { %3160 = vst [vmem:[#allocation1] ss:$4 sm:$0xff] %v7114_v19  ;;  %v7049_v60 = vor.u32 %v8732_v47, %v7048_v46  ;;  %v8730_v46 = vld [vmem:[%s13069_s1 + $0x9c4] sm:$0xf]  ;;  %v7050_v47 = vld [vmem:[%s13069_s1 + $0x9d0] sm:$0xf0] }
 0x118   : >> { %2468 = vmatpush.bf16.msrb.mxu2 %v6702_v24  ;;  %v6957_v24 = vor.u32 %v8706_v51, %v6954_v12  ;;  %v1283_v14 = vpop.f32.mrf.mxu2 }
 0x119   : >> { %2453 = vmatpush.bf16.msrb.mxu1 %v6606_v39  ;;  %v1244_v37 = vpop.f32.mrf.mxu3  ;;  %v6539_v39 = vld [vmem:[%s13069_s1 + $0x648] sm:$0xf0] }
 0x11a   : >> { %2428 = vmatpush.bf16.msrb.mxu3 %v6714_v13  ;;  %2418 = vmatpush.bf16.msra.mxu0 %v6538_v44  ;;  %v6952_v13 = vld [vmem:[%s13069_s1 + $0x900] sm:$0xf]  ;;  %v6941_v44 = vor.u32 %v8702_v26, %v6938_v27  ;;  %v6542_v48 = vor.u32 %v8619_v31, %v6539_v39  ;;  %v1257_v59 = vpop.f32.mrf.mxu0  ;;  %v6874_v37 = vld [vmem:[%s13069_s1 + $0x870] sm:$0xf0] }
 0x11b   : >> { %v6953_v6 = vor.u32 %v8708_v30, %v6952_v13  ;;  %v7016_v30 = vld [vmem:[%s13069_s1 + $0x980] sm:$0xf]  ;;  %v8682_v59 = vld [vmem:[%s13069_s1 + $0x844] sm:$0xf] }
 0x11c   : >> { %2469 = vmatpush.bf16.msrb.mxu2 %v6686_v41  ;;  %v7065_v41 = vor.u32 %v8736_v25, %v7064_v23  ;;  %v8692_v23 = vld [vmem:[%s13069_s1 + $0x88c] sm:$0xf0]  ;;  %v6872_v39 = vld [vmem:[%s13069_s1 + $0x860] sm:$0xf] }
 0x11d   : >> { %2454 = vmatpush.bf16.msrb.mxu1 %v6590_v58  ;;  %2419 = vmatmul.bf16.vlgmr.msra.gmra.mxu0 %v10455_v32  ;;  %v8742_v58 = vld [vmem:[%s13069_s1 + $0xa24] sm:$0xf] }
 0x11e   : >> { %2429 = vmatpush.bf16.msrb.mxu3 %v6698_v36  ;;  %2483 = vmatpush.bf16.msrb.mxu0 %v2331_v50  ;;  %v6558_v36 = vor.u32 %v8623_v1, %v6555_v15  ;;  %v6922_v50 = vld [vmem:[%s13069_s1 + $0x8d0] sm:$0xf0]  ;;  %v7101_v28 = vor.u32 %v8742_v58, %v7098_v22  ;;  %v8724_v1 = vld [vmem:[%s13069_s1 + $0x98c] sm:$0xf0] }
 0x11f   : >> { %v7017_v26 = vor.u32 %v8724_v1, %v7016_v30  ;;  %v8716_v22 = vld [vmem:[%s13069_s1 + $0x94c] sm:$0xf0] }
 0x120   : >> { %2470 = vmatpush.bf16.msrb.mxu2 %v6670_v63  ;;  %v8728_v63 = vld [vmem:[%s13069_s1 + $0x9ac] sm:$0xf0] }
 0x121   : >> { %2455 = vmatpush.bf16.msrb.mxu1 %v6574_v10  ;;  %v7082_v10 = vld [vmem:[%s13069_s1 + $0xa10] sm:$0xf0]  ;;  %v7033_v12 = vor.u32 %v8728_v63, %v7032_v35  ;;  %v7053_v35 = vor.u32 %v8730_v46, %v7050_v47  ;;  %v8713_v63 = vld [vmem:[%s13069_s1 + $0x934] sm:$0xf0]  ;;  %v7088_v46 = vld [vmem:[%s13069_s1 + $0xa08] sm:$0xf] }
 0x122   : >> { %2430 = vmatpush.bf16.msrb.mxu3 %v6682_v49  ;;  %2944 = vmatpush.bf16.msra.mxu0 %v7097_v4  ;;  %v8698_v49 = vld [vmem:[%s13069_s1 + $0x8c4] sm:$0xf]  ;;  %v6906_v4 = vld [vmem:[%s13069_s1 + $0x8b0] sm:$0xf0]  ;;  %v1320_v27 = vpop.f32.mrf.mxu0  ;;  %v8741_v47 = vld [vmem:[%s13069_s1 + $0xa14] sm:$0xf0] }
 0x123   : >> { %2471 = vmatmul.bf16.vlgmr.msrb.gmra.mxu2 %v10457_v34  ;;  %v6925_v62 = vor.u32 %v8698_v49, %v6922_v50  ;;  %v6909_v13 = vor.u32 %v8694_v2, %v6906_v4  ;;  %v6856_v4 = vld [vmem:[%s13069_s1 + $0x840] sm:$0xf] }
 0x124   : >> { %2970 = vmatpush.bf16.msra.mxu2 %v6973_v5  ;;  %v6904_v5 = vld [vmem:[%s13069_s1 + $0x8a0] sm:$0xf]  ;;  %v1268_v33 = vpop.f32.mrf.mxu3 }
 0x125   : >> { %2456 = vmatpush.bf16.msrb.mxu1 %v6558_v36  ;;  %v1269_v51 = vadd.f32 %v1268_v33, %v1256_v45  ;;  %v6905_v17 = vor.u32 %v8696_v8, %v6904_v5  ;;  %v8734_v45 = vld [vmem:[%s13069_s1 + $0x9e4] sm:$0xf]  ;;  %v8720_v36 = vld [vmem:[%s13069_s1 + $0x96c] sm:$0xf0]  ;;  %v2574_v33 = vshll.u32 %v10882_v43, 16  ;;  %v6985_v8 = vor.u32 %v8716_v22, %v6984_v53 }
 0x126   : >> { %2431 = vmatpush.bf16.msrb.mxu3 %v6666_v56  ;;  %2945 = vmatpush.bf16.msra.mxu0 %v7081_v21  ;;  %v1307_v56 = vpop.f32.mrf.mxu2  ;;  %v6888_v21 = vld [vmem:[%s13069_s1 + $0x880] sm:$0xf]  ;;  %v8684_v5 = vld [vmem:[%s13069_s1 + $0x84c] sm:$0xf0]  ;;  %v6928_v22 = vld [vmem:[%s13069_s1 + $0x8c8] sm:$0xf] }
 0x127   : >> { %v10941_v15 = vadd.f32 %v10797_v57, %v1269_v51  ;;  %v1294_v57 = vpop.f32.mrf.mxu1  ;;  %v7034_v51 = vld [vmem:[%s13069_s1 + $0x9b0] sm:$0xf0] }
 0x128   : >> { %2971 = vmatpush.bf16.msra.mxu2 %v6957_v24  ;;  %v7066_v24 = vld [vmem:[%s13069_s1 + $0x9f0] sm:$0xf0]  ;;  %v1295_v25 = vadd.f32 %v1294_v57, %v10526_v11  ;;  %v8686_v11 = vld [vmem:[%s13069_s1 + $0x864] sm:$0xf] }
 0x129   : >> { %2432 = vmatmul.bf16.vlgmr.msrb.gmra.mxu3 %v10457_v34  ;;  %v6937_v34 = vor.u32 %v8704_v29, %v6936_v9  ;;  %2457 = vmatpush.bf16.msrb.mxu1 %v6542_v48  ;;  %v6889_v29 = vor.u32 %v8692_v23, %v6888_v21  ;;  %v7069_v31 = vor.u32 %v8734_v45, %v7066_v24  ;;  %v8709_v21 = vld [vmem:[%s13069_s1 + $0x914] sm:$0xf0]  ;;  %v7104_v45 = vld [vmem:[%s13069_s1 + $0xa28] sm:$0xf] }
 0x12a   : >> { %2931 = vmatpush.bf16.msra.mxu3 %v6969_v61  ;;  %2946 = vmatpush.bf16.msra.mxu0 %v7065_v41  ;;  %v8738_v61 = vld [vmem:[%s13069_s1 + $0xa04] sm:$0xf]  ;;  %v1308_v9 = vadd.f32 %v1307_v56, %v1295_v25  ;;  %v6877_v58 = vor.u32 %v8686_v11, %v6874_v37  ;;  %v8745_v24 = vld [vmem:[%s13069_s1 + $0xa34] sm:$0xf0]  ;;  %v2572_v25 = vshrl.u32 %v10882_v43, 16 }
 0x12b   : >> { %v7085_v19 = vor.u32 %v8738_v61, %v7082_v10  ;;  %v2566_v61 = vshrl.u32 %v10880_v42, 16  ;;  %v2570_v10 = vrot.slane %v2568_v38, 1  ;;  %v6857_v42 = vor.u32 %v8684_v5, %v6856_v4  ;;  %v6944_v37 = vld [vmem:[%s13069_s1 + $0x8e8] sm:$0xf]  ;;  %v6978_v4 = vld [vmem:[%s13069_s1 + $0x938] sm:$0xf0] }
 0x12c   : >> { %2972 = vmatpush.bf16.msra.mxu2 %v6941_v44  ;;  %2458 = vmatmul.bf16.vlgmr.msrb.gmra.mxu1 %v10455_v32  ;;  %v8690_v32 = vld [vmem:[%s13069_s1 + $0x884] sm:$0xf]  ;;  %v8688_v44 = vld [vmem:[%s13069_s1 + $0x86c] sm:$0xf0]  ;;  %v10995_v49 = vadd.f32 %v1320_v27, %v1308_v9  ;;  %v7105_v9 = vor.u32 %v8745_v24, %v7104_v45  ;;  %v7089_v38 = vor.u32 %v8741_v47, %v7088_v46  ;;  %v7042_v45 = vld [vmem:[%s13069_s1 + $0x9b8] sm:$0xf0] }
 0x12d   : >> { %2964 = vmatpush.bf16.msra.mxu1 %v2920_v54  ;;  %6786 = vmatmul.msk.bf16.vlgmr.msrb.gmra.mxu0 %vm642_vm1, %v10453_v7  ;;  %v10967_v7 = vld [vmem:[%s13069_s1 + $0xa48] sm:$0x11]  ;;  %v6893_v14 = vor.u32 %v8690_v32, %v6890_v20  ;;  %v2781_v54 = vunpack.c.h.b16 %v10822_v16  ;;  %v7106_v32 = vld [vmem:[%s13069_s1 + $0xa38] sm:$0xf0]  ;;  %v11054_v27 = vor.u32 %v2570_v10, %v2566_v61 }
 0x12e   : >> { %2932 = vmatpush.bf16.msra.mxu3 %v6953_v6  ;;  %2947 = vmatpush.bf16.msra.mxu0 %v7049_v60  ;;  %v7000_v6 = vld [vmem:[%s13069_s1 + $0x960] sm:$0xf]  ;;  %v1309_v41 = vpop.f32.mrf.mxu2  ;;  %v2782_v48 = vunpack.c.l.b16 %v10967_v7  ;;  %v6858_v60 = vld [vmem:[%s13069_s1 + $0x850] sm:$0xf0]  ;;  %v6976_v16 = vld [vmem:[%s13069_s1 + $0x928] sm:$0xf] }
 0x12f   : >> { %v7001_v50 = vor.u32 %v8720_v36, %v7000_v6  ;;  %v1296_v2 = vpop.f32.mrf.mxu1  ;;  %v6861_v30 = vor.u32 %v8682_v59, %v6858_v60  ;;  %v6977_v1 = vor.u32 %v8713_v63, %v6976_v16  ;;  %v6960_v20 = vld [vmem:[%s13069_s1 + $0x908] sm:$0xf]  ;;  %v8722_v6 = vld [vmem:[%s13069_s1 + $0x984] sm:$0xf]  ;;  %v7018_v36 = vld [vmem:[%s13069_s1 + $0x990] sm:$0xf0] }
 0x130   : >> { %2973 = vmatpush.bf16.msra.mxu2 %v6925_v62  ;;  %v6873_v62 = vor.u32 %v8688_v44, %v6872_v39  ;;  %v2850_v56 = vpack.c.b16 %v2782_v48, %v2782_v48  ;;  %v6961_v43 = vor.u32 %v8709_v21, %v6960_v20  ;;  %v8705_v41 = vld [vmem:[%s13069_s1 + $0x8f4] sm:$0xf0]  ;;  %v7002_v48 = vld [vmem:[%s13069_s1 + $0x970] sm:$0xf0]  ;;  %v8714_v63 = vld [vmem:[%s13069_s1 + $0x944] sm:$0xf] }
 0x131   : >> { %2983 = vmatpush.bf16.msrb.mxu1 %v7101_v28  ;;  %v2582_v28 = vrot.slane %v2580_v52, 1  ;;  %v7021_v52 = vor.u32 %v8722_v6, %v7018_v36  ;;  %v6945_v53 = vor.u32 %v8705_v41, %v6944_v37  ;;  %v8701_v60 = vld [vmem:[%s13069_s1 + $0x8d4] sm:$0xf0]  ;;  %v8711_v2 = vld [vmem:[%s13069_s1 + $0x92c] sm:$0xf] }
 0x132   : >> { %2933 = vmatpush.bf16.msra.mxu3 %v6937_v34  ;;  %2948 = vmatpush.bf16.msra.mxu0 %v7033_v12  ;;  %v1270_v34 = vpop.f32.mrf.mxu3  ;;  %v1322_v12 = vpop.f32.mrf.mxu0  ;;  %v2926_v23 = vand.u32 %v2850_v56, %v9112_v18  ;;  %v6929_v5 = vor.u32 %v8701_v60, %v6928_v22  ;;  %v8707_v20 = vld [vmem:[%s13069_s1 + $0x90c] sm:$0xf]  ;;  %v6962_v21 = vld [vmem:[%s13069_s1 + $0x918] sm:$0xf0]  ;;  %v8725_v22 = vld [vmem:[%s13069_s1 + $0x994] sm:$0xf0] }
 0x133   : >> { %v8718_v34 = vld [vmem:[%s13069_s1 + $0x964] sm:$0xf]  ;;  %v8697_v12 = vld [vmem:[%s13069_s1 + $0x8b4] sm:$0xf0]  ;;  %v6965_v6 = vor.u32 %v8707_v20, %v6962_v21  ;;  %v6946_v37 = vld [vmem:[%s13069_s1 + $0x8f8] sm:$0xf0] }
 0x134   : >> { %2974 = vmatpush.bf16.msra.mxu2 %v6909_v13  ;;  %v2849_v13 = vpack.c.b16 %v2781_v54, %v2781_v54  ;;  %v8735_v54 = vld [vmem:[%s13069_s1 + $0x9ec] sm:$0xf]  ;;  %v7005_v59 = vor.u32 %v8718_v34, %v7002_v48  ;;  %v6880_v34 = vld [vmem:[%s13069_s1 + $0x868] sm:$0xf]  ;;  %v8689_v48 = vld [vmem:[%s13069_s1 + $0x874] sm:$0xf0] }
 0x135   : >> { %2984 = vmatpush.bf16.msrb.mxu1 %v7085_v19  ;;  %v6930_v60 = vld [vmem:[%s13069_s1 + $0x8d8] sm:$0xf0] }
 0x136   : >> { %2934 = vmatpush.bf16.msra.mxu3 %v6921_v0  ;;  %2949 = vmatpush.bf16.msra.mxu0 %v7017_v26  ;;  %v2578_v0 = vshrl.u32 %v10877_v55, 16  ;;  %v8726_v55 = vld [vmem:[%s13069_s1 + $0x9a4] sm:$0xf]  ;;  %v2576_v26 = vrot.slane %v2574_v33, 1  ;;  %v8731_v33 = vld [vmem:[%s13069_s1 + $0x9cc] sm:$0xf] }
 0x137   : >> { %v7037_v57 = vor.u32 %v8726_v55, %v7034_v51  ;;  %v1785_v39 = vpop.f32.mrf.mxu1  ;;  %v6912_v51 = vld [vmem:[%s13069_s1 + $0x8a8] sm:$0xf] }
 0x138   : >> { %2975 = vmatpush.bf16.msra.mxu2 %v6893_v14  ;;  %v11035_v19 = vor.u32 %v2582_v28, %v2578_v0  ;;  %v2923_v14 = vand.u32 %v2849_v13, %v9112_v18  ;;  %v11077_v44 = vor.u32 %v2576_v26, %v2572_v25  ;;  %v6986_v0 = vld [vmem:[%s13069_s1 + $0x950] sm:$0xf0]  ;;  %v6896_v26 = vld [vmem:[%s13069_s1 + $0x888] sm:$0xf] }
 0x139   : >> { %2985 = vmatpush.bf16.msrb.mxu1 %v7069_v31  ;;  %v7090_v31 = vld [vmem:[%s13069_s1 + $0xa18] sm:$0xf0]  ;;  %v6989_v55 = vor.u32 %v8714_v63, %v6986_v0  ;;  %v6864_v0 = vld [vmem:[%s13069_s1 + $0x848] sm:$0xf] }
 0x13a   : >> { %2935 = vmatpush.bf16.msra.mxu3 %v6905_v17  ;;  %2950 = vmatpush.bf16.msra.mxu0 %v7001_v50  ;;  %v8743_v17 = vld [vmem:[%s13069_s1 + $0xa2c] sm:$0xf]  ;;  %v1772_v16 = vpop.f32.mrf.mxu0 }
 0x13b   : >> { %v7109_v11 = vor.u32 %v8743_v17, %v7106_v32  ;;  %v8733_v17 = vld [vmem:[%s13069_s1 + $0x9d4] sm:$0xf0] }
 0x13c   : >> { %2976 = vmatpush.bf16.msra.mxu2 %v6877_v58  ;;  %7110 = vmatmul.msk.bf16.vlgmr.msra.gmra.mxu1 %vm642_vm1, %v11035_v19  ;;  %v7074_v58 = vld [vmem:[%s13069_s1 + $0x9f8] sm:$0xf0] }
 0x13d   : >> { %2986 = vmatpush.bf16.msrb.mxu1 %v7053_v35  ;;  %v8737_v35 = vld [vmem:[%s13069_s1 + $0x9f4] sm:$0xf0]  ;;  %v7077_v28 = vor.u32 %v8735_v54, %v7074_v58  ;;  %v7024_v58 = vld [vmem:[%s13069_s1 + $0x988] sm:$0xf] }
 0x13e   : >> { %2936 = vmatpush.bf16.msra.mxu3 %v6889_v29  ;;  %2951 = vmatpush.bf16.msra.mxu0 %v6985_v8  ;;  %v8739_v29 = vld [vmem:[%s13069_s1 + $0xa0c] sm:$0xf]  ;;  %v7058_v8 = vld [vmem:[%s13069_s1 + $0x9d8] sm:$0xf0]  ;;  %v1798_v61 = vpop.f32.mrf.mxu2  ;;  %v7025_v63 = vor.u32 %v8725_v22, %v7024_v58  ;;  %v7391_v22 = vld [vmem:[%s13069_s1 + $0xbf0] sm:$0xf] }
 0x13f   : >> { %v7093_v50 = vor.u32 %v8739_v29, %v7090_v31  ;;  %v1787_v10 = vpop.f32.mrf.mxu1  ;;  %v7061_v32 = vor.u32 %v8731_v33, %v7058_v8  ;;  %v8703_v31 = vld [vmem:[%s13069_s1 + $0x8ec] sm:$0xf] }
 0x140   : >> { %2977 = vmatpush.bf16.msra.mxu2 %v6861_v30  ;;  %v6981_v30 = vor.u32 %v8711_v2, %v6978_v4  ;;  %v6949_v54 = vor.u32 %v8703_v31, %v6946_v37  ;;  %v8695_v8 = vld [vmem:[%s13069_s1 + $0x8ac] sm:$0xf] }
 0x141   : >> { %2987 = vmatpush.bf16.msrb.mxu1 %v7037_v57  ;;  %2952 = vmatmul.bf16.vlgmr.msra.gmra.mxu0 %v11077_v44  ;;  %v6913_v57 = vor.u32 %v8697_v12, %v6912_v51  ;;  %v6994_v51 = vld [vmem:[%s13069_s1 + $0x958] sm:$0xf0]  ;;  %v7423_v12 = vld [vmem:[%s13069_s1 + $0xc30] sm:$0xf] }
 0x142   : >> { %2937 = vmatpush.bf16.msra.mxu3 %v6873_v62  ;;  %3009 = vmatpush.bf16.msrb.mxu0 %v6977_v1  ;;  %v7072_v62 = vld [vmem:[%s13069_s1 + $0x9e8] sm:$0xf]  ;;  %v1774_v36 = vpop.f32.mrf.mxu0 }
 0x143   : >> { %2978 = vmatmul.bf16.vlgmr.msra.gmra.mxu2 %v11054_v27  ;;  %v7073_v56 = vor.u32 %v8737_v35, %v7072_v62  ;;  %v7056_v1 = vld [vmem:[%s13069_s1 + $0x9c8] sm:$0xf]  ;;  %v6881_v62 = vor.u32 %v8689_v48, %v6880_v34  ;;  %v8719_v35 = vld [vmem:[%s13069_s1 + $0x96c] sm:$0xf]  ;;  %v6898_v36 = vld [vmem:[%s13069_s1 + $0x898] sm:$0xf0] }
 0x144   : >> { %3042 = vmatpush.bf16.msrb.mxu2 %v2926_v23  ;;  %v1759_v13 = vpop.f32.mrf.mxu3  ;;  %v8727_v23 = vld [vmem:[%s13069_s1 + $0x9ac] sm:$0xf]  ;;  %v7057_v25 = vor.u32 %v8733_v17, %v7056_v1  ;;  %v8808_v1 = vld [vmem:[%s13069_s1 + $0xc3c] sm:$0xf0]  ;;  %v8774_v17 = vld [vmem:[%s13069_s1 + $0xb34] sm:$0xf] }
 0x145   : >> { %2988 = vmatpush.bf16.msrb.mxu1 %v7021_v52  ;;  %v7045_v29 = vor.u32 %v8727_v23, %v7042_v45  ;;  %v8723_v52 = vld [vmem:[%s13069_s1 + $0x98c] sm:$0xf]  ;;  %v6992_v23 = vld [vmem:[%s13069_s1 + $0x948] sm:$0xf]  ;;  %v8717_v45 = vld [vmem:[%s13069_s1 + $0x954] sm:$0xf0] }
 0x146   : >> { %2938 = vmatpush.bf16.msra.mxu3 %v6857_v42  ;;  %3010 = vmatpush.bf16.msrb.mxu0 %v6961_v43  ;;  %v1773_v42 = vadd.f32 %v1772_v16, %v1759_v13  ;;  %v8729_v43 = vld [vmem:[%s13069_s1 + $0x9b4] sm:$0xf0]  ;;  %v1800_v41 = vpop.f32.mrf.mxu2  ;;  %v7010_v16 = vld [vmem:[%s13069_s1 + $0x978] sm:$0xf0]  ;;  %v6993_v37 = vor.u32 %v8717_v45, %v6992_v23  ;;  %v8772_v34 = vld [vmem:[%s13069_s1 + $0xb1c] sm:$0xf0] }
 0x147   : >> { %v1811_v46 = vpop.f32.mrf.mxu1  ;;  %v7013_v33 = vor.u32 %v8719_v35, %v7010_v16  ;;  %v8687_v48 = vld [vmem:[%s13069_s1 + $0x86c] sm:$0xf] }
 0x148   : >> { %3061 = vmatpush.bf16.msra.mxu2 %v7109_v11  ;;  %v1786_v24 = vadd.f32 %v1785_v39, %v1773_v42  ;;  %v7040_v11 = vld [vmem:[%s13069_s1 + $0x9a8] sm:$0xf]  ;;  %v7297_v42 = vld [vmem:[%s13069_s1 + $0xb40] sm:$0xf0] }
 0x149   : >> { %2939 = vmatmul.bf16.vlgmr.msra.gmra.mxu3 %v11054_v27  ;;  %2989 = vmatpush.bf16.msrb.mxu1 %v7005_v59  ;;  %v7041_v47 = vor.u32 %v8729_v43, %v7040_v11  ;;  %v8699_v59 = vld [vmem:[%s13069_s1 + $0x8cc] sm:$0xf]  ;;  %v7424_v11 = vor.u32 %v8808_v1, %v7423_v12  ;;  %v7300_v43 = vor.u32 %v8774_v17, %v7297_v42  ;;  %v8796_v12 = vld [vmem:[%s13069_s1 + $0xbdc] sm:$0xf0]  ;;  %v7249_v1 = vld [vmem:[%s13069_s1 + $0xae0] sm:$0xf0] }
 0x14a   : >> { %3003 = vmatpush.bf16.msrb.mxu3 %v2923_v14  ;;  %3011 = vmatpush.bf16.msrb.mxu0 %v6945_v53  ;;  %v8693_v14 = vld [vmem:[%s13069_s1 + $0x894] sm:$0xf0]  ;;  %v1812_v53 = vadd.f32 %v1811_v46, %v1798_v61  ;;  %v6933_v4 = vor.u32 %v8699_v59, %v6930_v60  ;;  %v6914_v61 = vld [vmem:[%s13069_s1 + $0x8b8] sm:$0xf0]  ;;  %v7281_v46 = vld [vmem:[%s13069_s1 + $0xb20] sm:$0xf0] }
 0x14b   : >> { %v6897_v39 = vor.u32 %v8693_v14, %v6896_v26  ;;  %v8776_v14 = vld [vmem:[%s13069_s1 + $0xb3c] sm:$0xf0]  ;;  %v8766_v60 = vld [vmem:[%s13069_s1 + $0xaf4] sm:$0xf]  ;;  %v7247_v17 = vld [vmem:[%s13069_s1 + $0xad0] sm:$0xf] }
 0x14c   : >> { %3062 = vmatpush.bf16.msra.mxu2 %v7093_v50  ;;  %v2783_v50 = vunpack.c.h.b16 %v10967_v7  ;;  %v8800_v59 = vld [vmem:[%s13069_s1 + $0xbfc] sm:$0xf0] }
 0x14d   : >> { %2990 = vmatpush.bf16.msrb.mxu1 %v6989_v55  ;;  %v8715_v55 = vld [vmem:[%s13069_s1 + $0x94c] sm:$0xf]  ;;  %v8764_v42 = vld [vmem:[%s13069_s1 + $0xadc] sm:$0xf0] }
 0x14e   : >> { %3022 = vmatpush.bf16.msra.mxu3 %v7105_v9  ;;  %3012 = vmatpush.bf16.msrb.mxu0 %v6929_v5  ;;  %v11167_v9 = vadd.f32 %v1786_v24, %v10722_v40  ;;  %v7026_v40 = vld [vmem:[%s13069_s1 + $0x998] sm:$0xf0]  ;;  %v2851_v2 = vpack.c.b16 %v2783_v50, %v2783_v50  ;;  %v7008_v5 = vld [vmem:[%s13069_s1 + $0x968] sm:$0xf]  ;;  %v7295_v24 = vld [vmem:[%s13069_s1 + $0xb30] sm:$0xf]  ;;  %v6997_v26 = vor.u32 %v8715_v55, %v6994_v51 }
 0x14f   : >> { %v7029_v7 = vor.u32 %v8723_v52, %v7026_v40  ;;  %v1813_v20 = vpop.f32.mrf.mxu1  ;;  %v8804_v52 = vld [vmem:[%s13069_s1 + $0xc1c] sm:$0xf0]  ;;  %v7296_v40 = vor.u32 %v8776_v14, %v7295_v24  ;;  %v6882_v50 = vld [vmem:[%s13069_s1 + $0x878] sm:$0xf0]  ;;  %v7375_v51 = vld [vmem:[%s13069_s1 + $0xbd0] sm:$0xf]  ;;  %v7248_v14 = vor.u32 %v8764_v42, %v7247_v17 }
 0x150   : >> { %3063 = vmatpush.bf16.msra.mxu2 %v7077_v28  ;;  %2991 = vmatmul.bf16.vlgmr.msrb.gmra.mxu1 %v11077_v44  ;;  %v8685_v28 = vld [vmem:[%s13069_s1 + $0x854] sm:$0xf0]  ;;  %v7376_v45 = vor.u32 %v8796_v12, %v7375_v51  ;;  %v8752_v12 = vld [vmem:[%s13069_s1 + $0xa7c] sm:$0xf0] }
 0x151   : >> { %3048 = vmatpush.bf16.msra.mxu1 %v6981_v30  ;;  %v6865_v10 = vor.u32 %v8685_v28, %v6864_v0  ;;  %v2929_v30 = vand.u32 %v2851_v2, %v9112_v18  ;;  %v6885_v0 = vor.u32 %v8687_v48, %v6882_v50  ;;  %v7263_v28 = vld [vmem:[%s13069_s1 + $0xaf0] sm:$0xf]  ;;  %v8768_v2 = vld [vmem:[%s13069_s1 + $0xafc] sm:$0xf0] }
 0x152   : >> { %3023 = vmatpush.bf16.msra.mxu3 %v7089_v38  ;;  %3013 = vmatpush.bf16.msrb.mxu0 %v6913_v57  ;;  %v1761_v38 = vpop.f32.mrf.mxu3  ;;  %v6917_v57 = vor.u32 %v8695_v8, %v6914_v61  ;;  %v7392_v8 = vor.u32 %v8800_v59, %v7391_v22  ;;  %v11333_v61 = vld.sshfl [vmem:[#allocation1] sm:$0xff pattern:$0x73625140]  ;;  %v7215_v22 = vld [vmem:[%s13069_s1 + $0xa90] sm:$0xf] }
 0x153   : >> { %7112 = vmatmul.msk.bf16.vlgmr.msrb.gmra.mxu2 %vm642_vm1, %v11035_v19  ;;  %v7441_v38 = vld [vmem:[%s9197_s25 + $0xc] sm:$0x15]  ;;  %v8788_v48 = vld [vmem:[%s13069_s1 + $0xb9c] sm:$0xf0]  ;;  %v8798_v59 = vld [vmem:[%s13069_s1 + $0xbf4] sm:$0xf] }
 0x154   : >> { %3064 = vmatpush.bf16.msra.mxu2 %v7061_v32  ;;  %v11248_v32 = vpop.f32.mrf.mxu2 }
 0x155   : >> { %3049 = vmatpush.bf16.msra.mxu1 %v6965_v6  ;;  %v8691_v6 = vld [vmem:[%s13069_s1 + $0x88c] sm:$0xf] }
 0x156   : >> { %3024 = vmatpush.bf16.msra.mxu3 %v7073_v56  ;;  %3014 = vmatpush.bf16.msrb.mxu0 %v6897_v39  ;;  %v8721_v56 = vld [vmem:[%s13069_s1 + $0x974] sm:$0xf0]  ;;  %v7407_v39 = vld [vmem:[%s13069_s1 + $0xc10] sm:$0xf]  ;;  %v6901_v41 = vor.u32 %v8691_v6, %v6898_v36  ;;  %v8758_v36 = vld [vmem:[%s13069_s1 + $0xab4] sm:$0xf] }
 0x157   : >> { %v7009_v13 = vor.u32 %v8721_v56, %v7008_v5  ;;  %v7408_v58 = vor.u32 %v8804_v52, %v7407_v39  ;;  %v6866_v5 = vld [vmem:[%s13069_s1 + $0x858] sm:$0xf0]  ;;  %v8760_v52 = vld [vmem:[%s13069_s1 + $0xabc] sm:$0xf0] }
 0x158   : >> { %3065 = vmatpush.bf16.msra.mxu2 %v7045_v29  ;;  %v11271_v29 = vld [vmem:[%s13069_s1 + $0xc50] sm:$0x11] }
 0x159   : >> { %7111 = vmatmul.msk.bf16.vlgmr.msrb.gmra.mxu3 %vm642_vm1, %v11035_v19  ;;  %3050 = vmatpush.bf16.msra.mxu1 %v6949_v54  ;;  %v11303_v54 = vpop.f32.mrf.mxu0 }
 0x15a   : >> { %3025 = vmatpush.bf16.msra.mxu3 %v7057_v25  ;;  %3015 = vmatpush.bf16.msrb.mxu0 %v6881_v62  ;;  %v1824_v21 = vpop.f32.mrf.mxu3  ;;  %v7265_v62 = vld [vmem:[%s13069_s1 + $0xb00] sm:$0xf0] }
 0x15b   : >> { %v1825_v25 = vadd.f32 %v1824_v21, %v1812_v53  ;;  %v3366_v53 = vunpack.c.l.b16 %v11271_v29  ;;  %v7268_v55 = vor.u32 %v8766_v60, %v7265_v62  ;;  %v8806_v21 = vld [vmem:[%s13069_s1 + $0xc34] sm:$0xf]  ;;  %v7393_v60 = vld [vmem:[%s13069_s1 + $0xc00] sm:$0xf0] }
 0x15c   : >> { %3066 = vmatpush.bf16.msra.mxu2 %v7029_v7  ;;  %v1865_v35 = vpop.f32.mrf.mxu2 }
 0x15d   : >> { %3051 = vmatpush.bf16.msra.mxu1 %v6933_v4  ;;  %v11274_v31 = vadd.f32 %v1825_v25, %v10817_v3  ;;  %v8770_v3 = vld [vmem:[%s13069_s1 + $0xb14] sm:$0xf]  ;;  %v8683_v4 = vld [vmem:[%s13069_s1 + $0x84c] sm:$0xf]  ;;  %v3434_v56 = vpack.c.b16 %v3366_v53, %v3366_v53  ;;  %v7359_v25 = vld [vmem:[%s13069_s1 + $0xbb0] sm:$0xf] }
 0x15e   : >> { %3026 = vmatpush.bf16.msra.mxu3 %v7041_v47  ;;  %3016 = vmatpush.bf16.msrb.mxu0 %v6865_v10  ;;  %v7279_v47 = vld [vmem:[%s13069_s1 + $0xb10] sm:$0xf]  ;;  %v7284_v7 = vor.u32 %v8770_v3, %v7281_v46  ;;  %v11335_v10 = vld.sshfl [vmem:[#allocation1 + $0x8] sm:$0xff pattern:$0x73625140] }
 0x15f   : >> { %v3506_v20 = vand.u32 %v3434_v56, %v9112_v18  ;;  %v7201_v56 = vld [vmem:[%s13069_s1 + $0xa80] sm:$0xf0] }
 0x160   : >> { %3067 = vmatpush.bf16.msra.mxu2 %v7013_v33  ;;  %v11330_v33 = vld.sshfl [vmem:[#allocation1 + $0x10] sm:$0xff pattern:$0x73625140] }
 0x161   : >> { %3052 = vmatpush.bf16.msra.mxu1 %v6917_v57  ;;  %3017 = vmatmul.bf16.vlgmr.msrb.gmra.mxu0 %v11054_v27  ;;  %3750 = vst [vmem:[#allocation1] ss:$4 sm:$0xff] %v7441_v38  ;;  %v7425_v57 = vld [vmem:[%s13069_s1 + $0xc40] sm:$0xf0]  ;;  %v1839_v23 = vpop.f32.mrf.mxu0 }
 0x162   : >> { %3027 = vmatpush.bf16.msra.mxu3 %v7025_v63  ;;  %3081 = vmatpush.bf16.msra.mxu0 %v2929_v30  ;;  %v1826_v16 = vpop.f32.mrf.mxu3  ;;  %v7280_v63 = vor.u32 %v8772_v34, %v7279_v47  ;;  %v8762_v30 = vld [vmem:[%s13069_s1 + $0xad4] sm:$0xf]  ;;  %v7428_v6 = vor.u32 %v8806_v21, %v7425_v57  ;;  %v7343_v34 = vld [vmem:[%s13069_s1 + $0xb90] sm:$0xf]  ;;  %v8780_v21 = vld [vmem:[%s13069_s1 + $0xb5c] sm:$0xf0] }
 0x163   : >> { %v7252_v24 = vor.u32 %v8762_v30, %v7249_v1  ;;  %v7344_v16 = vor.u32 %v8788_v48, %v7343_v34  ;;  %v8746_v57 = vld [vmem:[%s13069_s1 + $0xa54] sm:$0xf]  ;;  %v7433_v34 = vld [vmem:[%s13069_s1 + $0xc48] sm:$0xf0]  ;;  %v7287_v48 = vld [vmem:[%s13069_s1 + $0xb18] sm:$0xf] }
 0x164   : >> { %3068 = vmatpush.bf16.msra.mxu2 %v6997_v26  ;;  %v8792_v26 = vld [vmem:[%s13069_s1 + $0xbbc] sm:$0xf0] }
 0x165   : >> { %3053 = vmatpush.bf16.msra.mxu1 %v6901_v41  ;;  %v7409_v41 = vld [vmem:[%s13069_s1 + $0xc20] sm:$0xf0]  ;;  %v7360_v46 = vor.u32 %v8792_v26, %v7359_v25  ;;  %v1876_v53 = vpop.f32.mrf.mxu1  ;;  %v7303_v25 = vld [vmem:[%s13069_s1 + $0xb38] sm:$0xf]  ;;  %v8777_v26 = vld [vmem:[%s13069_s1 + $0xb44] sm:$0xf0] }
 0x166   : >> { %3028 = vmatpush.bf16.msra.mxu3 %v7009_v13  ;;  %3530 = vmatpush.bf16.msrb.mxu0 %v7424_v11  ;;  %v6869_v13 = vor.u32 %v8683_v4, %v6866_v5  ;;  %v7233_v11 = vld [vmem:[%s13069_s1 + $0xac0] sm:$0xf0]  ;;  %v7396_v4 = vor.u32 %v8798_v59, %v7393_v60  ;;  %v8750_v5 = vld [vmem:[%s13069_s1 + $0xa74] sm:$0xf]  ;;  %v8803_v59 = vld [vmem:[%s13069_s1 + $0xc1c] sm:$0xf] }
 0x167   : >> { %3069 = vmatmul.bf16.vlgmr.msra.gmra.mxu2 %v11077_v44  ;;  %v7236_v47 = vor.u32 %v8758_v36, %v7233_v11  ;;  %v7204_v42 = vor.u32 %v8750_v5, %v7201_v56  ;;  %v8782_v5 = vld [vmem:[%s13069_s1 + $0xb74] sm:$0xf] }
 0x168   : >> { %3556 = vmatpush.bf16.msrb.mxu2 %v7300_v43  ;;  %v1889_v43 = vpop.f32.mrf.mxu2 }
 0x169   : >> { %3054 = vmatpush.bf16.msra.mxu1 %v6885_v0  ;;  %v1902_v35 = vpop.f32.mrf.mxu0 }
 0x16a   : >> { %3029 = vmatpush.bf16.msra.mxu3 %v6993_v37  ;;  %3531 = vmatpush.bf16.msrb.mxu0 %v7408_v58  ;;  %v7231_v37 = vld [vmem:[%s13069_s1 + $0xab0] sm:$0xf]  ;;  %v1850_v39 = vpop.f32.mrf.mxu3  ;;  %v7217_v58 = vld [vmem:[%s13069_s1 + $0xaa0] sm:$0xf0] }
 0x16b   : >> { %v1851_v3 = vadd.f32 %v1850_v39, %v11303_v54  ;;  %v7232_v38 = vor.u32 %v8760_v52, %v7231_v37  ;;  %v7361_v37 = vld [vmem:[%s13069_s1 + $0xbc0] sm:$0xf0] }
 0x16c   : >> { %3557 = vmatpush.bf16.msrb.mxu2 %v7284_v7  ;;  %v8756_v7 = vld [vmem:[%s13069_s1 + $0xa9c] sm:$0xf0] }
 0x16d   : >> { %3030 = vmatmul.bf16.vlgmr.msra.gmra.mxu3 %v11077_v44  ;;  %v7264_v44 = vor.u32 %v8768_v2, %v7263_v28  ;;  %3055 = vmatpush.bf16.msra.mxu1 %v6869_v13  ;;  %v1864_v50 = vadd.f32 %v11248_v32, %v1851_v3  ;;  %v1890_v32 = vadd.f32 %v1889_v43, %v1876_v53  ;;  %v7327_v28 = vld [vmem:[%s13069_s1 + $0xb70] sm:$0xf]  ;;  %v7377_v13 = vld [vmem:[%s13069_s1 + $0xbe0] sm:$0xf0]  ;;  %v1878_v23 = vpop.f32.mrf.mxu1  ;;  %v8790_v43 = vld [vmem:[%s13069_s1 + $0xbb4] sm:$0xf] }
 0x16e   : >> { %3517 = vmatpush.bf16.msrb.mxu3 %v7296_v40  ;;  %3532 = vmatpush.bf16.msrb.mxu0 %v7392_v8  ;;  %v8802_v40 = vld [vmem:[%s13069_s1 + $0xc14] sm:$0xf]  ;;  %v7216_v2 = vor.u32 %v8756_v7, %v7215_v22  ;;  %v7199_v8 = vld [vmem:[%s13069_s1 + $0xa70] sm:$0xf]  ;;  %v11483_v3 = vrot.slane %v11330_v33, 1 }
 0x16f   : >> { %v7412_v54 = vor.u32 %v8802_v40, %v7409_v41  ;;  %v11416_v62 = vadd.f32 %v1864_v50, %v10941_v15  ;;  %v8784_v15 = vld [vmem:[%s13069_s1 + $0xb7c] sm:$0xf0]  ;;  %v7304_v41 = vor.u32 %v8777_v26, %v7303_v25  ;;  %v7364_v50 = vor.u32 %v8790_v43, %v7361_v37  ;;  %v8773_v33 = vld [vmem:[%s13069_s1 + $0xb24] sm:$0xf0]  ;;  %v8786_v22 = vld [vmem:[%s13069_s1 + $0xb94] sm:$0xf] }
 0x170   : >> { %3558 = vmatpush.bf16.msrb.mxu2 %v7268_v55  ;;  %3056 = vmatmul.bf16.vlgmr.msra.gmra.mxu1 %v11054_v27  ;;  %v8754_v27 = vld [vmem:[%s13069_s1 + $0xa94] sm:$0xf]  ;;  %v1891_v55 = vpop.f32.mrf.mxu2  ;;  %v7328_v17 = vor.u32 %v8784_v15, %v7327_v28  ;;  %v11529_v15 = vrot.slane %v11335_v10, 1  ;;  %v7329_v10 = vld [vmem:[%s13069_s1 + $0xb80] sm:$0xf0] }
 0x171   : >> { %3550 = vmatpush.bf16.msrb.mxu1 %v3506_v20  ;;  %7113 = vmatmul.msk.bf16.vlgmr.msra.gmra.mxu0 %vm642_vm1, %v11035_v19  ;;  %v11421_v19 = vld [vmem:[%s13069_s1 + $0xc58] sm:$0x11]  ;;  %v7220_v0 = vor.u32 %v8754_v27, %v7217_v58  ;;  %v7311_v20 = vld [vmem:[%s13069_s1 + $0xb50] sm:$0xf]  ;;  %v1904_v39 = vpop.f32.mrf.mxu0  ;;  %v11505_v27 = vrot.slane %v11333_v61, 1  ;;  %v7288_v61 = vor.u32 %v8773_v33, %v7287_v48 }
 0x172   : >> { %3518 = vmatpush.bf16.msrb.mxu3 %v7280_v63  ;;  %3533 = vmatpush.bf16.msrb.mxu0 %v7376_v45  ;;  %v1903_v63 = vadd.f32 %v1902_v35, %v1890_v32  ;;  %v1852_v30 = vpop.f32.mrf.mxu3  ;;  %v3368_v1 = vunpack.c.l.b16 %v11421_v19  ;;  %v7200_v45 = vor.u32 %v8752_v12, %v7199_v8  ;;  %v7312_v11 = vor.u32 %v8780_v21, %v7311_v20  ;;  %v7345_v32 = vld [vmem:[%s13069_s1 + $0xba0] sm:$0xf0]  ;;  %v7417_v35 = vld [vmem:[%s13069_s1 + $0xc28] sm:$0xf0]  ;;  %v8799_v12 = vld [vmem:[%s13069_s1 + $0xbfc] sm:$0xf] }
 0x173   : >> { %v7348_v28 = vor.u32 %v8786_v22, %v7345_v32  ;;  %v7420_v56 = vor.u32 %v8803_v59, %v7417_v35  ;;  %v7332_v30 = vor.u32 %v8782_v5, %v7329_v10  ;;  %v8778_v20 = vld [vmem:[%s13069_s1 + $0xb54] sm:$0xf]  ;;  %v7313_v21 = vld [vmem:[%s13069_s1 + $0xb60] sm:$0xf0]  ;;  %v8775_v23 = vld [vmem:[%s13069_s1 + $0xb3c] sm:$0xf] }
 0x174   : >> { %3559 = vmatpush.bf16.msrb.mxu2 %v7252_v24  ;;  %v11439_v51 = vadd.f32 %v1903_v63, %v10995_v49  ;;  %v3367_v49 = vunpack.c.h.b16 %v11271_v29  ;;  %v7185_v29 = vld [vmem:[%s13069_s1 + $0xa60] sm:$0xf0]  ;;  %v3436_v36 = vpack.c.b16 %v3368_v1, %v3368_v1  ;;  %v8769_v63 = vld [vmem:[%s13069_s1 + $0xb04] sm:$0xf0]  ;;  %v8795_v25 = vld [vmem:[%s13069_s1 + $0xbdc] sm:$0xf] }
 0x175   : >> { %3569 = vmatpush.bf16.msra.mxu1 %v7428_v6  ;;  %v8748_v6 = vld [vmem:[%s13069_s1 + $0xa5c] sm:$0xf0]  ;;  %v7188_v40 = vor.u32 %v8746_v57, %v7185_v29  ;;  %v8765_v1 = vld [vmem:[%s13069_s1 + $0xae4] sm:$0xf0]  ;;  %v7385_v26 = vld [vmem:[%s13069_s1 + $0xbe8] sm:$0xf0] }
 0x176   : >> { %3519 = vmatpush.bf16.msrb.mxu3 %v7264_v44  ;;  %3534 = vmatpush.bf16.msrb.mxu0 %v7360_v46  ;;  %v8794_v44 = vld [vmem:[%s13069_s1 + $0xbd4] sm:$0xf]  ;;  %v3435_v52 = vpack.c.b16 %v3367_v49, %v3367_v49  ;;  %v3512_v53 = vand.u32 %v3436_v36, %v9112_v18  ;;  %v8801_v49 = vld [vmem:[%s13069_s1 + $0xc04] sm:$0xf0]  ;;  %v7316_v36 = vor.u32 %v8778_v20, %v7313_v21  ;;  %v8767_v35 = vld [vmem:[%s13069_s1 + $0xafc] sm:$0xf] }
 0x177   : >> { %v7380_v24 = vor.u32 %v8794_v44, %v7377_v13  ;;  %v7401_v44 = vld [vmem:[%s13069_s1 + $0xc08] sm:$0xf0]  ;;  %v7255_v13 = vld [vmem:[%s13069_s1 + $0xad8] sm:$0xf]  ;;  %v8761_v43 = vld [vmem:[%s13069_s1 + $0xac4] sm:$0xf0] }
 0x178   : >> { %3560 = vmatpush.bf16.msrb.mxu2 %v7236_v47  ;;  %v8807_v47 = vld [vmem:[%s13069_s1 + $0xc3c] sm:$0xf]  ;;  %v3509_v58 = vand.u32 %v3435_v52, %v9112_v18  ;;  %v7404_v57 = vor.u32 %v8799_v12, %v7401_v44  ;;  %v7383_v52 = vld [vmem:[%s13069_s1 + $0xbd8] sm:$0xf]  ;;  %v8793_v59 = vld [vmem:[%s13069_s1 + $0xbc4] sm:$0xf0] }
 0x179   : >> { %3570 = vmatpush.bf16.msra.mxu1 %v7412_v54  ;;  %v8809_v54 = vld [vmem:[%s13069_s1 + $0xc44] sm:$0xf0]  ;;  %v7436_v7 = vor.u32 %v8807_v47, %v7433_v34  ;;  %v8771_v47 = vld [vmem:[%s13069_s1 + $0xb1c] sm:$0xf]  ;;  %v7289_v34 = vld [vmem:[%s13069_s1 + $0xb28] sm:$0xf0] }
 0x17a   : >> { %3520 = vmatpush.bf16.msrb.mxu3 %v7248_v14  ;;  %3535 = vmatpush.bf16.msrb.mxu0 %v7344_v16  ;;  %v7183_v14 = vld [vmem:[%s13069_s1 + $0xa50] sm:$0xf]  ;;  %v7271_v16 = vld [vmem:[%s13069_s1 + $0xaf8] sm:$0xf]  ;;  %v7292_v22 = vor.u32 %v8771_v47, %v7289_v34  ;;  %v8753_v10 = vld [vmem:[%s13069_s1 + $0xa84] sm:$0xf0] }
 0x17b   : >> { %v7184_v46 = vor.u32 %v8748_v6, %v7183_v14  ;;  %v7272_v8 = vor.u32 %v8769_v63, %v7271_v16  ;;  %v7273_v16 = vld [vmem:[%s13069_s1 + $0xb08] sm:$0xf0]  ;;  %v7207_v5 = vld [vmem:[%s13069_s1 + $0xa78] sm:$0xf] }
 0x17c   : >> { %3561 = vmatpush.bf16.msrb.mxu2 %v7220_v0  ;;  %v2368_v0 = vpop.f32.mrf.mxu1  ;;  %v7276_v12 = vor.u32 %v8767_v35, %v7273_v16  ;;  %v7351_v44 = vld [vmem:[%s13069_s1 + $0xb98] sm:$0xf] }
 0x17d   : >> { %3571 = vmatpush.bf16.msra.mxu1 %v7396_v4  ;;  %v8805_v4 = vld [vmem:[%s13069_s1 + $0xc24] sm:$0xf0]  ;;  %v7191_v21 = vld [vmem:[%s13069_s1 + $0xa58] sm:$0xf] }
 0x17e   : >> { %3521 = vmatpush.bf16.msrb.mxu3 %v7232_v38  ;;  %3536 = vmatpush.bf16.msrb.mxu0 %v7328_v17  ;;  %v7431_v38 = vld [vmem:[%s13069_s1 + $0xc38] sm:$0xf] }
 0x17f   : >> { %v7432_v60 = vor.u32 %v8809_v54, %v7431_v38  ;;  %v7399_v17 = vld [vmem:[%s13069_s1 + $0xbf8] sm:$0xf] }
 0x180   : >> { %3562 = vmatpush.bf16.msrb.mxu2 %v7204_v42  ;;  %7437 = vmatmul.msk.bf16.vlgmr.msrb.gmra.mxu1 %vm642_vm1, %v11483_v3  ;;  %v2355_v42 = vpop.f32.mrf.mxu0  ;;  %v7400_v29 = vor.u32 %v8801_v49, %v7399_v17  ;;  %v7223_v54 = vld [vmem:[%s13069_s1 + $0xa98] sm:$0xf]  ;;  %v7208_v17 = vor.u32 %v8753_v10, %v7207_v5  ;;  %v8783_v49 = vld [vmem:[%s13069_s1 + $0xb7c] sm:$0xf]  ;;  %v8836_v5 = vld [vmem:[%s13069_s1 + $0xd2c] sm:$0xf0] }
 0x181   : >> { %3572 = vmatpush.bf16.msra.mxu1 %v7380_v24  ;;  %v7256_v24 = vor.u32 %v8765_v1, %v7255_v13  ;;  %v8789_v13 = vld [vmem:[%s13069_s1 + $0xba4] sm:$0xf0]  ;;  %v7257_v1 = vld [vmem:[%s13069_s1 + $0xae8] sm:$0xf0]  ;;  %v8751_v10 = vld [vmem:[%s13069_s1 + $0xa7c] sm:$0xf] }
 0x182   : >> { %3522 = vmatpush.bf16.msrb.mxu3 %v7216_v2  ;;  %3537 = vmatpush.bf16.msrb.mxu0 %v7312_v11  ;;  %v7415_v2 = vld [vmem:[%s13069_s1 + $0xc18] sm:$0xf]  ;;  %v2381_v14 = vpop.f32.mrf.mxu2  ;;  %v7352_v20 = vor.u32 %v8789_v13, %v7351_v44  ;;  %v7718_v13 = vld [vmem:[%s13069_s1 + $0xe00] sm:$0xf] }
 0x183   : >> { %v7416_v55 = vor.u32 %v8805_v4, %v7415_v2  ;;  %v7239_v11 = vld [vmem:[%s13069_s1 + $0xab8] sm:$0xf] }
 0x184   : >> { %3563 = vmatpush.bf16.msrb.mxu2 %v7188_v40  ;;  %v2370_v6 = vpop.f32.mrf.mxu1  ;;  %v8797_v40 = vld [vmem:[%s13069_s1 + $0xbe4] sm:$0xf0]  ;;  %v7240_v48 = vor.u32 %v8761_v43, %v7239_v11  ;;  %v7321_v11 = vld [vmem:[%s13069_s1 + $0xb68] sm:$0xf0]  ;;  %v7750_v43 = vld [vmem:[%s13069_s1 + $0xe40] sm:$0xf] }
 0x185   : >> { %3573 = vmatpush.bf16.msra.mxu1 %v7364_v50  ;;  %3538 = vmatmul.bf16.vlgmr.msrb.gmra.mxu0 %v11529_v15  ;;  %v8791_v50 = vld [vmem:[%s13069_s1 + $0xbbc] sm:$0xf]  ;;  %v7384_v38 = vor.u32 %v8797_v40, %v7383_v52  ;;  %v8872_v52 = vld [vmem:[%s13069_s1 + $0xe4c] sm:$0xf0]  ;;  %v8838_v40 = vld [vmem:[%s13069_s1 + $0xd44] sm:$0xf] }
 0x186   : >> { %3523 = vmatpush.bf16.msrb.mxu3 %v7200_v45  ;;  %3595 = vmatpush.bf16.msra.mxu0 %v7304_v41  ;;  %v7305_v45 = vld [vmem:[%s13069_s1 + $0xb48] sm:$0xf0] }
 0x187   : >> { %3564 = vmatmul.bf16.vlgmr.msrb.gmra.mxu2 %v11505_v27  ;;  %v7308_v39 = vor.u32 %v8775_v23, %v7305_v45 }
 0x188   : >> { %3628 = vmatpush.bf16.msra.mxu2 %v3512_v53  ;;  %v2342_v37 = vpop.f32.mrf.mxu3  ;;  %v7369_v53 = vld [vmem:[%s13069_s1 + $0xbc8] sm:$0xf0]  ;;  %v2357_v32 = vpop.f32.mrf.mxu0 }
 0x189   : >> { %3574 = vmatpush.bf16.msra.mxu1 %v7348_v28  ;;  %v2356_v41 = vadd.f32 %v2355_v42, %v2342_v37  ;;  %v7337_v42 = vld [vmem:[%s13069_s1 + $0xb88] sm:$0xf0] }
 0x18a   : >> { %3524 = vmatpush.bf16.msrb.mxu3 %v7184_v46  ;;  %3596 = vmatpush.bf16.msra.mxu0 %v7288_v61  ;;  %v7388_v46 = vor.u32 %v8795_v25, %v7385_v26  ;;  %v2383_v28 = vpop.f32.mrf.mxu2  ;;  %v7340_v25 = vor.u32 %v8783_v49, %v7337_v42  ;;  %v8759_v26 = vld [vmem:[%s13069_s1 + $0xabc] sm:$0xf]  ;;  %v7225_v32 = vld [vmem:[%s13069_s1 + $0xaa8] sm:$0xf0] }
 0x18b   : >> { %v2369_v33 = vadd.f32 %v2368_v0, %v2356_v41  ;;  %v8787_v0 = vld [vmem:[%s13069_s1 + $0xb9c] sm:$0xf]  ;;  %v7624_v41 = vld [vmem:[%s13069_s1 + $0xd50] sm:$0xf0] }
 0x18c   : >> { %3647 = vmatpush.bf16.msrb.mxu2 %v7436_v7  ;;  %v7367_v7 = vld [vmem:[%s13069_s1 + $0xbb8] sm:$0xf]  ;;  %v2394_v2 = vpop.f32.mrf.mxu1 }
 0x18d   : >> { %3525 = vmatmul.bf16.vlgmr.msrb.gmra.mxu3 %v11505_v27  ;;  %3575 = vmatpush.bf16.msra.mxu1 %v7332_v30  ;;  %v11619_v61 = vadd.f32 %v2369_v33, %v11167_v9  ;;  %v7353_v9 = vld [vmem:[%s13069_s1 + $0xba8] sm:$0xf0]  ;;  %v7368_v4 = vor.u32 %v8793_v59, %v7367_v7  ;;  %v8763_v30 = vld [vmem:[%s13069_s1 + $0xadc] sm:$0xf]  ;;  %v7622_v33 = vld [vmem:[%s13069_s1 + $0xd40] sm:$0xf]  ;;  %v7751_v7 = vor.u32 %v8872_v52, %v7750_v43 }
 0x18e   : >> { %3589 = vmatpush.bf16.msra.mxu3 %v3509_v58  ;;  %3597 = vmatpush.bf16.msra.mxu0 %v7272_v8  ;;  %v8757_v58 = vld [vmem:[%s13069_s1 + $0xaa4] sm:$0xf0]  ;;  %v2395_v8 = vadd.f32 %v2394_v2, %v2381_v14  ;;  %v7260_v45 = vor.u32 %v8763_v30, %v7257_v1  ;;  %v7241_v14 = vld [vmem:[%s13069_s1 + $0xac8] sm:$0xf0]  ;;  %v7627_v59 = vor.u32 %v8838_v40, %v7624_v41  ;;  %v8834_v2 = vld [vmem:[%s13069_s1 + $0xd24] sm:$0xf] }
 0x18f   : >> { %v7224_v63 = vor.u32 %v8757_v58, %v7223_v54  ;;  %v8840_v58 = vld [vmem:[%s13069_s1 + $0xd4c] sm:$0xf0]  ;;  %v8830_v30 = vld [vmem:[%s13069_s1 + $0xd04] sm:$0xf] }
 0x190   : >> { %3648 = vmatpush.bf16.msrb.mxu2 %v7420_v56  ;;  %v3369_v56 = vunpack.c.h.b16 %v11421_v19  ;;  %v7356_v19 = vor.u32 %v8787_v0, %v7353_v9  ;;  %v8868_v0 = vld [vmem:[%s13069_s1 + $0xe2c] sm:$0xf0]  ;;  %v7623_v9 = vor.u32 %v8840_v58, %v7622_v33  ;;  %v11803_v40 = vld.sshfl [vmem:[#allocation1] sm:$0xff pattern:$0x73625140] }
 0x191   : >> { %3576 = vmatpush.bf16.msra.mxu1 %v7316_v36  ;;  %v8779_v36 = vld [vmem:[%s13069_s1 + $0xb5c] sm:$0xf]  ;;  %v8828_v43 = vld [vmem:[%s13069_s1 + $0xcec] sm:$0xf0] }
 0x192   : >> { %3608 = vmatpush.bf16.msrb.mxu3 %v7432_v60  ;;  %3598 = vmatpush.bf16.msra.mxu0 %v7256_v24  ;;  %v7372_v60 = vor.u32 %v8791_v50, %v7369_v53  ;;  %v3437_v23 = vpack.c.b16 %v3369_v56, %v3369_v56  ;;  %v7335_v24 = vld [vmem:[%s13069_s1 + $0xb78] sm:$0xf]  ;;  %v8781_v53 = vld [vmem:[%s13069_s1 + $0xb64] sm:$0xf0]  ;;  %v7324_v54 = vor.u32 %v8779_v36, %v7321_v11  ;;  %v7209_v56 = vld [vmem:[%s13069_s1 + $0xa88] sm:$0xf0] }
 0x193   : >> { %v7319_v50 = vld [vmem:[%s13069_s1 + $0xb58] sm:$0xf]  ;;  %v7576_v36 = vld [vmem:[%s13069_s1 + $0xcf0] sm:$0xf0] }
 0x194   : >> { %3649 = vmatpush.bf16.msrb.mxu2 %v7404_v57  ;;  %3577 = vmatmul.bf16.vlgmr.msra.gmra.mxu1 %v11529_v15  ;;  %v8749_v57 = vld [vmem:[%s13069_s1 + $0xa64] sm:$0xf0]  ;;  %v2396_v47 = vpop.f32.mrf.mxu1  ;;  %v7320_v16 = vor.u32 %v8781_v53, %v7319_v50 }
 0x195   : >> { %3634 = vmatpush.bf16.msrb.mxu1 %v7308_v39  ;;  %v7192_v6 = vor.u32 %v8749_v57, %v7191_v21  ;;  %v3515_v39 = vand.u32 %v3437_v23, %v9112_v18  ;;  %v7592_v21 = vld [vmem:[%s13069_s1 + $0xd10] sm:$0xf0]  ;;  %v7590_v57 = vld [vmem:[%s13069_s1 + $0xd00] sm:$0xf]  ;;  %v8832_v23 = vld [vmem:[%s13069_s1 + $0xd0c] sm:$0xf0] }
 0x196   : >> { %3609 = vmatpush.bf16.msrb.mxu3 %v7416_v55  ;;  %3599 = vmatpush.bf16.msra.mxu0 %v7240_v48  ;;  %v2344_v55 = vpop.f32.mrf.mxu3  ;;  %v7244_v48 = vor.u32 %v8759_v26, %v7241_v14  ;;  %v8860_v14 = vld [vmem:[%s13069_s1 + $0xdec] sm:$0xf0]  ;;  %v7595_v11 = vor.u32 %v8830_v30, %v7592_v21  ;;  %v11805_v41 = vld.sshfl [vmem:[#allocation1 + $0x8] sm:$0xff pattern:$0x73625140] }
 0x197   : >> { %7439 = vmatmul.msk.bf16.vlgmr.msra.gmra.mxu2 %vm642_vm1, %v11483_v3  ;;  %v8862_v30 = vld [vmem:[%s13069_s1 + $0xe04] sm:$0xf] }
 0x198   : >> { %3650 = vmatpush.bf16.msrb.mxu2 %v7388_v46  ;;  %v11700_v46 = vpop.f32.mrf.mxu2 }
 0x199   : >> { %3635 = vmatpush.bf16.msrb.mxu1 %v7292_v22  ;;  %v8755_v22 = vld [vmem:[%s13069_s1 + $0xa9c] sm:$0xf] }
 0x19a   : >> { %3610 = vmatpush.bf16.msrb.mxu3 %v7400_v29  ;;  %3600 = vmatpush.bf16.msra.mxu0 %v7224_v63  ;;  %v8785_v29 = vld [vmem:[%s13069_s1 + $0xb84] sm:$0xf0]  ;;  %v7734_v63 = vld [vmem:[%s13069_s1 + $0xe20] sm:$0xf]  ;;  %v7228_v28 = vor.u32 %v8755_v22, %v7225_v32  ;;  %v11754_v55 = vpop.f32.mrf.mxu0  ;;  %v8822_v32 = vld [vmem:[%s13069_s1 + $0xcc4] sm:$0xf] }
 0x19b   : >> { %v7336_v37 = vor.u32 %v8785_v29, %v7335_v24  ;;  %v7193_v24 = vld [vmem:[%s13069_s1 + $0xa68] sm:$0xf0]  ;;  %v7702_v29 = vld [vmem:[%s13069_s1 + $0xde0] sm:$0xf] }
 0x19c   : >> { %3651 = vmatpush.bf16.msrb.mxu2 %v7372_v60  ;;  %v11723_v60 = vld [vmem:[%s13069_s1 + $0xe60] sm:$0x11]  ;;  %v7703_v53 = vor.u32 %v8860_v14, %v7702_v29  ;;  %v7528_v29 = vld [vmem:[%s13069_s1 + $0xc90] sm:$0xf0] }
 0x19d   : >> { %7438 = vmatmul.msk.bf16.vlgmr.msra.gmra.mxu3 %vm642_vm1, %v11483_v3  ;;  %3636 = vmatpush.bf16.msrb.mxu1 %v7276_v12  ;;  %v7735_v12 = vor.u32 %v8868_v0, %v7734_v63  ;;  %v8824_v0 = vld [vmem:[%s13069_s1 + $0xccc] sm:$0xf0] }
 0x19e   : >> { %3611 = vmatpush.bf16.msrb.mxu3 %v7384_v38  ;;  %3601 = vmatpush.bf16.msra.mxu0 %v7208_v17  ;;  %v2407_v34 = vpop.f32.mrf.mxu3  ;;  %v7768_v17 = vld [vmem:[%s9197_s25 + $0xc] sm:$0x3f] }
 0x19f   : >> { %v2408_v38 = vadd.f32 %v2407_v34, %v2395_v8  ;;  %v3950_v8 = vunpack.c.l.b16 %v11723_v60  ;;  %v8870_v34 = vld [vmem:[%s13069_s1 + $0xe44] sm:$0xf] }
 0x1a0   : >> { %3652 = vmatpush.bf16.msrb.mxu2 %v7356_v19  ;;  %v8864_v19 = vld [vmem:[%s13069_s1 + $0xe0c] sm:$0xf0]  ;;  %v2448_v1 = vpop.f32.mrf.mxu2 }
 0x1a1   : >> { %3637 = vmatpush.bf16.msrb.mxu1 %v7260_v45  ;;  %v11726_v35 = vadd.f32 %v2408_v38, %v11274_v31  ;;  %v7608_v31 = vld [vmem:[%s13069_s1 + $0xd30] sm:$0xf0]  ;;  %v8747_v45 = vld [vmem:[%s13069_s1 + $0xa5c] sm:$0xf]  ;;  %v7719_v26 = vor.u32 %v8864_v19, %v7718_v13  ;;  %v7686_v38 = vld [vmem:[%s13069_s1 + $0xdc0] sm:$0xf] }
 0x1a2   : >> { %3612 = vmatpush.bf16.msrb.mxu3 %v7368_v4  ;;  %3602 = vmatpush.bf16.msra.mxu0 %v7192_v6  ;;  %v7606_v4 = vld [vmem:[%s13069_s1 + $0xd20] sm:$0xf]  ;;  %v7611_v44 = vor.u32 %v8834_v2, %v7608_v31  ;;  %v8826_v6 = vld [vmem:[%s13069_s1 + $0xce4] sm:$0xf]  ;;  %v7196_v52 = vor.u32 %v8747_v45, %v7193_v24  ;;  %v2422_v50 = vpop.f32.mrf.mxu0  ;;  %v8820_v19 = vld [vmem:[%s13069_s1 + $0xcac] sm:$0xf0] }
 0x1a3   : >> { %v7607_v42 = vor.u32 %v8836_v5, %v7606_v4  ;;  %v7579_v33 = vor.u32 %v8826_v6, %v7576_v36  ;;  %v7670_v5 = vld [vmem:[%s13069_s1 + $0xda0] sm:$0xf]  ;;  %v7720_v1 = vld [vmem:[%s13069_s1 + $0xe10] sm:$0xf0]  ;;  %v8814_v24 = vld [vmem:[%s13069_s1 + $0xc84] sm:$0xf] }
 0x1a4   : >> { %3653 = vmatpush.bf16.msrb.mxu2 %v7340_v25  ;;  %v4018_v25 = vpack.c.b16 %v3950_v8, %v3950_v8  ;;  %v7542_v13 = vld [vmem:[%s13069_s1 + $0xca0] sm:$0xf]  ;;  %v7723_v45 = vor.u32 %v8862_v30, %v7720_v1  ;;  %v8816_v6 = vld [vmem:[%s13069_s1 + $0xc8c] sm:$0xf0]  ;;  %v8858_v36 = vld [vmem:[%s13069_s1 + $0xde4] sm:$0xf] }
 0x1a5   : >> { %3638 = vmatpush.bf16.msrb.mxu1 %v7244_v48  ;;  %3603 = vmatmul.bf16.vlgmr.msra.gmra.mxu0 %v11505_v27  ;;  %v7752_v48 = vld [vmem:[%s13069_s1 + $0xe50] sm:$0xf0]  ;;  %v8867_v1 = vld [vmem:[%s13069_s1 + $0xe2c] sm:$0xf] }
 0x1a6   : >> { %3613 = vmatpush.bf16.msrb.mxu3 %v7352_v20  ;;  %3667 = vmatpush.bf16.msrb.mxu0 %v3515_v39  ;;  %v2409_v49 = vpop.f32.mrf.mxu3  ;;  %v7212_v20 = vor.u32 %v8751_v10, %v7209_v56  ;;  %v7591_v39 = vor.u32 %v8832_v23, %v7590_v57  ;;  %v4089_v47 = vand.u32 %v4018_v25, %v9112_v18  ;;  %v8852_v10 = vld [vmem:[%s13069_s1 + $0xdac] sm:$0xf0]  ;;  %v7654_v57 = vld [vmem:[%s13069_s1 + $0xd80] sm:$0xf] }
 0x1a7   : >> { %v7755_v22 = vor.u32 %v8870_v34, %v7752_v48  ;;  %v7543_v23 = vor.u32 %v8820_v19, %v7542_v13  ;;  %v7526_v25 = vld [vmem:[%s13069_s1 + $0xc80] sm:$0xf]  ;;  %v8844_v34 = vld [vmem:[%s13069_s1 + $0xd6c] sm:$0xf0]  ;;  %v8810_v48 = vld [vmem:[%s13069_s1 + $0xc64] sm:$0xf] }
 0x1a8   : >> { %3654 = vmatpush.bf16.msrb.mxu2 %v7324_v54  ;;  %v8856_v54 = vld [vmem:[%s13069_s1 + $0xdcc] sm:$0xf0]  ;;  %v7672_v13 = vld [vmem:[%s13069_s1 + $0xdb0] sm:$0xf0] }
 0x1a9   : >> { %3639 = vmatpush.bf16.msrb.mxu1 %v7228_v28  ;;  %v7736_v28 = vld [vmem:[%s13069_s1 + $0xe30] sm:$0xf0]  ;;  %v7687_v31 = vor.u32 %v8856_v54, %v7686_v38  ;;  %v2459_v8 = vpop.f32.mrf.mxu1  ;;  %v7630_v38 = vld [vmem:[%s13069_s1 + $0xd48] sm:$0xf]  ;;  %v8841_v54 = vld [vmem:[%s13069_s1 + $0xd54] sm:$0xf0] }
 0x1aa   : >> { %3614 = vmatpush.bf16.msrb.mxu3 %v7336_v37  ;;  %4113 = vmatpush.bf16.msra.mxu0 %v7751_v7  ;;  %v11801_v37 = vld.sshfl [vmem:[#allocation1 + $0x10] sm:$0xff pattern:$0x73625140]  ;;  %v2485_v49 = vpop.f32.mrf.mxu0 }
 0x1ab   : >> { %3655 = vmatmul.bf16.vlgmr.msrb.gmra.mxu2 %v11529_v15  ;;  %4329 = vst [vmem:[#allocation1] ss:$4 sm:$0xff] %v7768_v17  ;;  %v7560_v7 = vld [vmem:[%s13069_s1 + $0xcd0] sm:$0xf0] }
 0x1ac   : >> { %4139 = vmatpush.bf16.msra.mxu2 %v7627_v59  ;;  %v2472_v59 = vpop.f32.mrf.mxu2  ;;  %v7563_v4 = vor.u32 %v8822_v32, %v7560_v7 }
 0x1ad   : >> { %3640 = vmatpush.bf16.msrb.mxu1 %v7212_v20 }
 0x1ae   : >> { %3615 = vmatpush.bf16.msrb.mxu3 %v7320_v16  ;;  %4114 = vmatpush.bf16.msra.mxu0 %v7735_v12  ;;  %v7558_v16 = vld [vmem:[%s13069_s1 + $0xcc0] sm:$0xf]  ;;  %v2433_v63 = vpop.f32.mrf.mxu3 }
 0x1af   : >> { %v2434_v2 = vadd.f32 %v2433_v63, %v11754_v55  ;;  %v7559_v12 = vor.u32 %v8824_v0, %v7558_v16  ;;  %v7688_v16 = vld [vmem:[%s13069_s1 + $0xdd0] sm:$0xf0] }
 0x1b0   : >> { %4140 = vmatpush.bf16.msra.mxu2 %v7611_v44  ;;  %v7544_v44 = vld [vmem:[%s13069_s1 + $0xcb0] sm:$0xf0] }
 0x1b1   : >> { %3616 = vmatmul.bf16.vlgmr.msrb.gmra.mxu3 %v11529_v15  ;;  %v7574_v15 = vld [vmem:[%s13069_s1 + $0xce0] sm:$0xf]  ;;  %3641 = vmatpush.bf16.msrb.mxu1 %v7196_v52  ;;  %v2447_v56 = vadd.f32 %v11700_v46, %v2434_v2  ;;  %v2473_v46 = vadd.f32 %v2472_v59, %v2459_v8  ;;  %v7531_v52 = vor.u32 %v8814_v24, %v7528_v29  ;;  %v2461_v50 = vpop.f32.mrf.mxu1  ;;  %v8854_v59 = vld [vmem:[%s13069_s1 + $0xdc4] sm:$0xf]  ;;  %v8837_v8 = vld [vmem:[%s13069_s1 + $0xd34] sm:$0xf0] }
 0x1b2   : >> { %4100 = vmatpush.bf16.msra.mxu3 %v7623_v9  ;;  %4115 = vmatpush.bf16.msra.mxu0 %v7719_v26  ;;  %v7575_v58 = vor.u32 %v8828_v43, %v7574_v15  ;;  %v8866_v9 = vld [vmem:[%s13069_s1 + $0xe24] sm:$0xf]  ;;  %v2487_v63 = vpop.f32.mrf.mxu0  ;;  %v7656_v24 = vld [vmem:[%s13069_s1 + $0xd90] sm:$0xf0]  ;;  %v8839_v50 = vld [vmem:[%s13069_s1 + $0xd4c] sm:$0xf] }
 0x1b3   : >> { %v7739_v55 = vor.u32 %v8866_v9, %v7736_v28  ;;  %v11868_v17 = vadd.f32 %v2447_v56, %v11416_v62  ;;  %v2486_v20 = vadd.f32 %v2485_v49, %v2473_v46  ;;  %v8848_v62 = vld [vmem:[%s13069_s1 + $0xd8c] sm:$0xf0]  ;;  %v7631_v28 = vor.u32 %v8841_v54, %v7630_v38  ;;  %v7744_v49 = vld [vmem:[%s13069_s1 + $0xe38] sm:$0xf0]  ;;  %v8859_v38 = vld [vmem:[%s13069_s1 + $0xdec] sm:$0xf] }
 0x1b4   : >> { %4141 = vmatpush.bf16.msra.mxu2 %v7595_v11  ;;  %3642 = vmatmul.bf16.vlgmr.msrb.gmra.mxu1 %v11505_v27  ;;  %v8818_v27 = vld [vmem:[%s13069_s1 + $0xca4] sm:$0xf]  ;;  %v2474_v26 = vpop.f32.mrf.mxu2  ;;  %v7704_v11 = vld [vmem:[%s13069_s1 + $0xdf0] sm:$0xf0]  ;;  %v7747_v29 = vor.u32 %v8867_v1, %v7744_v49  ;;  %v7712_v54 = vld [vmem:[%s13069_s1 + $0xdf8] sm:$0xf0] }
 0x1b5   : >> { %4133 = vmatpush.bf16.msra.mxu1 %v4089_v47  ;;  %7440 = vmatmul.msk.bf16.vlgmr.msrb.gmra.mxu0 %vm642_vm1, %v11483_v3  ;;  %v11873_v3 = vld [vmem:[%s13069_s1 + $0xe68] sm:$0x11]  ;;  %v7547_v21 = vor.u32 %v8818_v27, %v7544_v44  ;;  %v11891_v14 = vadd.f32 %v2486_v20, %v11439_v51  ;;  %v3951_v51 = vunpack.c.h.b16 %v11723_v60  ;;  %v7638_v47 = vld [vmem:[%s13069_s1 + $0xd60] sm:$0xf]  ;;  %v7512_v60 = vld [vmem:[%s13069_s1 + $0xc70] sm:$0xf0] }
 0x1b6   : >> { %4101 = vmatpush.bf16.msra.mxu3 %v7607_v42  ;;  %4116 = vmatpush.bf16.msra.mxu0 %v7703_v53  ;;  %v7671_v42 = vor.u32 %v8852_v10, %v7670_v5  ;;  %v2435_v15 = vpop.f32.mrf.mxu3  ;;  %v3952_v43 = vunpack.c.l.b16 %v11873_v3  ;;  %v7527_v53 = vor.u32 %v8816_v6, %v7526_v25  ;;  %v7639_v7 = vor.u32 %v8844_v34, %v7638_v47  ;;  %v7614_v5 = vld [vmem:[%s13069_s1 + $0xd28] sm:$0xf]  ;;  %v8850_v44 = vld [vmem:[%s13069_s1 + $0xda4] sm:$0xf]  ;;  %v8863_v6 = vld [vmem:[%s13069_s1 + $0xe0c] sm:$0xf] }
 0x1b7   : >> { %v4019_v0 = vpack.c.b16 %v3951_v51, %v3951_v51  ;;  %v7515_v9 = vor.u32 %v8810_v48, %v7512_v60  ;;  %v7691_v10 = vor.u32 %v8854_v59, %v7688_v16  ;;  %v7615_v19 = vor.u32 %v8837_v8, %v7614_v5  ;;  %v8865_v51 = vld [vmem:[%s13069_s1 + $0xe14] sm:$0xf0]  ;;  %v8842_v47 = vld [vmem:[%s13069_s1 + $0xd64] sm:$0xf]  ;;  %v7640_v34 = vld [vmem:[%s13069_s1 + $0xd70] sm:$0xf0] }
 0x1b8   : >> { %4142 = vmatpush.bf16.msra.mxu2 %v7579_v33  ;;  %v7707_v33 = vor.u32 %v8858_v36, %v7704_v11  ;;  %v4020_v32 = vpack.c.b16 %v3952_v43, %v3952_v43  ;;  %v7728_v36 = vld [vmem:[%s13069_s1 + $0xe18] sm:$0xf0]  ;;  %v7582_v11 = vld [vmem:[%s13069_s1 + $0xce8] sm:$0xf]  ;;  %v8829_v43 = vld [vmem:[%s13069_s1 + $0xcf4] sm:$0xf0] }
 0x1b9   : >> { %4152 = vmatpush.bf16.msrb.mxu1 %v7755_v22  ;;  %v8812_v22 = vld [vmem:[%s13069_s1 + $0xc6c] sm:$0xf0]  ;;  %v4092_v27 = vand.u32 %v4019_v0, %v9112_v18  ;;  %v2966_v20 = vpop.f32.mrf.mxu1  ;;  %v7731_v48 = vor.u32 %v8863_v6, %v7728_v36  ;;  %v8825_v59 = vld [vmem:[%s13069_s1 + $0xcd4] sm:$0xf0]  ;;  %v7710_v0 = vld [vmem:[%s13069_s1 + $0xde8] sm:$0xf] }
 0x1ba   : >> { %4102 = vmatpush.bf16.msra.mxu3 %v7591_v39  ;;  %4117 = vmatpush.bf16.msra.mxu0 %v7687_v31  ;;  %v7655_v39 = vor.u32 %v8848_v62, %v7654_v57  ;;  %v8871_v31 = vld [vmem:[%s13069_s1 + $0xe4c] sm:$0xf]  ;;  %v4095_v56 = vand.u32 %v4020_v32, %v9112_v18  ;;  %v8833_v57 = vld [vmem:[%s13069_s1 + $0xd14] sm:$0xf0]  ;;  %v7742_v62 = vld [vmem:[%s13069_s1 + $0xe28] sm:$0xf]  ;;  %v7643_v32 = vor.u32 %v8842_v47, %v7640_v34 }
 0x1bb   : >> { %v8831_v49 = vld [vmem:[%s13069_s1 + $0xd0c] sm:$0xf]  ;;  %v7678_v36 = vld [vmem:[%s13069_s1 + $0xda8] sm:$0xf] }
 0x1bc   : >> { %4143 = vmatpush.bf16.msra.mxu2 %v7563_v4  ;;  %v7760_v4 = vld [vmem:[%s13069_s1 + $0xe58] sm:$0xf0]  ;;  %v7518_v34 = vld [vmem:[%s13069_s1 + $0xc68] sm:$0xf] }
 0x1bd   : >> { %4153 = vmatpush.bf16.msrb.mxu1 %v7739_v55  ;;  %v8873_v55 = vld [vmem:[%s13069_s1 + $0xe54] sm:$0xf0]  ;;  %v7763_v46 = vor.u32 %v8871_v31, %v7760_v4  ;;  %v8835_v31 = vld [vmem:[%s13069_s1 + $0xd2c] sm:$0xf]  ;;  %v7616_v4 = vld [vmem:[%s13069_s1 + $0xd38] sm:$0xf0] }
 0x1be   : >> { %4103 = vmatpush.bf16.msra.mxu3 %v7575_v58  ;;  %4118 = vmatpush.bf16.msra.mxu0 %v7671_v42  ;;  %v7510_v58 = vld [vmem:[%s13069_s1 + $0xc60] sm:$0xf]  ;;  %v7598_v42 = vld [vmem:[%s13069_s1 + $0xd08] sm:$0xf] }
 0x1bf   : >> { %v7511_v2 = vor.u32 %v8812_v22, %v7510_v58  ;;  %v7599_v25 = vor.u32 %v8833_v57, %v7598_v42  ;;  %v7600_v42 = vld [vmem:[%s13069_s1 + $0xd18] sm:$0xf0] }
 0x1c0   : >> { %4144 = vmatpush.bf16.msra.mxu2 %v7547_v21  ;;  %v7675_v21 = vor.u32 %v8850_v44, %v7672_v13  ;;  %v7619_v44 = vor.u32 %v8835_v31, %v7616_v4  ;;  %v7603_v6 = vor.u32 %v8831_v49, %v7600_v42 }
 0x1c1   : >> { %4154 = vmatpush.bf16.msrb.mxu1 %v7723_v45  ;;  %v8846_v45 = vld [vmem:[%s13069_s1 + $0xd84] sm:$0xf]  ;;  %v2968_v22 = vpop.f32.mrf.mxu1 }
 0x1c2   : >> { %4104 = vmatpush.bf16.msra.mxu3 %v7559_v12  ;;  %4119 = vmatpush.bf16.msra.mxu0 %v7655_v39  ;;  %v7758_v12 = vld [vmem:[%s13069_s1 + $0xe48] sm:$0xf]  ;;  %v7659_v15 = vor.u32 %v8846_v45, %v7656_v24  ;;  %v8817_v24 = vld [vmem:[%s13069_s1 + $0xc94] sm:$0xf0] }
 0x1c3   : >> { %v7759_v30 = vor.u32 %v8873_v55, %v7758_v12  ;;  %v7726_v39 = vld [vmem:[%s13069_s1 + $0xe08] sm:$0xf] }
 0x1c4   : >> { %4145 = vmatpush.bf16.msra.mxu2 %v7531_v52  ;;  %7764 = vmatmul.msk.bf16.vlgmr.msra.gmra.mxu1 %vm642_vm1, %v11801_v37  ;;  %v2953_v52 = vpop.f32.mrf.mxu0  ;;  %v7727_v60 = vor.u32 %v8865_v51, %v7726_v39  ;;  %v7550_v55 = vld [vmem:[%s13069_s1 + $0xca8] sm:$0xf]  ;;  %v8847_v51 = vld [vmem:[%s13069_s1 + $0xd8c] sm:$0xf] }
 0x1c5   : >> { %4155 = vmatpush.bf16.msrb.mxu1 %v7707_v33  ;;  %v7583_v33 = vor.u32 %v8829_v43, %v7582_v11  ;;  %v7534_v45 = vld [vmem:[%s13069_s1 + $0xc88] sm:$0xf]  ;;  %v8853_v11 = vld [vmem:[%s13069_s1 + $0xdb4] sm:$0xf0]  ;;  %v7584_v43 = vld [vmem:[%s13069_s1 + $0xcf8] sm:$0xf0] }
 0x1c6   : >> { %4105 = vmatpush.bf16.msra.mxu3 %v7543_v23  ;;  %4120 = vmatpush.bf16.msra.mxu0 %v7639_v7  ;;  %v8869_v23 = vld [vmem:[%s13069_s1 + $0xe34] sm:$0xf0]  ;;  %v2979_v58 = vpop.f32.mrf.mxu2  ;;  %v7566_v7 = vld [vmem:[%s13069_s1 + $0xcc8] sm:$0xf]  ;;  %v7535_v39 = vor.u32 %v8817_v24, %v7534_v45  ;;  %v7679_v47 = vor.u32 %v8853_v11, %v7678_v36  ;;  %v8900_v45 = vld [vmem:[%s13069_s1 + $0xf3c] sm:$0xf0] }
 0x1c7   : >> { %v7743_v26 = vor.u32 %v8869_v23, %v7742_v62  ;;  %v7567_v5 = vor.u32 %v8825_v59, %v7566_v7  ;;  %v7648_v7 = vld [vmem:[%s13069_s1 + $0xd78] sm:$0xf0]  ;;  %v8077_v59 = vld [vmem:[%s13069_s1 + $0x1050] sm:$0xf]  ;;  %v8815_v24 = vld [vmem:[%s13069_s1 + $0xc8c] sm:$0xf] }
 0x1c8   : >> { %4146 = vmatpush.bf16.msra.mxu2 %v7515_v9  ;;  %v8861_v9 = vld [vmem:[%s13069_s1 + $0xdf4] sm:$0xf0]  ;;  %v8045_v11 = vld [vmem:[%s13069_s1 + $0x1010] sm:$0xf] }
 0x1c9   : >> { %4156 = vmatpush.bf16.msrb.mxu1 %v7691_v10  ;;  %4121 = vmatmul.bf16.vlgmr.msra.gmra.mxu0 %v11805_v41  ;;  %v8855_v10 = vld [vmem:[%s13069_s1 + $0xdcc] sm:$0xf]  ;;  %v7711_v12 = vor.u32 %v8861_v9, %v7710_v0  ;;  %v8936_v0 = vld [vmem:[%s13069_s1 + $0x105c] sm:$0xf0]  ;;  %v8902_v9 = vld [vmem:[%s13069_s1 + $0xf54] sm:$0xf] }
 0x1ca   : >> { %4106 = vmatpush.bf16.msra.mxu3 %v7527_v53  ;;  %4178 = vmatpush.bf16.msrb.mxu0 %v7631_v28  ;;  %v7632_v53 = vld [vmem:[%s13069_s1 + $0xd58] sm:$0xf0] }
 0x1cb   : >> { %4147 = vmatmul.bf16.vlgmr.msra.gmra.mxu2 %v11803_v40  ;;  %v7635_v63 = vor.u32 %v8839_v50, %v7632_v53 }
 0x1cc   : >> { %4211 = vmatpush.bf16.msrb.mxu2 %v4095_v56  ;;  %v2940_v16 = vpop.f32.mrf.mxu3  ;;  %v7696_v56 = vld [vmem:[%s13069_s1 + $0xdd8] sm:$0xf0]  ;;  %v2955_v13 = vpop.f32.mrf.mxu0 }
 0x1cd   : >> { %4157 = vmatpush.bf16.msrb.mxu1 %v7675_v21  ;;  %v2954_v28 = vadd.f32 %v2953_v52, %v2940_v16  ;;  %v7699_v1 = vor.u32 %v8855_v10, %v7696_v56  ;;  %v8851_v21 = vld [vmem:[%s13069_s1 + $0xdac] sm:$0xf]  ;;  %v2992_v62 = vpop.f32.mrf.mxu1  ;;  %v7664_v52 = vld [vmem:[%s13069_s1 + $0xd98] sm:$0xf0]  ;;  %v7646_v10 = vld [vmem:[%s13069_s1 + $0xd68] sm:$0xf] }
 0x1ce   : >> { %4107 = vmatpush.bf16.msra.mxu3 %v7511_v2  ;;  %4179 = vmatpush.bf16.msrb.mxu0 %v7615_v19  ;;  %v7715_v2 = vor.u32 %v8859_v38, %v7712_v54  ;;  %v8857_v19 = vld [vmem:[%s13069_s1 + $0xdd4] sm:$0xf0]  ;;  %v2981_v57 = vpop.f32.mrf.mxu2  ;;  %v7667_v38 = vor.u32 %v8847_v51, %v7664_v52  ;;  %v8823_v54 = vld [vmem:[%s13069_s1 + $0xccc] sm:$0xf]  ;;  %v7552_v13 = vld [vmem:[%s13069_s1 + $0xcb8] sm:$0xf0] }
 0x1cf   : >> { %v2967_v8 = vadd.f32 %v2966_v20, %v2954_v28  ;;  %v7951_v28 = vld [vmem:[%s13069_s1 + $0xf60] sm:$0xf0]  ;;  %v8845_v56 = vld [vmem:[%s13069_s1 + $0xd74] sm:$0xf0] }
 0x1d0   : >> { %4230 = vmatpush.bf16.msra.mxu2 %v7763_v46  ;;  %v7694_v46 = vld [vmem:[%s13069_s1 + $0xdc8] sm:$0xf]  ;;  %v7647_v42 = vor.u32 %v8845_v56, %v7646_v10 }
 0x1d1   : >> { %4108 = vmatmul.bf16.vlgmr.msra.gmra.mxu3 %v11803_v40  ;;  %4158 = vmatpush.bf16.msrb.mxu1 %v7659_v15  ;;  %v7695_v23 = vor.u32 %v8857_v19, %v7694_v46  ;;  %v8827_v15 = vld [vmem:[%s13069_s1 + $0xcec] sm:$0xf]  ;;  %v8078_v46 = vor.u32 %v8936_v0, %v8077_v59  ;;  %v7954_v19 = vor.u32 %v8902_v9, %v7951_v28  ;;  %v8924_v59 = vld [vmem:[%s13069_s1 + $0xffc] sm:$0xf0]  ;;  %v7903_v0 = vld [vmem:[%s13069_s1 + $0xf00] sm:$0xf0] }
 0x1d2   : >> { %4172 = vmatpush.bf16.msrb.mxu3 %v4092_v27  ;;  %4180 = vmatpush.bf16.msrb.mxu0 %v7599_v25  ;;  %v8821_v27 = vld [vmem:[%s13069_s1 + $0xcb4] sm:$0xf0]  ;;  %v2993_v25 = vadd.f32 %v2992_v62, %v2979_v58  ;;  %v7587_v53 = vor.u32 %v8827_v15, %v7584_v43  ;;  %v7568_v58 = vld [vmem:[%s13069_s1 + $0xcd8] sm:$0xf0]  ;;  %v7935_v62 = vld [vmem:[%s13069_s1 + $0xf40] sm:$0xf0] }
 0x1d3   : >> { %v7551_v20 = vor.u32 %v8821_v27, %v7550_v55  ;;  %v8904_v27 = vld [vmem:[%s13069_s1 + $0xf5c] sm:$0xf0]  ;;  %v8894_v43 = vld [vmem:[%s13069_s1 + $0xf14] sm:$0xf]  ;;  %v7901_v9 = vld [vmem:[%s13069_s1 + $0xef0] sm:$0xf] }
 0x1d4   : >> { %4231 = vmatpush.bf16.msra.mxu2 %v7747_v29  ;;  %v3953_v29 = vunpack.c.h.b16 %v11873_v3  ;;  %v8928_v15 = vld [vmem:[%s13069_s1 + $0x101c] sm:$0xf0] }
 0x1d5   : >> { %4159 = vmatpush.bf16.msrb.mxu1 %v7643_v32  ;;  %v8843_v32 = vld [vmem:[%s13069_s1 + $0xd6c] sm:$0xf]  ;;  %v2994_v31 = vpop.f32.mrf.mxu1  ;;  %v8892_v28 = vld [vmem:[%s13069_s1 + $0xefc] sm:$0xf0] }
 0x1d6   : >> { %4191 = vmatpush.bf16.msra.mxu3 %v7759_v30  ;;  %4181 = vmatpush.bf16.msrb.mxu0 %v7583_v33  ;;  %v12062_v30 = vadd.f32 %v2967_v8, %v11619_v61  ;;  %v7680_v61 = vld [vmem:[%s13069_s1 + $0xdb8] sm:$0xf0]  ;;  %v4021_v50 = vpack.c.b16 %v3953_v29, %v3953_v29  ;;  %v7662_v33 = vld [vmem:[%s13069_s1 + $0xd88] sm:$0xf]  ;;  %v7949_v8 = vld [vmem:[%s13069_s1 + $0xf50] sm:$0xf]  ;;  %v7651_v55 = vor.u32 %v8843_v32, %v7648_v7 }
 0x1d7   : >> { %v7683_v3 = vor.u32 %v8851_v21, %v7680_v61  ;;  %v8932_v21 = vld [vmem:[%s13069_s1 + $0x103c] sm:$0xf0]  ;;  %v7950_v61 = vor.u32 %v8904_v27, %v7949_v8  ;;  %v7536_v29 = vld [vmem:[%s13069_s1 + $0xc98] sm:$0xf0]  ;;  %v8029_v7 = vld [vmem:[%s13069_s1 + $0xff0] sm:$0xf]  ;;  %v7902_v27 = vor.u32 %v8892_v28, %v7901_v9 }
 0x1d8   : >> { %4232 = vmatpush.bf16.msra.mxu2 %v7731_v48  ;;  %4160 = vmatmul.bf16.vlgmr.msrb.gmra.mxu1 %v11805_v41  ;;  %v8813_v48 = vld [vmem:[%s13069_s1 + $0xc74] sm:$0xf0]  ;;  %v8030_v56 = vor.u32 %v8924_v59, %v8029_v7 }
 0x1d9   : >> { %4217 = vmatpush.bf16.msra.mxu1 %v7635_v63  ;;  %v7519_v22 = vor.u32 %v8813_v48, %v7518_v34  ;;  %v4098_v63 = vand.u32 %v4021_v50, %v9112_v18  ;;  %v7539_v34 = vor.u32 %v8815_v24, %v7536_v29  ;;  %v7917_v48 = vld [vmem:[%s13069_s1 + $0xf10] sm:$0xf]  ;;  %v8896_v50 = vld [vmem:[%s13069_s1 + $0xf1c] sm:$0xf0] }
 0x1da   : >> { %4192 = vmatpush.bf16.msra.mxu3 %v7743_v26  ;;  %4182 = vmatpush.bf16.msrb.mxu0 %v7567_v5  ;;  %v2942_v26 = vpop.f32.mrf.mxu3  ;;  %v7571_v5 = vor.u32 %v8823_v54, %v7568_v58  ;;  %v8046_v54 = vor.u32 %v8928_v15, %v8045_v11  ;;  %v12228_v58 = vld.sshfl [vmem:[#allocation1] sm:$0xff pattern:$0x73625140]  ;;  %v7869_v11 = vld [vmem:[%s13069_s1 + $0xeb0] sm:$0xf] }
 0x1db   : >> { %7766 = vmatmul.msk.bf16.vlgmr.msrb.gmra.mxu2 %vm642_vm1, %v11801_v37  ;;  %v8095_v26 = vld [vmem:[%s9197_s25 + $0xc] sm:$0x2a]  ;;  %v8916_v24 = vld [vmem:[%s13069_s1 + $0xfbc] sm:$0xf0]  ;;  %v8926_v15 = vld [vmem:[%s13069_s1 + $0x1014] sm:$0xf] }
 0x1dc   : >> { %4233 = vmatpush.bf16.msra.mxu2 %v7715_v2  ;;  %v12143_v2 = vpop.f32.mrf.mxu2 }
 0x1dd   : >> { %4218 = vmatpush.bf16.msra.mxu1 %v7619_v44  ;;  %v8819_v44 = vld [vmem:[%s13069_s1 + $0xcac] sm:$0xf] }
 0x1de   : >> { %4193 = vmatpush.bf16.msra.mxu3 %v7727_v60  ;;  %4183 = vmatpush.bf16.msrb.mxu0 %v7551_v20  ;;  %v8849_v60 = vld [vmem:[%s13069_s1 + $0xd94] sm:$0xf0]  ;;  %v8061_v20 = vld [vmem:[%s13069_s1 + $0x1030] sm:$0xf]  ;;  %v7555_v57 = vor.u32 %v8819_v44, %v7552_v13  ;;  %v8886_v13 = vld [vmem:[%s13069_s1 + $0xed4] sm:$0xf] }
 0x1df   : >> { %v7663_v16 = vor.u32 %v8849_v60, %v7662_v33  ;;  %v8062_v36 = vor.u32 %v8932_v21, %v8061_v20  ;;  %v7520_v33 = vld [vmem:[%s13069_s1 + $0xc78] sm:$0xf0]  ;;  %v8888_v21 = vld [vmem:[%s13069_s1 + $0xedc] sm:$0xf0] }
 0x1e0   : >> { %4234 = vmatpush.bf16.msra.mxu2 %v7699_v1  ;;  %v12166_v1 = vld [vmem:[%s13069_s1 + $0x1070] sm:$0x11] }
 0x1e1   : >> { %7765 = vmatmul.msk.bf16.vlgmr.msrb.gmra.mxu3 %vm642_vm1, %v11801_v37  ;;  %4219 = vmatpush.bf16.msra.mxu1 %v7603_v6  ;;  %v12198_v6 = vpop.f32.mrf.mxu0 }
 0x1e2   : >> { %4194 = vmatpush.bf16.msra.mxu3 %v7711_v12  ;;  %4184 = vmatpush.bf16.msrb.mxu0 %v7535_v39  ;;  %v3005_v4 = vpop.f32.mrf.mxu3  ;;  %v7919_v39 = vld [vmem:[%s13069_s1 + $0xf20] sm:$0xf0] }
 0x1e3   : >> { %v3006_v12 = vadd.f32 %v3005_v4, %v2993_v25  ;;  %v4547_v25 = vunpack.c.l.b16 %v12166_v1  ;;  %v7922_v32 = vor.u32 %v8894_v43, %v7919_v39  ;;  %v8934_v4 = vld [vmem:[%s13069_s1 + $0x1054] sm:$0xf]  ;;  %v8047_v43 = vld [vmem:[%s13069_s1 + $0x1020] sm:$0xf0] }
 0x1e4   : >> { %4235 = vmatpush.bf16.msra.mxu2 %v7683_v3  ;;  %v3046_v51 = vpop.f32.mrf.mxu2 }
 0x1e5   : >> { %4220 = vmatpush.bf16.msra.mxu1 %v7587_v53  ;;  %v12169_v49 = vadd.f32 %v3006_v12, %v11726_v35  ;;  %v8898_v35 = vld [vmem:[%s13069_s1 + $0xf34] sm:$0xf]  ;;  %v8811_v53 = vld [vmem:[%s13069_s1 + $0xc6c] sm:$0xf]  ;;  %v4615_v60 = vpack.c.b16 %v4547_v25, %v4547_v25  ;;  %v8013_v12 = vld [vmem:[%s13069_s1 + $0xfd0] sm:$0xf] }
 0x1e6   : >> { %4195 = vmatpush.bf16.msra.mxu3 %v7695_v23  ;;  %4185 = vmatpush.bf16.msrb.mxu0 %v7519_v22  ;;  %v7933_v23 = vld [vmem:[%s13069_s1 + $0xf30] sm:$0xf]  ;;  %v7938_v3 = vor.u32 %v8898_v35, %v7935_v62  ;;  %v12230_v22 = vld.sshfl [vmem:[#allocation1 + $0x8] sm:$0xff pattern:$0x73625140] }
 0x1e7   : >> { %v4687_v31 = vand.u32 %v4615_v60, %v9112_v18  ;;  %v7855_v60 = vld [vmem:[%s13069_s1 + $0xea0] sm:$0xf0] }
 0x1e8   : >> { %4236 = vmatpush.bf16.msra.mxu2 %v7667_v38  ;;  %v12225_v38 = vld.sshfl [vmem:[#allocation1 + $0x10] sm:$0xff pattern:$0x73625140] }
 0x1e9   : >> { %4221 = vmatpush.bf16.msra.mxu1 %v7571_v5  ;;  %4186 = vmatmul.bf16.vlgmr.msrb.gmra.mxu0 %v11803_v40  ;;  %4927 = vst [vmem:[#allocation1] ss:$4 sm:$0xff] %v8095_v26  ;;  %v8079_v5 = vld [vmem:[%s13069_s1 + $0x1060] sm:$0xf0]  ;;  %v3020_v10 = vpop.f32.mrf.mxu0 }
 0x1ea   : >> { %4196 = vmatpush.bf16.msra.mxu3 %v7679_v47  ;;  %4250 = vmatpush.bf16.msra.mxu0 %v4098_v63  ;;  %v3007_v52 = vpop.f32.mrf.mxu3  ;;  %v7934_v47 = vor.u32 %v8900_v45, %v7933_v23  ;;  %v8890_v63 = vld [vmem:[%s13069_s1 + $0xef4] sm:$0xf]  ;;  %v8082_v44 = vor.u32 %v8934_v4, %v8079_v5  ;;  %v7997_v45 = vld [vmem:[%s13069_s1 + $0xfb0] sm:$0xf]  ;;  %v4548_v4 = vunpack.c.h.b16 %v12166_v1  ;;  %v8908_v10 = vld [vmem:[%s13069_s1 + $0xf7c] sm:$0xf0] }
 0x1eb   : >> { %v7906_v8 = vor.u32 %v8890_v63, %v7903_v0  ;;  %v7998_v52 = vor.u32 %v8916_v24, %v7997_v45  ;;  %v8031_v63 = vld [vmem:[%s13069_s1 + $0x1000] sm:$0xf0]  ;;  %v7957_v1 = vld [vmem:[%s13069_s1 + $0xf58] sm:$0xf] }
 0x1ec   : >> { %4237 = vmatpush.bf16.msra.mxu2 %v7651_v55  ;;  %v8920_v55 = vld [vmem:[%s13069_s1 + $0xfdc] sm:$0xf0]  ;;  %v4616_v45 = vpack.c.b16 %v4548_v4, %v4548_v4  ;;  %v8927_v4 = vld [vmem:[%s13069_s1 + $0x101c] sm:$0xf] }
 0x1ed   : >> { %4222 = vmatpush.bf16.msra.mxu1 %v7555_v57  ;;  %v8063_v57 = vld [vmem:[%s13069_s1 + $0x1040] sm:$0xf0]  ;;  %v8014_v62 = vor.u32 %v8920_v55, %v8013_v12  ;;  %v3057_v25 = vpop.f32.mrf.mxu1 }
 0x1ee   : >> { %4197 = vmatpush.bf16.msra.mxu3 %v7663_v16  ;;  %4711 = vmatpush.bf16.msrb.mxu0 %v8078_v46  ;;  %v7523_v16 = vor.u32 %v8811_v53, %v7520_v33  ;;  %v7887_v46 = vld [vmem:[%s13069_s1 + $0xee0] sm:$0xf0]  ;;  %v8050_v33 = vor.u32 %v8926_v15, %v8047_v43  ;;  %v8937_v15 = vld [vmem:[%s13069_s1 + $0x1064] sm:$0xf0]  ;;  %v4339_v43 = vshrl.u32 %v12230_v22, 16 }
 0x1ef   : >> { %4238 = vmatmul.bf16.vlgmr.msra.gmra.mxu2 %v11805_v41  ;;  %v7890_v23 = vor.u32 %v8886_v13, %v7887_v46  ;;  %v4345_v13 = vshrl.u32 %v12225_v38, 16 }
 0x1f0   : >> { %4737 = vmatpush.bf16.msrb.mxu2 %v7954_v19  ;;  %v3070_v19 = vpop.f32.mrf.mxu2 }
 0x1f1   : >> { %4223 = vmatpush.bf16.msra.mxu1 %v7539_v34  ;;  %v3083_v51 = vpop.f32.mrf.mxu0 }
 0x1f2   : >> { %4198 = vmatpush.bf16.msra.mxu3 %v7647_v42  ;;  %4712 = vmatpush.bf16.msrb.mxu0 %v8062_v36  ;;  %v7885_v42 = vld [vmem:[%s13069_s1 + $0xed0] sm:$0xf]  ;;  %v3031_v20 = vpop.f32.mrf.mxu3  ;;  %v7871_v36 = vld [vmem:[%s13069_s1 + $0xec0] sm:$0xf0] }
 0x1f3   : >> { %v3032_v35 = vadd.f32 %v3031_v20, %v12198_v6  ;;  %v7886_v26 = vor.u32 %v8888_v21, %v7885_v42  ;;  %v8876_v42 = vld [vmem:[%s13069_s1 + $0xe7c] sm:$0xf0]  ;;  %v4341_v21 = vshll.u32 %v12230_v22, 16 }
 0x1f4   : >> { %4738 = vmatpush.bf16.msrb.mxu2 %v7938_v3  ;;  %v8884_v3 = vld [vmem:[%s13069_s1 + $0xebc] sm:$0xf0] }
 0x1f5   : >> { %4199 = vmatmul.bf16.vlgmr.msra.gmra.mxu3 %v11805_v41  ;;  %v7918_v41 = vor.u32 %v8896_v50, %v7917_v48  ;;  %4224 = vmatpush.bf16.msra.mxu1 %v7523_v16  ;;  %v3045_v29 = vadd.f32 %v12143_v2, %v3032_v35  ;;  %v3071_v2 = vadd.f32 %v3070_v19, %v3057_v25  ;;  %v7981_v48 = vld [vmem:[%s13069_s1 + $0xf90] sm:$0xf]  ;;  %v8878_v50 = vld [vmem:[%s13069_s1 + $0xe94] sm:$0xf]  ;;  %v3059_v12 = vpop.f32.mrf.mxu1  ;;  %v8935_v25 = vld [vmem:[%s13069_s1 + $0x105c] sm:$0xf] }
 0x1f6   : >> { %4698 = vmatpush.bf16.msrb.mxu3 %v7950_v61  ;;  %4713 = vmatpush.bf16.msrb.mxu0 %v8046_v54  ;;  %v8930_v61 = vld [vmem:[%s13069_s1 + $0x1034] sm:$0xf]  ;;  %v7870_v53 = vor.u32 %v8884_v3, %v7869_v11  ;;  %v7853_v54 = vld [vmem:[%s13069_s1 + $0xe90] sm:$0xf]  ;;  %v7858_v5 = vor.u32 %v8878_v50, %v7855_v60  ;;  %v8085_v3 = vld [vmem:[%s13069_s1 + $0x1058] sm:$0xf] }
 0x1f7   : >> { %v8066_v6 = vor.u32 %v8930_v61, %v8063_v57  ;;  %v12311_v39 = vadd.f32 %v3045_v29, %v11868_v17  ;;  %v8912_v17 = vld [vmem:[%s13069_s1 + $0xf9c] sm:$0xf0]  ;;  %v8922_v16 = vld [vmem:[%s13069_s1 + $0xff4] sm:$0xf]  ;;  %v7837_v19 = vld [vmem:[%s13069_s1 + $0xe70] sm:$0xf]  ;;  %v8086_v50 = vor.u32 %v8937_v15, %v8085_v3 }
 0x1f8   : >> { %4739 = vmatpush.bf16.msrb.mxu2 %v7922_v32  ;;  %4225 = vmatmul.bf16.vlgmr.msra.gmra.mxu1 %v11803_v40  ;;  %v8882_v40 = vld [vmem:[%s13069_s1 + $0xeb4] sm:$0xf]  ;;  %v4347_v32 = vshll.u32 %v12225_v38, 16  ;;  %v3072_v7 = vpop.f32.mrf.mxu2  ;;  %v7982_v28 = vor.u32 %v8912_v17, %v7981_v48  ;;  %v4333_v57 = vshrl.u32 %v12228_v58, 16  ;;  %v7999_v48 = vld [vmem:[%s13069_s1 + $0xfc0] sm:$0xf0] }
 0x1f9   : >> { %4731 = vmatpush.bf16.msrb.mxu1 %v4687_v31  ;;  %7767 = vmatmul.msk.bf16.vlgmr.msra.gmra.mxu0 %vm642_vm1, %v11801_v37  ;;  %v12316_v37 = vld [vmem:[%s13069_s1 + $0x1078] sm:$0x11]  ;;  %v7874_v34 = vor.u32 %v8882_v40, %v7871_v36  ;;  %v4335_v31 = vshll.u32 %v12228_v58, 16  ;;  %v8918_v38 = vld [vmem:[%s13069_s1 + $0xfd4] sm:$0xf]  ;;  %v7838_v58 = vor.u32 %v8876_v42, %v7837_v19 }
 0x1fa   : >> { %4699 = vmatpush.bf16.msrb.mxu3 %v7934_v47  ;;  %4714 = vmatpush.bf16.msrb.mxu0 %v8030_v56  ;;  %v3084_v47 = vadd.f32 %v3083_v51, %v3071_v2  ;;  %v3033_v0 = vpop.f32.mrf.mxu3  ;;  %v4549_v9 = vunpack.c.l.b16 %v12316_v37  ;;  %v8874_v56 = vld [vmem:[%s13069_s1 + $0xe74] sm:$0xf]  ;;  %v4349_v46 = vrot.slane %v4347_v32, 1  ;;  %v7941_v40 = vld [vmem:[%s13069_s1 + $0xf38] sm:$0xf]  ;;  %v4343_v51 = vrot.slane %v4341_v21, 1 }
 0x1fb   : >> { %v4337_v35 = vrot.slane %v4335_v31, 1  ;;  %v8901_v36 = vld [vmem:[%s13069_s1 + $0xf44] sm:$0xf0]  ;;  %v7925_v60 = vld [vmem:[%s13069_s1 + $0xf18] sm:$0xf] }
 0x1fc   : >> { %4740 = vmatpush.bf16.msrb.mxu2 %v7906_v8  ;;  %v12335_v59 = vadd.f32 %v3084_v47, %v11891_v14  ;;  %v7965_v14 = vld [vmem:[%s13069_s1 + $0xf70] sm:$0xf]  ;;  %v7839_v8 = vld [vmem:[%s13069_s1 + $0xe80] sm:$0xf0]  ;;  %v4617_v20 = vpack.c.b16 %v4549_v9, %v4549_v9  ;;  %v4690_v47 = vand.u32 %v4616_v45, %v9112_v18  ;;  %v7942_v22 = vor.u32 %v8901_v36, %v7941_v40  ;;  %v8897_v7 = vld [vmem:[%s13069_s1 + $0xf24] sm:$0xf0] }
 0x1fd   : >> { %4750 = vmatpush.bf16.msra.mxu1 %v8082_v44  ;;  %v8905_v44 = vld [vmem:[%s13069_s1 + $0xf64] sm:$0xf0]  ;;  %v7966_v61 = vor.u32 %v8908_v10, %v7965_v14  ;;  %v7842_v24 = vor.u32 %v8874_v56, %v7839_v8  ;;  %v8910_v0 = vld [vmem:[%s13069_s1 + $0xf94] sm:$0xf]  ;;  %v7983_v9 = vld [vmem:[%s13069_s1 + $0xfa0] sm:$0xf0]  ;;  %v7926_v14 = vor.u32 %v8897_v7, %v7925_v60 }
 0x1fe   : >> { %4700 = vmatpush.bf16.msrb.mxu3 %v7918_v41  ;;  %4715 = vmatpush.bf16.msrb.mxu0 %v8014_v62  ;;  %v8880_v41 = vld [vmem:[%s13069_s1 + $0xe9c] sm:$0xf0]  ;;  %v8015_v62 = vld [vmem:[%s13069_s1 + $0xfe0] sm:$0xf0]  ;;  %v7958_v29 = vor.u32 %v8905_v44, %v7957_v1  ;;  %v4693_v2 = vand.u32 %v4617_v20, %v9112_v18  ;;  %v7909_v10 = vld [vmem:[%s13069_s1 + $0xef8] sm:$0xf]  ;;  %v7986_v56 = vor.u32 %v8910_v0, %v7983_v9 }
 0x1ff   : >> { %v7854_v55 = vor.u32 %v8880_v41, %v7853_v54  ;;  %v8018_v11 = vor.u32 %v8918_v38, %v8015_v62  ;;  %v3552_v54 = vpop.f32.mrf.mxu1  ;;  %v12427_v41 = vor.u32 %v4343_v51, %v4339_v43  ;;  %v8893_v8 = vld [vmem:[%s13069_s1 + $0xf04] sm:$0xf0]  ;;  %v8053_v12 = vld [vmem:[%s13069_s1 + $0x1018] sm:$0xf]  ;;  %v8906_v1 = vld [vmem:[%s13069_s1 + $0xf74] sm:$0xf] }
 0x200   : >> { %4741 = vmatpush.bf16.msrb.mxu2 %v7890_v23  ;;  %v3085_v23 = vpop.f32.mrf.mxu0  ;;  %v7967_v44 = vld [vmem:[%s13069_s1 + $0xf80] sm:$0xf0]  ;;  %v7959_v19 = vld [vmem:[%s13069_s1 + $0xf68] sm:$0xf0]  ;;  %v7910_v42 = vor.u32 %v8893_v8, %v7909_v10  ;;  %v8923_v21 = vld [vmem:[%s13069_s1 + $0xffc] sm:$0xf] }
 0x201   : >> { %4751 = vmatpush.bf16.msra.mxu1 %v8066_v6  ;;  %v8087_v6 = vld [vmem:[%s13069_s1 + $0x1068] sm:$0xf0]  ;;  %v7970_v38 = vor.u32 %v8906_v1, %v7967_v44  ;;  %v7893_v62 = vld [vmem:[%s13069_s1 + $0xed8] sm:$0xf]  ;;  %v8889_v23 = vld [vmem:[%s13069_s1 + $0xee4] sm:$0xf0] }
 0x202   : >> { %4701 = vmatpush.bf16.msrb.mxu3 %v7902_v27  ;;  %4716 = vmatpush.bf16.msrb.mxu0 %v7998_v52  ;;  %v8034_v27 = vor.u32 %v8922_v16, %v8031_v63  ;;  %v12404_v52 = vor.u32 %v4337_v35, %v4333_v57  ;;  %v8090_v17 = vor.u32 %v8935_v25, %v8087_v6  ;;  %v8069_v16 = vld [vmem:[%s13069_s1 + $0x1038] sm:$0xf]  ;;  %v8933_v63 = vld [vmem:[%s13069_s1 + $0x1044] sm:$0xf0]  ;;  %v8899_v40 = vld [vmem:[%s13069_s1 + $0xf3c] sm:$0xf] }
 0x203   : >> { %v8070_v31 = vor.u32 %v8933_v63, %v8069_v16  ;;  %v8925_v25 = vld [vmem:[%s13069_s1 + $0x1004] sm:$0xf0]  ;;  %v7943_v36 = vld [vmem:[%s13069_s1 + $0xf48] sm:$0xf0]  ;;  %v7877_v51 = vld [vmem:[%s13069_s1 + $0xeb8] sm:$0xf] }
 0x204   : >> { %4742 = vmatpush.bf16.msrb.mxu2 %v7874_v34  ;;  %v8914_v34 = vld [vmem:[%s13069_s1 + $0xfb4] sm:$0xf]  ;;  %v8023_v3 = vld [vmem:[%s13069_s1 + $0xfe8] sm:$0xf0]  ;;  %v7861_v0 = vld [vmem:[%s13069_s1 + $0xe98] sm:$0xf] }
 0x205   : >> { %4752 = vmatpush.bf16.msra.mxu1 %v8050_v33  ;;  %v8071_v33 = vld [vmem:[%s13069_s1 + $0x1048] sm:$0xf0]  ;;  %v8002_v32 = vor.u32 %v8914_v34, %v7999_v48  ;;  %v7946_v34 = vor.u32 %v8899_v40, %v7943_v36  ;;  %v8881_v9 = vld [vmem:[%s13069_s1 + $0xea4] sm:$0xf0]  ;;  %v7845_v44 = vld [vmem:[%s13069_s1 + $0xe78] sm:$0xf] }
 0x206   : >> { %4702 = vmatpush.bf16.msrb.mxu3 %v7886_v26  ;;  %4717 = vmatpush.bf16.msrb.mxu0 %v7982_v28  ;;  %v12385_v26 = vor.u32 %v4349_v46, %v4345_v13  ;;  %v8903_v46 = vld [vmem:[%s13069_s1 + $0xf5c] sm:$0xf]  ;;  %v7927_v60 = vld [vmem:[%s13069_s1 + $0xf28] sm:$0xf0]  ;;  %v8917_v10 = vld [vmem:[%s13069_s1 + $0xfc4] sm:$0xf0] }
 0x207   : >> { %v3554_v35 = vpop.f32.mrf.mxu1  ;;  %v7911_v8 = vld [vmem:[%s13069_s1 + $0xf08] sm:$0xf0] }
 0x208   : >> { %4743 = vmatpush.bf16.msrb.mxu2 %v7858_v5  ;;  %8091 = vmatmul.msk.bf16.vlgmr.msrb.gmra.mxu1 %vm642_vm1, %v12385_v26  ;;  %v8055_v5 = vld [vmem:[%s13069_s1 + $0x1028] sm:$0xf0] }
 0x209   : >> { %4753 = vmatpush.bf16.msra.mxu1 %v8034_v27  ;;  %v3539_v27 = vpop.f32.mrf.mxu0  ;;  %v8058_v13 = vor.u32 %v8927_v4, %v8055_v5  ;;  %v8005_v5 = vld [vmem:[%s13069_s1 + $0xfb8] sm:$0xf] }
 0x20a   : >> { %4703 = vmatpush.bf16.msrb.mxu3 %v7870_v53  ;;  %4718 = vmatpush.bf16.msrb.mxu0 %v7966_v61  ;;  %v8931_v53 = vld [vmem:[%s13069_s1 + $0x103c] sm:$0xf]  ;;  %v8039_v61 = vld [vmem:[%s13069_s1 + $0x1008] sm:$0xf0]  ;;  %v3565_v57 = vpop.f32.mrf.mxu2  ;;  %v8006_v1 = vor.u32 %v8917_v10, %v8005_v5  ;;  %v8372_v10 = vld [vmem:[%s13069_s1 + $0x1220] sm:$0xf] }
 0x20b   : >> { %v8074_v28 = vor.u32 %v8931_v53, %v8071_v33  ;;  %v8042_v6 = vor.u32 %v8923_v21, %v8039_v61  ;;  %v8895_v33 = vld [vmem:[%s13069_s1 + $0xf1c] sm:$0xf] }
 0x20c   : >> { %4744 = vmatpush.bf16.msrb.mxu2 %v7842_v24  ;;  %v7962_v24 = vor.u32 %v8903_v46, %v7959_v19  ;;  %v7930_v4 = vor.u32 %v8895_v33, %v7927_v60  ;;  %v8887_v61 = vld [vmem:[%s13069_s1 + $0xedc] sm:$0xf] }
 0x20d   : >> { %4754 = vmatpush.bf16.msra.mxu1 %v8018_v11  ;;  %4719 = vmatmul.bf16.vlgmr.msrb.gmra.mxu0 %v12427_v41  ;;  %v7894_v11 = vor.u32 %v8889_v23, %v7893_v62  ;;  %v7975_v62 = vld [vmem:[%s13069_s1 + $0xf88] sm:$0xf0]  ;;  %v8404_v23 = vld [vmem:[%s13069_s1 + $0x1260] sm:$0xf] }
 0x20e   : >> { %4704 = vmatpush.bf16.msrb.mxu3 %v7854_v55  ;;  %4776 = vmatpush.bf16.msra.mxu0 %v7958_v29  ;;  %v8929_v55 = vld [vmem:[%s13069_s1 + $0x1024] sm:$0xf0]  ;;  %v8037_v29 = vld [vmem:[%s13069_s1 + $0xff8] sm:$0xf] }
 0x20f   : >> { %4745 = vmatmul.bf16.vlgmr.msrb.gmra.mxu2 %v12404_v52  ;;  %v8054_v20 = vor.u32 %v8929_v55, %v8053_v12  ;;  %v8038_v43 = vor.u32 %v8925_v25, %v8037_v29  ;;  %v7862_v12 = vor.u32 %v8881_v9, %v7861_v0  ;;  %v8911_v55 = vld [vmem:[%s13069_s1 + $0xf9c] sm:$0xf]  ;;  %v9000_v29 = vld [vmem:[%s13069_s1 + $0x126c] sm:$0xf0]  ;;  %v8966_v25 = vld [vmem:[%s13069_s1 + $0x1164] sm:$0xf] }
 0x210   : >> { %4809 = vmatpush.bf16.msra.mxu2 %v4693_v2  ;;  %v3526_v45 = vpop.f32.mrf.mxu3  ;;  %v8919_v2 = vld [vmem:[%s13069_s1 + $0xfdc] sm:$0xf]  ;;  %v8964_v0 = vld [vmem:[%s13069_s1 + $0x114c] sm:$0xf0] }
 0x211   : >> { %4755 = vmatpush.bf16.msra.mxu1 %v8002_v32  ;;  %v3541_v48 = vpop.f32.mrf.mxu0  ;;  %v8026_v53 = vor.u32 %v8919_v2, %v8023_v3  ;;  %v8915_v32 = vld [vmem:[%s13069_s1 + $0xfbc] sm:$0xf]  ;;  %v3578_v16 = vpop.f32.mrf.mxu1  ;;  %v7973_v2 = vld [vmem:[%s13069_s1 + $0xf78] sm:$0xf]  ;;  %v8909_v3 = vld [vmem:[%s13069_s1 + $0xf84] sm:$0xf0] }
 0x212   : >> { %4705 = vmatpush.bf16.msrb.mxu3 %v7838_v58  ;;  %4777 = vmatpush.bf16.msra.mxu0 %v7942_v22  ;;  %v3540_v58 = vadd.f32 %v3539_v27, %v3526_v45  ;;  %v8921_v22 = vld [vmem:[%s13069_s1 + $0xfe4] sm:$0xf0]  ;;  %v3567_v7 = vpop.f32.mrf.mxu2  ;;  %v7991_v27 = vld [vmem:[%s13069_s1 + $0xfa8] sm:$0xf0]  ;;  %v7974_v60 = vor.u32 %v8909_v3, %v7973_v2  ;;  %v8879_v9 = vld [vmem:[%s13069_s1 + $0xe9c] sm:$0xf] }
 0x213   : >> { %v7994_v21 = vor.u32 %v8911_v55, %v7991_v27  ;;  %v7879_v48 = vld [vmem:[%s13069_s1 + $0xec8] sm:$0xf0]  ;;  %v8958_v27 = vld [vmem:[%s13069_s1 + $0x1124] sm:$0xf]  ;;  %v8984_v2 = vld [vmem:[%s13069_s1 + $0x11ec] sm:$0xf0] }
 0x214   : >> { %4828 = vmatpush.bf16.msrb.mxu2 %v8090_v17  ;;  %v3553_v15 = vadd.f32 %v3552_v54, %v3540_v58  ;;  %v8021_v17 = vld [vmem:[%s13069_s1 + $0xfd8] sm:$0xf]  ;;  %v8278_v58 = vld [vmem:[%s13069_s1 + $0x1170] sm:$0xf0] }
 0x215   : >> { %4706 = vmatmul.bf16.vlgmr.msrb.gmra.mxu3 %v12404_v52  ;;  %4756 = vmatpush.bf16.msra.mxu1 %v7986_v56  ;;  %v8022_v63 = vor.u32 %v8921_v22, %v8021_v17  ;;  %v8891_v56 = vld [vmem:[%s13069_s1 + $0xefc] sm:$0xf]  ;;  %v8405_v17 = vor.u32 %v9000_v29, %v8404_v23  ;;  %v8281_v22 = vor.u32 %v8966_v25, %v8278_v58  ;;  %v8228_v23 = vld [vmem:[%s13069_s1 + $0x1100] sm:$0xf]  ;;  %v8998_v29 = vld [vmem:[%s13069_s1 + $0x1264] sm:$0xf] }
 0x216   : >> { %4770 = vmatpush.bf16.msra.mxu3 %v4690_v47  ;;  %4778 = vmatpush.bf16.msra.mxu0 %v7926_v14  ;;  %v8885_v47 = vld [vmem:[%s13069_s1 + $0xec4] sm:$0xf0]  ;;  %v3579_v14 = vadd.f32 %v3578_v16, %v3565_v57  ;;  %v7914_v19 = vor.u32 %v8891_v56, %v7911_v8  ;;  %v7895_v57 = vld [vmem:[%s13069_s1 + $0xee8] sm:$0xf0]  ;;  %v8962_v16 = vld [vmem:[%s13069_s1 + $0x1144] sm:$0xf] }
 0x217   : >> { %v7878_v54 = vor.u32 %v8885_v47, %v7877_v51  ;;  %v8968_v47 = vld [vmem:[%s13069_s1 + $0x116c] sm:$0xf0]  ;;  %v8406_v25 = vld [vmem:[%s13069_s1 + $0x1270] sm:$0xf0] }
 0x218   : >> { %4829 = vmatpush.bf16.msrb.mxu2 %v8074_v28  ;;  %v4550_v28 = vunpack.c.h.b16 %v12316_v37 }
 0x219   : >> { %4757 = vmatpush.bf16.msra.mxu1 %v7970_v38  ;;  %v8907_v38 = vld [vmem:[%s13069_s1 + $0xf7c] sm:$0xf]  ;;  %v3580_v40 = vpop.f32.mrf.mxu1 }
 0x21a   : >> { %4789 = vmatpush.bf16.msrb.mxu3 %v8086_v50  ;;  %4779 = vmatpush.bf16.msra.mxu0 %v7910_v42  ;;  %v12517_v50 = vadd.f32 %v3553_v15, %v12062_v30  ;;  %v8007_v30 = vld [vmem:[%s13069_s1 + $0xfc8] sm:$0xf0]  ;;  %v4618_v46 = vpack.c.b16 %v4550_v28, %v4550_v28  ;;  %v7989_v42 = vld [vmem:[%s13069_s1 + $0xf98] sm:$0xf]  ;;  %v8276_v15 = vld [vmem:[%s13069_s1 + $0x1160] sm:$0xf]  ;;  %v7978_v51 = vor.u32 %v8907_v38, %v7975_v62 }
 0x21b   : >> { %v8010_v37 = vor.u32 %v8915_v32, %v8007_v30  ;;  %v8996_v32 = vld [vmem:[%s13069_s1 + $0x124c] sm:$0xf0]  ;;  %v8277_v30 = vor.u32 %v8968_v47, %v8276_v15  ;;  %v7863_v28 = vld [vmem:[%s13069_s1 + $0xea8] sm:$0xf0]  ;;  %v8230_v62 = vld [vmem:[%s13069_s1 + $0x1110] sm:$0xf0]  ;;  %v8409_v15 = vor.u32 %v8998_v29, %v8406_v25 }
 0x21c   : >> { %4830 = vmatpush.bf16.msrb.mxu2 %v8058_v13  ;;  %4758 = vmatmul.bf16.vlgmr.msra.gmra.mxu1 %v12427_v41  ;;  %v8877_v13 = vld [vmem:[%s13069_s1 + $0xe84] sm:$0xf0]  ;;  %v7866_v55 = vor.u32 %v8879_v9, %v7863_v28  ;;  %v8198_v28 = vld [vmem:[%s13069_s1 + $0x10d0] sm:$0xf0]  ;;  %v8969_v25 = vld [vmem:[%s13069_s1 + $0x1174] sm:$0xf0] }
 0x21d   : >> { %4815 = vmatpush.bf16.msrb.mxu1 %v7962_v24  ;;  %v7846_v35 = vor.u32 %v8877_v13, %v7845_v44  ;;  %v4696_v24 = vand.u32 %v4618_v46, %v9112_v18  ;;  %v8244_v44 = vld [vmem:[%s13069_s1 + $0x1120] sm:$0xf]  ;;  %v8960_v13 = vld [vmem:[%s13069_s1 + $0x112c] sm:$0xf0]  ;;  %v8875_v46 = vld [vmem:[%s13069_s1 + $0xe7c] sm:$0xf] }
 0x21e   : >> { %4790 = vmatpush.bf16.msrb.mxu3 %v8070_v31  ;;  %4780 = vmatpush.bf16.msra.mxu0 %v7894_v11  ;;  %v3528_v31 = vpop.f32.mrf.mxu3  ;;  %v7898_v11 = vor.u32 %v8887_v61, %v7895_v57  ;;  %v8356_v61 = vld [vmem:[%s13069_s1 + $0x1200] sm:$0xf]  ;;  %v8988_v57 = vld [vmem:[%s13069_s1 + $0x120c] sm:$0xf0]  ;;  %v8284_v29 = vld [vmem:[%s13069_s1 + $0x1168] sm:$0xf] }
 0x21f   : >> { %8093 = vmatmul.msk.bf16.vlgmr.msra.gmra.mxu2 %vm642_vm1, %v12385_v26  ;;  %v8357_v40 = vor.u32 %v8988_v57, %v8356_v61  ;;  %v8358_v61 = vld [vmem:[%s13069_s1 + $0x1210] sm:$0xf0] }
 0x220   : >> { %4831 = vmatpush.bf16.msrb.mxu2 %v8042_v6  ;;  %v12598_v6 = vpop.f32.mrf.mxu2 }
 0x221   : >> { %4816 = vmatpush.bf16.msrb.mxu1 %v7946_v34  ;;  %v8883_v34 = vld [vmem:[%s13069_s1 + $0xebc] sm:$0xf] }
 0x222   : >> { %4791 = vmatpush.bf16.msrb.mxu3 %v8054_v20  ;;  %4781 = vmatpush.bf16.msra.mxu0 %v7878_v54  ;;  %v8913_v20 = vld [vmem:[%s13069_s1 + $0xfa4] sm:$0xf0]  ;;  %v8388_v54 = vld [vmem:[%s13069_s1 + $0x1240] sm:$0xf]  ;;  %v7882_v7 = vor.u32 %v8883_v34, %v7879_v48  ;;  %v3604_v31 = vpop.f32.mrf.mxu0 }
 0x223   : >> { %v7990_v45 = vor.u32 %v8913_v20, %v7989_v42  ;;  %v8212_v34 = vld [vmem:[%s13069_s1 + $0x10e0] sm:$0xf] }
 0x224   : >> { %4832 = vmatpush.bf16.msrb.mxu2 %v8026_v53  ;;  %v12621_v53 = vld [vmem:[%s13069_s1 + $0x1280] sm:$0x11] }
 0x225   : >> { %8092 = vmatmul.msk.bf16.vlgmr.msra.gmra.mxu3 %vm642_vm1, %v12385_v26  ;;  %4817 = vmatpush.bf16.msrb.mxu1 %v7930_v4  ;;  %v8389_v4 = vor.u32 %v8996_v32, %v8388_v54 }
 0x226   : >> { %4792 = vmatpush.bf16.msrb.mxu3 %v8038_v43  ;;  %4782 = vmatpush.bf16.msra.mxu0 %v7862_v12  ;;  %v3591_v36 = vpop.f32.mrf.mxu3 }
 0x227   : >> { %v3592_v43 = vadd.f32 %v3591_v36, %v3579_v14  ;;  %v5133_v14 = vunpack.c.l.b16 %v12621_v53 }
 0x228   : >> { %4833 = vmatpush.bf16.msrb.mxu2 %v8010_v37  ;;  %v8992_v37 = vld [vmem:[%s13069_s1 + $0x122c] sm:$0xf0]  ;;  %v3632_v56 = vpop.f32.mrf.mxu2 }
 0x229   : >> { %4818 = vmatpush.bf16.msrb.mxu1 %v7914_v19  ;;  %v12624_v33 = vadd.f32 %v3592_v43, %v12169_v49  ;;  %v8262_v49 = vld [vmem:[%s13069_s1 + $0x1150] sm:$0xf0]  ;;  %v7847_v19 = vld [vmem:[%s13069_s1 + $0xe88] sm:$0xf0]  ;;  %v5201_v42 = vpack.c.b16 %v5133_v14, %v5133_v14  ;;  %v8373_v20 = vor.u32 %v8992_v37, %v8372_v10  ;;  %v8950_v43 = vld [vmem:[%s13069_s1 + $0x10e4] sm:$0xf] }
 0x22a   : >> { %4793 = vmatpush.bf16.msrb.mxu3 %v8022_v63  ;;  %4783 = vmatpush.bf16.msra.mxu0 %v7846_v35  ;;  %v8260_v63 = vld [vmem:[%s13069_s1 + $0x1140] sm:$0xf]  ;;  %v8265_v5 = vor.u32 %v8962_v16, %v8262_v49  ;;  %v8245_v35 = vor.u32 %v8960_v13, %v8244_v44  ;;  %v7850_v38 = vor.u32 %v8875_v46, %v7847_v19  ;;  %v3606_v58 = vpop.f32.mrf.mxu0  ;;  %v8980_v16 = vld [vmem:[%s13069_s1 + $0x11cc] sm:$0xf0]  ;;  %v8942_v44 = vld [vmem:[%s13069_s1 + $0x10a4] sm:$0xf] }
 0x22b   : >> { %v8261_v12 = vor.u32 %v8964_v0, %v8260_v63  ;;  %v8196_v14 = vld [vmem:[%s13069_s1 + $0x10c0] sm:$0xf]  ;;  %v8182_v13 = vld [vmem:[%s13069_s1 + $0x10b0] sm:$0xf0] }
 0x22c   : >> { %4834 = vmatpush.bf16.msrb.mxu2 %v7994_v21  ;;  %v8180_v46 = vld [vmem:[%s13069_s1 + $0x10a0] sm:$0xf] }
 0x22d   : >> { %4819 = vmatpush.bf16.msrb.mxu1 %v7898_v11  ;;  %4784 = vmatmul.bf16.vlgmr.msra.gmra.mxu0 %v12404_v52  ;;  %v8340_v11 = vld [vmem:[%s13069_s1 + $0x11e0] sm:$0xf] }
 0x22e   : >> { %4794 = vmatpush.bf16.msrb.mxu3 %v8006_v1  ;;  %4848 = vmatpush.bf16.msrb.mxu0 %v4696_v24  ;;  %v3593_v8 = vpop.f32.mrf.mxu3  ;;  %v8246_v1 = vld [vmem:[%s13069_s1 + $0x1130] sm:$0xf0]  ;;  %v5273_v24 = vand.u32 %v5201_v42, %v9112_v18  ;;  %v8341_v32 = vor.u32 %v8984_v2, %v8340_v11  ;;  %v8940_v2 = vld [vmem:[%s13069_s1 + $0x108c] sm:$0xf0] }
 0x22f   : >> { %v8249_v21 = vor.u32 %v8958_v27, %v8246_v1  ;;  %v4932_v11 = vld.sshfl [vmem:[#allocation1 + $0x10] sm:$0xff pattern:$0x73625140] }
 0x230   : >> { %4835 = vmatpush.bf16.msrb.mxu2 %v7978_v51  ;;  %v8214_v51 = vld [vmem:[%s13069_s1 + $0x10f0] sm:$0xf0]  ;;  %v3656_v47 = vpop.f32.mrf.mxu2 }
 0x231   : >> { %4820 = vmatpush.bf16.msrb.mxu1 %v7882_v7  ;;  %v8324_v7 = vld [vmem:[%s13069_s1 + $0x11c0] sm:$0xf]  ;;  %v3643_v63 = vpop.f32.mrf.mxu1 }
 0x232   : >> { %4795 = vmatpush.bf16.msrb.mxu3 %v7990_v45  ;;  %5297 = vmatpush.bf16.msra.mxu0 %v8405_v17  ;;  %v8956_v45 = vld [vmem:[%s13069_s1 + $0x110c] sm:$0xf0]  ;;  %v3669_v37 = vpop.f32.mrf.mxu0  ;;  %v8325_v56 = vor.u32 %v8980_v16, %v8324_v7  ;;  %v8268_v7 = vld [vmem:[%s13069_s1 + $0x1148] sm:$0xf]  ;;  %v8965_v16 = vld [vmem:[%s13069_s1 + $0x1154] sm:$0xf0] }
 0x233   : >> { %4836 = vmatmul.bf16.vlgmr.msrb.gmra.mxu2 %v12427_v41  ;;  %v8229_v3 = vor.u32 %v8956_v45, %v8228_v23  ;;  %v8952_v17 = vld [vmem:[%s13069_s1 + $0x10ec] sm:$0xf0]  ;;  %v5134_v23 = vunpack.c.h.b16 %v12621_v53  ;;  %v8185_v45 = vor.u32 %v8942_v44, %v8182_v13  ;;  %v8164_v53 = vld [vmem:[%s13069_s1 + $0x1080] sm:$0xf]  ;;  %v8396_v44 = vld [vmem:[%s13069_s1 + $0x1248] sm:$0xf] }
 0x234   : >> { %5323 = vmatpush.bf16.msra.mxu2 %v8281_v22  ;;  %v8994_v22 = vld [vmem:[%s13069_s1 + $0x1244] sm:$0xf]  ;;  %v8213_v0 = vor.u32 %v8952_v17, %v8212_v34  ;;  %v8997_v13 = vld [vmem:[%s13069_s1 + $0x1254] sm:$0xf0] }
 0x235   : >> { %4821 = vmatpush.bf16.msrb.mxu1 %v7866_v55  ;;  %v8308_v55 = vld [vmem:[%s13069_s1 + $0x11a0] sm:$0xf] }
 0x236   : >> { %4796 = vmatpush.bf16.msrb.mxu3 %v7974_v60  ;;  %5298 = vmatpush.bf16.msra.mxu0 %v8389_v4  ;;  %v3617_v48 = vpop.f32.mrf.mxu3  ;;  %v8390_v60 = vld [vmem:[%s13069_s1 + $0x1250] sm:$0xf0]  ;;  %v8990_v4 = vld [vmem:[%s13069_s1 + $0x1224] sm:$0xf] }
 0x237   : >> { %v3618_v54 = vadd.f32 %v3617_v48, %v3604_v31  ;;  %v8393_v9 = vor.u32 %v8994_v22, %v8390_v60  ;;  %v8948_v31 = vld [vmem:[%s13069_s1 + $0x10cc] sm:$0xf0]  ;;  %v5202_v48 = vpack.c.b16 %v5134_v23, %v5134_v23  ;;  %v8285_v22 = vor.u32 %v8969_v25, %v8284_v29  ;;  %v8993_v23 = vld [vmem:[%s13069_s1 + $0x1234] sm:$0xf0]  ;;  %v8294_v29 = vld [vmem:[%s13069_s1 + $0x1190] sm:$0xf0] }
 0x238   : >> { %5324 = vmatpush.bf16.msra.mxu2 %v8265_v5  ;;  %v8374_v5 = vld [vmem:[%s13069_s1 + $0x1230] sm:$0xf0]  ;;  %v8197_v27 = vor.u32 %v8948_v31, %v8196_v14  ;;  %v3658_v19 = vpop.f32.mrf.mxu2  ;;  %v12822_v60 = vrot.slane %v4932_v11, 1  ;;  %v8987_v11 = vld [vmem:[%s13069_s1 + $0x120c] sm:$0xf] }
 0x239   : >> { %4797 = vmatmul.bf16.vlgmr.msrb.gmra.mxu3 %v12427_v41  ;;  %v8954_v41 = vld [vmem:[%s13069_s1 + $0x1104] sm:$0xf]  ;;  %4822 = vmatpush.bf16.msrb.mxu1 %v7850_v38  ;;  %v3631_v49 = vadd.f32 %v12598_v6, %v3618_v54  ;;  %v3657_v6 = vadd.f32 %v3656_v47, %v3643_v63  ;;  %v8377_v1 = vor.u32 %v8990_v4, %v8374_v5  ;;  %v3645_v58 = vpop.f32.mrf.mxu1  ;;  %v8342_v47 = vld [vmem:[%s13069_s1 + $0x11f0] sm:$0xf0]  ;;  %v8999_v54 = vld [vmem:[%s13069_s1 + $0x126c] sm:$0xf] }
 0x23a   : >> { %5284 = vmatpush.bf16.msra.mxu3 %v8277_v30  ;;  %5299 = vmatpush.bf16.msra.mxu0 %v8373_v20  ;;  %v8233_v36 = vor.u32 %v8954_v41, %v8230_v62  ;;  %v8217_v30 = vor.u32 %v8950_v43, %v8214_v51  ;;  %v8944_v20 = vld [vmem:[%s13069_s1 + $0x10ac] sm:$0xf0]  ;;  %v8938_v62 = vld [vmem:[%s13069_s1 + $0x1084] sm:$0xf]  ;;  %v3671_v34 = vpop.f32.mrf.mxu0  ;;  %v5276_v14 = vand.u32 %v5202_v48, %v9112_v18  ;;  %v8326_v31 = vld [vmem:[%s13069_s1 + $0x11d0] sm:$0xf0] }
 0x23b   : >> { %v12756_v10 = vadd.f32 %v3631_v49, %v12311_v39  ;;  %v3670_v8 = vadd.f32 %v3669_v37, %v3657_v6  ;;  %v8976_v39 = vld [vmem:[%s13069_s1 + $0x11ac] sm:$0xf0]  ;;  %v8982_v51 = vld [vmem:[%s13069_s1 + $0x11e4] sm:$0xf]  ;;  %v8412_v49 = vld [vmem:[%s13069_s1 + $0x1268] sm:$0xf]  ;;  %v8269_v37 = vor.u32 %v8965_v16, %v8268_v7 }
 0x23c   : >> { %5325 = vmatpush.bf16.msra.mxu2 %v8249_v21  ;;  %4823 = vmatmul.bf16.vlgmr.msrb.gmra.mxu1 %v12404_v52  ;;  %v8946_v52 = vld [vmem:[%s13069_s1 + $0x10c4] sm:$0xf]  ;;  %v8309_v38 = vor.u32 %v8976_v39, %v8308_v55  ;;  %v8972_v41 = vld [vmem:[%s13069_s1 + $0x118c] sm:$0xf0]  ;;  %v8345_v63 = vor.u32 %v8982_v51, %v8342_v47  ;;  %v8995_v5 = vld [vmem:[%s13069_s1 + $0x124c] sm:$0xf] }
 0x23d   : >> { %5317 = vmatpush.bf16.msra.mxu1 %v5273_v24  ;;  %8094 = vmatmul.msk.bf16.vlgmr.msrb.gmra.mxu0 %vm642_vm1, %v12385_v26  ;;  %v12761_v26 = vld [vmem:[%s13069_s1 + $0x1288] sm:$0x11]  ;;  %v12779_v42 = vadd.f32 %v3670_v8, %v12335_v59  ;;  %v8986_v21 = vld [vmem:[%s13069_s1 + $0x1204] sm:$0xf]  ;;  %v8292_v59 = vld [vmem:[%s13069_s1 + $0x1180] sm:$0xf] }
 0x23e   : >> { %5285 = vmatpush.bf16.msra.mxu3 %v8261_v12  ;;  %5300 = vmatpush.bf16.msra.mxu0 %v8357_v40  ;;  %v8201_v12 = vor.u32 %v8946_v52, %v8198_v28  ;;  %v3619_v57 = vpop.f32.mrf.mxu3  ;;  %v8166_v24 = vld [vmem:[%s13069_s1 + $0x1090] sm:$0xf0]  ;;  %v8181_v40 = vor.u32 %v8944_v20, %v8180_v46  ;;  %v8293_v43 = vor.u32 %v8972_v41, %v8292_v59  ;;  %v4930_v52 = vld.sshfl [vmem:[#allocation1 + $0x8] sm:$0xff pattern:$0x73625140] }
 0x23f   : >> { %v8169_v17 = vor.u32 %v8938_v62, %v8166_v24  ;;  %v8978_v6 = vld [vmem:[%s13069_s1 + $0x11c4] sm:$0xf]  ;;  %v8398_v8 = vld [vmem:[%s13069_s1 + $0x1258] sm:$0xf0]  ;;  %v8252_v55 = vld [vmem:[%s13069_s1 + $0x1128] sm:$0xf] }
 0x240   : >> { %5326 = vmatpush.bf16.msra.mxu2 %v8233_v36  ;;  %v8361_v36 = vor.u32 %v8986_v21, %v8358_v61  ;;  %v8974_v46 = vld [vmem:[%s13069_s1 + $0x11a4] sm:$0xf]  ;;  %v8310_v19 = vld [vmem:[%s13069_s1 + $0x11b0] sm:$0xf0]  ;;  %v8401_v20 = vor.u32 %v8995_v5, %v8398_v8  ;;  %v8397_v61 = vor.u32 %v8997_v13, %v8396_v44  ;;  %v8991_v57 = vld [vmem:[%s13069_s1 + $0x122c] sm:$0xf] }
 0x241   : >> { %5336 = vmatpush.bf16.msrb.mxu1 %v8409_v15  ;;  %v4135_v39 = vpop.f32.mrf.mxu1  ;;  %v8313_v59 = vor.u32 %v8974_v46, %v8310_v19  ;;  %v8957_v41 = vld [vmem:[%s13069_s1 + $0x1114] sm:$0xf0]  ;;  %v8380_v62 = vld [vmem:[%s13069_s1 + $0x1228] sm:$0xf]  ;;  %v8970_v24 = vld [vmem:[%s13069_s1 + $0x1184] sm:$0xf] }
 0x242   : >> { %5286 = vmatpush.bf16.msra.mxu3 %v8245_v35  ;;  %5301 = vmatpush.bf16.msra.mxu0 %v8341_v32  ;;  %v5135_v35 = vunpack.c.l.b16 %v12761_v26  ;;  %v8414_v32 = vld [vmem:[%s13069_s1 + $0x1278] sm:$0xf0]  ;;  %v8967_v58 = vld [vmem:[%s13069_s1 + $0x116c] sm:$0xf]  ;;  %v8220_v51 = vld [vmem:[%s13069_s1 + $0x10e8] sm:$0xf] }
 0x243   : >> { %v8417_v4 = vor.u32 %v8999_v54, %v8414_v32  ;;  %v8953_v47 = vld [vmem:[%s13069_s1 + $0x10f4] sm:$0xf0]  ;;  %v8270_v7 = vld [vmem:[%s13069_s1 + $0x1158] sm:$0xf0]  ;;  %v8959_v8 = vld [vmem:[%s13069_s1 + $0x112c] sm:$0xf] }
 0x244   : >> { %5327 = vmatpush.bf16.msra.mxu2 %v8217_v30  ;;  %v5203_v15 = vpack.c.b16 %v5135_v35, %v5135_v35  ;;  %v8165_v30 = vor.u32 %v8940_v2, %v8164_v53  ;;  %v8382_v35 = vld [vmem:[%s13069_s1 + $0x1238] sm:$0xf0]  ;;  %v8381_v53 = vor.u32 %v8993_v23, %v8380_v62  ;;  %v8221_v16 = vor.u32 %v8953_v47, %v8220_v51  ;;  %v8985_v5 = vld [vmem:[%s13069_s1 + $0x11f4] sm:$0xf0]  ;;  %v8188_v46 = vld [vmem:[%s13069_s1 + $0x10a8] sm:$0xf] }
 0x245   : >> { %5337 = vmatpush.bf16.msrb.mxu1 %v8393_v9  ;;  %v9001_v9 = vld [vmem:[%s13069_s1 + $0x1274] sm:$0xf0]  ;;  %v8385_v25 = vor.u32 %v8991_v57, %v8382_v35  ;;  %v8366_v2 = vld [vmem:[%s13069_s1 + $0x1218] sm:$0xf0]  ;;  %v8332_v35 = vld [vmem:[%s13069_s1 + $0x11c8] sm:$0xf] }
 0x246   : >> { %5287 = vmatpush.bf16.msra.mxu3 %v8229_v3  ;;  %5302 = vmatpush.bf16.msra.mxu0 %v8325_v56  ;;  %v4928_v3 = vld.sshfl [vmem:[#allocation1] sm:$0xff pattern:$0x73625140]  ;;  %v8413_v56 = vor.u32 %v9001_v9, %v8412_v49  ;;  %v8369_v32 = vor.u32 %v8987_v11, %v8366_v2  ;;  %v8983_v49 = vld [vmem:[%s13069_s1 + $0x11ec] sm:$0xf] }
 0x247   : >> { %v12843_v28 = vrot.slane %v4928_v3, 1  ;;  %v8945_v19 = vld [vmem:[%s13069_s1 + $0x10b4] sm:$0xf0]  ;;  %v8975_v23 = vld [vmem:[%s13069_s1 + $0x11ac] sm:$0xf] }
 0x248   : >> { %5328 = vmatpush.bf16.msra.mxu2 %v8201_v12  ;;  %v12860_v12 = vrot.slane %v4930_v52, 1  ;;  %v8204_v52 = vld [vmem:[%s13069_s1 + $0x10c8] sm:$0xf]  ;;  %v8189_v62 = vor.u32 %v8945_v19, %v8188_v46  ;;  %v8951_v2 = vld [vmem:[%s13069_s1 + $0x10ec] sm:$0xf] }
 0x249   : >> { %5338 = vmatpush.bf16.msrb.mxu1 %v8377_v1  ;;  %v8961_v1 = vld [vmem:[%s13069_s1 + $0x1134] sm:$0xf0]  ;;  %v8302_v51 = vld [vmem:[%s13069_s1 + $0x1198] sm:$0xf0] }
 0x24a   : >> { %5288 = vmatpush.bf16.msra.mxu3 %v8213_v0  ;;  %5303 = vmatpush.bf16.msra.mxu0 %v8309_v38  ;;  %v5279_v0 = vand.u32 %v5203_v15, %v9112_v18  ;;  %v8253_v21 = vor.u32 %v8961_v1, %v8252_v55  ;;  %v8236_v38 = vld [vmem:[%s13069_s1 + $0x1108] sm:$0xf]  ;;  %v4137_v15 = vpop.f32.mrf.mxu1  ;;  %v8254_v55 = vld [vmem:[%s13069_s1 + $0x1138] sm:$0xf0] }
 0x24b   : >> { %v8257_v57 = vor.u32 %v8959_v8, %v8254_v55 }
 0x24c   : >> { %5329 = vmatpush.bf16.msra.mxu2 %v8185_v45  ;;  %8418 = vmatmul.msk.bf16.vlgmr.msra.gmra.mxu1 %vm642_vm1, %v12822_v60  ;;  %v4122_v45 = vpop.f32.mrf.mxu0 }
 0x24d   : >> { %5339 = vmatpush.bf16.msrb.mxu1 %v8361_v36  ;;  %v8237_v36 = vor.u32 %v8957_v41, %v8236_v38  ;;  %v8981_v38 = vld [vmem:[%s13069_s1 + $0x11d4] sm:$0xf0]  ;;  %v8238_v41 = vld [vmem:[%s13069_s1 + $0x1118] sm:$0xf0] }
 0x24e   : >> { %5289 = vmatpush.bf16.msra.mxu3 %v8197_v27  ;;  %5304 = vmatpush.bf16.msra.mxu0 %v8293_v43  ;;  %v8329_v27 = vor.u32 %v8978_v6, %v8326_v31  ;;  %v4148_v3 = vpop.f32.mrf.mxu2  ;;  %v8297_v43 = vor.u32 %v8970_v24, %v8294_v29  ;;  %v8333_v24 = vor.u32 %v8981_v38, %v8332_v35  ;;  %v8172_v29 = vld [vmem:[%s13069_s1 + $0x1088] sm:$0xf] }
 0x250   : >> { %5330 = vmatpush.bf16.msra.mxu2 %v8169_v17  ;;  %v8364_v17 = vld [vmem:[%s13069_s1 + $0x1208] sm:$0xf] }
 0x251   : >> { %5340 = vmatpush.bf16.msrb.mxu1 %v8345_v63  ;;  %5305 = vmatmul.bf16.vlgmr.msra.gmra.mxu0 %v12860_v12  ;;  %v8350_v63 = vld [vmem:[%s13069_s1 + $0x11f8] sm:$0xf0] }
 0x252   : >> { %5290 = vmatpush.bf16.msra.mxu3 %v8181_v40  ;;  %5362 = vmatpush.bf16.msrb.mxu0 %v8285_v22  ;;  %v8286_v40 = vld [vmem:[%s13069_s1 + $0x1178] sm:$0xf0]  ;;  %v8989_v22 = vld [vmem:[%s13069_s1 + $0x1214] sm:$0xf0] }
 0x253   : >> { %5331 = vmatmul.bf16.vlgmr.msra.gmra.mxu2 %v12843_v28  ;;  %v8289_v48 = vor.u32 %v8967_v58, %v8286_v40  ;;  %v8365_v9 = vor.u32 %v8989_v22, %v8364_v17 }
 0x254   : >> { %5395 = vmatpush.bf16.msrb.mxu2 %v5279_v0  ;;  %v4109_v34 = vpop.f32.mrf.mxu3  ;;  %v4124_v31 = vpop.f32.mrf.mxu0 }
 0x255   : >> { %5341 = vmatpush.bf16.msrb.mxu1 %v8329_v27  ;;  %v4123_v54 = vadd.f32 %v4122_v45, %v4109_v34  ;;  %v8979_v27 = vld [vmem:[%s13069_s1 + $0x11cc] sm:$0xf]  ;;  %v4161_v44 = vpop.f32.mrf.mxu1  ;;  %v8318_v45 = vld [vmem:[%s13069_s1 + $0x11b8] sm:$0xf0] }
 0x256   : >> { %5291 = vmatpush.bf16.msra.mxu3 %v8165_v30  ;;  %5363 = vmatpush.bf16.msrb.mxu0 %v8269_v37  ;;  %v8963_v30 = vld [vmem:[%s13069_s1 + $0x114c] sm:$0xf]  ;;  %v4150_v1 = vpop.f32.mrf.mxu2  ;;  %v8321_v11 = vor.u32 %v8975_v23, %v8318_v45 }
 0x257   : >> { %v4136_v0 = vadd.f32 %v4135_v39, %v4123_v54  ;;  %v8273_v6 = vor.u32 %v8963_v30, %v8270_v7  ;;  %v8973_v30 = vld [vmem:[%s13069_s1 + $0x1194] sm:$0xf0] }
 0x258   : >> { %5414 = vmatpush.bf16.msra.mxu2 %v8417_v4  ;;  %v8348_v4 = vld [vmem:[%s13069_s1 + $0x11e8] sm:$0xf] }
 0x259   : >> { %5292 = vmatmul.bf16.vlgmr.msra.gmra.mxu3 %v12843_v28  ;;  %5342 = vmatpush.bf16.msrb.mxu1 %v8313_v59  ;;  %v12956_v37 = vadd.f32 %v4136_v0, %v12517_v50  ;;  %v8334_v50 = vld [vmem:[%s13069_s1 + $0x11d8] sm:$0xf0]  ;;  %v8349_v13 = vor.u32 %v8985_v5, %v8348_v4  ;;  %v8955_v59 = vld [vmem:[%s13069_s1 + $0x110c] sm:$0xf] }
 0x25a   : >> { %5356 = vmatpush.bf16.msrb.mxu3 %v5276_v14  ;;  %5364 = vmatpush.bf16.msrb.mxu0 %v8253_v21  ;;  %v8949_v14 = vld [vmem:[%s13069_s1 + $0x10d4] sm:$0xf0]  ;;  %v4162_v21 = vadd.f32 %v4161_v44, %v4148_v3  ;;  %v8241_v40 = vor.u32 %v8955_v59, %v8238_v41  ;;  %v8222_v3 = vld [vmem:[%s13069_s1 + $0x10f8] sm:$0xf0]  ;;  %v8939_v5 = vld [vmem:[%s13069_s1 + $0x108c] sm:$0xf] }
 0x25b   : >> { %v8205_v39 = vor.u32 %v8949_v14, %v8204_v52  ;;  %v8225_v54 = vor.u32 %v8951_v2, %v8222_v3  ;;  %v8943_v52 = vld [vmem:[%s13069_s1 + $0x10ac] sm:$0xf]  ;;  %v8190_v14 = vld [vmem:[%s13069_s1 + $0x10b8] sm:$0xf0] }
 0x25c   : >> { %5415 = vmatpush.bf16.msra.mxu2 %v8401_v20  ;;  %v5136_v20 = vunpack.c.h.b16 %v12761_v26  ;;  %v8337_v26 = vor.u32 %v8979_v27, %v8334_v50  ;;  %v8193_v4 = vor.u32 %v8943_v52, %v8190_v14 }
 0x25d   : >> { %5343 = vmatpush.bf16.msrb.mxu1 %v8297_v43  ;;  %v8971_v43 = vld [vmem:[%s13069_s1 + $0x118c] sm:$0xf]  ;;  %v4163_v17 = vpop.f32.mrf.mxu1 }
 0x25e   : >> { %5375 = vmatpush.bf16.msra.mxu3 %v8413_v56  ;;  %5365 = vmatpush.bf16.msrb.mxu0 %v8237_v36  ;;  %v8353_v56 = vor.u32 %v8983_v49, %v8350_v63  ;;  %v5204_v58 = vpack.c.b16 %v5136_v20, %v5136_v20  ;;  %v8316_v36 = vld [vmem:[%s13069_s1 + $0x11a8] sm:$0xf]  ;;  %v8206_v49 = vld [vmem:[%s13069_s1 + $0x10d8] sm:$0xf0] }
 0x260   : >> { %5416 = vmatpush.bf16.msra.mxu2 %v8385_v25  ;;  %5344 = vmatmul.bf16.vlgmr.msrb.gmra.mxu1 %v12860_v12  ;;  %v8941_v25 = vld [vmem:[%s13069_s1 + $0x1094] sm:$0xf0]  ;;  %v5282_v34 = vand.u32 %v5204_v58, %v9112_v18  ;;  %v8947_v18 = vld [vmem:[%s13069_s1 + $0x10cc] sm:$0xf] }
 0x261   : >> { %5401 = vmatpush.bf16.msra.mxu1 %v8289_v48  ;;  %v8173_v15 = vor.u32 %v8941_v25, %v8172_v29  ;;  %v4213_v48 = vpop.f32.mrf.mxu2 }
 0x262   : >> { %5376 = vmatpush.bf16.msra.mxu3 %v8397_v61  ;;  %5366 = vmatpush.bf16.msrb.mxu0 %v8221_v16  ;;  %v4111_v61 = vpop.f32.mrf.mxu3  ;;  %v8305_v16 = vor.u32 %v8971_v43, %v8302_v51 }
 0x263   : >> { %8420 = vmatmul.msk.bf16.vlgmr.msrb.gmra.mxu2 %vm642_vm1, %v12822_v60 }
 0x264   : >> { %5417 = vmatpush.bf16.msra.mxu2 %v8369_v32  ;;  %v8300_v32 = vld [vmem:[%s13069_s1 + $0x1188] sm:$0xf] }
 0x265   : >> { %5402 = vmatpush.bf16.msra.mxu1 %v8273_v6  ;;  %v8301_v0 = vor.u32 %v8973_v30, %v8300_v32 }
 0x266   : >> { %5377 = vmatpush.bf16.msra.mxu3 %v8381_v53  ;;  %5367 = vmatpush.bf16.msrb.mxu0 %v8205_v39  ;;  %v8977_v53 = vld [vmem:[%s13069_s1 + $0x11b4] sm:$0xf0]  ;;  %v4187_v6 = vpop.f32.mrf.mxu0 }
 0x267   : >> { %v8317_v47 = vor.u32 %v8977_v53, %v8316_v36 }
 0x268   : >> { %5418 = vmatpush.bf16.msra.mxu2 %v8353_v56  ;;  %v8174_v56 = vld [vmem:[%s13069_s1 + $0x1098] sm:$0xf0] }
 0x269   : >> { %8419 = vmatmul.msk.bf16.vlgmr.msrb.gmra.mxu3 %vm642_vm1, %v12822_v60  ;;  %5403 = vmatpush.bf16.msra.mxu1 %v8257_v57  ;;  %v4215_v31 = vpop.f32.mrf.mxu2  ;;  %v8177_v8 = vor.u32 %v8939_v5, %v8174_v56 }
 0x26a   : >> { %5378 = vmatpush.bf16.msra.mxu3 %v8365_v9  ;;  %5368 = vmatpush.bf16.msrb.mxu0 %v8189_v62  ;;  %v4174_v22 = vpop.f32.mrf.mxu3  ;;  %v8209_v9 = vor.u32 %v8947_v18, %v8206_v49 }
 0x26b   : >> { %v4175_v7 = vadd.f32 %v4174_v22, %v4162_v21 }
 0x26c   : >> { %5419 = vmatpush.bf16.msra.mxu2 %v8337_v26 }
 0x26d   : >> { %5404 = vmatpush.bf16.msra.mxu1 %v8241_v40  ;;  %v4257_v63 = vadd.f32 %v4175_v7, %v12624_v33 }
 0x26e   : >> { %5379 = vmatpush.bf16.msra.mxu3 %v8349_v13  ;;  %5369 = vmatpush.bf16.msrb.mxu0 %v8173_v15  ;;  %v4189_v55 = vpop.f32.mrf.mxu0 }
 0x270   : >> { %5420 = vmatpush.bf16.msra.mxu2 %v8321_v11 }
 0x271   : >> { %5405 = vmatpush.bf16.msra.mxu1 %v8225_v54  ;;  %5370 = vmatmul.bf16.vlgmr.msrb.gmra.mxu0 %v12843_v28 }
 0x272   : >> { %5380 = vmatpush.bf16.msra.mxu3 %v8333_v24  ;;  %5434 = vmatpush.bf16.msra.mxu0 %v5282_v34  ;;  %v4176_v33 = vpop.f32.mrf.mxu3  ;;  %v4239_v39 = vpop.f32.mrf.mxu2 }
 0x274   : >> { %5421 = vmatpush.bf16.msra.mxu2 %v8305_v16 }
 0x275   : >> { %5406 = vmatpush.bf16.msra.mxu1 %v8209_v9  ;;  %v4226_v44 = vpop.f32.mrf.mxu1 }
 0x276   : >> { %5381 = vmatpush.bf16.msra.mxu3 %v8317_v47  ;;  %v4240_v13 = vadd.f32 %v4239_v39, %v4226_v44  ;;  %v4252_v19 = vpop.f32.mrf.mxu0 }
 0x277   : >> { %5422 = vmatmul.bf16.vlgmr.msra.gmra.mxu2 %v12860_v12 }
 0x278   : >> { %v4253_v20 = vadd.f32 %v4252_v19, %v4240_v13 }
 0x279   : >> { %5407 = vmatpush.bf16.msra.mxu1 %v8193_v4 }
 0x27a   : >> { %5382 = vmatpush.bf16.msra.mxu3 %v8301_v0  ;;  %v4200_v27 = vpop.f32.mrf.mxu3  ;;  %v4259_v21 = vadd.f32 %v4253_v20, %v12779_v42 }
 0x27b   : >> { %v4201_v50 = vadd.f32 %v4200_v27, %v4187_v6 }
 0x27d   : >> { %5383 = vmatmul.bf16.vlgmr.msra.gmra.mxu3 %v12860_v12  ;;  %5408 = vmatpush.bf16.msra.mxu1 %v8177_v8  ;;  %v4214_v1 = vadd.f32 %v4213_v48, %v4201_v50  ;;  %v4241_v12 = vpop.f32.mrf.mxu2  ;;  %v4228_v57 = vpop.f32.mrf.mxu1 }
 0x27e   : >> { %v4254_v35 = vpop.f32.mrf.mxu0 }
 0x27f   : >> { %v4258_v46 = vadd.f32 %v4214_v1, %v12756_v10 }
 0x280   : >> { %5409 = vmatmul.bf16.vlgmr.msra.gmra.mxu1 %v12843_v28 }
 0x281   : >> { %8421 = vmatmul.msk.bf16.vlgmr.msra.gmra.mxu0 %vm642_vm1, %v12822_v60 }
 0x282   : >> { %v4202_v61 = vpop.f32.mrf.mxu3 }
 0x285   : >> { %v4733_v38 = vpop.f32.mrf.mxu1 }
 0x28a   : >> { %v4720_v26 = vpop.f32.mrf.mxu0 }
 0x28d   : >> { %v4735_v28 = vpop.f32.mrf.mxu1 }
 0x292   : >> { %v4746_v59 = vpop.f32.mrf.mxu2  ;;  %v4722_v45 = vpop.f32.mrf.mxu0 }
 0x298   : >> { %v4707_v41 = vpop.f32.mrf.mxu3 }
 0x299   : >> { %v4721_v62 = vadd.f32 %v4720_v26, %v4707_v41  ;;  %v4759_v10 = vpop.f32.mrf.mxu1 }
 0x29a   : >> { %v4748_v24 = vpop.f32.mrf.mxu2  ;;  %v4760_v29 = vadd.f32 %v4759_v10, %v4746_v59 }
 0x29b   : >> { %v4734_v23 = vadd.f32 %v4733_v38, %v4721_v62 }
 0x29d   : >> { %v4854_v60 = vadd.f32 %v4734_v23, %v12956_v37 }
 0x2a0   : >> { %v4709_v25 = vpop.f32.mrf.mxu3 }
 0x2a1   : >> { %v4761_v40 = vpop.f32.mrf.mxu1 }
 0x2a2   : >> { %v4811_v58 = vpop.f32.mrf.mxu2 }
 0x2a8   : >> { %v4772_v42 = vpop.f32.mrf.mxu3 }
 0x2a9   : >> { %v4773_v36 = vadd.f32 %v4772_v42, %v4760_v29 }
 0x2aa   : >> { %v4785_v11 = vpop.f32.mrf.mxu0  ;;  %v4813_v2 = vpop.f32.mrf.mxu2 }
 0x2ab   : >> { %v4855_v53 = vadd.f32 %v4773_v36, %v4257_v63 }
 0x2b0   : >> { %v4774_v3 = vpop.f32.mrf.mxu3 }
 0x2b2   : >> { %v4787_v15 = vpop.f32.mrf.mxu0 }
 0x2b6   : >> { %v4837_v43 = vpop.f32.mrf.mxu2 }
 0x2b9   : >> { %v4824_v48 = vpop.f32.mrf.mxu1 }
 0x2ba   : >> { %v4838_v17 = vadd.f32 %v4837_v43, %v4824_v48  ;;  %v4850_v22 = vpop.f32.mrf.mxu0 }
 0x2bc   : >> { %v4798_v51 = vpop.f32.mrf.mxu3  ;;  %v4851_v54 = vadd.f32 %v4850_v22, %v4838_v17 }
 0x2bd   : >> { %v4799_v47 = vadd.f32 %v4798_v51, %v4785_v11 }
 0x2be   : >> { %v4839_v32 = vpop.f32.mrf.mxu2  ;;  %v4857_v30 = vadd.f32 %v4851_v54, %v4259_v21 }
 0x2bf   : >> { %v4812_v34 = vadd.f32 %v4811_v58, %v4799_v47 }
 0x2c1   : >> { %v4856_v37 = vadd.f32 %v4812_v34, %v4258_v46  ;;  %v4826_v16 = vpop.f32.mrf.mxu1 }
 0x2c2   : >> { %v4852_v18 = vpop.f32.mrf.mxu0 }
 0x2c4   : >> { %v4800_v7 = vpop.f32.mrf.mxu3 }
 0x2c9   : >> { %v5319_v49 = vpop.f32.mrf.mxu1 }
 0x2ce   : >> { %v5306_v63 = vpop.f32.mrf.mxu0 }
 0x2d1   : >> { %v5321_v9 = vpop.f32.mrf.mxu1 }
 0x2d6   : >> { %v5332_v0 = vpop.f32.mrf.mxu2  ;;  %v5308_v14 = vpop.f32.mrf.mxu0 }
 0x2dc   : >> { %v5293_v52 = vpop.f32.mrf.mxu3 }
 0x2dd   : >> { %v5307_v6 = vadd.f32 %v5306_v63, %v5293_v52  ;;  %v5345_v33 = vpop.f32.mrf.mxu1 }
 0x2de   : >> { %v5334_v31 = vpop.f32.mrf.mxu2  ;;  %v5346_v8 = vadd.f32 %v5345_v33, %v5332_v0 }
 0x2df   : >> { %v5320_v5 = vadd.f32 %v5319_v49, %v5307_v6 }
 0x2e1   : >> { %v5440_v56 = vadd.f32 %v5320_v5, %v4854_v60 }
 0x2e3   : >> { %v5444_v1 = vmul.f32 0.2, %v5440_v56 }
 0x2e4   : >> { %v5295_v4 = vpop.f32.mrf.mxu3 }
 0x2e5   : >> { %v5347_v39 = vpop.f32.mrf.mxu1  ;;  %v5448_v19 = vmax.f32 %v5440_v56, %v5444_v1 }
 0x2e6   : >> { %v5397_v55 = vpop.f32.mrf.mxu2 }
 0x2ec   : >> { %v5358_v27 = vpop.f32.mrf.mxu3 }
 0x2ed   : >> { %v5359_v50 = vadd.f32 %v5358_v27, %v5346_v8 }
 0x2ee   : >> { %v5371_v46 = vpop.f32.mrf.mxu0  ;;  %v5399_v12 = vpop.f32.mrf.mxu2 }
 0x2ef   : >> { %v5441_v44 = vadd.f32 %v5359_v50, %v4855_v53 }
 0x2f1   : >> { %v5445_v13 = vmul.f32 0.2, %v5441_v44 }
 0x2f3   : >> { %v5449_v20 = vmax.f32 %v5441_v44, %v5445_v13 }
 0x2f4   : >> { %v5360_v21 = vpop.f32.mrf.mxu3 }
 0x2f5   : >> { %v5452_v61 = vpack.c.bf16 %v5449_v20, %v5448_v19 }
 0x2f6   : >> { %v5373_v57 = vpop.f32.mrf.mxu0 }
 0x2f7   : >> { %v5456_v53 = vrot.slane %v5452_v61, 3 }
 0x2f9   : >> { %v5461_v15 = vsel %vm646_vm0, %v5452_v61, %v5456_v53 }
 0x2fa   : >> { %v5423_v35 = vpop.f32.mrf.mxu2 }
 0x2fd   : >> { %v5410_v28 = vpop.f32.mrf.mxu1 }
 0x2fe   : >> { %v5424_v41 = vadd.f32 %v5423_v35, %v5410_v28  ;;  %v5436_v23 = vpop.f32.mrf.mxu0 }
 0x300   : >> { %v5384_v38 = vpop.f32.mrf.mxu3  ;;  %v5437_v45 = vadd.f32 %v5436_v23, %v5424_v41 }
 0x301   : >> { %v5385_v26 = vadd.f32 %v5384_v38, %v5371_v46 }
 0x302   : >> { %v5425_v60 = vpop.f32.mrf.mxu2  ;;  %v5443_v10 = vadd.f32 %v5437_v45, %v4857_v30 }
 0x303   : >> { %v5398_v59 = vadd.f32 %v5397_v55, %v5385_v26 }
 0x304   : >> { %v5447_v25 = vmul.f32 0.2, %v5443_v10 }
 0x305   : >> { %v5442_v62 = vadd.f32 %v5398_v59, %v4856_v37  ;;  %v5412_v58 = vpop.f32.mrf.mxu1 }
 0x306   : >> { %v5451_v42 = vmax.f32 %v5443_v10, %v5447_v25  ;;  %v5438_v36 = vpop.f32.mrf.mxu0 }
 0x307   : >> { %v5446_v24 = vmul.f32 0.2, %v5442_v62 }
 0x308   : >> { %v5386_v29 = vpop.f32.mrf.mxu3 }
 0x309   : >> { %v5450_v40 = vmax.f32 %v5442_v62, %v5446_v24 }
 0x30b   : >> { %v5453_v11 = vpack.c.bf16 %v5451_v42, %v5450_v40 }
 0x30d   : >> { %v5457_v2 = vrot.slane %v5453_v11, 6  ;;  %v5458_v3 = vrot.slane %v5453_v11, 1  ;;  %147 = sbr.rel (!%p145_p4) target bundleno = 15 (0xf), region = 77 }
 0x30f   : >> { %v5465_v43 = vsel %vm5462_vm2, %v5457_v2, %v5458_v3 }
 0x310   : >> { %v5467_v51 = vsel %vm5466_vm3, %v5461_v15, %v5465_v43 }
 0x311   : >> { %5471 = vst [vmem:[%s5470_s13] sm:$0xf] %v5467_v51 }
 0x312 PF: > { %s12_s9 = sadd.s32 1, %s9030_s9  }
 0x313   : > { %p9_p5 = scmp.ge.s32.totalorder %s12_s9, 4  }
 0x315   :  { %11 = sbr.rel (!%p9_p5) target bundleno = 1 (0x1), region = 88 }

// kernel: discriminator_forward.9
= control target key start
LH: loop header
LB: loop body
LE: loop exit
PB: predicated region body
PF: predicated region fallthrough
CT: control target
= control target key end

     0   :  { %s5249_s9 = smov 0   ;;  %s6234_s0 = inlined_call_operand.vmem [shape: bf16[2,4,4,512], index: 0, kind: input, shape index: {}]   ;;  %s6235_s1 = inlined_call_operand.vmem [shape: bf16[9,512,128], index: 1, kind: input, shape index: {}]   ;;  %s6236_s2 = inlined_call_operand.vmem [shape: f32[2,2,2,128], index: 2, kind: output, shape index: {}]  }
   0x1 LB: > { %s3221_s10 = sadd.s32 4294967295, %s5228_s9   ;;  %p3225_p0 = scmp.ge.s32.totalorder %s5228_s9, 1  ;;  %s5228_s9 = sphi %s5249_s9, %s12_s9  }
   0x2   : > { %p112_p1 = scmp.lt.s32.totalorder %s5228_s9, 3 }
   0x4   : > { %p113_p2 = pnand %p3225_p0, %p112_p1 }
   0x5   : > { %p134_p3 = scmp.lt.s32.totalorder (!%p113_p2), %s3221_s10, 1  ;;  %s5267_s19 = smov (!%p113_p2), 0  }
   0x6   : > { %116 = sbr.rel (%p113_p2) target bundleno = 463 (0x1cf), region = 28 }
   0xb   : > { %s6238_s10 = smov (!%p134_p3, %s3221_s10), 1 }
   0xc   : > { %s4907_s11 = sshll.u32 %s6238_s10, 5  ;;  %s4908_s12 = sshll.u32 %s6238_s10, 2 }
   0xd   : > { %s5260_s15 = scalar_lea.vmem %s6234_s0, %s4907_s11  ;;  %s5265_s18 = scalar_lea.vmem %s6236_s2, %s4908_s12 }
   0xe LB: >> { %v4949_v0 = vld [vmem:[%s6235_s1 + $0x138] sm:$0xff]  ;;  %v4948_v4 = vld [vmem:[%s6235_s1 + $0x130] sm:$0xff]  ;;  %v4947_v8 = vld [vmem:[%s6235_s1 + $0x128] sm:$0xff]  ;;  %s4909_s28 = sshll.u32 %s5232_s19, 3  ;;  %s5232_s19 = sphi %s5267_s19, %s149_s19  }
   0xf   : >> { %v4957_v1 = vld [vmem:[%s6235_s1 + $0x178] sm:$0xff]  ;;  %510 = vmatpush.bf16.msra.mxu0 %v4949_v0  ;;  %v4956_v5 = vld [vmem:[%s6235_s1 + $0x170] sm:$0xff]  ;;  %v4955_v9 = vld [vmem:[%s6235_s1 + $0x168] sm:$0xff]  ;;  %s5328_s5 = scalar_lea.vmem %s5260_s15, %s4909_s28 }
  0x10   : >> { %v4965_v2 = vld [vmem:[%s6235_s1 + $0x1b8] sm:$0xff]  ;;  %523 = vmatpush.bf16.msra.mxu1 %v4957_v1  ;;  %v4964_v6 = vld [vmem:[%s6235_s1 + $0x1b0] sm:$0xff]  ;;  %v4963_v10 = vld [vmem:[%s6235_s1 + $0x1a8] sm:$0xff] }
  0x11   : >> { %v4973_v3 = vld [vmem:[%s6235_s1 + $0x1f8] sm:$0xff]  ;;  %536 = vmatpush.bf16.msra.mxu2 %v4965_v2  ;;  %v4972_v7 = vld [vmem:[%s6235_s1 + $0x1f0] sm:$0xff]  ;;  %v4971_v11 = vld [vmem:[%s6235_s1 + $0x1e8] sm:$0xff] }
  0x12   : >> { %549 = vmatpush.bf16.msra.mxu3 %v4973_v3  ;;  %v4946_v12 = vld [vmem:[%s6235_s1 + $0x120] sm:$0xff]  ;;  %v4945_v16 = vld [vmem:[%s6235_s1 + $0x118] sm:$0xff]  ;;  %v4944_v21 = vld [vmem:[%s6235_s1 + $0x110] sm:$0xff] }
  0x13   : >> { %511 = vmatpush.bf16.msra.mxu0 %v4948_v4  ;;  %v4954_v13 = vld [vmem:[%s6235_s1 + $0x160] sm:$0xff]  ;;  %v4953_v17 = vld [vmem:[%s6235_s1 + $0x158] sm:$0xff]  ;;  %v4952_v22 = vld [vmem:[%s6235_s1 + $0x150] sm:$0xff] }
  0x14   : >> { %524 = vmatpush.bf16.msra.mxu1 %v4956_v5  ;;  %v4962_v14 = vld [vmem:[%s6235_s1 + $0x1a0] sm:$0xff]  ;;  %v4961_v18 = vld [vmem:[%s6235_s1 + $0x198] sm:$0xff]  ;;  %v4960_v23 = vld [vmem:[%s6235_s1 + $0x190] sm:$0xff] }
  0x15   : >> { %537 = vmatpush.bf16.msra.mxu2 %v4964_v6  ;;  %v4970_v15 = vld [vmem:[%s6235_s1 + $0x1e0] sm:$0xff]  ;;  %v4969_v19 = vld [vmem:[%s6235_s1 + $0x1d8] sm:$0xff]  ;;  %v4968_v24 = vld [vmem:[%s6235_s1 + $0x1d0] sm:$0xff] }
  0x16   : >> { %550 = vmatpush.bf16.msra.mxu3 %v4972_v7  ;;  %v218_v20 = vld [vmem:[%s5328_s5] sm:$0xff]  ;;  %v4943_v25 = vld [vmem:[%s6235_s1 + $0x108] sm:$0xff]  ;;  %v4917_v41 = vld [vmem:[%s6235_s1 + $0x38] sm:$0xff] }
  0x17   : >> { %512 = vmatpush.bf16.msra.mxu0 %v4947_v8  ;;  %285 = vst [vmem:[#allocation1] ss:$4 sm:$0xff] %v218_v20  ;;  %v4951_v26 = vld [vmem:[%s6235_s1 + $0x148] sm:$0xff]  ;;  %v4942_v29 = vld [vmem:[%s6235_s1 + $0x100] sm:$0xff]  ;;  %v4925_v42 = vld [vmem:[%s6235_s1 + $0x78] sm:$0xff] }
  0x18   : >> { %525 = vmatpush.bf16.msra.mxu1 %v4955_v9  ;;  %v4959_v27 = vld [vmem:[%s6235_s1 + $0x188] sm:$0xff]  ;;  %v4950_v30 = vld [vmem:[%s6235_s1 + $0x140] sm:$0xff]  ;;  %v4933_v47 = vld [vmem:[%s6235_s1 + $0xb8] sm:$0xff] }
  0x19   : >> { %538 = vmatpush.bf16.msra.mxu2 %v4963_v10  ;;  %v4967_v28 = vld [vmem:[%s6235_s1 + $0x1c8] sm:$0xff]  ;;  %v4958_v33 = vld [vmem:[%s6235_s1 + $0x180] sm:$0xff]  ;;  %v4941_v48 = vld [vmem:[%s6235_s1 + $0xf8] sm:$0xff] }
  0x1a   : >> { %551 = vmatpush.bf16.msra.mxu3 %v4971_v11  ;;  %v4966_v34 = vld [vmem:[%s6235_s1 + $0x1c0] sm:$0xff]  ;;  %v4916_v56 = vld [vmem:[%s6235_s1 + $0x30] sm:$0xff]  ;;  %v4915_v62 = vld [vmem:[%s6235_s1 + $0x28] sm:$0xff] }
  0x1b   : >> { %513 = vmatpush.bf16.msra.mxu0 %v4946_v12  ;;  %v153_v54 = vld [vmem:[%s5328_s5] sm:$0x55]  ;;  %v4924_v57 = vld [vmem:[%s6235_s1 + $0x70] sm:$0xff]  ;;  %v4923_v63 = vld [vmem:[%s6235_s1 + $0x68] sm:$0xff] }
  0x1c   : >> { %526 = vmatpush.bf16.msra.mxu1 %v4954_v13  ;;  %v4932_v59 = vld [vmem:[%s6235_s1 + $0xb0] sm:$0xff]  ;;  %v4931_v0 = vld [vmem:[%s6235_s1 + $0xa8] sm:$0xff]  ;;  %v4914_v2 = vld [vmem:[%s6235_s1 + $0x20] sm:$0xff] }
  0x1d   : >> { %539 = vmatpush.bf16.msra.mxu2 %v4962_v14  ;;  %v4940_v60 = vld [vmem:[%s6235_s1 + $0xf0] sm:$0xff]  ;;  %v4939_v1 = vld [vmem:[%s6235_s1 + $0xe8] sm:$0xff]  ;;  %v4922_v6 = vld [vmem:[%s6235_s1 + $0x60] sm:$0xff] }
  0x1e   : >> { %552 = vmatpush.bf16.msra.mxu3 %v4970_v15  ;;  %v288_v31 = vld.sshfl [vmem:[#allocation1 + $0x10] sm:$0xff pattern:$0x73625140]  ;;  %v286_v32 = vld.sshfl [vmem:[#allocation1] sm:$0xff pattern:$0x73625140] }
  0x1f   : >> { %514 = vmatpush.bf16.msra.mxu0 %v4945_v16  ;;  %v302_v35 = vshrl.u32 %v288_v31, 16  ;;  %v304_v36 = vshll.u32 %v288_v31, 16  ;;  %v290_v37 = vshrl.u32 %v286_v32, 16  ;;  %v292_v38 = vshll.u32 %v286_v32, 16  ;;  %v816_v8 = vld [vmem:[%s5328_s5] sm:$0xaa] }
  0x20   : >> { %527 = vmatpush.bf16.msra.mxu1 %v4953_v17  ;;  %v289_v39 = vld.sshfl [vmem:[#allocation1 + $0x18] sm:$0xff pattern:$0x73625140]  ;;  %v287_v40 = vld.sshfl [vmem:[#allocation1 + $0x8] sm:$0xff pattern:$0x73625140] }
  0x21   : >> { %540 = vmatpush.bf16.msra.mxu2 %v4961_v18  ;;  %v306_v43 = vrot.slane %v304_v36, 1  ;;  %v294_v44 = vrot.slane %v292_v38, 1  ;;  %v308_v45 = vshrl.u32 %v289_v39, 16  ;;  %v310_v46 = vshll.u32 %v289_v39, 16  ;;  %563 = vst [vmem:[#allocation1] ss:$4 sm:$0xff] %v153_v54 }
  0x22   : >> { %553 = vmatpush.bf16.msra.mxu3 %v4969_v19  ;;  %v296_v49 = vshrl.u32 %v287_v40, 16  ;;  %v298_v50 = vshll.u32 %v287_v40, 16  ;;  %v4930_v9 = vld [vmem:[%s6235_s1 + $0xa0] sm:$0xff]  ;;  %v4913_v11 = vld [vmem:[%s6235_s1 + $0x18] sm:$0xff]  ;;  %v4912_v15 = vld [vmem:[%s6235_s1 + $0x10] sm:$0xff] }
  0x23   : >> { %515 = vmatpush.bf16.msra.mxu0 %v4944_v21  ;;  %v307_v51 = vor.u32 %v306_v43, %v302_v35  ;;  %v295_v52 = vor.u32 %v294_v44, %v290_v37  ;;  %v312_v53 = vrot.slane %v310_v46, 1  ;;  %v4938_v10 = vld [vmem:[%s6235_s1 + $0xe0] sm:$0xff]  ;;  %v4921_v12 = vld [vmem:[%s6235_s1 + $0x58] sm:$0xff]  ;;  %v4920_v16 = vld [vmem:[%s6235_s1 + $0x50] sm:$0xff] }
  0x24   : >> { %528 = vmatpush.bf16.msra.mxu1 %v4952_v22  ;;  %v300_v55 = vrot.slane %v298_v50, 1  ;;  %v4929_v13 = vld [vmem:[%s6235_s1 + $0x98] sm:$0xff]  ;;  %v4928_v17 = vld [vmem:[%s6235_s1 + $0x90] sm:$0xff]  ;;  %v4911_v19 = vld [vmem:[%s6235_s1 + $0x8] sm:$0xff] }
  0x25   : >> { %541 = vmatpush.bf16.msra.mxu2 %v4960_v23  ;;  %v313_v58 = vor.u32 %v312_v53, %v308_v45  ;;  %v4937_v14 = vld [vmem:[%s6235_s1 + $0xd8] sm:$0xff]  ;;  %v4936_v18 = vld [vmem:[%s6235_s1 + $0xd0] sm:$0xff]  ;;  %v4919_v20 = vld [vmem:[%s6235_s1 + $0x48] sm:$0xff] }
  0x26   : >> { %554 = vmatpush.bf16.msra.mxu3 %v4968_v24  ;;  %v301_v61 = vor.u32 %v300_v55, %v296_v49  ;;  %v4927_v21 = vld [vmem:[%s6235_s1 + $0x88] sm:$0xff]  ;;  %v4910_v23 = vld [vmem:[%s6235_s1] sm:$0xff]  ;;  %v4980_v31 = vld [vmem:[%s6235_s1 + $0x230] sm:$0xff] }
  0x27   : >> { %516 = vmatpush.bf16.msra.mxu0 %v4943_v25  ;;  %v4935_v22 = vld [vmem:[%s6235_s1 + $0xc8] sm:$0xff]  ;;  %v4918_v24 = vld [vmem:[%s6235_s1 + $0x40] sm:$0xff]  ;;  %v4988_v32 = vld [vmem:[%s6235_s1 + $0x270] sm:$0xff] }
  0x28   : >> { %529 = vmatpush.bf16.msra.mxu1 %v4951_v26  ;;  %v566_v3 = vld.sshfl [vmem:[#allocation1 + $0x10] sm:$0xff pattern:$0x73625140]  ;;  %v564_v4 = vld.sshfl [vmem:[#allocation1] sm:$0xff pattern:$0x73625140] }
  0x29   : >> { %542 = vmatpush.bf16.msra.mxu2 %v4959_v27  ;;  %v567_v5 = vld.sshfl [vmem:[#allocation1 + $0x18] sm:$0xff pattern:$0x73625140]  ;;  %v565_v7 = vld.sshfl [vmem:[#allocation1 + $0x8] sm:$0xff pattern:$0x73625140] }
  0x2a   : >> { %555 = vmatpush.bf16.msra.mxu3 %v4967_v28  ;;  %883 = vst [vmem:[#allocation1] ss:$4 sm:$0xff] %v816_v8  ;;  %v4926_v25 = vld [vmem:[%s6235_s1 + $0x80] sm:$0xff]  ;;  %v4981_v27 = vld [vmem:[%s6235_s1 + $0x238] sm:$0xff]  ;;  %v4979_v35 = vld [vmem:[%s6235_s1 + $0x228] sm:$0xff] }
  0x2b   : >> { %517 = vmatpush.bf16.msra.mxu0 %v4942_v29  ;;  %v4934_v26 = vld [vmem:[%s6235_s1 + $0xc0] sm:$0xff]  ;;  %v4989_v28 = vld [vmem:[%s6235_s1 + $0x278] sm:$0xff]  ;;  %v4987_v36 = vld [vmem:[%s6235_s1 + $0x268] sm:$0xff] }
  0x2c   : >> { %530 = vmatpush.bf16.msra.mxu1 %v4950_v30  ;;  %v4997_v29 = vld [vmem:[%s6235_s1 + $0x2b8] sm:$0xff]  ;;  %v4995_v37 = vld [vmem:[%s6235_s1 + $0x2a8] sm:$0xff]  ;;  %v4978_v39 = vld [vmem:[%s6235_s1 + $0x220] sm:$0xff] }
  0x2d   : >> { %543 = vmatpush.bf16.msra.mxu2 %v4958_v33  ;;  %v5005_v30 = vld [vmem:[%s6235_s1 + $0x2f8] sm:$0xff]  ;;  %v4996_v33 = vld [vmem:[%s6235_s1 + $0x2b0] sm:$0xff]  ;;  %v5003_v38 = vld [vmem:[%s6235_s1 + $0x2e8] sm:$0xff] }
  0x2e   : >> { %556 = vmatpush.bf16.msra.mxu3 %v4966_v34  ;;  %518 = vmatmul.bf16.vlgmr.msra.gmra.mxu0 %v295_v52  ;;  %v5004_v34 = vld [vmem:[%s6235_s1 + $0x2f0] sm:$0xff]  ;;  %v4986_v40 = vld [vmem:[%s6235_s1 + $0x260] sm:$0xff]  ;;  %v4977_v43 = vld [vmem:[%s6235_s1 + $0x218] sm:$0xff] }
  0x2f   : >> { %764 = vmatpush.bf16.msrb.mxu0 %v4917_v41  ;;  %531 = vmatmul.bf16.vlgmr.msra.gmra.mxu1 %v301_v61  ;;  %v4994_v41 = vld [vmem:[%s6235_s1 + $0x2a0] sm:$0xff]  ;;  %v4985_v44 = vld [vmem:[%s6235_s1 + $0x258] sm:$0xff]  ;;  %v4992_v49 = vld [vmem:[%s6235_s1 + $0x290] sm:$0xff] }
  0x30   : >> { %777 = vmatpush.bf16.msrb.mxu1 %v4925_v42  ;;  %544 = vmatmul.bf16.vlgmr.msra.gmra.mxu2 %v307_v51  ;;  %v5002_v42 = vld [vmem:[%s6235_s1 + $0x2e0] sm:$0xff]  ;;  %v4993_v45 = vld [vmem:[%s6235_s1 + $0x298] sm:$0xff]  ;;  %v5000_v50 = vld [vmem:[%s6235_s1 + $0x2d0] sm:$0xff] }
  0x31   : >> { %790 = vmatpush.bf16.msrb.mxu2 %v4933_v47  ;;  %557 = vmatmul.bf16.vlgmr.msra.gmra.mxu3 %v313_v58  ;;  %v5001_v46 = vld [vmem:[%s6235_s1 + $0x2d8] sm:$0xff]  ;;  %v4976_v47 = vld [vmem:[%s6235_s1 + $0x210] sm:$0xff]  ;;  %v4975_v51 = vld [vmem:[%s6235_s1 + $0x208] sm:$0xff] }
  0x32   : >> { %803 = vmatpush.bf16.msrb.mxu3 %v4941_v48  ;;  %v4984_v48 = vld [vmem:[%s6235_s1 + $0x250] sm:$0xff]  ;;  %v4983_v52 = vld [vmem:[%s6235_s1 + $0x248] sm:$0xff]  ;;  %v4982_v61 = vld [vmem:[%s6235_s1 + $0x240] sm:$0xff] }
  0x33   : >> { %765 = vmatpush.bf16.msrb.mxu0 %v4916_v56  ;;  %v4991_v53 = vld [vmem:[%s6235_s1 + $0x288] sm:$0xff]  ;;  %v888_v55 = vld.sshfl [vmem:[#allocation1 + $0x10] sm:$0xff pattern:$0x73625140] }
  0x34   : >> { %778 = vmatpush.bf16.msrb.mxu1 %v4924_v57  ;;  %v4999_v54 = vld [vmem:[%s6235_s1 + $0x2c8] sm:$0xff]  ;;  %v890_v56 = vld.sshfl [vmem:[#allocation1 + $0x18] sm:$0xff pattern:$0x73625140]  ;;  %v5012_v8 = vld [vmem:[%s6235_s1 + $0x330] sm:$0xff] }
  0x35   : >> { %791 = vmatpush.bf16.msrb.mxu2 %v4932_v59  ;;  %v884_v57 = vld.sshfl [vmem:[#allocation1] sm:$0xff pattern:$0x73625140]  ;;  %v886_v58 = vld.sshfl [vmem:[#allocation1 + $0x8] sm:$0xff pattern:$0x73625140] }
  0x36   : >> { %804 = vmatpush.bf16.msrb.mxu3 %v4940_v60  ;;  %v3745_v59 = vld [vmem:[%s5328_s5 + $0x8] sm:$0x55]  ;;  %v4974_v60 = vld [vmem:[%s6235_s1 + $0x200] sm:$0xff] }
  0x37   : >> { %766 = vmatpush.bf16.msrb.mxu0 %v4915_v62  ;;  %1216 = vst [vmem:[#allocation1] ss:$4 sm:$0xff] %v3745_v59  ;;  %v4990_v62 = vld [vmem:[%s6235_s1 + $0x280] sm:$0xff] }
  0x38   : >> { %779 = vmatpush.bf16.msrb.mxu1 %v4923_v63  ;;  %v4998_v63 = vld [vmem:[%s6235_s1 + $0x2c0] sm:$0xff] }
  0x39   : >> { %792 = vmatpush.bf16.msrb.mxu2 %v4931_v0  ;;  %v5013_v0 = vld [vmem:[%s6235_s1 + $0x338] sm:$0xff]  ;;  %v5050_v59 = vld [vmem:[%s6235_s1 + $0x460] sm:$0xff] }
  0x3a   : >> { %805 = vmatpush.bf16.msrb.mxu3 %v4939_v1  ;;  %v5021_v1 = vld [vmem:[%s6235_s1 + $0x378] sm:$0xff] }
  0x3b   : >> { %767 = vmatpush.bf16.msrb.mxu0 %v4914_v2  ;;  %v5029_v2 = vld [vmem:[%s6235_s1 + $0x3b8] sm:$0xff] }
  0x3c   : >> { %780 = vmatpush.bf16.msrb.mxu1 %v4922_v6  ;;  %v892_v6 = vrot.slane %v884_v57, 1  ;;  %v5067_v57 = vld [vmem:[%s6235_s1 + $0x4e8] sm:$0xff] }
  0x3d   : >> { %793 = vmatpush.bf16.msrb.mxu2 %v4930_v9  ;;  %v5020_v9 = vld [vmem:[%s6235_s1 + $0x370] sm:$0xff] }
  0x3e   : >> { %806 = vmatpush.bf16.msrb.mxu3 %v4938_v10  ;;  %v3938_v10 = vld [vmem:[%s5328_s5 + $0x8] sm:$0xff] }
  0x3f   : >> { %768 = vmatpush.bf16.msrb.mxu0 %v4913_v11  ;;  %v5028_v11 = vld [vmem:[%s6235_s1 + $0x3b0] sm:$0xff] }
  0x40   : >> { %781 = vmatpush.bf16.msrb.mxu1 %v4921_v12  ;;  %v5036_v12 = vld [vmem:[%s6235_s1 + $0x3f0] sm:$0xff] }
  0x41   : >> { %794 = vmatpush.bf16.msrb.mxu2 %v4929_v13  ;;  %v5593_v13 = vld.sshfl [vmem:[#allocation1 + $0x10] sm:$0xff pattern:$0x73625140] }
  0x42   : >> { %807 = vmatpush.bf16.msrb.mxu3 %v4937_v14  ;;  %v5595_v14 = vld.sshfl [vmem:[#allocation1 + $0x18] sm:$0xff pattern:$0x73625140] }
  0x43   : >> { %769 = vmatpush.bf16.msrb.mxu0 %v4912_v15  ;;  %v5597_v15 = vld.sshfl [vmem:[#allocation1] sm:$0xff pattern:$0x73625140] }
  0x44   : >> { %782 = vmatpush.bf16.msrb.mxu1 %v4920_v16  ;;  %v5599_v16 = vld.sshfl [vmem:[#allocation1 + $0x8] sm:$0xff pattern:$0x73625140] }
  0x45   : >> { %795 = vmatpush.bf16.msrb.mxu2 %v4928_v17  ;;  %v5011_v17 = vld [vmem:[%s6235_s1 + $0x328] sm:$0xff]  ;;  %1537 = vst [vmem:[#allocation1] ss:$4 sm:$0xff] %v3938_v10 }
  0x46   : >> { %808 = vmatpush.bf16.msrb.mxu3 %v4936_v18  ;;  %v5019_v18 = vld [vmem:[%s6235_s1 + $0x368] sm:$0xff] }
  0x47   : >> { %770 = vmatpush.bf16.msrb.mxu0 %v4911_v19  ;;  %v5027_v19 = vld [vmem:[%s6235_s1 + $0x3a8] sm:$0xff] }
  0x48   : >> { %783 = vmatpush.bf16.msrb.mxu1 %v4919_v20  ;;  %v5035_v20 = vld [vmem:[%s6235_s1 + $0x3e8] sm:$0xff] }
  0x49   : >> { %796 = vmatpush.bf16.msrb.mxu2 %v4927_v21  ;;  %v5010_v21 = vld [vmem:[%s6235_s1 + $0x320] sm:$0xff]  ;;  %v5055_v10 = vld [vmem:[%s6235_s1 + $0x488] sm:$0xff] }
  0x4a   : >> { %809 = vmatpush.bf16.msrb.mxu3 %v4935_v22  ;;  %v5018_v22 = vld [vmem:[%s6235_s1 + $0x360] sm:$0xff] }
  0x4b   : >> { %771 = vmatpush.bf16.msrb.mxu0 %v4910_v23  ;;  %v5026_v23 = vld [vmem:[%s6235_s1 + $0x3a0] sm:$0xff] }
  0x4c   : >> { %784 = vmatpush.bf16.msrb.mxu1 %v4918_v24  ;;  %v5034_v24 = vld [vmem:[%s6235_s1 + $0x3e0] sm:$0xff] }
  0x4d   : >> { %797 = vmatpush.bf16.msrb.mxu2 %v4926_v25  ;;  %v5009_v25 = vld [vmem:[%s6235_s1 + $0x318] sm:$0xff] }
  0x4e   : >> { %810 = vmatpush.bf16.msrb.mxu3 %v4934_v26  ;;  %772 = vmatmul.bf16.vlgmr.msrb.gmra.mxu0 %v564_v4  ;;  %v894_v4 = vrot.slane %v888_v55, 1  ;;  %v5017_v26 = vld [vmem:[%s6235_s1 + $0x358] sm:$0xff]  ;;  %v5051_v55 = vld [vmem:[%s6235_s1 + $0x468] sm:$0xff] }
  0x4f   : >> { %1092 = vmatpush.bf16.msra.mxu0 %v4981_v27  ;;  %785 = vmatmul.bf16.vlgmr.msrb.gmra.mxu1 %v565_v7  ;;  %v893_v7 = vrot.slane %v886_v58, 1  ;;  %v5025_v27 = vld [vmem:[%s6235_s1 + $0x398] sm:$0xff]  ;;  %v5042_v58 = vld [vmem:[%s6235_s1 + $0x420] sm:$0xff] }
  0x50   : >> { %1105 = vmatpush.bf16.msra.mxu1 %v4989_v28  ;;  %798 = vmatmul.bf16.vlgmr.msrb.gmra.mxu2 %v566_v3  ;;  %v5037_v3 = vld [vmem:[%s6235_s1 + $0x3f8] sm:$0xff] }
  0x51   : >> { %1118 = vmatpush.bf16.msra.mxu2 %v4997_v29  ;;  %811 = vmatmul.bf16.vlgmr.msrb.gmra.mxu3 %v567_v5  ;;  %v895_v5 = vrot.slane %v890_v56, 1  ;;  %v5033_v28 = vld [vmem:[%s6235_s1 + $0x3d8] sm:$0xff]  ;;  %v5008_v29 = vld [vmem:[%s6235_s1 + $0x310] sm:$0xff]  ;;  %v5059_v56 = vld [vmem:[%s6235_s1 + $0x4a8] sm:$0xff] }
  0x52   : >> { %1131 = vmatpush.bf16.msra.mxu3 %v5005_v30  ;;  %v5016_v30 = vld [vmem:[%s6235_s1 + $0x350] sm:$0xff] }
  0x53   : >> { %1093 = vmatpush.bf16.msra.mxu0 %v4980_v31  ;;  %v5024_v31 = vld [vmem:[%s6235_s1 + $0x390] sm:$0xff] }
  0x54   : >> { %1106 = vmatpush.bf16.msra.mxu1 %v4988_v32  ;;  %v5032_v32 = vld [vmem:[%s6235_s1 + $0x3d0] sm:$0xff] }
  0x55   : >> { %1119 = vmatpush.bf16.msra.mxu2 %v4996_v33  ;;  %v5007_v33 = vld [vmem:[%s6235_s1 + $0x308] sm:$0xff] }
  0x56   : >> { %1132 = vmatpush.bf16.msra.mxu3 %v5004_v34  ;;  %v5015_v34 = vld [vmem:[%s6235_s1 + $0x348] sm:$0xff] }
  0x57   : >> { %1094 = vmatpush.bf16.msra.mxu0 %v4979_v35  ;;  %v5023_v35 = vld [vmem:[%s6235_s1 + $0x388] sm:$0xff] }
  0x58   : >> { %1107 = vmatpush.bf16.msra.mxu1 %v4987_v36  ;;  %v5031_v36 = vld [vmem:[%s6235_s1 + $0x3c8] sm:$0xff] }
  0x59   : >> { %1120 = vmatpush.bf16.msra.mxu2 %v4995_v37  ;;  %v5006_v37 = vld [vmem:[%s6235_s1 + $0x300] sm:$0xff] }
  0x5a   : >> { %1133 = vmatpush.bf16.msra.mxu3 %v5003_v38  ;;  %v5014_v38 = vld [vmem:[%s6235_s1 + $0x340] sm:$0xff] }
  0x5b   : >> { %1095 = vmatpush.bf16.msra.mxu0 %v4978_v39  ;;  %v5022_v39 = vld [vmem:[%s6235_s1 + $0x380] sm:$0xff] }
  0x5c   : >> { %1108 = vmatpush.bf16.msra.mxu1 %v4986_v40  ;;  %v5030_v40 = vld [vmem:[%s6235_s1 + $0x3c0] sm:$0xff] }
  0x5d   : >> { %1121 = vmatpush.bf16.msra.mxu2 %v4994_v41  ;;  %v5045_v41 = vld [vmem:[%s6235_s1 + $0x438] sm:$0xff] }
  0x5e   : >> { %1134 = vmatpush.bf16.msra.mxu3 %v5002_v42  ;;  %v5053_v42 = vld [vmem:[%s6235_s1 + $0x478] sm:$0xff] }
  0x5f   : >> { %1096 = vmatpush.bf16.msra.mxu0 %v4977_v43  ;;  %v4131_v43 = vld [vmem:[%s5328_s5 + $0x8] sm:$0xaa] }
  0x60   : >> { %1109 = vmatpush.bf16.msra.mxu1 %v4985_v44  ;;  %v5061_v44 = vld [vmem:[%s6235_s1 + $0x4b8] sm:$0xff] }
  0x61   : >> { %1122 = vmatpush.bf16.msra.mxu2 %v4993_v45  ;;  %v5069_v45 = vld [vmem:[%s6235_s1 + $0x4f8] sm:$0xff] }
  0x62   : >> { %1135 = vmatpush.bf16.msra.mxu3 %v5001_v46  ;;  %v5686_v46 = vld.sshfl [vmem:[#allocation1 + $0x10] sm:$0xff pattern:$0x73625140] }
  0x63   : >> { %1097 = vmatpush.bf16.msra.mxu0 %v4976_v47  ;;  %v5688_v47 = vld.sshfl [vmem:[#allocation1 + $0x18] sm:$0xff pattern:$0x73625140] }
  0x64   : >> { %1110 = vmatpush.bf16.msra.mxu1 %v4984_v48  ;;  %v5690_v48 = vld.sshfl [vmem:[#allocation1] sm:$0xff pattern:$0x73625140] }
  0x65   : >> { %1123 = vmatpush.bf16.msra.mxu2 %v4992_v49  ;;  %v5692_v49 = vld.sshfl [vmem:[#allocation1 + $0x8] sm:$0xff pattern:$0x73625140] }
  0x66   : >> { %1136 = vmatpush.bf16.msra.mxu3 %v5000_v50  ;;  %v5044_v50 = vld [vmem:[%s6235_s1 + $0x430] sm:$0xff]  ;;  %1882 = vst [vmem:[#allocation1] ss:$4 sm:$0xff] %v4131_v43  ;;  %v5075_v43 = vld [vmem:[%s6235_s1 + $0x528] sm:$0xff] }
  0x67   : >> { %1098 = vmatpush.bf16.msra.mxu0 %v4975_v51  ;;  %v5052_v51 = vld [vmem:[%s6235_s1 + $0x470] sm:$0xff] }
  0x68   : >> { %1111 = vmatpush.bf16.msra.mxu1 %v4983_v52  ;;  %v5060_v52 = vld [vmem:[%s6235_s1 + $0x4b0] sm:$0xff] }
  0x69   : >> { %1124 = vmatpush.bf16.msra.mxu2 %v4991_v53  ;;  %v5068_v53 = vld [vmem:[%s6235_s1 + $0x4f0] sm:$0xff] }
  0x6a   : >> { %1137 = vmatpush.bf16.msra.mxu3 %v4999_v54  ;;  %v5043_v54 = vld [vmem:[%s6235_s1 + $0x428] sm:$0xff] }
  0x6b   : >> { %1099 = vmatpush.bf16.msra.mxu0 %v4974_v60  ;;  %v5058_v60 = vld [vmem:[%s6235_s1 + $0x4a0] sm:$0xff] }
  0x6c   : >> { %1112 = vmatpush.bf16.msra.mxu1 %v4982_v61  ;;  %v5066_v61 = vld [vmem:[%s6235_s1 + $0x4e0] sm:$0xff] }
  0x6d   : >> { %1125 = vmatpush.bf16.msra.mxu2 %v4990_v62  ;;  %v5041_v62 = vld [vmem:[%s6235_s1 + $0x418] sm:$0xff] }
  0x6e   : >> { %1138 = vmatpush.bf16.msra.mxu3 %v4998_v63  ;;  %1100 = vmatmul.bf16.vlgmr.msra.gmra.mxu0 %v892_v6  ;;  %v5049_v63 = vld [vmem:[%s6235_s1 + $0x458] sm:$0xff]  ;;  %v5039_v6 = vld [vmem:[%s6235_s1 + $0x408] sm:$0xff] }
  0x6f   : >> { %1417 = vmatpush.bf16.msrb.mxu0 %v5013_v0  ;;  %1113 = vmatmul.bf16.vlgmr.msra.gmra.mxu1 %v893_v7  ;;  %v5057_v0 = vld [vmem:[%s6235_s1 + $0x498] sm:$0xff]  ;;  %v5047_v7 = vld [vmem:[%s6235_s1 + $0x448] sm:$0xff] }
  0x70   : >> { %1430 = vmatpush.bf16.msrb.mxu1 %v5021_v1  ;;  %1126 = vmatmul.bf16.vlgmr.msra.gmra.mxu2 %v894_v4  ;;  %v5065_v1 = vld [vmem:[%s6235_s1 + $0x4d8] sm:$0xff]  ;;  %v5056_v4 = vld [vmem:[%s6235_s1 + $0x490] sm:$0xff] }
  0x71   : >> { %1443 = vmatpush.bf16.msrb.mxu2 %v5029_v2  ;;  %1139 = vmatmul.bf16.vlgmr.msra.gmra.mxu3 %v895_v5  ;;  %v5040_v2 = vld [vmem:[%s6235_s1 + $0x410] sm:$0xff] }
  0x72   : >> { %1456 = vmatpush.bf16.msrb.mxu3 %v5037_v3  ;;  %v5048_v3 = vld [vmem:[%s6235_s1 + $0x450] sm:$0xff] }
  0x73   : >> { %1418 = vmatpush.bf16.msrb.mxu0 %v5012_v8  ;;  %v5064_v5 = vld [vmem:[%s6235_s1 + $0x4d0] sm:$0xff]  ;;  %v1556_v8 = vshll.u32 %v5686_v46, 16 }
  0x74   : >> { %1431 = vmatpush.bf16.msrb.mxu1 %v5020_v9  ;;  %v1562_v9 = vshll.u32 %v5688_v47, 16 }
  0x75   : >> { %1444 = vmatpush.bf16.msrb.mxu2 %v5028_v11  ;;  %v5063_v11 = vld [vmem:[%s6235_s1 + $0x4c8] sm:$0xff] }
  0x76   : >> { %1457 = vmatpush.bf16.msrb.mxu3 %v5036_v12  ;;  %v1544_v12 = vshll.u32 %v5690_v48, 16 }
  0x77   : >> { %1419 = vmatpush.bf16.msrb.mxu0 %v5011_v17  ;;  %v1558_v17 = vrot.slane %v1556_v8, 1 }
  0x78   : >> { %1432 = vmatpush.bf16.msrb.mxu1 %v5019_v18  ;;  %v1560_v18 = vshrl.u32 %v5688_v47, 16 }
  0x79   : >> { %1445 = vmatpush.bf16.msrb.mxu2 %v5027_v19  ;;  %v1564_v19 = vrot.slane %v1562_v9, 1 }
  0x7a   : >> { %1458 = vmatpush.bf16.msrb.mxu3 %v5035_v20  ;;  %v5054_v20 = vld [vmem:[%s6235_s1 + $0x480] sm:$0xff] }
  0x7b   : >> { %1420 = vmatpush.bf16.msrb.mxu0 %v5010_v21  ;;  %v5062_v21 = vld [vmem:[%s6235_s1 + $0x4c0] sm:$0xff] }
  0x7c   : >> { %1433 = vmatpush.bf16.msrb.mxu1 %v5018_v22  ;;  %v1542_v22 = vshrl.u32 %v5690_v48, 16  ;;  %v5074_v48 = vld [vmem:[%s6235_s1 + $0x520] sm:$0xff] }
  0x7d   : >> { %1446 = vmatpush.bf16.msrb.mxu2 %v5026_v23  ;;  %v1546_v23 = vrot.slane %v1544_v12, 1  ;;  %v5086_v12 = vld [vmem:[%s6235_s1 + $0x580] sm:$0xff] }
  0x7e   : >> { %1459 = vmatpush.bf16.msrb.mxu3 %v5034_v24  ;;  %v1548_v24 = vshrl.u32 %v5692_v49, 16 }
  0x7f   : >> { %1421 = vmatpush.bf16.msrb.mxu0 %v5009_v25 }
  0x80   : >> { %1434 = vmatpush.bf16.msrb.mxu1 %v5017_v26  ;;  %v5077_v26 = vld [vmem:[%s6235_s1 + $0x538] sm:$0xff] }
  0x81   : >> { %1447 = vmatpush.bf16.msrb.mxu2 %v5025_v27  ;;  %v5085_v27 = vld [vmem:[%s6235_s1 + $0x578] sm:$0xff] }
  0x82   : >> { %1460 = vmatpush.bf16.msrb.mxu3 %v5033_v28  ;;  %v5093_v28 = vld [vmem:[%s6235_s1 + $0x5b8] sm:$0xff] }
  0x83   : >> { %1422 = vmatpush.bf16.msrb.mxu0 %v5008_v29  ;;  %v5101_v29 = vld [vmem:[%s6235_s1 + $0x5f8] sm:$0xff] }
  0x84   : >> { %1435 = vmatpush.bf16.msrb.mxu1 %v5016_v30 }
  0x85   : >> { %1448 = vmatpush.bf16.msrb.mxu2 %v5024_v31  ;;  %v1565_v31 = vor.u32 %v1564_v19, %v1560_v18 }
  0x86   : >> { %1461 = vmatpush.bf16.msrb.mxu3 %v5032_v32  ;;  %v4325_v32 = vld [vmem:[%s5328_s5 + $0x10] sm:$0x55] }
  0x87   : >> { %1423 = vmatpush.bf16.msrb.mxu0 %v5007_v33  ;;  %v5076_v33 = vld [vmem:[%s6235_s1 + $0x530] sm:$0xff] }
  0x88   : >> { %1436 = vmatpush.bf16.msrb.mxu1 %v5015_v34  ;;  %v1547_v34 = vor.u32 %v1546_v23, %v1542_v22  ;;  %v5108_v22 = vld [vmem:[%s6235_s1 + $0x630] sm:$0xff] }
  0x89   : >> { %1449 = vmatpush.bf16.msrb.mxu2 %v5023_v35  ;;  %v5116_v23 = vld [vmem:[%s6235_s1 + $0x670] sm:$0xff] }
  0x8a   : >> { %1462 = vmatpush.bf16.msrb.mxu3 %v5031_v36  ;;  %v5084_v36 = vld [vmem:[%s6235_s1 + $0x570] sm:$0xff] }
  0x8b   : >> { %1424 = vmatpush.bf16.msrb.mxu0 %v5006_v37  ;;  %v5092_v37 = vld [vmem:[%s6235_s1 + $0x5b0] sm:$0xff] }
  0x8c   : >> { %1437 = vmatpush.bf16.msrb.mxu1 %v5014_v38  ;;  %v5100_v38 = vld [vmem:[%s6235_s1 + $0x5f0] sm:$0xff] }
  0x8d   : >> { %1450 = vmatpush.bf16.msrb.mxu2 %v5022_v39  ;;  %v5815_v39 = vld.sshfl [vmem:[#allocation1 + $0x10] sm:$0xff pattern:$0x73625140] }
  0x8e   : >> { %1463 = vmatpush.bf16.msrb.mxu3 %v5030_v40  ;;  %1425 = vmatmul.bf16.vlgmr.msrb.gmra.mxu0 %v5597_v15  ;;  %v5046_v15 = vld [vmem:[%s6235_s1 + $0x440] sm:$0xff]  ;;  %v5817_v40 = vld.sshfl [vmem:[#allocation1 + $0x18] sm:$0xff pattern:$0x73625140]  ;;  %v1893_v18 = vrot.slane %v5815_v39, 1 }
  0x8f   : >> { %1762 = vmatpush.bf16.msra.mxu0 %v5045_v41  ;;  %1438 = vmatmul.bf16.vlgmr.msrb.gmra.mxu1 %v5599_v16  ;;  %v1554_v16 = vshrl.u32 %v5686_v46, 16  ;;  %v5819_v41 = vld.sshfl [vmem:[#allocation1] sm:$0xff pattern:$0x73625140]  ;;  %v5099_v46 = vld [vmem:[%s6235_s1 + $0x5e8] sm:$0xff]  ;;  %v1894_v19 = vrot.slane %v5817_v40, 1 }
  0x90   : >> { %1775 = vmatpush.bf16.msra.mxu1 %v5053_v42  ;;  %1451 = vmatmul.bf16.vlgmr.msrb.gmra.mxu2 %v5593_v13  ;;  %v1550_v13 = vshll.u32 %v5692_v49, 16  ;;  %v5821_v42 = vld.sshfl [vmem:[#allocation1 + $0x8] sm:$0xff pattern:$0x73625140]  ;;  %v5082_v49 = vld [vmem:[%s6235_s1 + $0x560] sm:$0xff] }
  0x91   : >> { %1788 = vmatpush.bf16.msra.mxu2 %v5061_v44  ;;  %1464 = vmatmul.bf16.vlgmr.msrb.gmra.mxu3 %v5595_v14  ;;  %v5038_v14 = vld [vmem:[%s6235_s1 + $0x400] sm:$0xff]  ;;  %v1559_v30 = vor.u32 %v1558_v17, %v1554_v16  ;;  %2215 = vst [vmem:[#allocation1] ss:$4 sm:$0xff] %v4325_v32  ;;  %v5083_v44 = vld [vmem:[%s6235_s1 + $0x568] sm:$0xff]  ;;  %v5125_v16 = vld [vmem:[%s6235_s1 + $0x6b8] sm:$0xff] }
  0x92   : >> { %1801 = vmatpush.bf16.msra.mxu3 %v5069_v45  ;;  %v1552_v25 = vrot.slane %v1550_v13, 1  ;;  %v5091_v45 = vld [vmem:[%s6235_s1 + $0x5a8] sm:$0xff]  ;;  %v5094_v13 = vld [vmem:[%s6235_s1 + $0x5c0] sm:$0xff]  ;;  %v5133_v17 = vld [vmem:[%s6235_s1 + $0x6f8] sm:$0xff] }
  0x93   : >> { %1763 = vmatpush.bf16.msra.mxu0 %v5044_v50  ;;  %v5115_v32 = vld [vmem:[%s6235_s1 + $0x668] sm:$0xff]  ;;  %v5122_v40 = vld [vmem:[%s6235_s1 + $0x6a0] sm:$0xff] }
  0x94   : >> { %1776 = vmatpush.bf16.msra.mxu1 %v5052_v51  ;;  %v1553_v35 = vor.u32 %v1552_v25, %v1548_v24  ;;  %v5090_v51 = vld [vmem:[%s6235_s1 + $0x5a0] sm:$0xff]  ;;  %v4518_v24 = vld [vmem:[%s5328_s5 + $0x10] sm:$0xff] }
  0x95   : >> { %1789 = vmatpush.bf16.msra.mxu2 %v5060_v52  ;;  %v5098_v52 = vld [vmem:[%s6235_s1 + $0x5e0] sm:$0xff]  ;;  %v5124_v25 = vld [vmem:[%s6235_s1 + $0x6b0] sm:$0xff] }
  0x96   : >> { %1802 = vmatpush.bf16.msra.mxu3 %v5068_v53 }
  0x97   : >> { %1764 = vmatpush.bf16.msra.mxu0 %v5043_v54  ;;  %v5073_v54 = vld [vmem:[%s6235_s1 + $0x518] sm:$0xff] }
  0x98   : >> { %1777 = vmatpush.bf16.msra.mxu1 %v5051_v55  ;;  %v5081_v55 = vld [vmem:[%s6235_s1 + $0x558] sm:$0xff] }
  0x99   : >> { %1790 = vmatpush.bf16.msra.mxu2 %v5059_v56  ;;  %v5089_v56 = vld [vmem:[%s6235_s1 + $0x598] sm:$0xff] }
  0x9a   : >> { %1803 = vmatpush.bf16.msra.mxu3 %v5067_v57  ;;  %v5097_v57 = vld [vmem:[%s6235_s1 + $0x5d8] sm:$0xff] }
  0x9b   : >> { %1765 = vmatpush.bf16.msra.mxu0 %v5042_v58 }
  0x9c   : >> { %1778 = vmatpush.bf16.msra.mxu1 %v5050_v59 }
  0x9d   : >> { %1791 = vmatpush.bf16.msra.mxu2 %v5058_v60 }
  0x9e   : >> { %1804 = vmatpush.bf16.msra.mxu3 %v5066_v61 }
  0x9f   : >> { %1766 = vmatpush.bf16.msra.mxu0 %v5041_v62  ;;  %v5072_v62 = vld [vmem:[%s6235_s1 + $0x510] sm:$0xff] }
  0xa0   : >> { %1779 = vmatpush.bf16.msra.mxu1 %v5049_v63  ;;  %v5080_v63 = vld [vmem:[%s6235_s1 + $0x550] sm:$0xff] }
  0xa1   : >> { %1792 = vmatpush.bf16.msra.mxu2 %v5057_v0 }
  0xa2   : >> { %1805 = vmatpush.bf16.msra.mxu3 %v5065_v1 }
  0xa3   : >> { %1767 = vmatpush.bf16.msra.mxu0 %v5040_v2  ;;  %v5088_v2 = vld [vmem:[%s6235_s1 + $0x590] sm:$0xff] }
  0xa4   : >> { %1780 = vmatpush.bf16.msra.mxu1 %v5048_v3  ;;  %v5096_v3 = vld [vmem:[%s6235_s1 + $0x5d0] sm:$0xff] }
  0xa5   : >> { %1793 = vmatpush.bf16.msra.mxu2 %v5056_v4  ;;  %v5071_v4 = vld [vmem:[%s6235_s1 + $0x508] sm:$0xff] }
  0xa6   : >> { %1806 = vmatpush.bf16.msra.mxu3 %v5064_v5  ;;  %v5079_v5 = vld [vmem:[%s6235_s1 + $0x548] sm:$0xff] }
  0xa7   : >> { %1768 = vmatpush.bf16.msra.mxu0 %v5039_v6  ;;  %v5087_v6 = vld [vmem:[%s6235_s1 + $0x588] sm:$0xff] }
  0xa8   : >> { %1781 = vmatpush.bf16.msra.mxu1 %v5047_v7  ;;  %v5095_v7 = vld [vmem:[%s6235_s1 + $0x5c8] sm:$0xff] }
  0xa9   : >> { %1794 = vmatpush.bf16.msra.mxu2 %v5055_v10  ;;  %v5070_v10 = vld [vmem:[%s6235_s1 + $0x500] sm:$0xff] }
  0xaa   : >> { %1807 = vmatpush.bf16.msra.mxu3 %v5063_v11  ;;  %v5078_v11 = vld [vmem:[%s6235_s1 + $0x540] sm:$0xff] }
  0xab   : >> { %1769 = vmatpush.bf16.msra.mxu0 %v5038_v14  ;;  %v519_v47 = vpop.f32.mrf.mxu0  ;;  %v5109_v14 = vld [vmem:[%s6235_s1 + $0x638] sm:$0xff] }
  0xac   : >> { %1782 = vmatpush.bf16.msra.mxu1 %v5046_v15  ;;  %v532_v50 = vpop.f32.mrf.mxu1  ;;  %v5117_v15 = vld [vmem:[%s6235_s1 + $0x678] sm:$0xff] }
  0xad   : >> { %1795 = vmatpush.bf16.msra.mxu2 %v5054_v20  ;;  %v533_v53 = vadd.f32 %v532_v50, %v519_v47  ;;  %v1891_v20 = vrot.slane %v5819_v41, 1  ;;  %v5130_v41 = vld [vmem:[%s6235_s1 + $0x6e0] sm:$0xff] }
  0xae   : >> { %1808 = vmatpush.bf16.msra.mxu3 %v5062_v21  ;;  %1770 = vmatmul.bf16.vlgmr.msra.gmra.mxu0 %v1547_v34  ;;  %v1892_v21 = vrot.slane %v5821_v42, 1  ;;  %v5131_v34 = vld [vmem:[%s6235_s1 + $0x6e8] sm:$0xff] }
  0xaf   : >> { %2091 = vmatpush.bf16.msrb.mxu0 %v5077_v26  ;;  %1783 = vmatmul.bf16.vlgmr.msra.gmra.mxu1 %v1553_v35  ;;  %v5132_v26 = vld [vmem:[%s6235_s1 + $0x6f0] sm:$0xff] }
  0xb0   : >> { %2104 = vmatpush.bf16.msrb.mxu1 %v5085_v27  ;;  %1796 = vmatmul.bf16.vlgmr.msra.gmra.mxu2 %v1559_v30  ;;  %v5926_v27 = vld.sshfl [vmem:[#allocation1 + $0x10] sm:$0xff pattern:$0x73625140]  ;;  %v5932_v30 = vld.sshfl [vmem:[#allocation1 + $0x8] sm:$0xff pattern:$0x73625140] }
  0xb1   : >> { %2117 = vmatpush.bf16.msrb.mxu2 %v5093_v28  ;;  %1809 = vmatmul.bf16.vlgmr.msra.gmra.mxu3 %v1565_v31  ;;  %v5928_v28 = vld.sshfl [vmem:[#allocation1 + $0x18] sm:$0xff pattern:$0x73625140]  ;;  %v5107_v31 = vld [vmem:[%s6235_s1 + $0x628] sm:$0xff] }
  0xb2   : >> { %2130 = vmatpush.bf16.msrb.mxu3 %v5101_v29  ;;  %v5930_v29 = vld.sshfl [vmem:[#allocation1] sm:$0xff pattern:$0x73625140] }
  0xb3   : >> { %2092 = vmatpush.bf16.msrb.mxu0 %v5076_v33  ;;  %v545_v58 = vpop.f32.mrf.mxu2  ;;  %v521_v61 = vpop.f32.mrf.mxu0  ;;  %2536 = vst [vmem:[#allocation1] ss:$4 sm:$0xff] %v4518_v24  ;;  %v5123_v33 = vld [vmem:[%s6235_s1 + $0x6a8] sm:$0xff]  ;;  %v5154_v24 = vld [vmem:[%s6235_s1 + $0x7a0] sm:$0xff] }
  0xb4   : >> { %2105 = vmatpush.bf16.msrb.mxu1 %v5084_v36  ;;  %v546_v59 = vadd.f32 %v545_v58, %v533_v53  ;;  %v558_v60 = vpop.f32.mrf.mxu3  ;;  %v534_v1 = vpop.f32.mrf.mxu1  ;;  %v5106_v36 = vld [vmem:[%s6235_s1 + $0x620] sm:$0xff]  ;;  %v5111_v58 = vld [vmem:[%s6235_s1 + $0x648] sm:$0xff] }
  0xb5   : >> { %2118 = vmatpush.bf16.msrb.mxu2 %v5092_v37  ;;  %v5114_v37 = vld [vmem:[%s6235_s1 + $0x660] sm:$0xff] }
  0xb6   : >> { %2131 = vmatpush.bf16.msrb.mxu3 %v5100_v38  ;;  %v5865_v0 = vadd.f32 %v558_v60, %v546_v59  ;;  %v5119_v59 = vld [vmem:[%s6235_s1 + $0x688] sm:$0xff]  ;;  %v5118_v1 = vld [vmem:[%s6235_s1 + $0x680] sm:$0xff] }
  0xb7   : >> { %2093 = vmatpush.bf16.msrb.mxu0 %v5075_v43  ;;  %v5105_v43 = vld [vmem:[%s6235_s1 + $0x618] sm:$0xff]  ;;  %v5127_v60 = vld [vmem:[%s6235_s1 + $0x6c8] sm:$0xff] }
  0xb8   : >> { %2106 = vmatpush.bf16.msrb.mxu1 %v5083_v44  ;;  %v5113_v44 = vld [vmem:[%s6235_s1 + $0x658] sm:$0xff] }
  0xb9   : >> { %2119 = vmatpush.bf16.msrb.mxu2 %v5091_v45  ;;  %v5121_v45 = vld [vmem:[%s6235_s1 + $0x698] sm:$0xff] }
  0xba   : >> { %2132 = vmatpush.bf16.msrb.mxu3 %v5099_v46  ;;  %v5129_v46 = vld [vmem:[%s6235_s1 + $0x6d8] sm:$0xff] }
  0xbb   : >> { %2094 = vmatpush.bf16.msrb.mxu0 %v5074_v48  ;;  %v547_v8 = vpop.f32.mrf.mxu2 }
  0xbc   : >> { %2107 = vmatpush.bf16.msrb.mxu1 %v5082_v49  ;;  %v560_v9 = vpop.f32.mrf.mxu3  ;;  %v6022_v8 = vld.sshfl [vmem:[#allocation1 + $0x10] sm:$0xff pattern:$0x73625140] }
  0xbd   : >> { %2120 = vmatpush.bf16.msrb.mxu2 %v5090_v51  ;;  %v5104_v51 = vld [vmem:[%s6235_s1 + $0x610] sm:$0xff]  ;;  %v6024_v9 = vld.sshfl [vmem:[#allocation1 + $0x18] sm:$0xff pattern:$0x73625140] }
  0xbe   : >> { %2133 = vmatpush.bf16.msrb.mxu3 %v5098_v52  ;;  %v5112_v52 = vld [vmem:[%s6235_s1 + $0x650] sm:$0xff] }
  0xbf   : >> { %2095 = vmatpush.bf16.msrb.mxu0 %v5073_v54 }
  0xc0   : >> { %2108 = vmatpush.bf16.msrb.mxu1 %v5081_v55  ;;  %v5120_v55 = vld [vmem:[%s6235_s1 + $0x690] sm:$0xff] }
  0xc1   : >> { %2121 = vmatpush.bf16.msrb.mxu2 %v5089_v56  ;;  %v5128_v56 = vld [vmem:[%s6235_s1 + $0x6d0] sm:$0xff] }
  0xc2   : >> { %2134 = vmatpush.bf16.msrb.mxu3 %v5097_v57  ;;  %v5103_v57 = vld [vmem:[%s6235_s1 + $0x608] sm:$0xff] }
  0xc3   : >> { %2096 = vmatpush.bf16.msrb.mxu0 %v5072_v62 }
  0xc4   : >> { %2109 = vmatpush.bf16.msrb.mxu1 %v5080_v63  ;;  %v5102_v63 = vld [vmem:[%s6235_s1 + $0x600] sm:$0xff] }
  0xc5   : >> { %2122 = vmatpush.bf16.msrb.mxu2 %v5088_v2  ;;  %v5126_v2 = vld [vmem:[%s6235_s1 + $0x6c0] sm:$0xff] }
  0xc6   : >> { %2135 = vmatpush.bf16.msrb.mxu3 %v5096_v3  ;;  %v5141_v3 = vld [vmem:[%s6235_s1 + $0x738] sm:$0xff] }
  0xc7   : >> { %2097 = vmatpush.bf16.msrb.mxu0 %v5071_v4  ;;  %v5149_v4 = vld [vmem:[%s6235_s1 + $0x778] sm:$0xff] }
  0xc8   : >> { %2110 = vmatpush.bf16.msrb.mxu1 %v5079_v5  ;;  %v4711_v5 = vld [vmem:[%s5328_s5 + $0x10] sm:$0xaa]  ;;  %s4904_s5 = sshll.u32 %s5232_s19, 1  ;;  %s149_s19 = sadd.s32 1, %s5232_s19  }
  0xc9   : >> { %2123 = vmatpush.bf16.msrb.mxu2 %v5087_v6  ;;  %v5157_v6 = vld [vmem:[%s6235_s1 + $0x7b8] sm:$0xff]  ;;  %s3149_s13 = scalar_lea.vmem %s5265_s18, %s4904_s5  ;;  %p146_p4 = scmp.ge.s32.totalorder %s149_s19, 2  }
  0xca   : >> { %2136 = vmatpush.bf16.msrb.mxu3 %v5095_v7  ;;  %v5165_v7 = vld [vmem:[%s6235_s1 + $0x7f8] sm:$0xff] }
  0xcb   : >> { %2098 = vmatpush.bf16.msrb.mxu0 %v5070_v10  ;;  %v773_v35 = vpop.f32.mrf.mxu0  ;;  %v6026_v10 = vld.sshfl [vmem:[#allocation1] sm:$0xff pattern:$0x73625140] }
  0xcc   : >> { %2111 = vmatpush.bf16.msrb.mxu1 %v5078_v11  ;;  %v774_v38 = vadd.f32 %v773_v35, %v5865_v0  ;;  %v786_v39 = vpop.f32.mrf.mxu1  ;;  %v5110_v0 = vld [vmem:[%s6235_s1 + $0x640] sm:$0xff]  ;;  %v6028_v11 = vld.sshfl [vmem:[#allocation1 + $0x8] sm:$0xff pattern:$0x73625140]  ;;  %v5136_v35 = vld [vmem:[%s6235_s1 + $0x710] sm:$0xff] }
  0xcd   : >> { %2124 = vmatpush.bf16.msrb.mxu2 %v5086_v12  ;;  %v5140_v12 = vld [vmem:[%s6235_s1 + $0x730] sm:$0xff]  ;;  %2881 = vst [vmem:[#allocation1] ss:$4 sm:$0xff] %v4711_v5 }
  0xce   : >> { %2137 = vmatpush.bf16.msrb.mxu3 %v5094_v13  ;;  %2099 = vmatmul.bf16.vlgmr.msrb.gmra.mxu0 %v1891_v20  ;;  %v787_v42 = vadd.f32 %v786_v39, %v774_v38  ;;  %v5148_v13 = vld [vmem:[%s6235_s1 + $0x770] sm:$0xff]  ;;  %v5138_v20 = vld [vmem:[%s6235_s1 + $0x720] sm:$0xff] }
  0xcf   : >> { %2416 = vmatpush.bf16.msra.mxu0 %v5109_v14  ;;  %2112 = vmatmul.bf16.vlgmr.msrb.gmra.mxu1 %v1892_v21  ;;  %v5156_v14 = vld [vmem:[%s6235_s1 + $0x7b0] sm:$0xff]  ;;  %v5146_v21 = vld [vmem:[%s6235_s1 + $0x760] sm:$0xff] }
  0xd0   : >> { %2429 = vmatpush.bf16.msra.mxu1 %v5117_v15  ;;  %2125 = vmatmul.bf16.vlgmr.msrb.gmra.mxu2 %v1893_v18  ;;  %v5164_v15 = vld [vmem:[%s6235_s1 + $0x7f0] sm:$0xff]  ;;  %v5155_v18 = vld [vmem:[%s6235_s1 + $0x7a8] sm:$0xff] }
  0xd1   : >> { %2442 = vmatpush.bf16.msra.mxu2 %v5125_v16  ;;  %2138 = vmatmul.bf16.vlgmr.msrb.gmra.mxu3 %v1894_v19  ;;  %v5139_v16 = vld [vmem:[%s6235_s1 + $0x728] sm:$0xff]  ;;  %v5152_v39 = vld [vmem:[%s6235_s1 + $0x790] sm:$0xff] }
  0xd2   : >> { %2455 = vmatpush.bf16.msra.mxu3 %v5133_v17  ;;  %v5147_v17 = vld [vmem:[%s6235_s1 + $0x768] sm:$0xff] }
  0xd3   : >> { %2417 = vmatpush.bf16.msra.mxu0 %v5108_v22  ;;  %v799_v47 = vpop.f32.mrf.mxu2  ;;  %v775_v50 = vpop.f32.mrf.mxu0  ;;  %v5163_v19 = vld [vmem:[%s6235_s1 + $0x7e8] sm:$0xff] }
  0xd4   : >> { %2430 = vmatpush.bf16.msra.mxu1 %v5116_v23  ;;  %v800_v48 = vadd.f32 %v799_v47, %v787_v42  ;;  %v812_v49 = vpop.f32.mrf.mxu3  ;;  %v788_v54 = vpop.f32.mrf.mxu1  ;;  %v5135_v42 = vld [vmem:[%s6235_s1 + $0x708] sm:$0xff] }
  0xd5   : >> { %2443 = vmatpush.bf16.msra.mxu2 %v5124_v25  ;;  %v5162_v25 = vld [vmem:[%s6235_s1 + $0x7e0] sm:$0xff]  ;;  %v5159_v47 = vld [vmem:[%s6235_s1 + $0x7c8] sm:$0xff]  ;;  %v2553_v54 = vshrl.u32 %v6022_v8, 16 }
  0xd6   : >> { %2456 = vmatpush.bf16.msra.mxu3 %v5132_v26  ;;  %v5977_v53 = vadd.f32 %v812_v49, %v800_v48  ;;  %v2543_v48 = vshll.u32 %v6026_v10, 16  ;;  %v2549_v49 = vshll.u32 %v6028_v11, 16 }
  0xd7   : >> { %2418 = vmatpush.bf16.msra.mxu0 %v5107_v31 }
  0xd8   : >> { %2431 = vmatpush.bf16.msra.mxu1 %v5115_v32 }
  0xd9   : >> { %2444 = vmatpush.bf16.msra.mxu2 %v5123_v33 }
  0xda   : >> { %2457 = vmatpush.bf16.msra.mxu3 %v5131_v34 }
  0xdb   : >> { %2419 = vmatpush.bf16.msra.mxu0 %v5106_v36  ;;  %v801_v61 = vpop.f32.mrf.mxu2  ;;  %v5144_v36 = vld [vmem:[%s6235_s1 + $0x750] sm:$0xff] }
  0xdc   : >> { %2432 = vmatpush.bf16.msra.mxu1 %v5114_v37  ;;  %v814_v62 = vpop.f32.mrf.mxu3  ;;  %v2545_v61 = vrot.slane %v2543_v48, 1  ;;  %v2882_v48 = vld.sshfl [vmem:[#allocation1] sm:$0xff pattern:$0x73625140] }
  0xdd   : >> { %2445 = vmatpush.bf16.msra.mxu2 %v5122_v40  ;;  %v5160_v40 = vld [vmem:[%s6235_s1 + $0x7d0] sm:$0xff]  ;;  %v2547_v62 = vshrl.u32 %v6028_v11, 16 }
  0xde   : >> { %2458 = vmatpush.bf16.msra.mxu3 %v5130_v41  ;;  %v5196_v11 = vld [vmem:[%s6235_s1 + $0x8f0] sm:$0xff] }
  0xdf   : >> { %2420 = vmatpush.bf16.msra.mxu0 %v5105_v43  ;;  %v5143_v43 = vld [vmem:[%s6235_s1 + $0x748] sm:$0xff] }
  0xe0   : >> { %2433 = vmatpush.bf16.msra.mxu1 %v5113_v44  ;;  %v2555_v44 = vshll.u32 %v6022_v8, 16  ;;  %v5172_v8 = vld [vmem:[%s6235_s1 + $0x830] sm:$0xff] }
  0xe1   : >> { %2446 = vmatpush.bf16.msra.mxu2 %v5121_v45  ;;  %v2561_v45 = vshll.u32 %v6024_v9, 16 }
  0xe2   : >> { %2459 = vmatpush.bf16.msra.mxu3 %v5129_v46  ;;  %v5151_v46 = vld [vmem:[%s6235_s1 + $0x788] sm:$0xff] }
  0xe3   : >> { %2421 = vmatpush.bf16.msra.mxu0 %v5104_v51 }
  0xe4   : >> { %2434 = vmatpush.bf16.msra.mxu1 %v5112_v52  ;;  %v5134_v52 = vld [vmem:[%s6235_s1 + $0x700] sm:$0xff] }
  0xe5   : >> { %2447 = vmatpush.bf16.msra.mxu2 %v5120_v55  ;;  %v2557_v55 = vrot.slane %v2555_v44, 1  ;;  %v5166_v44 = vld [vmem:[%s6235_s1 + $0x800] sm:$0xff] }
  0xe6   : >> { %2460 = vmatpush.bf16.msra.mxu3 %v5128_v56  ;;  %v2559_v56 = vshrl.u32 %v6024_v9, 16  ;;  %v5180_v9 = vld [vmem:[%s6235_s1 + $0x870] sm:$0xff] }
  0xe7   : >> { %2422 = vmatpush.bf16.msra.mxu0 %v5103_v57  ;;  %v2563_v57 = vrot.slane %v2561_v45, 1  ;;  %v5174_v45 = vld [vmem:[%s6235_s1 + $0x840] sm:$0xff] }
  0xe8   : >> { %2435 = vmatpush.bf16.msra.mxu1 %v5111_v58  ;;  %v5150_v58 = vld [vmem:[%s6235_s1 + $0x780] sm:$0xff] }
  0xe9   : >> { %2448 = vmatpush.bf16.msra.mxu2 %v5119_v59  ;;  %v5158_v59 = vld [vmem:[%s6235_s1 + $0x7c0] sm:$0xff]  ;;  %v2564_v5 = vor.u32 %v2563_v57, %v2559_v56 }
  0xea   : >> { %2461 = vmatpush.bf16.msra.mxu3 %v5127_v60  ;;  %v2541_v60 = vshrl.u32 %v6026_v10, 16  ;;  %v5188_v10 = vld [vmem:[%s6235_s1 + $0x8b0] sm:$0xff] }
  0xeb   : >> { %2423 = vmatpush.bf16.msra.mxu0 %v5102_v63  ;;  %v1101_v22 = vpop.f32.mrf.mxu0  ;;  %v2551_v63 = vrot.slane %v2549_v49, 1  ;;  %v2884_v49 = vld.sshfl [vmem:[#allocation1 + $0x8] sm:$0xff pattern:$0x73625140] }
  0xec   : >> { %2436 = vmatpush.bf16.msra.mxu1 %v5110_v0  ;;  %v1114_v23 = vpop.f32.mrf.mxu1  ;;  %v5173_v0 = vld [vmem:[%s6235_s1 + $0x838] sm:$0xff] }
  0xed   : >> { %2449 = vmatpush.bf16.msra.mxu2 %v5118_v1  ;;  %v1115_v26 = vadd.f32 %v1114_v23, %v1101_v22  ;;  %v5181_v1 = vld [vmem:[%s6235_s1 + $0x878] sm:$0xff] }
  0xee   : >> { %2462 = vmatpush.bf16.msra.mxu3 %v5126_v2  ;;  %2424 = vmatmul.bf16.vlgmr.msra.gmra.mxu0 %v5930_v29  ;;  %v5153_v29 = vld [vmem:[%s6235_s1 + $0x798] sm:$0xff] }
  0xef   : >> { %2761 = vmatpush.bf16.msrb.mxu0 %v5141_v3  ;;  %2437 = vmatmul.bf16.vlgmr.msra.gmra.mxu1 %v5932_v30  ;;  %v5161_v30 = vld [vmem:[%s6235_s1 + $0x7d8] sm:$0xff] }
  0xf0   : >> { %2774 = vmatpush.bf16.msrb.mxu1 %v5149_v4  ;;  %2450 = vmatmul.bf16.vlgmr.msra.gmra.mxu2 %v5926_v27  ;;  %v5137_v27 = vld [vmem:[%s6235_s1 + $0x718] sm:$0xff]  ;;  %v2558_v4 = vor.u32 %v2557_v55, %v2553_v54 }
  0xf1   : >> { %2787 = vmatpush.bf16.msrb.mxu2 %v5157_v6  ;;  %2463 = vmatmul.bf16.vlgmr.msra.gmra.mxu3 %v5928_v28  ;;  %v5145_v28 = vld [vmem:[%s6235_s1 + $0x758] sm:$0xff]  ;;  %v2546_v6 = vor.u32 %v2545_v61, %v2541_v60 }
  0xf2   : >> { %2800 = vmatpush.bf16.msrb.mxu3 %v5165_v7  ;;  %v5189_v2 = vld [vmem:[%s6235_s1 + $0x8b8] sm:$0xff]  ;;  %v2552_v7 = vor.u32 %v2551_v63, %v2547_v62 }
  0xf3   : >> { %2762 = vmatpush.bf16.msrb.mxu0 %v5140_v12  ;;  %v1127_v31 = vpop.f32.mrf.mxu2  ;;  %v1103_v37 = vpop.f32.mrf.mxu0  ;;  %v5197_v3 = vld [vmem:[%s6235_s1 + $0x8f8] sm:$0xff]  ;;  %v5171_v12 = vld [vmem:[%s6235_s1 + $0x828] sm:$0xff] }
  0xf4   : >> { %2775 = vmatpush.bf16.msrb.mxu1 %v5148_v13  ;;  %v1140_v32 = vpop.f32.mrf.mxu3  ;;  %v1128_v33 = vadd.f32 %v1127_v31, %v1115_v26  ;;  %v1116_v38 = vpop.f32.mrf.mxu1  ;;  %v5179_v13 = vld [vmem:[%s6235_s1 + $0x868] sm:$0xff]  ;;  %v5169_v23 = vld [vmem:[%s6235_s1 + $0x818] sm:$0xff]  ;;  %v5168_v31 = vld [vmem:[%s6235_s1 + $0x810] sm:$0xff] }
  0xf5   : >> { %2788 = vmatpush.bf16.msrb.mxu2 %v5156_v14  ;;  %v5187_v14 = vld [vmem:[%s6235_s1 + $0x8a8] sm:$0xff]  ;;  %v5193_v26 = vld [vmem:[%s6235_s1 + $0x8d8] sm:$0xff] }
  0xf6   : >> { %2801 = vmatpush.bf16.msrb.mxu3 %v5164_v15  ;;  %v1141_v34 = vadd.f32 %v1140_v32, %v1128_v33  ;;  %v5195_v15 = vld [vmem:[%s6235_s1 + $0x8e8] sm:$0xff]  ;;  %v5176_v32 = vld [vmem:[%s6235_s1 + $0x850] sm:$0xff] }
  0xf7   : >> { %2763 = vmatpush.bf16.msrb.mxu0 %v5139_v16  ;;  %v5170_v16 = vld [vmem:[%s6235_s1 + $0x820] sm:$0xff]  ;;  %v5167_v38 = vld [vmem:[%s6235_s1 + $0x808] sm:$0xff] }
  0xf8   : >> { %2776 = vmatpush.bf16.msrb.mxu1 %v5147_v17  ;;  %v6095_v41 = vadd.f32 %v1141_v34, %v5977_v53  ;;  %v5142_v53 = vld [vmem:[%s6235_s1 + $0x740] sm:$0xff] }
  0xf9   : >> { %2789 = vmatpush.bf16.msrb.mxu2 %v5155_v18  ;;  %v5178_v17 = vld [vmem:[%s6235_s1 + $0x860] sm:$0xff] }
  0xfa   : >> { %2802 = vmatpush.bf16.msrb.mxu3 %v5163_v19 }
  0xfb   : >> { %2764 = vmatpush.bf16.msrb.mxu0 %v5138_v20  ;;  %v1129_v50 = vpop.f32.mrf.mxu2  ;;  %v5186_v20 = vld [vmem:[%s6235_s1 + $0x8a0] sm:$0xff] }
  0xfc   : >> { %2777 = vmatpush.bf16.msrb.mxu1 %v5146_v21  ;;  %v1142_v51 = vpop.f32.mrf.mxu3  ;;  %v5194_v21 = vld [vmem:[%s6235_s1 + $0x8e0] sm:$0xff]  ;;  %v2886_v50 = vld.sshfl [vmem:[#allocation1 + $0x10] sm:$0xff pattern:$0x73625140] }
  0xfd   : >> { %2790 = vmatpush.bf16.msrb.mxu2 %v5154_v24  ;;  %v5177_v24 = vld [vmem:[%s6235_s1 + $0x858] sm:$0xff]  ;;  %v2892_v54 = vrot.slane %v2886_v50, 1 }
  0xfe   : >> { %2803 = vmatpush.bf16.msrb.mxu3 %v5162_v25  ;;  %v5185_v25 = vld [vmem:[%s6235_s1 + $0x898] sm:$0xff] }
  0xff   : >> { %2765 = vmatpush.bf16.msrb.mxu0 %v5137_v27  ;;  %v2888_v51 = vld.sshfl [vmem:[#allocation1 + $0x18] sm:$0xff pattern:$0x73625140] }
 0x100   : >> { %2778 = vmatpush.bf16.msrb.mxu1 %v5145_v28  ;;  %v2893_v55 = vrot.slane %v2888_v51, 1 }
 0x101   : >> { %2791 = vmatpush.bf16.msrb.mxu2 %v5153_v29 }
 0x102   : >> { %2804 = vmatpush.bf16.msrb.mxu3 %v5161_v30 }
 0x103   : >> { %2766 = vmatpush.bf16.msrb.mxu0 %v5136_v35  ;;  %v5184_v35 = vld [vmem:[%s6235_s1 + $0x890] sm:$0xff] }
 0x104   : >> { %2779 = vmatpush.bf16.msrb.mxu1 %v5144_v36  ;;  %v5192_v36 = vld [vmem:[%s6235_s1 + $0x8d0] sm:$0xff] }
 0x105   : >> { %2792 = vmatpush.bf16.msrb.mxu2 %v5152_v39  ;;  %v5175_v39 = vld [vmem:[%s6235_s1 + $0x848] sm:$0xff] }
 0x106   : >> { %2805 = vmatpush.bf16.msrb.mxu3 %v5160_v40  ;;  %v5183_v40 = vld [vmem:[%s6235_s1 + $0x888] sm:$0xff] }
 0x107   : >> { %2767 = vmatpush.bf16.msrb.mxu0 %v5135_v42 }
 0x108   : >> { %2780 = vmatpush.bf16.msrb.mxu1 %v5143_v43 }
 0x109   : >> { %2793 = vmatpush.bf16.msrb.mxu2 %v5151_v46  ;;  %v5182_v46 = vld [vmem:[%s6235_s1 + $0x880] sm:$0xff] }
 0x10a   : >> { %2806 = vmatpush.bf16.msrb.mxu3 %v5159_v47  ;;  %v5190_v47 = vld [vmem:[%s6235_s1 + $0x8c0] sm:$0xff] }
 0x10b   : >> { %2768 = vmatpush.bf16.msrb.mxu0 %v5134_v52  ;;  %v1426_v18 = vpop.f32.mrf.mxu0  ;;  %v2890_v52 = vrot.slane %v2882_v48, 1 }
 0x10c   : >> { %2781 = vmatpush.bf16.msrb.mxu1 %v5142_v53  ;;  %v1439_v19 = vpop.f32.mrf.mxu1  ;;  %v2891_v53 = vrot.slane %v2884_v49, 1 }
 0x10d   : >> { %2794 = vmatpush.bf16.msrb.mxu2 %v5150_v58  ;;  %v1440_v22 = vadd.f32 %v1439_v19, %v1426_v18 }
 0x10e   : >> { %2807 = vmatpush.bf16.msrb.mxu3 %v5158_v59  ;;  %2769 = vmatmul.bf16.vlgmr.msrb.gmra.mxu0 %v2546_v6 }
 0x10f   : >> { %3090 = vmatpush.bf16.msra.mxu0 %v5173_v0  ;;  %2782 = vmatmul.bf16.vlgmr.msrb.gmra.mxu1 %v2552_v7 }
 0x110   : >> { %3103 = vmatpush.bf16.msra.mxu1 %v5181_v1  ;;  %2795 = vmatmul.bf16.vlgmr.msrb.gmra.mxu2 %v2558_v4 }
 0x111   : >> { %3116 = vmatpush.bf16.msra.mxu2 %v5189_v2  ;;  %2808 = vmatmul.bf16.vlgmr.msrb.gmra.mxu3 %v2564_v5 }
 0x112   : >> { %3129 = vmatpush.bf16.msra.mxu3 %v5197_v3 }
 0x113   : >> { %3091 = vmatpush.bf16.msra.mxu0 %v5172_v8  ;;  %v1452_v27 = vpop.f32.mrf.mxu2  ;;  %v1428_v33 = vpop.f32.mrf.mxu0 }
 0x114   : >> { %3104 = vmatpush.bf16.msra.mxu1 %v5180_v9  ;;  %v1465_v28 = vpop.f32.mrf.mxu3  ;;  %v1453_v29 = vadd.f32 %v1452_v27, %v1440_v22  ;;  %v1441_v34 = vpop.f32.mrf.mxu1 }
 0x115   : >> { %3117 = vmatpush.bf16.msra.mxu2 %v5188_v10 }
 0x116   : >> { %3130 = vmatpush.bf16.msra.mxu3 %v5196_v11  ;;  %v1466_v30 = vadd.f32 %v1465_v28, %v1453_v29 }
 0x117   : >> { %3092 = vmatpush.bf16.msra.mxu0 %v5171_v12 }
 0x118   : >> { %3105 = vmatpush.bf16.msra.mxu1 %v5179_v13  ;;  %v1469_v37 = vadd.f32 %v1466_v30, %v6095_v41  ;;  %v5191_v41 = vld [vmem:[%s6235_s1 + $0x8c8] sm:$0xff] }
 0x119   : >> { %3118 = vmatpush.bf16.msra.mxu2 %v5187_v14 }
 0x11a   : >> { %3131 = vmatpush.bf16.msra.mxu3 %v5195_v15 }
 0x11b   : >> { %3093 = vmatpush.bf16.msra.mxu0 %v5170_v16  ;;  %v1454_v42 = vpop.f32.mrf.mxu2 }
 0x11c   : >> { %3106 = vmatpush.bf16.msra.mxu1 %v5178_v17  ;;  %v1467_v43 = vpop.f32.mrf.mxu3 }
 0x11d   : >> { %3119 = vmatpush.bf16.msra.mxu2 %v5186_v20 }
 0x11e   : >> { %3132 = vmatpush.bf16.msra.mxu3 %v5194_v21 }
 0x11f   : >> { %3094 = vmatpush.bf16.msra.mxu0 %v5169_v23 }
 0x120   : >> { %3107 = vmatpush.bf16.msra.mxu1 %v5177_v24 }
 0x121   : >> { %3120 = vmatpush.bf16.msra.mxu2 %v5185_v25 }
 0x122   : >> { %3133 = vmatpush.bf16.msra.mxu3 %v5193_v26 }
 0x123   : >> { %3095 = vmatpush.bf16.msra.mxu0 %v5168_v31 }
 0x124   : >> { %3108 = vmatpush.bf16.msra.mxu1 %v5176_v32 }
 0x125   : >> { %3121 = vmatpush.bf16.msra.mxu2 %v5184_v35 }
 0x126   : >> { %3134 = vmatpush.bf16.msra.mxu3 %v5192_v36 }
 0x127   : >> { %3096 = vmatpush.bf16.msra.mxu0 %v5167_v38 }
 0x128   : >> { %3109 = vmatpush.bf16.msra.mxu1 %v5175_v39 }
 0x129   : >> { %3122 = vmatpush.bf16.msra.mxu2 %v5183_v40 }
 0x12a   : >> { %3135 = vmatpush.bf16.msra.mxu3 %v5191_v41 }
 0x12b   : >> { %3097 = vmatpush.bf16.msra.mxu0 %v5166_v44  ;;  %v1771_v56 = vpop.f32.mrf.mxu0 }
 0x12c   : >> { %3110 = vmatpush.bf16.msra.mxu1 %v5174_v45  ;;  %v1784_v57 = vpop.f32.mrf.mxu1 }
 0x12d   : >> { %3123 = vmatpush.bf16.msra.mxu2 %v5182_v46  ;;  %v1785_v58 = vadd.f32 %v1784_v57, %v1771_v56 }
 0x12e   : >> { %3136 = vmatpush.bf16.msra.mxu3 %v5190_v47  ;;  %3098 = vmatmul.bf16.vlgmr.msra.gmra.mxu0 %v2890_v52 }
 0x12f   : >> { %3111 = vmatmul.bf16.vlgmr.msra.gmra.mxu1 %v2891_v53 }
 0x130   : >> { %3124 = vmatmul.bf16.vlgmr.msra.gmra.mxu2 %v2892_v54 }
 0x131   : >> { %3137 = vmatmul.bf16.vlgmr.msra.gmra.mxu3 %v2893_v55 }
 0x133   : >> { %v1797_v59 = vpop.f32.mrf.mxu2  ;;  %v1773_v63 = vpop.f32.mrf.mxu0 }
 0x134   : >> { %v1810_v60 = vpop.f32.mrf.mxu3  ;;  %v1798_v61 = vadd.f32 %v1797_v59, %v1785_v58  ;;  %v1786_v0 = vpop.f32.mrf.mxu1 }
 0x136   : >> { %v1811_v62 = vadd.f32 %v1810_v60, %v1798_v61 }
 0x138   : >> { %v1814_v1 = vadd.f32 %v1811_v62, %v1469_v37 }
 0x13b   : >> { %v1799_v2 = vpop.f32.mrf.mxu2 }
 0x13c   : >> { %v1812_v3 = vpop.f32.mrf.mxu3 }
 0x14b   : >> { %v2100_v4 = vpop.f32.mrf.mxu0 }
 0x14c   : >> { %v2113_v5 = vpop.f32.mrf.mxu1 }
 0x14d   : >> { %v2114_v6 = vadd.f32 %v2113_v5, %v2100_v4 }
 0x153   : >> { %v2126_v7 = vpop.f32.mrf.mxu2  ;;  %v2102_v11 = vpop.f32.mrf.mxu0 }
 0x154   : >> { %v2139_v8 = vpop.f32.mrf.mxu3  ;;  %v2127_v9 = vadd.f32 %v2126_v7, %v2114_v6  ;;  %v2115_v12 = vpop.f32.mrf.mxu1 }
 0x156   : >> { %v2140_v10 = vadd.f32 %v2139_v8, %v2127_v9 }
 0x158   : >> { %v2143_v13 = vadd.f32 %v2140_v10, %v1814_v1 }
 0x15b   : >> { %v2128_v14 = vpop.f32.mrf.mxu2 }
 0x15c   : >> { %v2141_v15 = vpop.f32.mrf.mxu3 }
 0x16b   : >> { %v2425_v16 = vpop.f32.mrf.mxu0 }
 0x16c   : >> { %v2438_v17 = vpop.f32.mrf.mxu1 }
 0x16d   : >> { %v2439_v32 = vadd.f32 %v2438_v17, %v2425_v16 }
 0x173   : >> { %v2451_v18 = vpop.f32.mrf.mxu2  ;;  %v2427_v20 = vpop.f32.mrf.mxu0 }
 0x174   : >> { %v2464_v19 = vpop.f32.mrf.mxu3  ;;  %v2440_v21 = vpop.f32.mrf.mxu1  ;;  %v2452_v34 = vadd.f32 %v2451_v18, %v2439_v32 }
 0x176   : >> { %v2465_v38 = vadd.f32 %v2464_v19, %v2452_v34 }
 0x178   : >> { %v2468_v43 = vadd.f32 %v2465_v38, %v2143_v13 }
 0x17b   : >> { %v2453_v22 = vpop.f32.mrf.mxu2 }
 0x17c   : >> { %v2466_v23 = vpop.f32.mrf.mxu3 }
 0x18b   : >> { %v2770_v24 = vpop.f32.mrf.mxu0 }
 0x18c   : >> { %v2783_v25 = vpop.f32.mrf.mxu1 }
 0x18d   : >> { %v2784_v33 = vadd.f32 %v2783_v25, %v2770_v24 }
 0x193   : >> { %v2796_v26 = vpop.f32.mrf.mxu2  ;;  %v2772_v28 = vpop.f32.mrf.mxu0 }
 0x194   : >> { %v2809_v27 = vpop.f32.mrf.mxu3  ;;  %v2785_v29 = vpop.f32.mrf.mxu1  ;;  %v2797_v37 = vadd.f32 %v2796_v26, %v2784_v33 }
 0x196   : >> { %v2810_v40 = vadd.f32 %v2809_v27, %v2797_v37 }
 0x198   : >> { %v2813_v47 = vadd.f32 %v2810_v40, %v2468_v43 }
 0x19b   : >> { %v2798_v30 = vpop.f32.mrf.mxu2 }
 0x19c   : >> { %v2811_v31 = vpop.f32.mrf.mxu3 }
 0x1ab   : >> { %v3099_v35 = vpop.f32.mrf.mxu0 }
 0x1ac   : >> { %v3112_v36 = vpop.f32.mrf.mxu1 }
 0x1ad   : >> { %v3113_v39 = vadd.f32 %v3112_v36, %v3099_v35 }
 0x1b3   : >> { %v3125_v41 = vpop.f32.mrf.mxu2  ;;  %v3101_v45 = vpop.f32.mrf.mxu0 }
 0x1b4   : >> { %v3138_v42 = vpop.f32.mrf.mxu3  ;;  %v3126_v44 = vadd.f32 %v3125_v41, %v3113_v39  ;;  %v3114_v46 = vpop.f32.mrf.mxu1 }
 0x1b6   : >> { %v3139_v48 = vadd.f32 %v3138_v42, %v3126_v44 }
 0x1b8   : >> { %v3142_v49 = vadd.f32 %v3139_v48, %v2813_v47 }
 0x1ba   : >> { %v3143_v50 = vsub.f32 0.0, %v3142_v49 }
 0x1bb   : >> { %v3127_v51 = vpop.f32.mrf.mxu2 }
 0x1bc   : >> { %v3140_v52 = vpop.f32.mrf.mxu3  ;;  %v3144_v53 = vmul.f32 1.442695, %v3143_v50 }
 0x1be   : >> { %5214 = vpow2.f32 %v3144_v53 }
 0x1c4   : >> { %v5215_v54 = vpop.eup %5214 }
 0x1c5   : >> { %v3146_v55 = vadd.f32 1.0, %v5215_v54 }
 0x1c7   : >> { %5216 = vrcp.f32 %v3146_v55 }
 0x1ca   : > { %148 = sbr.rel (!%p146_p4) target bundleno = 14 (0xe), region = 77 }
 0x1cd   : >> { %v5217_v56 = vpop.eup %5216 }
 0x1ce   : >> { %3150 = vst [vmem:[%s3149_s13] sm:$0x3] %v5217_v56 }
 0x1cf PF: > { %s12_s9 = sadd.s32 1, %s5228_s9  }
 0x1d0   : > { %p9_p5 = scmp.ge.s32.totalorder %s12_s9, 4  }
 0x1d2   :  { %11 = sbr.rel (!%p9_p5) target bundleno = 1 (0x1), region = 88 }

</bundles_post_ra>
